<compile_context>
chip_gen: v5e
topology: v5e:2x2
jax: 0.10.0
libtpu: 0.0.40
codegen_flags: <defaults>
</compile_context>

<pallas_src>
import functools

import jax
import jax.numpy as jnp
from jax.experimental import pallas as pl
from jax.experimental.pallas import tpu as pltpu

LANE = 128          # TPU lane width: conv channels / matmul N padded to this.
EMBED_DIM = 32      # joint embedding size (true, un-padded)
VIS_CH = 16         # visual channels (true)
HID = 16            # LSTM hidden size per direction (true)
EMB_E = 16          # word-embedding size
VOCAB = 32

_VMEM_LIMIT = 32 * 1024 * 1024


def _round_up(x, m):
    return (x + m - 1) // m * m


def _pad2(x, rows, cols):
    return jnp.pad(x, ((0, rows - x.shape[0]), (0, cols - x.shape[1])))


# ----------------------------------------------------------------------------
# Pallas kernels
# ----------------------------------------------------------------------------
def _matmul_kernel(a_ref, w_ref, scale_ref, shift_ref, o_ref, acc_ref, *, relu):
    """Tiled o = relu?((a @ w) * scale + shift); f32 accumulator over K axis."""
    @pl.when(pl.program_id(2) == 0)
    def _():
        acc_ref[...] = jnp.zeros_like(acc_ref)

    acc_ref[...] += jnp.dot(a_ref[...], w_ref[...],
                            preferred_element_type=jnp.float32)

    @pl.when(pl.program_id(2) == pl.num_programs(2) - 1)
    def _():
        y = acc_ref[...] * scale_ref[...] + shift_ref[...]
        if relu:
            y = jnp.maximum(y, 0.0)
        o_ref[...] = y.astype(o_ref.dtype)


def _conv3x3_kernel(*refs, height, width, relu, has_res, pool):
    """3x3 conv (stride 1, pad 1) for one image / one Cout tile.

    x_ref:  (1, (H+2)*W, Kp)  width-im2col'ed + H-padded rows, bf16
    w_ref:  (3, Kp, tn)       per-dy weight slabs (rows = dx*Cin + ci), bf16
    The three height taps are accumulated from aligned row slices in VMEM.
    Epilogue fuses BN affine, optional residual add, ReLU and optional global
    mean pooling (f32 math throughout).
    """
    if has_res:
        x_ref, w_ref, scale_ref, shift_ref, res_ref, o_ref = refs
    else:
        x_ref, w_ref, scale_ref, shift_ref, o_ref = refs
        res_ref = None
    hw = height * width
    tn = w_ref.shape[2]

    acc = jnp.zeros((hw, tn), jnp.float32)
    for dy in range(3):
        a = x_ref[0, pl.ds(dy * width, hw), :]          # sublane-aligned slice
        acc = acc + jnp.dot(a, w_ref[dy], preferred_element_type=jnp.float32)

    y = acc * scale_ref[...] + shift_ref[...]
    if has_res:
        y = y + res_ref[0].astype(jnp.float32)
    if relu:
        y = jnp.maximum(y, 0.0)
    if pool:
        o_ref[0] = jnp.mean(y, axis=0, keepdims=True).astype(o_ref.dtype)
    else:
        o_ref[0] = y.astype(o_ref.dtype)


def _gather_row_kernel(ids_ref, tbl_ref, o_ref):
    """Embedding row gather; row selection is done by the scalar-prefetch
    driven index_map, the body just copies the selected row."""
    del ids_ref
    o_ref[...] = tbl_ref[...]


def _lstm_chunk_kernel(xp_ref, whh_ref, o_ref, h_sc, c_sc, *, hdim, tc):
    """A chunk of `tc` LSTM timesteps per grid step; both directions batched.

    xp_ref:  (tc, 2, B, 4H) f32 precomputed x@W_ih^T + (b_ih + b_hh)
             (direction 1 is already time-reversed)
    whh_ref: (2, H, 4H) bf16 recurrent weights (transposed torch layout)
    h/c carried across grid steps in VMEM scratch.  Gate order: i, f, g, o.
    """
    @pl.when(pl.program_id(0) == 0)
    def _():
        h_sc[...] = jnp.zeros_like(h_sc)
        c_sc[...] = jnp.zeros_like(c_sc)

    for t in range(tc):
        rec = jnp.einsum('dbh,dhg->dbg',
                         h_sc[...].astype(jnp.bfloat16), whh_ref[...],
                         preferred_element_type=jnp.float32)
        gates = xp_ref[t] + rec
        i_g = jax.nn.sigmoid(gates[..., 0 * hdim:1 * hdim])
        f_g = jax.nn.sigmoid(gates[..., 1 * hdim:2 * hdim])
        g_g = jnp.tanh(gates[..., 2 * hdim:3 * hdim])
        o_g = jax.nn.sigmoid(gates[..., 3 * hdim:4 * hdim])
        c = f_g * c_sc[...] + i_g * g_g
        h = o_g * jnp.tanh(c)
        c_sc[...] = c
        h_sc[...] = h
        o_ref[t] = h.astype(o_ref.dtype)
    # TODO(synk): pad H/4H to lane multiples and handle variable sequence
    # lengths (pack_padded_sequence) for full parity with PyTorch.


def _max_time_kernel(x_ref, o_ref):
    """Max over time: [T, 2, B, H] -> [2, B, H]."""
    o_ref[...] = jnp.max(x_ref[...], axis=0)


def _embed_norm_kernel(x_ref, w_ref, b_ref, o_ref):
    """Linear projection + L2 normalization (F.normalize, eps=1e-12)."""
    y = jnp.dot(x_ref[...], w_ref[...], preferred_element_type=jnp.float32)
    y = y + b_ref[...]
    n2 = jnp.sum(y * y, axis=-1, keepdims=True)
    o_ref[...] = y * jax.lax.rsqrt(jnp.maximum(n2, 1e-24))


# ----------------------------------------------------------------------------
# Kernel wrappers
# ----------------------------------------------------------------------------
def matmul_affine(a, w, scale, shift, *, relu=False, out_dtype=jnp.float32,
                  tm=256, tn=256, tk=512):
    """Tiled bf16 matmul with fused affine epilogue.  Pads M/N/K to tile
    multiples (N padded to lanes) and slices the logical shape back out."""
    m, k = a.shape
    k2, n = w.shape
    assert k == k2
    tm = min(tm, _round_up(m, 8))
    tn = min(tn, _round_up(n, LANE))
    tk = min(tk, _round_up(k, LANE))
    mp, kp, np_ = _round_up(m, tm), _round_up(k, tk), _round_up(n, tn)

    a_p = _pad2(a, mp, kp).astype(jnp.bfloat16)
    w_p = _pad2(w, kp, np_).astype(jnp.bfloat16)
    scale_p = _pad2(scale.reshape(1, n), 1, np_).astype(jnp.float32)
    shift_p = _pad2(shift.reshape(1, n), 1, np_).astype(jnp.float32)

    out = pl.pallas_call(
        functools.partial(_matmul_kernel, relu=relu),
        out_shape=jax.ShapeDtypeStruct((mp, np_), out_dtype),
        grid_spec=pltpu.PrefetchScalarGridSpec(
            num_scalar_prefetch=0,
            grid=(mp // tm, np_ // tn, kp // tk),
            in_specs=[pl.BlockSpec((tm, tk), lambda i, j, kk: (i, kk)),
                      pl.BlockSpec((tk, tn), lambda i, j, kk: (kk, j)),
                      pl.BlockSpec((1, tn), lambda i, j, kk: (0, j)),
                      pl.BlockSpec((1, tn), lambda i, j, kk: (0, j))],
            out_specs=pl.BlockSpec((tm, tn), lambda i, j, kk: (i, j)),
            scratch_shapes=[pltpu.VMEM((tm, tn), jnp.float32)]),
        compiler_params=pltpu.CompilerParams(
            dimension_semantics=("parallel", "parallel", "arbitrary"),
            vmem_limit_bytes=_VMEM_LIMIT),
        cost_estimate=pl.CostEstimate(
            flops=2 * mp * np_ * kp, transcendentals=0,
            bytes_accessed=mp * kp * 2 + kp * np_ * 2 + mp * np_ * 4),
    )(a_p, w_p, scale_p, shift_p)
    return out[:m, :n]


def conv3x3_bn(x_nhwc, cw, *, relu=True, residual=None, pool=False):
    """3x3 conv (stride 1, pad 1) + folded BN, optional residual/ReLU/mean-pool
    fused in the kernel epilogue.  Activations stay channel-padded bf16."""
    b, h, w, c = x_nhwc.shape
    assert w % 8 == 0
    kp = cw['w'].shape[1]
    coutp = cw['w'].shape[2]
    assert 3 * c <= kp
    hw = h * w

    # Width-direction im2col (3x, not 9x) in XLA; height taps handled in-kernel.
    xp = jnp.pad(x_nhwc, ((0, 0), (0, 0), (1, 1), (0, 0)))
    xw = jnp.concatenate(
        [xp[:, :, 0:w], xp[:, :, 1:w + 1], xp[:, :, 2:w + 2]], axis=-1)
    xw = jnp.pad(xw, ((0, 0), (1, 1), (0, 0), (0, kp - 3 * c)))
    xw = xw.reshape(b, (h + 2) * w, kp).astype(jnp.bfloat16)

    tn = LANE
    in_specs = [
        pl.BlockSpec((1, (h + 2) * w, kp), lambda bi, j: (bi, 0, 0)),
        pl.BlockSpec((3, kp, tn), lambda bi, j: (0, 0, j)),
        pl.BlockSpec((1, tn), lambda bi, j: (0, j)),
        pl.BlockSpec((1, tn), lambda bi, j: (0, j)),
    ]
    inputs = [xw, cw['w'], cw['scale'], cw['shift']]
    if residual is not None:
        in_specs.append(pl.BlockSpec((1, hw, tn), lambda bi, j: (bi, 0, j)))
        inputs.append(residual.reshape(b, hw, coutp))

    if pool:
        out_shape = jax.ShapeDtypeStruct((b, 1, coutp), jnp.float32)
        out_spec = pl.BlockSpec((1, 1, tn), lambda bi, j: (bi, 0, j))
    else:
        out_shape = jax.ShapeDtypeStruct((b, hw, coutp), jnp.bfloat16)
        out_spec = pl.BlockSpec((1, hw, tn), lambda bi, j: (bi, 0, j))

    out = pl.pallas_call(
        functools.partial(_conv3x3_kernel, height=h, width=w, relu=relu,
                          has_res=residual is not None, pool=pool),
        out_shape=out_shape,
        grid_spec=pltpu.PrefetchScalarGridSpec(
            num_scalar_prefetch=0,
            grid=(b, coutp // tn),
            in_specs=in_specs,
            out_specs=out_spec),
        compiler_params=pltpu.CompilerParams(
            dimension_semantics=("parallel", "parallel"),
            vmem_limit_bytes=_VMEM_LIMIT),
        cost_estimate=pl.CostEstimate(
            flops=2 * b * hw * kp * coutp * 3, transcendentals=0,
            bytes_accessed=(b * (h + 2) * w * kp * 2 + 3 * kp * coutp * 2
                            + b * hw * coutp * 2)),
    )(*inputs)

    if pool:
        return out.reshape(b, coutp)          # [B, Cp] f32 (padded chans == 0)
    return out.reshape(b, h, w, coutp)


def embedding_gather(ids, table3):
    """Gather embedding rows via scalar-prefetched token ids (no one-hot)."""
    n = ids.shape[0]
    _, _, e = table3.shape
    out = pl.pallas_call(
        _gather_row_kernel,
        out_shape=jax.ShapeDtypeStruct((n, 1, e), table3.dtype),
        grid_spec=pltpu.PrefetchScalarGridSpec(
            num_scalar_prefetch=1,
            grid=(n,),
            in_specs=[pl.BlockSpec((1, 1, e), lambda i, ids_ref: (ids_ref[i], 0, 0))],
            out_specs=pl.BlockSpec((1, 1, e), lambda i, ids_ref: (i, 0, 0))),
        compiler_params=pltpu.CompilerParams(
            dimension_semantics=("arbitrary",)),
    )(ids, table3)
    return out.reshape(n, e)


def max_over_time(x_tdbh):
    t, d, b, h = x_tdbh.shape
    return pl.pallas_call(
        _max_time_kernel,
        out_shape=jax.ShapeDtypeStruct((d, b, h), jnp.float32),
    )(x_tdbh)


def embed_project(x, w_p, b_p):
    m = x.shape[0]
    n = w_p.shape[1]
    return pl.pallas_call(
        _embed_norm_kernel,
        out_shape=jax.ShapeDtypeStruct((m, n), jnp.float32),
    )(x.astype(jnp.bfloat16), w_p, b_p)


# ----------------------------------------------------------------------------
# Model pieces
# ----------------------------------------------------------------------------
def visual_model(images_nchw, vp):
    """Stem conv + one BasicBlock; residual/ReLU/global-mean-pool fused."""
    x = jnp.transpose(images_nchw, (0, 2, 3, 1)).astype(jnp.bfloat16)   # NHWC
    x = conv3x3_bn(x, vp['conv1'], relu=True)                           # [B,H,W,128]
    # TODO(synk): real ViTAA uses a ResNet-50 stem (7x7/stride-2 + maxpool) and
    # stride-2 downsample stages; this toy stand-in keeps stride-1 3x3 convs.
    y = conv3x3_bn(x, vp['block1'], relu=True)
    pooled = conv3x3_bn(y, vp['block2'], relu=True, residual=x, pool=True)
    return pooled                                                       # [B,128] f32


def textual_model(tokens, tp):
    """Embedding gather + bidirectional LSTM (chunked, direction-batched)
    + max-over-time pooling."""
    b, t = tokens.shape
    hid = tp['w_hh_stack'].shape[1]

    ids = tokens.reshape(-1).astype(jnp.int32)
    emb = embedding_gather(ids, tp['emb_tbl'])                          # [B*T, E]
    e = emb.shape[-1]
    x_tb = jnp.transpose(emb.reshape(b, t, e), (1, 0, 2)).reshape(t * b, e)

    # Input projections for both directions in one tiled matmul: [T*B, 8H].
    xp = matmul_affine(x_tb, tp['w_ih_cat'], tp['ones_cat'], tp['b_cat'],
                       relu=False, out_dtype=jnp.float32)
    xp = xp.reshape(t, b, 8 * hid)
    # dir 0 = forward, dir 1 = backward (time-reversed gate pre-activations)
    xp_stack = jnp.stack([xp[..., :4 * hid], xp[..., 4 * hid:][::-1]], axis=1)

    tc = t if t <= 8 else 8            # timesteps per grid step
    assert t % tc == 0
    out = pl.pallas_call(
        functools.partial(_lstm_chunk_kernel, hdim=hid, tc=tc),
        out_shape=jax.ShapeDtypeStruct((t, 2, b, hid), jnp.float32),
        grid_spec=pltpu.PrefetchScalarGridSpec(
            num_scalar_prefetch=0,
            grid=(t // tc,),
            in_specs=[pl.BlockSpec((tc, 2, b, 4 * hid), lambda i: (i, 0, 0, 0)),
                      pl.BlockSpec((2, hid, 4 * hid), lambda i: (0, 0, 0))],
            out_specs=pl.BlockSpec((tc, 2, b, hid), lambda i: (i, 0, 0, 0)),
            scratch_shapes=[pltpu.VMEM((2, b, hid), jnp.float32),
                            pltpu.VMEM((2, b, hid), jnp.float32)]),
        compiler_params=pltpu.CompilerParams(
            dimension_semantics=("arbitrary",),
            vmem_limit_bytes=_VMEM_LIMIT),
    )(xp_stack, tp['w_hh_stack'])

    pooled = max_over_time(out)        # [2, B, H]; max is time-order invariant
    return jnp.transpose(pooled, (1, 0, 2)).reshape(b, 2 * hid)   # fwd || bwd


def vitaa_forward(images, captions, attributes, prep):
    """Inference path of ViTAA.forward (self.training == False)."""
    visual_feat = visual_model(images, prep['visual'])                  # [B, 128]
    # Captions + attributes share the text encoder: batch them into one pass.
    tokens = jnp.concatenate([captions, attributes], axis=0)
    text_feat = textual_model(tokens, prep['textual'])                  # [2B, 2H]

    v_e = embed_project(visual_feat, prep['embed']['v_w'], prep['embed']['v_b'])
    t_e = embed_project(text_feat, prep['embed']['t_w'], prep['embed']['t_b'])
    nb = captions.shape[0]
    # TODO(synk): training-only losses (cross-modal align / identity losses)
    # and variable-length caption handling are not implemented; inference only.
    return {
        'visual_embed': v_e[:, :EMBED_DIM],
        'textual_embed': t_e[:nb, :EMBED_DIM],
        'attribute_embed': t_e[nb:, :EMBED_DIM],
    }


# ----------------------------------------------------------------------------
# Parameter init (torch layouts) and one-time device-side preparation
# ----------------------------------------------------------------------------
def init_params(key):
    cv, hid, emb_e, vocab, d = VIS_CH, HID, EMB_E, VOCAB, EMBED_DIM
    ks = jax.random.split(key, 19)

    def bn(k, c):
        g, bta, mn, vr = jax.random.split(k, 4)
        return (jax.random.normal(g, (c,)) * 0.1 + 1.0,
                jax.random.normal(bta, (c,)) * 0.1,
                jax.random.normal(mn, (c,)) * 0.1,
                jnp.abs(jax.random.normal(vr, (c,))) * 0.1 + 1.0)

    visual = dict(
        conv1_w=jax.random.normal(ks[0], (cv, 3, 3, 3)) * 0.1,
        bn1=bn(ks[1], cv),
        block_w1=jax.random.normal(ks[2], (cv, cv, 3, 3)) * 0.1,
        block_bn1=bn(ks[3], cv),
        block_w2=jax.random.normal(ks[4], (cv, cv, 3, 3)) * 0.1,
        block_bn2=bn(ks[5], cv),
    )
    textual = dict(
        emb=jax.random.normal(ks[6], (vocab, emb_e)) * 0.1,
        w_ih_f=jax.random.normal(ks[7], (4 * hid, emb_e)) * 0.1,
        w_hh_f=jax.random.normal(ks[8], (4 * hid, hid)) * 0.1,
        b_ih_f=jax.random.normal(ks[9], (4 * hid,)) * 0.1,
        b_hh_f=jax.random.normal(ks[10], (4 * hid,)) * 0.1,
        w_ih_b=jax.random.normal(ks[11], (4 * hid, emb_e)) * 0.1,
        w_hh_b=jax.random.normal(ks[12], (4 * hid, hid)) * 0.1,
        b_ih_b=jax.random.normal(ks[13], (4 * hid,)) * 0.1,
        b_hh_b=jax.random.normal(ks[14], (4 * hid,)) * 0.1,
    )
    embed = dict(
        v_w=jax.random.normal(ks[15], (cv, d)) * 0.1,
        v_b=jax.random.normal(ks[16], (d,)) * 0.1,
        t_w=jax.random.normal(ks[17], (2 * hid, d)) * 0.1,
        t_b=jax.random.normal(ks[18], (d,)) * 0.1,
    )
    return dict(visual=visual, textual=textual, embed=embed)


def _prep_conv(w_torch, bn, cin_used):
    """Fold BN, pad channels to 128 lanes, reorder to per-dy [3, 3*Cin, Coutp]."""
    cout, cin_true, kh, kw = w_torch.shape
    assert (kh, kw) == (3, 3)
    w = jnp.transpose(w_torch, (2, 3, 1, 0))                # [dy, dx, Cin, Cout]
    w = jnp.pad(w, ((0, 0), (0, 0),
                    (0, cin_used - cin_true), (0, LANE - cout)))
    w = w.reshape(3, 3 * cin_used, LANE)                    # rows = dx*Cin + ci
    kp = _round_up(3 * cin_used, LANE)
    w = jnp.pad(w, ((0, 0), (0, kp - 3 * cin_used), (0, 0))).astype(jnp.bfloat16)

    gamma, beta, mean, var = bn
    scale = gamma / jnp.sqrt(var + 1e-5)
    shift = beta - mean * scale
    scale = jnp.pad(scale, (0, LANE - cout)).reshape(1, LANE).astype(jnp.float32)
    shift = jnp.pad(shift, (0, LANE - cout)).reshape(1, LANE).astype(jnp.float32)
    return dict(w=w, scale=scale, shift=shift)


def prepare_params(params):
    """One-time weight padding / stacking / bf16 casting (hoisted out of the
    jitted forward).  All leaves are arrays so the dict can be a jit arg."""
    v, t, e = params['visual'], params['textual'], params['embed']
    hid = t['w_hh_f'].shape[1]

    visual = dict(
        conv1=_prep_conv(v['conv1_w'], v['bn1'], cin_used=3),
        block1=_prep_conv(v['block_w1'], v['block_bn1'], cin_used=LANE),
        block2=_prep_conv(v['block_w2'], v['block_bn2'], cin_used=LANE),
    )
    textual = dict(
        emb_tbl=t['emb'][:, None, :].astype(jnp.float32),                # [V,1,E]
        w_ih_cat=jnp.concatenate([t['w_ih_f'].T, t['w_ih_b'].T], axis=1),  # [E,8H]
        b_cat=jnp.concatenate([t['b_ih_f'] + t['b_hh_f'],
                               t['b_ih_b'] + t['b_hh_b']]),              # [8H]
        ones_cat=jnp.ones((8 * hid,), jnp.float32),
        w_hh_stack=jnp.stack([t['w_hh_f'].T, t['w_hh_b'].T],
                             axis=0).astype(jnp.bfloat16),               # [2,H,4H]
    )

    def _prep_head(w, b):
        kin, dout = w.shape
        wp = _pad2(w, _round_up(kin, 8), LANE).astype(jnp.bfloat16)
        bp = jnp.pad(b, (0, LANE - dout)).reshape(1, LANE).astype(jnp.float32)
        return wp, bp

    # Visual pooled feature is LANE-wide (padded channels are exactly zero).
    v_w_full = jnp.pad(e['v_w'], ((0, LANE - e['v_w'].shape[0]), (0, 0)))
    v_wp, v_bp = _prep_head(v_w_full, e['v_b'])
    t_wp, t_bp = _prep_head(e['t_w'], e['t_b'])
    embed = dict(v_w=v_wp, v_b=v_bp, t_w=t_wp, t_b=t_bp)
    return dict(visual=visual, textual=textual, embed=embed)


if __name__ == "__main__":
    key = jax.random.PRNGKey(0)
    pkey, ikey, ckey, akey = jax.random.split(key, 4)
    params = init_params(pkey)
    prep = prepare_params(params)

    images = jax.random.normal(ikey, (2, 3, 16, 16), jnp.float32)   # NCHW
    captions = jax.random.randint(ckey, (2, 8), 0, VOCAB)           # token ids
    attributes = jax.random.randint(akey, (2, 8), 0, VOCAB)         # attribute ids

    forward = jax.jit(vitaa_forward)
    out = forward(images, captions, attributes, prep)
    out = jax.tree_util.tree_map(jax.block_until_ready, out)
    assert out['visual_embed'].shape == (2, EMBED_DIM)
    assert out['textual_embed'].shape == (2, EMBED_DIM)
    assert out['attribute_embed'].shape == (2, EMBED_DIM)
    print("KERNEL_OK")
</pallas_src>

<mosaic_0001>
module attributes {stable_mosaic.version = 11 : i64} {
  func.func @_conv3x3_kernel(%arg0: i32, %arg1: i32, %arg2: memref<1x288x128xbf16, #tpu.memory_space<vmem>>, %arg3: memref<3x128x128xbf16, #tpu.memory_space<vmem>>, %arg4: memref<1x128xf32, #tpu.memory_space<vmem>>, %arg5: memref<1x128xf32, #tpu.memory_space<vmem>>, %arg6: memref<1x256x128xbf16, #tpu.memory_space<vmem>>) attributes {dimension_semantics = [#tpu.dimension_semantics<parallel>, #tpu.dimension_semantics<parallel>], iteration_bounds = array<i64: 2, 1>, scalar_prefetch = 0 : i64, scratch_operands = 0 : i64, tpu.core_type = #tpu.core_type<tc>, window_params = [{transform_indices = @transform_0, window_bounds = array<i64: 1, 288, 128>}, {transform_indices = @transform_1, window_bounds = array<i64: 3, 128, 128>}, {transform_indices = @transform_2, window_bounds = array<i64: 1, 128>}, {transform_indices = @transform_3, window_bounds = array<i64: 1, 128>}, {transform_indices = @transform_4, window_bounds = array<i64: 1, 256, 128>}]} {
    %cst = arith.constant 0.000000e+00 : f32
    %0 = vector.broadcast %cst : f32 to vector<256x128xf32>
    %c0 = arith.constant 0 : index
    %c0_0 = arith.constant 0 : index
    %c0_1 = arith.constant 0 : index
    %1 = vector.load %arg2[%c0, %c0_0, %c0_1] : memref<1x288x128xbf16, #tpu.memory_space<vmem>>, vector<1x256x128xbf16>
    %2 = vector.shape_cast %1 : vector<1x256x128xbf16> to vector<256x128xbf16>
    %c0_2 = arith.constant 0 : index
    %c0_3 = arith.constant 0 : index
    %c0_4 = arith.constant 0 : index
    %3 = vector.load %arg3[%c0_2, %c0_3, %c0_4] : memref<3x128x128xbf16, #tpu.memory_space<vmem>>, vector<1x128x128xbf16>
    %4 = vector.shape_cast %3 : vector<1x128x128xbf16> to vector<128x128xbf16>
    %cst_5 = arith.constant dense<0.000000e+00> : vector<256x128xf32>
    %5 = tpu.matmul %2, %4, %cst_5 {dimension_numbers = #tpu.dot_dimension_numbers<[1], [0], [0], [1], [0, 0, 1, 1], [], []>} : vector<256x128xbf16>, vector<128x128xbf16>, vector<256x128xf32> -> vector<256x128xf32>
    %6 = arith.addf %0, %5 : vector<256x128xf32>
    %c0_6 = arith.constant 0 : index
    %c16 = arith.constant 16 : index
    %c0_7 = arith.constant 0 : index
    %7 = vector.load %arg2[%c0_6, %c16, %c0_7] : memref<1x288x128xbf16, #tpu.memory_space<vmem>>, vector<1x256x128xbf16>
    %8 = vector.shape_cast %7 : vector<1x256x128xbf16> to vector<256x128xbf16>
    %c1 = arith.constant 1 : index
    %c0_8 = arith.constant 0 : index
    %c0_9 = arith.constant 0 : index
    %9 = vector.load %arg3[%c1, %c0_8, %c0_9] : memref<3x128x128xbf16, #tpu.memory_space<vmem>>, vector<1x128x128xbf16>
    %10 = vector.shape_cast %9 : vector<1x128x128xbf16> to vector<128x128xbf16>
    %cst_10 = arith.constant dense<0.000000e+00> : vector<256x128xf32>
    %11 = tpu.matmul %8, %10, %cst_10 {dimension_numbers = #tpu.dot_dimension_numbers<[1], [0], [0], [1], [0, 0, 1, 1], [], []>} : vector<256x128xbf16>, vector<128x128xbf16>, vector<256x128xf32> -> vector<256x128xf32>
    %12 = arith.addf %6, %11 : vector<256x128xf32>
    %c0_11 = arith.constant 0 : index
    %c32 = arith.constant 32 : index
    %c0_12 = arith.constant 0 : index
    %13 = vector.load %arg2[%c0_11, %c32, %c0_12] : memref<1x288x128xbf16, #tpu.memory_space<vmem>>, vector<1x256x128xbf16>
    %14 = vector.shape_cast %13 : vector<1x256x128xbf16> to vector<256x128xbf16>
    %c2 = arith.constant 2 : index
    %c0_13 = arith.constant 0 : index
    %c0_14 = arith.constant 0 : index
    %15 = vector.load %arg3[%c2, %c0_13, %c0_14] : memref<3x128x128xbf16, #tpu.memory_space<vmem>>, vector<1x128x128xbf16>
    %16 = vector.shape_cast %15 : vector<1x128x128xbf16> to vector<128x128xbf16>
    %cst_15 = arith.constant dense<0.000000e+00> : vector<256x128xf32>
    %17 = tpu.matmul %14, %16, %cst_15 {dimension_numbers = #tpu.dot_dimension_numbers<[1], [0], [0], [1], [0, 0, 1, 1], [], []>} : vector<256x128xbf16>, vector<128x128xbf16>, vector<256x128xf32> -> vector<256x128xf32>
    %18 = arith.addf %12, %17 : vector<256x128xf32>
    %c0_16 = arith.constant 0 : index
    %c0_17 = arith.constant 0 : index
    %19 = vector.load %arg4[%c0_16, %c0_17] : memref<1x128xf32, #tpu.memory_space<vmem>>, vector<1x128xf32>
    %20 = vector.broadcast %19 : vector<1x128xf32> to vector<256x128xf32>
    %21 = arith.mulf %18, %20 : vector<256x128xf32>
    %c0_18 = arith.constant 0 : index
    %c0_19 = arith.constant 0 : index
    %22 = vector.load %arg5[%c0_18, %c0_19] : memref<1x128xf32, #tpu.memory_space<vmem>>, vector<1x128xf32>
    %23 = vector.broadcast %22 : vector<1x128xf32> to vector<256x128xf32>
    %24 = arith.addf %21, %23 : vector<256x128xf32>
    %cst_20 = arith.constant 0.000000e+00 : f32
    %25 = vector.broadcast %cst_20 : f32 to vector<256x128xf32>
    %26 = arith.maximumf %24, %25 : vector<256x128xf32>
    %27 = arith.truncf %26 : vector<256x128xf32> to vector<256x128xbf16>
    %c0_21 = arith.constant 0 : index
    %c0_22 = arith.constant 0 : index
    %c0_23 = arith.constant 0 : index
    %28 = vector.load %arg6[%c0_21, %c0_22, %c0_23] : memref<1x256x128xbf16, #tpu.memory_space<vmem>>, vector<1x256x128xbf16>
    %29 = vector.shape_cast %28 : vector<1x256x128xbf16> to vector<256x128xbf16>
    %30 = vector.shape_cast %27 : vector<256x128xbf16> to vector<1x256x128xbf16>
    tpu.vector_store %arg6[%c0_21, %c0_22, %c0_23], %30 {strides = array<i32>} : memref<1x256x128xbf16, #tpu.memory_space<vmem>>, vector<1x256x128xbf16>,
    return
  }
  func.func @transform_0(%arg0: i32, %arg1: i32) -> (i32, i32, i32) {
    %c0_i32 = arith.constant 0 : i32
    %c0_i32_0 = arith.constant 0 : i32
    %c0_i32_1 = arith.constant 0 : i32
    return %arg0, %c0_i32, %c0_i32_0 : i32, i32, i32
  }
  func.func @transform_1(%arg0: i32, %arg1: i32) -> (i32, i32, i32) {
    %c0_i32 = arith.constant 0 : i32
    %c0_i32_0 = arith.constant 0 : i32
    %c0_i32_1 = arith.constant 0 : i32
    return %c0_i32, %c0_i32_0, %arg1 : i32, i32, i32
  }
  func.func @transform_2(%arg0: i32, %arg1: i32) -> (i32, i32) {
    %c0_i32 = arith.constant 0 : i32
    %c0_i32_0 = arith.constant 0 : i32
    return %c0_i32, %arg1 : i32, i32
  }
  func.func @transform_3(%arg0: i32, %arg1: i32) -> (i32, i32) {
    %c0_i32 = arith.constant 0 : i32
    %c0_i32_0 = arith.constant 0 : i32
    return %c0_i32, %arg1 : i32, i32
  }
  func.func @transform_4(%arg0: i32, %arg1: i32) -> (i32, i32, i32) {
    %c0_i32 = arith.constant 0 : i32
    %c0_i32_0 = arith.constant 0 : i32
    return %arg0, %c0_i32, %arg1 : i32, i32, i32
  }
}

module attributes {stable_mosaic.version = 11 : i64} {
  func.func @_conv3x3_kernel(%arg0: i32, %arg1: i32, %arg2: memref<1x288x384xbf16, #tpu.memory_space<vmem>>, %arg3: memref<3x384x128xbf16, #tpu.memory_space<vmem>>, %arg4: memref<1x128xf32, #tpu.memory_space<vmem>>, %arg5: memref<1x128xf32, #tpu.memory_space<vmem>>, %arg6: memref<1x256x128xbf16, #tpu.memory_space<vmem>>) attributes {dimension_semantics = [#tpu.dimension_semantics<parallel>, #tpu.dimension_semantics<parallel>], iteration_bounds = array<i64: 2, 1>, scalar_prefetch = 0 : i64, scratch_operands = 0 : i64, tpu.core_type = #tpu.core_type<tc>, window_params = [{transform_indices = @transform_0, window_bounds = array<i64: 1, 288, 384>}, {transform_indices = @transform_1, window_bounds = array<i64: 3, 384, 128>}, {transform_indices = @transform_2, window_bounds = array<i64: 1, 128>}, {transform_indices = @transform_3, window_bounds = array<i64: 1, 128>}, {transform_indices = @transform_4, window_bounds = array<i64: 1, 256, 128>}]} {
    %cst = arith.constant 0.000000e+00 : f32
    %0 = vector.broadcast %cst : f32 to vector<256x128xf32>
    %c0 = arith.constant 0 : index
    %c0_0 = arith.constant 0 : index
    %c0_1 = arith.constant 0 : index
    %1 = vector.load %arg2[%c0, %c0_0, %c0_1] : memref<1x288x384xbf16, #tpu.memory_space<vmem>>, vector<1x256x384xbf16>
    %2 = vector.shape_cast %1 : vector<1x256x384xbf16> to vector<256x384xbf16>
    %c0_2 = arith.constant 0 : index
    %c0_3 = arith.constant 0 : index
    %c0_4 = arith.constant 0 : index
    %3 = vector.load %arg3[%c0_2, %c0_3, %c0_4] : memref<3x384x128xbf16, #tpu.memory_space<vmem>>, vector<1x384x128xbf16>
    %4 = vector.shape_cast %3 : vector<1x384x128xbf16> to vector<384x128xbf16>
    %cst_5 = arith.constant dense<0.000000e+00> : vector<256x128xf32>
    %5 = tpu.matmul %2, %4, %cst_5 {dimension_numbers = #tpu.dot_dimension_numbers<[1], [0], [0], [1], [0, 0, 1, 1], [], []>} : vector<256x384xbf16>, vector<384x128xbf16>, vector<256x128xf32> -> vector<256x128xf32>
    %6 = arith.addf %0, %5 : vector<256x128xf32>
    %c0_6 = arith.constant 0 : index
    %c16 = arith.constant 16 : index
    %c0_7 = arith.constant 0 : index
    %7 = vector.load %arg2[%c0_6, %c16, %c0_7] : memref<1x288x384xbf16, #tpu.memory_space<vmem>>, vector<1x256x384xbf16>
    %8 = vector.shape_cast %7 : vector<1x256x384xbf16> to vector<256x384xbf16>
    %c1 = arith.constant 1 : index
    %c0_8 = arith.constant 0 : index
    %c0_9 = arith.constant 0 : index
    %9 = vector.load %arg3[%c1, %c0_8, %c0_9] : memref<3x384x128xbf16, #tpu.memory_space<vmem>>, vector<1x384x128xbf16>
    %10 = vector.shape_cast %9 : vector<1x384x128xbf16> to vector<384x128xbf16>
    %cst_10 = arith.constant dense<0.000000e+00> : vector<256x128xf32>
    %11 = tpu.matmul %8, %10, %cst_10 {dimension_numbers = #tpu.dot_dimension_numbers<[1], [0], [0], [1], [0, 0, 1, 1], [], []>} : vector<256x384xbf16>, vector<384x128xbf16>, vector<256x128xf32> -> vector<256x128xf32>
    %12 = arith.addf %6, %11 : vector<256x128xf32>
    %c0_11 = arith.constant 0 : index
    %c32 = arith.constant 32 : index
    %c0_12 = arith.constant 0 : index
    %13 = vector.load %arg2[%c0_11, %c32, %c0_12] : memref<1x288x384xbf16, #tpu.memory_space<vmem>>, vector<1x256x384xbf16>
    %14 = vector.shape_cast %13 : vector<1x256x384xbf16> to vector<256x384xbf16>
    %c2 = arith.constant 2 : index
    %c0_13 = arith.constant 0 : index
    %c0_14 = arith.constant 0 : index
    %15 = vector.load %arg3[%c2, %c0_13, %c0_14] : memref<3x384x128xbf16, #tpu.memory_space<vmem>>, vector<1x384x128xbf16>
    %16 = vector.shape_cast %15 : vector<1x384x128xbf16> to vector<384x128xbf16>
    %cst_15 = arith.constant dense<0.000000e+00> : vector<256x128xf32>
    %17 = tpu.matmul %14, %16, %cst_15 {dimension_numbers = #tpu.dot_dimension_numbers<[1], [0], [0], [1], [0, 0, 1, 1], [], []>} : vector<256x384xbf16>, vector<384x128xbf16>, vector<256x128xf32> -> vector<256x128xf32>
    %18 = arith.addf %12, %17 : vector<256x128xf32>
    %c0_16 = arith.constant 0 : index
    %c0_17 = arith.constant 0 : index
    %19 = vector.load %arg4[%c0_16, %c0_17] : memref<1x128xf32, #tpu.memory_space<vmem>>, vector<1x128xf32>
    %20 = vector.broadcast %19 : vector<1x128xf32> to vector<256x128xf32>
    %21 = arith.mulf %18, %20 : vector<256x128xf32>
    %c0_18 = arith.constant 0 : index
    %c0_19 = arith.constant 0 : index
    %22 = vector.load %arg5[%c0_18, %c0_19] : memref<1x128xf32, #tpu.memory_space<vmem>>, vector<1x128xf32>
    %23 = vector.broadcast %22 : vector<1x128xf32> to vector<256x128xf32>
    %24 = arith.addf %21, %23 : vector<256x128xf32>
    %cst_20 = arith.constant 0.000000e+00 : f32
    %25 = vector.broadcast %cst_20 : f32 to vector<256x128xf32>
    %26 = arith.maximumf %24, %25 : vector<256x128xf32>
    %27 = arith.truncf %26 : vector<256x128xf32> to vector<256x128xbf16>
    %c0_21 = arith.constant 0 : index
    %c0_22 = arith.constant 0 : index
    %c0_23 = arith.constant 0 : index
    %28 = vector.load %arg6[%c0_21, %c0_22, %c0_23] : memref<1x256x128xbf16, #tpu.memory_space<vmem>>, vector<1x256x128xbf16>
    %29 = vector.shape_cast %28 : vector<1x256x128xbf16> to vector<256x128xbf16>
    %30 = vector.shape_cast %27 : vector<256x128xbf16> to vector<1x256x128xbf16>
    tpu.vector_store %arg6[%c0_21, %c0_22, %c0_23], %30 {strides = array<i32>} : memref<1x256x128xbf16, #tpu.memory_space<vmem>>, vector<1x256x128xbf16>,
    return
  }
  func.func @transform_0(%arg0: i32, %arg1: i32) -> (i32, i32, i32) {
    %c0_i32 = arith.constant 0 : i32
    %c0_i32_0 = arith.constant 0 : i32
    %c0_i32_1 = arith.constant 0 : i32
    return %arg0, %c0_i32, %c0_i32_0 : i32, i32, i32
  }
  func.func @transform_1(%arg0: i32, %arg1: i32) -> (i32, i32, i32) {
    %c0_i32 = arith.constant 0 : i32
    %c0_i32_0 = arith.constant 0 : i32
    %c0_i32_1 = arith.constant 0 : i32
    return %c0_i32, %c0_i32_0, %arg1 : i32, i32, i32
  }
  func.func @transform_2(%arg0: i32, %arg1: i32) -> (i32, i32) {
    %c0_i32 = arith.constant 0 : i32
    %c0_i32_0 = arith.constant 0 : i32
    return %c0_i32, %arg1 : i32, i32
  }
  func.func @transform_3(%arg0: i32, %arg1: i32) -> (i32, i32) {
    %c0_i32 = arith.constant 0 : i32
    %c0_i32_0 = arith.constant 0 : i32
    return %c0_i32, %arg1 : i32, i32
  }
  func.func @transform_4(%arg0: i32, %arg1: i32) -> (i32, i32, i32) {
    %c0_i32 = arith.constant 0 : i32
    %c0_i32_0 = arith.constant 0 : i32
    return %arg0, %c0_i32, %arg1 : i32, i32, i32
  }
}

module attributes {stable_mosaic.version = 11 : i64} {
  func.func @_conv3x3_kernel(%arg0: i32, %arg1: i32, %arg2: memref<1x288x384xbf16, #tpu.memory_space<vmem>>, %arg3: memref<3x384x128xbf16, #tpu.memory_space<vmem>>, %arg4: memref<1x128xf32, #tpu.memory_space<vmem>>, %arg5: memref<1x128xf32, #tpu.memory_space<vmem>>, %arg6: memref<1x256x128xbf16, #tpu.memory_space<vmem>>, %arg7: memref<1x1x128xf32, #tpu.memory_space<vmem>>) attributes {dimension_semantics = [#tpu.dimension_semantics<parallel>, #tpu.dimension_semantics<parallel>], iteration_bounds = array<i64: 2, 1>, scalar_prefetch = 0 : i64, scratch_operands = 0 : i64, tpu.core_type = #tpu.core_type<tc>, window_params = [{transform_indices = @transform_0, window_bounds = array<i64: 1, 288, 384>}, {transform_indices = @transform_1, window_bounds = array<i64: 3, 384, 128>}, {transform_indices = @transform_2, window_bounds = array<i64: 1, 128>}, {transform_indices = @transform_3, window_bounds = array<i64: 1, 128>}, {transform_indices = @transform_4, window_bounds = array<i64: 1, 256, 128>}, {transform_indices = @transform_5, window_bounds = array<i64: 1, 1, 128>}]} {
    %cst = arith.constant 0.000000e+00 : f32
    %0 = vector.broadcast %cst : f32 to vector<256x128xf32>
    %c0 = arith.constant 0 : index
    %c0_0 = arith.constant 0 : index
    %c0_1 = arith.constant 0 : index
    %1 = vector.load %arg2[%c0, %c0_0, %c0_1] : memref<1x288x384xbf16, #tpu.memory_space<vmem>>, vector<1x256x384xbf16>
    %2 = vector.shape_cast %1 : vector<1x256x384xbf16> to vector<256x384xbf16>
    %c0_2 = arith.constant 0 : index
    %c0_3 = arith.constant 0 : index
    %c0_4 = arith.constant 0 : index
    %3 = vector.load %arg3[%c0_2, %c0_3, %c0_4] : memref<3x384x128xbf16, #tpu.memory_space<vmem>>, vector<1x384x128xbf16>
    %4 = vector.shape_cast %3 : vector<1x384x128xbf16> to vector<384x128xbf16>
    %cst_5 = arith.constant dense<0.000000e+00> : vector<256x128xf32>
    %5 = tpu.matmul %2, %4, %cst_5 {dimension_numbers = #tpu.dot_dimension_numbers<[1], [0], [0], [1], [0, 0, 1, 1], [], []>} : vector<256x384xbf16>, vector<384x128xbf16>, vector<256x128xf32> -> vector<256x128xf32>
    %6 = arith.addf %0, %5 : vector<256x128xf32>
    %c0_6 = arith.constant 0 : index
    %c16 = arith.constant 16 : index
    %c0_7 = arith.constant 0 : index
    %7 = vector.load %arg2[%c0_6, %c16, %c0_7] : memref<1x288x384xbf16, #tpu.memory_space<vmem>>, vector<1x256x384xbf16>
    %8 = vector.shape_cast %7 : vector<1x256x384xbf16> to vector<256x384xbf16>
    %c1 = arith.constant 1 : index
    %c0_8 = arith.constant 0 : index
    %c0_9 = arith.constant 0 : index
    %9 = vector.load %arg3[%c1, %c0_8, %c0_9] : memref<3x384x128xbf16, #tpu.memory_space<vmem>>, vector<1x384x128xbf16>
    %10 = vector.shape_cast %9 : vector<1x384x128xbf16> to vector<384x128xbf16>
    %cst_10 = arith.constant dense<0.000000e+00> : vector<256x128xf32>
    %11 = tpu.matmul %8, %10, %cst_10 {dimension_numbers = #tpu.dot_dimension_numbers<[1], [0], [0], [1], [0, 0, 1, 1], [], []>} : vector<256x384xbf16>, vector<384x128xbf16>, vector<256x128xf32> -> vector<256x128xf32>
    %12 = arith.addf %6, %11 : vector<256x128xf32>
    %c0_11 = arith.constant 0 : index
    %c32 = arith.constant 32 : index
    %c0_12 = arith.constant 0 : index
    %13 = vector.load %arg2[%c0_11, %c32, %c0_12] : memref<1x288x384xbf16, #tpu.memory_space<vmem>>, vector<1x256x384xbf16>
    %14 = vector.shape_cast %13 : vector<1x256x384xbf16> to vector<256x384xbf16>
    %c2 = arith.constant 2 : index
    %c0_13 = arith.constant 0 : index
    %c0_14 = arith.constant 0 : index
    %15 = vector.load %arg3[%c2, %c0_13, %c0_14] : memref<3x384x128xbf16, #tpu.memory_space<vmem>>, vector<1x384x128xbf16>
    %16 = vector.shape_cast %15 : vector<1x384x128xbf16> to vector<384x128xbf16>
    %cst_15 = arith.constant dense<0.000000e+00> : vector<256x128xf32>
    %17 = tpu.matmul %14, %16, %cst_15 {dimension_numbers = #tpu.dot_dimension_numbers<[1], [0], [0], [1], [0, 0, 1, 1], [], []>} : vector<256x384xbf16>, vector<384x128xbf16>, vector<256x128xf32> -> vector<256x128xf32>
    %18 = arith.addf %12, %17 : vector<256x128xf32>
    %c0_16 = arith.constant 0 : index
    %c0_17 = arith.constant 0 : index
    %19 = vector.load %arg4[%c0_16, %c0_17] : memref<1x128xf32, #tpu.memory_space<vmem>>, vector<1x128xf32>
    %20 = vector.broadcast %19 : vector<1x128xf32> to vector<256x128xf32>
    %21 = arith.mulf %18, %20 : vector<256x128xf32>
    %c0_18 = arith.constant 0 : index
    %c0_19 = arith.constant 0 : index
    %22 = vector.load %arg5[%c0_18, %c0_19] : memref<1x128xf32, #tpu.memory_space<vmem>>, vector<1x128xf32>
    %23 = vector.broadcast %22 : vector<1x128xf32> to vector<256x128xf32>
    %24 = arith.addf %21, %23 : vector<256x128xf32>
    %c0_20 = arith.constant 0 : index
    %c0_21 = arith.constant 0 : index
    %c0_22 = arith.constant 0 : index
    %25 = vector.load %arg6[%c0_20, %c0_21, %c0_22] : memref<1x256x128xbf16, #tpu.memory_space<vmem>>, vector<1x256x128xbf16>
    %26 = vector.shape_cast %25 : vector<1x256x128xbf16> to vector<256x128xbf16>
    %27 = arith.extf %26 : vector<256x128xbf16> to vector<256x128xf32>
    %28 = arith.addf %24, %27 : vector<256x128xf32>
    %cst_23 = arith.constant 0.000000e+00 : f32
    %29 = vector.broadcast %cst_23 : f32 to vector<256x128xf32>
    %30 = arith.maximumf %28, %29 : vector<256x128xf32>
    %cst_24 = arith.constant dense<0.000000e+00> : vector<128xf32>
    %31 = vector.multi_reduction <add>, %30, %cst_24 [0] : vector<256x128xf32> to vector<128xf32>
    %32 = vector.shape_cast %31 : vector<128xf32> to vector<1x128xf32>
    %cst_25 = arith.constant 2.560000e+02 : f32
    %33 = vector.broadcast %cst_25 : f32 to vector<1x128xf32>
    %34 = arith.divf %32, %33 : vector<1x128xf32>
    %c0_26 = arith.constant 0 : index
    %c0_27 = arith.constant 0 : index
    %c0_28 = arith.constant 0 : index
    %35 = vector.load %arg7[%c0_26, %c0_27, %c0_28] : memref<1x1x128xf32, #tpu.memory_space<vmem>>, vector<1x1x128xf32>
    %36 = vector.shape_cast %35 : vector<1x1x128xf32> to vector<1x128xf32>
    %37 = vector.shape_cast %34 : vector<1x128xf32> to vector<1x1x128xf32>
    tpu.vector_store %arg7[%c0_26, %c0_27, %c0_28], %37 {strides = array<i32>} : memref<1x1x128xf32, #tpu.memory_space<vmem>>, vector<1x1x128xf32>,
    return
  }
  func.func @transform_0(%arg0: i32, %arg1: i32) -> (i32, i32, i32) {
    %c0_i32 = arith.constant 0 : i32
    %c0_i32_0 = arith.constant 0 : i32
    %c0_i32_1 = arith.constant 0 : i32
    return %arg0, %c0_i32, %c0_i32_0 : i32, i32, i32
  }
  func.func @transform_1(%arg0: i32, %arg1: i32) -> (i32, i32, i32) {
    %c0_i32 = arith.constant 0 : i32
    %c0_i32_0 = arith.constant 0 : i32
    %c0_i32_1 = arith.constant 0 : i32
    return %c0_i32, %c0_i32_0, %arg1 : i32, i32, i32
  }
  func.func @transform_2(%arg0: i32, %arg1: i32) -> (i32, i32) {
    %c0_i32 = arith.constant 0 : i32
    %c0_i32_0 = arith.constant 0 : i32
    return %c0_i32, %arg1 : i32, i32
  }
  func.func @transform_3(%arg0: i32, %arg1: i32) -> (i32, i32) {
    %c0_i32 = arith.constant 0 : i32
    %c0_i32_0 = arith.constant 0 : i32
    return %c0_i32, %arg1 : i32, i32
  }
  func.func @transform_4(%arg0: i32, %arg1: i32) -> (i32, i32, i32) {
    %c0_i32 = arith.constant 0 : i32
    %c0_i32_0 = arith.constant 0 : i32
    return %arg0, %c0_i32, %arg1 : i32, i32, i32
  }
  func.func @transform_5(%arg0: i32, %arg1: i32) -> (i32, i32, i32) {
    %c0_i32 = arith.constant 0 : i32
    %c0_i32_0 = arith.constant 0 : i32
    return %arg0, %c0_i32, %arg1 : i32, i32, i32
  }
}

module attributes {stable_mosaic.version = 11 : i64} {
  func.func @_embed_norm_kernel(%arg0: memref<2x128xbf16, #tpu.memory_space<vmem>>, %arg1: memref<128x128xbf16, #tpu.memory_space<vmem>>, %arg2: memref<1x128xf32, #tpu.memory_space<vmem>>, %arg3: memref<2x128xf32, #tpu.memory_space<vmem>>) attributes {dimension_semantics = [], scalar_prefetch = 0 : i64, scratch_operands = 0 : i64, tpu.core_type = #tpu.core_type<tc>} {
    %c0 = arith.constant 0 : index
    %c0_0 = arith.constant 0 : index
    %0 = vector.load %arg0[%c0, %c0_0] : memref<2x128xbf16, #tpu.memory_space<vmem>>, vector<2x128xbf16>
    %c0_1 = arith.constant 0 : index
    %c0_2 = arith.constant 0 : index
    %1 = vector.load %arg1[%c0_1, %c0_2] : memref<128x128xbf16, #tpu.memory_space<vmem>>, vector<128x128xbf16>
    %cst = arith.constant dense<0.000000e+00> : vector<2x128xf32>
    %2 = tpu.matmul %0, %1, %cst {dimension_numbers = #tpu.dot_dimension_numbers<[1], [0], [0], [1], [0, 0, 1, 1], [], []>} : vector<2x128xbf16>, vector<128x128xbf16>, vector<2x128xf32> -> vector<2x128xf32>
    %c0_3 = arith.constant 0 : index
    %c0_4 = arith.constant 0 : index
    %3 = vector.load %arg2[%c0_3, %c0_4] : memref<1x128xf32, #tpu.memory_space<vmem>>, vector<1x128xf32>
    %4 = vector.broadcast %3 : vector<1x128xf32> to vector<2x128xf32>
    %5 = arith.addf %2, %4 : vector<2x128xf32>
    %6 = arith.mulf %5, %5 : vector<2x128xf32>
    %cst_5 = arith.constant dense<0.000000e+00> : vector<2xf32>
    %7 = vector.multi_reduction <add>, %6, %cst_5 [1] : vector<2x128xf32> to vector<2xf32>
    %8 = vector.shape_cast %7 : vector<2xf32> to vector<2x1xf32>
    %cst_6 = arith.constant 1.000000e-24 : f32
    %9 = vector.broadcast %cst_6 : f32 to vector<2x1xf32>
    %10 = arith.maximumf %8, %9 : vector<2x1xf32>
    %11 = math.rsqrt %10 : vector<2x1xf32>
    %12 = vector.broadcast %11 : vector<2x1xf32> to vector<2x128xf32>
    %13 = arith.mulf %5, %12 : vector<2x128xf32>
    %c0_7 = arith.constant 0 : index
    %c0_8 = arith.constant 0 : index
    %14 = vector.load %arg3[%c0_7, %c0_8] : memref<2x128xf32, #tpu.memory_space<vmem>>, vector<2x128xf32>
    tpu.vector_store %arg3[%c0_7, %c0_8], %13 {strides = array<i32>} : memref<2x128xf32, #tpu.memory_space<vmem>>, vector<2x128xf32>,
    return
  }
}

module attributes {stable_mosaic.version = 11 : i64} {
  func.func @_gather_row_kernel(%arg0: i32, %arg1: memref<32xi32, #tpu.memory_space<smem>>, %arg2: memref<1x1x16xf32, #tpu.memory_space<vmem>>, %arg3: memref<1x1x16xf32, #tpu.memory_space<vmem>>) attributes {dimension_semantics = [#tpu.dimension_semantics<arbitrary>], iteration_bounds = array<i64: 32>, scalar_prefetch = 1 : i64, scratch_operands = 0 : i64, tpu.core_type = #tpu.core_type<tc>, window_params = [{transform_indices = @transform_0, window_bounds = array<i64: 1, 1, 16>}, {transform_indices = @transform_1, window_bounds = array<i64: 1, 1, 16>}]} {
    %c0 = arith.constant 0 : index
    %c0_0 = arith.constant 0 : index
    %c0_1 = arith.constant 0 : index
    %0 = vector.load %arg2[%c0, %c0_0, %c0_1] : memref<1x1x16xf32, #tpu.memory_space<vmem>>, vector<1x1x16xf32>
    %c0_2 = arith.constant 0 : index
    %c0_3 = arith.constant 0 : index
    %c0_4 = arith.constant 0 : index
    %1 = vector.load %arg3[%c0_2, %c0_3, %c0_4] : memref<1x1x16xf32, #tpu.memory_space<vmem>>, vector<1x1x16xf32>
    tpu.vector_store %arg3[%c0_2, %c0_3, %c0_4], %0 {strides = array<i32>} : memref<1x1x16xf32, #tpu.memory_space<vmem>>, vector<1x1x16xf32>,
    return
  }
  func.func @transform_0(%arg0: i32, %arg1: memref<32xi32, #tpu.memory_space<smem>>) -> (i32, i32, i32) {
    %0 = arith.index_cast %arg0 : i32 to index
    %1 = memref.load %arg1[%0] : memref<32xi32, #tpu.memory_space<smem>>
    %c0_i32 = arith.constant 0 : i32
    %c0_i32_0 = arith.constant 0 : i32
    %c0_i32_1 = arith.constant 0 : i32
    return %1, %c0_i32, %c0_i32_0 : i32, i32, i32
  }
  func.func @transform_1(%arg0: i32, %arg1: memref<32xi32, #tpu.memory_space<smem>>) -> (i32, i32, i32) {
    %c0_i32 = arith.constant 0 : i32
    %c0_i32_0 = arith.constant 0 : i32
    %c0_i32_1 = arith.constant 0 : i32
    return %arg0, %c0_i32, %c0_i32_0 : i32, i32, i32
  }
}

module attributes {stable_mosaic.version = 11 : i64} {
  func.func @_lstm_chunk_kernel(%arg0: i32, %arg1: memref<8x2x4x64xf32, #tpu.memory_space<vmem>>, %arg2: memref<2x16x64xbf16, #tpu.memory_space<vmem>>, %arg3: memref<8x2x4x16xf32, #tpu.memory_space<vmem>>, %arg4: memref<2x4x16xf32, #tpu.memory_space<vmem>>, %arg5: memref<2x4x16xf32, #tpu.memory_space<vmem>>) attributes {dimension_semantics = [#tpu.dimension_semantics<arbitrary>], iteration_bounds = array<i64: 1>, scalar_prefetch = 0 : i64, scratch_operands = 2 : i64, tpu.core_type = #tpu.core_type<tc>, window_params = [{transform_indices = @transform_0, window_bounds = array<i64: 8, 2, 4, 64>}, {pipeline_mode = #tpu.pipeline_mode<synchronous>, transform_indices = @transform_1, window_bounds = array<i64: 2, 16, 64>}, {transform_indices = @transform_2, window_bounds = array<i64: 8, 2, 4, 16>}]} {
    %c0_i32 = arith.constant 0 : i32
    %0 = arith.cmpi eq, %arg0, %c0_i32 : i32
    %1 = arith.extui %0 : i1 to i32
    %c0_i32_0 = arith.constant 0 : i32
    %2 = arith.cmpi ne, %1, %c0_i32_0 : i32
    scf.if %2 {
      %cst_208 = arith.constant 0.000000e+00 : f32
      %307 = vector.broadcast %cst_208 : f32 to vector<2x4x16xf32>
      %c0_209 = arith.constant 0 : index
      %c0_210 = arith.constant 0 : index
      %c0_211 = arith.constant 0 : index
      %308 = vector.load %arg4[%c0_209, %c0_210, %c0_211] : memref<2x4x16xf32, #tpu.memory_space<vmem>>, vector<2x4x16xf32>
      tpu.vector_store %arg4[%c0_209, %c0_210, %c0_211], %307 {strides = array<i32>} : memref<2x4x16xf32, #tpu.memory_space<vmem>>, vector<2x4x16xf32>,
      %cst_212 = arith.constant 0.000000e+00 : f32
      %309 = vector.broadcast %cst_212 : f32 to vector<2x4x16xf32>
      %c0_213 = arith.constant 0 : index
      %c0_214 = arith.constant 0 : index
      %c0_215 = arith.constant 0 : index
      %310 = vector.load %arg5[%c0_213, %c0_214, %c0_215] : memref<2x4x16xf32, #tpu.memory_space<vmem>>, vector<2x4x16xf32>
      tpu.vector_store %arg5[%c0_213, %c0_214, %c0_215], %309 {strides = array<i32>} : memref<2x4x16xf32, #tpu.memory_space<vmem>>, vector<2x4x16xf32>,
    } else {
    }
    %c0 = arith.constant 0 : index
    %c0_1 = arith.constant 0 : index
    %c0_2 = arith.constant 0 : index
    %3 = vector.load %arg4[%c0, %c0_1, %c0_2] : memref<2x4x16xf32, #tpu.memory_space<vmem>>, vector<2x4x16xf32>
    %4 = arith.truncf %3 : vector<2x4x16xf32> to vector<2x4x16xbf16>
    %c0_3 = arith.constant 0 : index
    %c0_4 = arith.constant 0 : index
    %c0_5 = arith.constant 0 : index
    %5 = vector.load %arg2[%c0_3, %c0_4, %c0_5] : memref<2x16x64xbf16, #tpu.memory_space<vmem>>, vector<2x16x64xbf16>
    "tpu.trace_start"() <{level = 10 : i32, message = "dbh,dhg->dbg"}> : () -> ()
    %cst = arith.constant dense<0.000000e+00> : vector<2x4x64xf32>
    %6 = tpu.matmul %4, %5, %cst {dimension_numbers = #tpu.dot_dimension_numbers<[2], [1], [1], [2], [0, 0, 0, 1, 1, 2], [0], [0]>} : vector<2x4x16xbf16>, vector<2x16x64xbf16>, vector<2x4x64xf32> -> vector<2x4x64xf32>
    "tpu.trace_stop"() : () -> ()
    %c0_6 = arith.constant 0 : index
    %c0_7 = arith.constant 0 : index
    %c0_8 = arith.constant 0 : index
    %c0_9 = arith.constant 0 : index
    %7 = vector.load %arg1[%c0_6, %c0_7, %c0_8, %c0_9] : memref<8x2x4x64xf32, #tpu.memory_space<vmem>>, vector<1x2x4x64xf32>
    %8 = vector.shape_cast %7 : vector<1x2x4x64xf32> to vector<2x4x64xf32>
    %9 = arith.addf %8, %6 : vector<2x4x64xf32>
    %10 = vector.extract_strided_slice %9 {offsets = [0, 0, 0], sizes = [2, 4, 16], strides = [1, 1, 1]} : vector<2x4x64xf32> to vector<2x4x16xf32>
    %11 = arith.negf %10 : vector<2x4x16xf32>
    %12 = math.exp %11 : vector<2x4x16xf32>
    %cst_10 = arith.constant 1.000000e+00 : f32
    %13 = vector.broadcast %cst_10 : f32 to vector<2x4x16xf32>
    %14 = arith.addf %13, %12 : vector<2x4x16xf32>
    %15 = arith.divf %13, %14 : vector<2x4x16xf32>
    %16 = vector.extract_strided_slice %9 {offsets = [0, 0, 16], sizes = [2, 4, 16], strides = [1, 1, 1]} : vector<2x4x64xf32> to vector<2x4x16xf32>
    %17 = arith.negf %16 : vector<2x4x16xf32>
    %18 = math.exp %17 : vector<2x4x16xf32>
    %cst_11 = arith.constant 1.000000e+00 : f32
    %19 = vector.broadcast %cst_11 : f32 to vector<2x4x16xf32>
    %20 = arith.addf %19, %18 : vector<2x4x16xf32>
    %21 = arith.divf %19, %20 : vector<2x4x16xf32>
    %22 = vector.extract_strided_slice %9 {offsets = [0, 0, 32], sizes = [2, 4, 16], strides = [1, 1, 1]} : vector<2x4x64xf32> to vector<2x4x16xf32>
    %23 = math.tanh %22 : vector<2x4x16xf32>
    %24 = vector.extract_strided_slice %9 {offsets = [0, 0, 48], sizes = [2, 4, 16], strides = [1, 1, 1]} : vector<2x4x64xf32> to vector<2x4x16xf32>
    %25 = arith.negf %24 : vector<2x4x16xf32>
    %26 = math.exp %25 : vector<2x4x16xf32>
    %cst_12 = arith.constant 1.000000e+00 : f32
    %27 = vector.broadcast %cst_12 : f32 to vector<2x4x16xf32>
    %28 = arith.addf %27, %26 : vector<2x4x16xf32>
    %29 = arith.divf %27, %28 : vector<2x4x16xf32>
    %c0_13 = arith.constant 0 : index
    %c0_14 = arith.constant 0 : index
    %c0_15 = arith.constant 0 : index
    %30 = vector.load %arg5[%c0_13, %c0_14, %c0_15] : memref<2x4x16xf32, #tpu.memory_space<vmem>>, vector<2x4x16xf32>
    %31 = arith.mulf %21, %30 : vector<2x4x16xf32>
    %32 = arith.mulf %15, %23 : vector<2x4x16xf32>
    %33 = arith.addf %31, %32 : vector<2x4x16xf32>
    %34 = math.tanh %33 : vector<2x4x16xf32>
    %35 = arith.mulf %29, %34 : vector<2x4x16xf32>
    %c0_16 = arith.constant 0 : index
    %c0_17 = arith.constant 0 : index
    %c0_18 = arith.constant 0 : index
    %36 = vector.load %arg5[%c0_16, %c0_17, %c0_18] : memref<2x4x16xf32, #tpu.memory_space<vmem>>, vector<2x4x16xf32>
    tpu.vector_store %arg5[%c0_16, %c0_17, %c0_18], %33 {strides = array<i32>} : memref<2x4x16xf32, #tpu.memory_space<vmem>>, vector<2x4x16xf32>,
    %c0_19 = arith.constant 0 : index
    %c0_20 = arith.constant 0 : index
    %c0_21 = arith.constant 0 : index
    %37 = vector.load %arg4[%c0_19, %c0_20, %c0_21] : memref<2x4x16xf32, #tpu.memory_space<vmem>>, vector<2x4x16xf32>
    tpu.vector_store %arg4[%c0_19, %c0_20, %c0_21], %35 {strides = array<i32>} : memref<2x4x16xf32, #tpu.memory_space<vmem>>, vector<2x4x16xf32>,
    %c0_22 = arith.constant 0 : index
    %c0_23 = arith.constant 0 : index
    %c0_24 = arith.constant 0 : index
    %c0_25 = arith.constant 0 : index
    %38 = vector.load %arg3[%c0_22, %c0_23, %c0_24, %c0_25] : memref<8x2x4x16xf32, #tpu.memory_space<vmem>>, vector<1x2x4x16xf32>
    %39 = vector.shape_cast %38 : vector<1x2x4x16xf32> to vector<2x4x16xf32>
    %40 = vector.shape_cast %35 : vector<2x4x16xf32> to vector<1x2x4x16xf32>
    tpu.vector_store %arg3[%c0_22, %c0_23, %c0_24, %c0_25], %40 {strides = array<i32>} : memref<8x2x4x16xf32, #tpu.memory_space<vmem>>, vector<1x2x4x16xf32>,
    %c0_26 = arith.constant 0 : index
    %c0_27 = arith.constant 0 : index
    %c0_28 = arith.constant 0 : index
    %41 = vector.load %arg4[%c0_26, %c0_27, %c0_28] : memref<2x4x16xf32, #tpu.memory_space<vmem>>, vector<2x4x16xf32>
    %42 = arith.truncf %41 : vector<2x4x16xf32> to vector<2x4x16xbf16>
    %c0_29 = arith.constant 0 : index
    %c0_30 = arith.constant 0 : index
    %c0_31 = arith.constant 0 : index
    %43 = vector.load %arg2[%c0_29, %c0_30, %c0_31] : memref<2x16x64xbf16, #tpu.memory_space<vmem>>, vector<2x16x64xbf16>
    "tpu.trace_start"() <{level = 10 : i32, message = "dbh,dhg->dbg"}> : () -> ()
    %cst_32 = arith.constant dense<0.000000e+00> : vector<2x4x64xf32>
    %44 = tpu.matmul %42, %43, %cst_32 {dimension_numbers = #tpu.dot_dimension_numbers<[2], [1], [1], [2], [0, 0, 0, 1, 1, 2], [0], [0]>} : vector<2x4x16xbf16>, vector<2x16x64xbf16>, vector<2x4x64xf32> -> vector<2x4x64xf32>
    "tpu.trace_stop"() : () -> ()
    %c1 = arith.constant 1 : index
    %c0_33 = arith.constant 0 : index
    %c0_34 = arith.constant 0 : index
    %c0_35 = arith.constant 0 : index
    %45 = vector.load %arg1[%c1, %c0_33, %c0_34, %c0_35] : memref<8x2x4x64xf32, #tpu.memory_space<vmem>>, vector<1x2x4x64xf32>
    %46 = vector.shape_cast %45 : vector<1x2x4x64xf32> to vector<2x4x64xf32>
    %47 = arith.addf %46, %44 : vector<2x4x64xf32>
    %48 = vector.extract_strided_slice %47 {offsets = [0, 0, 0], sizes = [2, 4, 16], strides = [1, 1, 1]} : vector<2x4x64xf32> to vector<2x4x16xf32>
    %49 = arith.negf %48 : vector<2x4x16xf32>
    %50 = math.exp %49 : vector<2x4x16xf32>
    %cst_36 = arith.constant 1.000000e+00 : f32
    %51 = vector.broadcast %cst_36 : f32 to vector<2x4x16xf32>
    %52 = arith.addf %51, %50 : vector<2x4x16xf32>
    %53 = arith.divf %51, %52 : vector<2x4x16xf32>
    %54 = vector.extract_strided_slice %47 {offsets = [0, 0, 16], sizes = [2, 4, 16], strides = [1, 1, 1]} : vector<2x4x64xf32> to vector<2x4x16xf32>
    %55 = arith.negf %54 : vector<2x4x16xf32>
    %56 = math.exp %55 : vector<2x4x16xf32>
    %cst_37 = arith.constant 1.000000e+00 : f32
    %57 = vector.broadcast %cst_37 : f32 to vector<2x4x16xf32>
    %58 = arith.addf %57, %56 : vector<2x4x16xf32>
    %59 = arith.divf %57, %58 : vector<2x4x16xf32>
    %60 = vector.extract_strided_slice %47 {offsets = [0, 0, 32], sizes = [2, 4, 16], strides = [1, 1, 1]} : vector<2x4x64xf32> to vector<2x4x16xf32>
    %61 = math.tanh %60 : vector<2x4x16xf32>
    %62 = vector.extract_strided_slice %47 {offsets = [0, 0, 48], sizes = [2, 4, 16], strides = [1, 1, 1]} : vector<2x4x64xf32> to vector<2x4x16xf32>
    %63 = arith.negf %62 : vector<2x4x16xf32>
    %64 = math.exp %63 : vector<2x4x16xf32>
    %cst_38 = arith.constant 1.000000e+00 : f32
    %65 = vector.broadcast %cst_38 : f32 to vector<2x4x16xf32>
    %66 = arith.addf %65, %64 : vector<2x4x16xf32>
    %67 = arith.divf %65, %66 : vector<2x4x16xf32>
    %c0_39 = arith.constant 0 : index
    %c0_40 = arith.constant 0 : index
    %c0_41 = arith.constant 0 : index
    %68 = vector.load %arg5[%c0_39, %c0_40, %c0_41] : memref<2x4x16xf32, #tpu.memory_space<vmem>>, vector<2x4x16xf32>
    %69 = arith.mulf %59, %68 : vector<2x4x16xf32>
    %70 = arith.mulf %53, %61 : vector<2x4x16xf32>
    %71 = arith.addf %69, %70 : vector<2x4x16xf32>
    %72 = math.tanh %71 : vector<2x4x16xf32>
    %73 = arith.mulf %67, %72 : vector<2x4x16xf32>
    %c0_42 = arith.constant 0 : index
    %c0_43 = arith.constant 0 : index
    %c0_44 = arith.constant 0 : index
    %74 = vector.load %arg5[%c0_42, %c0_43, %c0_44] : memref<2x4x16xf32, #tpu.memory_space<vmem>>, vector<2x4x16xf32>
    tpu.vector_store %arg5[%c0_42, %c0_43, %c0_44], %71 {strides = array<i32>} : memref<2x4x16xf32, #tpu.memory_space<vmem>>, vector<2x4x16xf32>,
    %c0_45 = arith.constant 0 : index
    %c0_46 = arith.constant 0 : index
    %c0_47 = arith.constant 0 : index
    %75 = vector.load %arg4[%c0_45, %c0_46, %c0_47] : memref<2x4x16xf32, #tpu.memory_space<vmem>>, vector<2x4x16xf32>
    tpu.vector_store %arg4[%c0_45, %c0_46, %c0_47], %73 {strides = array<i32>} : memref<2x4x16xf32, #tpu.memory_space<vmem>>, vector<2x4x16xf32>,
    %c1_48 = arith.constant 1 : index
    %c0_49 = arith.constant 0 : index
    %c0_50 = arith.constant 0 : index
    %c0_51 = arith.constant 0 : index
    %76 = vector.load %arg3[%c1_48, %c0_49, %c0_50, %c0_51] : memref<8x2x4x16xf32, #tpu.memory_space<vmem>>, vector<1x2x4x16xf32>
    %77 = vector.shape_cast %76 : vector<1x2x4x16xf32> to vector<2x4x16xf32>
    %78 = vector.shape_cast %73 : vector<2x4x16xf32> to vector<1x2x4x16xf32>
    tpu.vector_store %arg3[%c1_48, %c0_49, %c0_50, %c0_51], %78 {strides = array<i32>} : memref<8x2x4x16xf32, #tpu.memory_space<vmem>>, vector<1x2x4x16xf32>,
    %c0_52 = arith.constant 0 : index
    %c0_53 = arith.constant 0 : index
    %c0_54 = arith.constant 0 : index
    %79 = vector.load %arg4[%c0_52, %c0_53, %c0_54] : memref<2x4x16xf32, #tpu.memory_space<vmem>>, vector<2x4x16xf32>
    %80 = arith.truncf %79 : vector<2x4x16xf32> to vector<2x4x16xbf16>
    %c0_55 = arith.constant 0 : index
    %c0_56 = arith.constant 0 : index
    %c0_57 = arith.constant 0 : index
    %81 = vector.load %arg2[%c0_55, %c0_56, %c0_57] : memref<2x16x64xbf16, #tpu.memory_space<vmem>>, vector<2x16x64xbf16>
    "tpu.trace_start"() <{level = 10 : i32, message = "dbh,dhg->dbg"}> : () -> ()
    %cst_58 = arith.constant dense<0.000000e+00> : vector<2x4x64xf32>
    %82 = tpu.matmul %80, %81, %cst_58 {dimension_numbers = #tpu.dot_dimension_numbers<[2], [1], [1], [2], [0, 0, 0, 1, 1, 2], [0], [0]>} : vector<2x4x16xbf16>, vector<2x16x64xbf16>, vector<2x4x64xf32> -> vector<2x4x64xf32>
    "tpu.trace_stop"() : () -> ()
    %c2 = arith.constant 2 : index
    %c0_59 = arith.constant 0 : index
    %c0_60 = arith.constant 0 : index
    %c0_61 = arith.constant 0 : index
    %83 = vector.load %arg1[%c2, %c0_59, %c0_60, %c0_61] : memref<8x2x4x64xf32, #tpu.memory_space<vmem>>, vector<1x2x4x64xf32>
    %84 = vector.shape_cast %83 : vector<1x2x4x64xf32> to vector<2x4x64xf32>
    %85 = arith.addf %84, %82 : vector<2x4x64xf32>
    %86 = vector.extract_strided_slice %85 {offsets = [0, 0, 0], sizes = [2, 4, 16], strides = [1, 1, 1]} : vector<2x4x64xf32> to vector<2x4x16xf32>
    %87 = arith.negf %86 : vector<2x4x16xf32>
    %88 = math.exp %87 : vector<2x4x16xf32>
    %cst_62 = arith.constant 1.000000e+00 : f32
    %89 = vector.broadcast %cst_62 : f32 to vector<2x4x16xf32>
    %90 = arith.addf %89, %88 : vector<2x4x16xf32>
    %91 = arith.divf %89, %90 : vector<2x4x16xf32>
    %92 = vector.extract_strided_slice %85 {offsets = [0, 0, 16], sizes = [2, 4, 16], strides = [1, 1, 1]} : vector<2x4x64xf32> to vector<2x4x16xf32>
    %93 = arith.negf %92 : vector<2x4x16xf32>
    %94 = math.exp %93 : vector<2x4x16xf32>
    %cst_63 = arith.constant 1.000000e+00 : f32
    %95 = vector.broadcast %cst_63 : f32 to vector<2x4x16xf32>
    %96 = arith.addf %95, %94 : vector<2x4x16xf32>
    %97 = arith.divf %95, %96 : vector<2x4x16xf32>
    %98 = vector.extract_strided_slice %85 {offsets = [0, 0, 32], sizes = [2, 4, 16], strides = [1, 1, 1]} : vector<2x4x64xf32> to vector<2x4x16xf32>
    %99 = math.tanh %98 : vector<2x4x16xf32>
    %100 = vector.extract_strided_slice %85 {offsets = [0, 0, 48], sizes = [2, 4, 16], strides = [1, 1, 1]} : vector<2x4x64xf32> to vector<2x4x16xf32>
    %101 = arith.negf %100 : vector<2x4x16xf32>
    %102 = math.exp %101 : vector<2x4x16xf32>
    %cst_64 = arith.constant 1.000000e+00 : f32
    %103 = vector.broadcast %cst_64 : f32 to vector<2x4x16xf32>
    %104 = arith.addf %103, %102 : vector<2x4x16xf32>
    %105 = arith.divf %103, %104 : vector<2x4x16xf32>
    %c0_65 = arith.constant 0 : index
    %c0_66 = arith.constant 0 : index
    %c0_67 = arith.constant 0 : index
    %106 = vector.load %arg5[%c0_65, %c0_66, %c0_67] : memref<2x4x16xf32, #tpu.memory_space<vmem>>, vector<2x4x16xf32>
    %107 = arith.mulf %97, %106 : vector<2x4x16xf32>
    %108 = arith.mulf %91, %99 : vector<2x4x16xf32>
    %109 = arith.addf %107, %108 : vector<2x4x16xf32>
    %110 = math.tanh %109 : vector<2x4x16xf32>
    %111 = arith.mulf %105, %110 : vector<2x4x16xf32>
    %c0_68 = arith.constant 0 : index
    %c0_69 = arith.constant 0 : index
    %c0_70 = arith.constant 0 : index
    %112 = vector.load %arg5[%c0_68, %c0_69, %c0_70] : memref<2x4x16xf32, #tpu.memory_space<vmem>>, vector<2x4x16xf32>
    tpu.vector_store %arg5[%c0_68, %c0_69, %c0_70], %109 {strides = array<i32>} : memref<2x4x16xf32, #tpu.memory_space<vmem>>, vector<2x4x16xf32>,
    %c0_71 = arith.constant 0 : index
    %c0_72 = arith.constant 0 : index
    %c0_73 = arith.constant 0 : index
    %113 = vector.load %arg4[%c0_71, %c0_72, %c0_73] : memref<2x4x16xf32, #tpu.memory_space<vmem>>, vector<2x4x16xf32>
    tpu.vector_store %arg4[%c0_71, %c0_72, %c0_73], %111 {strides = array<i32>} : memref<2x4x16xf32, #tpu.memory_space<vmem>>, vector<2x4x16xf32>,
    %c2_74 = arith.constant 2 : index
    %c0_75 = arith.constant 0 : index
    %c0_76 = arith.constant 0 : index
    %c0_77 = arith.constant 0 : index
    %114 = vector.load %arg3[%c2_74, %c0_75, %c0_76, %c0_77] : memref<8x2x4x16xf32, #tpu.memory_space<vmem>>, vector<1x2x4x16xf32>
    %115 = vector.shape_cast %114 : vector<1x2x4x16xf32> to vector<2x4x16xf32>
    %116 = vector.shape_cast %111 : vector<2x4x16xf32> to vector<1x2x4x16xf32>
    tpu.vector_store %arg3[%c2_74, %c0_75, %c0_76, %c0_77], %116 {strides = array<i32>} : memref<8x2x4x16xf32, #tpu.memory_space<vmem>>, vector<1x2x4x16xf32>,
    %c0_78 = arith.constant 0 : index
    %c0_79 = arith.constant 0 : index
    %c0_80 = arith.constant 0 : index
    %117 = vector.load %arg4[%c0_78, %c0_79, %c0_80] : memref<2x4x16xf32, #tpu.memory_space<vmem>>, vector<2x4x16xf32>
    %118 = arith.truncf %117 : vector<2x4x16xf32> to vector<2x4x16xbf16>
    %c0_81 = arith.constant 0 : index
    %c0_82 = arith.constant 0 : index
    %c0_83 = arith.constant 0 : index
    %119 = vector.load %arg2[%c0_81, %c0_82, %c0_83] : memref<2x16x64xbf16, #tpu.memory_space<vmem>>, vector<2x16x64xbf16>
    "tpu.trace_start"() <{level = 10 : i32, message = "dbh,dhg->dbg"}> : () -> ()
    %cst_84 = arith.constant dense<0.000000e+00> : vector<2x4x64xf32>
    %120 = tpu.matmul %118, %119, %cst_84 {dimension_numbers = #tpu.dot_dimension_numbers<[2], [1], [1], [2], [0, 0, 0, 1, 1, 2], [0], [0]>} : vector<2x4x16xbf16>, vector<2x16x64xbf16>, vector<2x4x64xf32> -> vector<2x4x64xf32>
    "tpu.trace_stop"() : () -> ()
    %c3 = arith.constant 3 : index
    %c0_85 = arith.constant 0 : index
    %c0_86 = arith.constant 0 : index
    %c0_87 = arith.constant 0 : index
    %121 = vector.load %arg1[%c3, %c0_85, %c0_86, %c0_87] : memref<8x2x4x64xf32, #tpu.memory_space<vmem>>, vector<1x2x4x64xf32>
    %122 = vector.shape_cast %121 : vector<1x2x4x64xf32> to vector<2x4x64xf32>
    %123 = arith.addf %122, %120 : vector<2x4x64xf32>
    %124 = vector.extract_strided_slice %123 {offsets = [0, 0, 0], sizes = [2, 4, 16], strides = [1, 1, 1]} : vector<2x4x64xf32> to vector<2x4x16xf32>
    %125 = arith.negf %124 : vector<2x4x16xf32>
    %126 = math.exp %125 : vector<2x4x16xf32>
    %cst_88 = arith.constant 1.000000e+00 : f32
    %127 = vector.broadcast %cst_88 : f32 to vector<2x4x16xf32>
    %128 = arith.addf %127, %126 : vector<2x4x16xf32>
    %129 = arith.divf %127, %128 : vector<2x4x16xf32>
    %130 = vector.extract_strided_slice %123 {offsets = [0, 0, 16], sizes = [2, 4, 16], strides = [1, 1, 1]} : vector<2x4x64xf32> to vector<2x4x16xf32>
    %131 = arith.negf %130 : vector<2x4x16xf32>
    %132 = math.exp %131 : vector<2x4x16xf32>
    %cst_89 = arith.constant 1.000000e+00 : f32
    %133 = vector.broadcast %cst_89 : f32 to vector<2x4x16xf32>
    %134 = arith.addf %133, %132 : vector<2x4x16xf32>
    %135 = arith.divf %133, %134 : vector<2x4x16xf32>
    %136 = vector.extract_strided_slice %123 {offsets = [0, 0, 32], sizes = [2, 4, 16], strides = [1, 1, 1]} : vector<2x4x64xf32> to vector<2x4x16xf32>
    %137 = math.tanh %136 : vector<2x4x16xf32>
    %138 = vector.extract_strided_slice %123 {offsets = [0, 0, 48], sizes = [2, 4, 16], strides = [1, 1, 1]} : vector<2x4x64xf32> to vector<2x4x16xf32>
    %139 = arith.negf %138 : vector<2x4x16xf32>
    %140 = math.exp %139 : vector<2x4x16xf32>
    %cst_90 = arith.constant 1.000000e+00 : f32
    %141 = vector.broadcast %cst_90 : f32 to vector<2x4x16xf32>
    %142 = arith.addf %141, %140 : vector<2x4x16xf32>
    %143 = arith.divf %141, %142 : vector<2x4x16xf32>
    %c0_91 = arith.constant 0 : index
    %c0_92 = arith.constant 0 : index
    %c0_93 = arith.constant 0 : index
    %144 = vector.load %arg5[%c0_91, %c0_92, %c0_93] : memref<2x4x16xf32, #tpu.memory_space<vmem>>, vector<2x4x16xf32>
    %145 = arith.mulf %135, %144 : vector<2x4x16xf32>
    %146 = arith.mulf %129, %137 : vector<2x4x16xf32>
    %147 = arith.addf %145, %146 : vector<2x4x16xf32>
    %148 = math.tanh %147 : vector<2x4x16xf32>
    %149 = arith.mulf %143, %148 : vector<2x4x16xf32>
    %c0_94 = arith.constant 0 : index
    %c0_95 = arith.constant 0 : index
    %c0_96 = arith.constant 0 : index
    %150 = vector.load %arg5[%c0_94, %c0_95, %c0_96] : memref<2x4x16xf32, #tpu.memory_space<vmem>>, vector<2x4x16xf32>
    tpu.vector_store %arg5[%c0_94, %c0_95, %c0_96], %147 {strides = array<i32>} : memref<2x4x16xf32, #tpu.memory_space<vmem>>, vector<2x4x16xf32>,
    %c0_97 = arith.constant 0 : index
    %c0_98 = arith.constant 0 : index
    %c0_99 = arith.constant 0 : index
    %151 = vector.load %arg4[%c0_97, %c0_98, %c0_99] : memref<2x4x16xf32, #tpu.memory_space<vmem>>, vector<2x4x16xf32>
    tpu.vector_store %arg4[%c0_97, %c0_98, %c0_99], %149 {strides = array<i32>} : memref<2x4x16xf32, #tpu.memory_space<vmem>>, vector<2x4x16xf32>,
    %c3_100 = arith.constant 3 : index
    %c0_101 = arith.constant 0 : index
    %c0_102 = arith.constant 0 : index
    %c0_103 = arith.constant 0 : index
    %152 = vector.load %arg3[%c3_100, %c0_101, %c0_102, %c0_103] : memref<8x2x4x16xf32, #tpu.memory_space<vmem>>, vector<1x2x4x16xf32>
    %153 = vector.shape_cast %152 : vector<1x2x4x16xf32> to vector<2x4x16xf32>
    %154 = vector.shape_cast %149 : vector<2x4x16xf32> to vector<1x2x4x16xf32>
    tpu.vector_store %arg3[%c3_100, %c0_101, %c0_102, %c0_103], %154 {strides = array<i32>} : memref<8x2x4x16xf32, #tpu.memory_space<vmem>>, vector<1x2x4x16xf32>,
    %c0_104 = arith.constant 0 : index
    %c0_105 = arith.constant 0 : index
    %c0_106 = arith.constant 0 : index
    %155 = vector.load %arg4[%c0_104, %c0_105, %c0_106] : memref<2x4x16xf32, #tpu.memory_space<vmem>>, vector<2x4x16xf32>
    %156 = arith.truncf %155 : vector<2x4x16xf32> to vector<2x4x16xbf16>
    %c0_107 = arith.constant 0 : index
    %c0_108 = arith.constant 0 : index
    %c0_109 = arith.constant 0 : index
    %157 = vector.load %arg2[%c0_107, %c0_108, %c0_109] : memref<2x16x64xbf16, #tpu.memory_space<vmem>>, vector<2x16x64xbf16>
    "tpu.trace_start"() <{level = 10 : i32, message = "dbh,dhg->dbg"}> : () -> ()
    %cst_110 = arith.constant dense<0.000000e+00> : vector<2x4x64xf32>
    %158 = tpu.matmul %156, %157, %cst_110 {dimension_numbers = #tpu.dot_dimension_numbers<[2], [1], [1], [2], [0, 0, 0, 1, 1, 2], [0], [0]>} : vector<2x4x16xbf16>, vector<2x16x64xbf16>, vector<2x4x64xf32> -> vector<2x4x64xf32>
    "tpu.trace_stop"() : () -> ()
    %c4 = arith.constant 4 : index
    %c0_111 = arith.constant 0 : index
    %c0_112 = arith.constant 0 : index
    %c0_113 = arith.constant 0 : index
    %159 = vector.load %arg1[%c4, %c0_111, %c0_112, %c0_113] : memref<8x2x4x64xf32, #tpu.memory_space<vmem>>, vector<1x2x4x64xf32>
    %160 = vector.shape_cast %159 : vector<1x2x4x64xf32> to vector<2x4x64xf32>
    %161 = arith.addf %160, %158 : vector<2x4x64xf32>
    %162 = vector.extract_strided_slice %161 {offsets = [0, 0, 0], sizes = [2, 4, 16], strides = [1, 1, 1]} : vector<2x4x64xf32> to vector<2x4x16xf32>
    %163 = arith.negf %162 : vector<2x4x16xf32>
    %164 = math.exp %163 : vector<2x4x16xf32>
    %cst_114 = arith.constant 1.000000e+00 : f32
    %165 = vector.broadcast %cst_114 : f32 to vector<2x4x16xf32>
    %166 = arith.addf %165, %164 : vector<2x4x16xf32>
    %167 = arith.divf %165, %166 : vector<2x4x16xf32>
    %168 = vector.extract_strided_slice %161 {offsets = [0, 0, 16], sizes = [2, 4, 16], strides = [1, 1, 1]} : vector<2x4x64xf32> to vector<2x4x16xf32>
    %169 = arith.negf %168 : vector<2x4x16xf32>
    %170 = math.exp %169 : vector<2x4x16xf32>
    %cst_115 = arith.constant 1.000000e+00 : f32
    %171 = vector.broadcast %cst_115 : f32 to vector<2x4x16xf32>
    %172 = arith.addf %171, %170 : vector<2x4x16xf32>
    %173 = arith.divf %171, %172 : vector<2x4x16xf32>
    %174 = vector.extract_strided_slice %161 {offsets = [0, 0, 32], sizes = [2, 4, 16], strides = [1, 1, 1]} : vector<2x4x64xf32> to vector<2x4x16xf32>
    %175 = math.tanh %174 : vector<2x4x16xf32>
    %176 = vector.extract_strided_slice %161 {offsets = [0, 0, 48], sizes = [2, 4, 16], strides = [1, 1, 1]} : vector<2x4x64xf32> to vector<2x4x16xf32>
    %177 = arith.negf %176 : vector<2x4x16xf32>
    %178 = math.exp %177 : vector<2x4x16xf32>
    %cst_116 = arith.constant 1.000000e+00 : f32
    %179 = vector.broadcast %cst_116 : f32 to vector<2x4x16xf32>
    %180 = arith.addf %179, %178 : vector<2x4x16xf32>
    %181 = arith.divf %179, %180 : vector<2x4x16xf32>
    %c0_117 = arith.constant 0 : index
    %c0_118 = arith.constant 0 : index
    %c0_119 = arith.constant 0 : index
    %182 = vector.load %arg5[%c0_117, %c0_118, %c0_119] : memref<2x4x16xf32, #tpu.memory_space<vmem>>, vector<2x4x16xf32>
    %183 = arith.mulf %173, %182 : vector<2x4x16xf32>
    %184 = arith.mulf %167, %175 : vector<2x4x16xf32>
    %185 = arith.addf %183, %184 : vector<2x4x16xf32>
    %186 = math.tanh %185 : vector<2x4x16xf32>
    %187 = arith.mulf %181, %186 : vector<2x4x16xf32>
    %c0_120 = arith.constant 0 : index
    %c0_121 = arith.constant 0 : index
    %c0_122 = arith.constant 0 : index
    %188 = vector.load %arg5[%c0_120, %c0_121, %c0_122] : memref<2x4x16xf32, #tpu.memory_space<vmem>>, vector<2x4x16xf32>
    tpu.vector_store %arg5[%c0_120, %c0_121, %c0_122], %185 {strides = array<i32>} : memref<2x4x16xf32, #tpu.memory_space<vmem>>, vector<2x4x16xf32>,
    %c0_123 = arith.constant 0 : index
    %c0_124 = arith.constant 0 : index
    %c0_125 = arith.constant 0 : index
    %189 = vector.load %arg4[%c0_123, %c0_124, %c0_125] : memref<2x4x16xf32, #tpu.memory_space<vmem>>, vector<2x4x16xf32>
    tpu.vector_store %arg4[%c0_123, %c0_124, %c0_125], %187 {strides = array<i32>} : memref<2x4x16xf32, #tpu.memory_space<vmem>>, vector<2x4x16xf32>,
    %c4_126 = arith.constant 4 : index
    %c0_127 = arith.constant 0 : index
    %c0_128 = arith.constant 0 : index
    %c0_129 = arith.constant 0 : index
    %190 = vector.load %arg3[%c4_126, %c0_127, %c0_128, %c0_129] : memref<8x2x4x16xf32, #tpu.memory_space<vmem>>, vector<1x2x4x16xf32>
    %191 = vector.shape_cast %190 : vector<1x2x4x16xf32> to vector<2x4x16xf32>
    %192 = vector.shape_cast %187 : vector<2x4x16xf32> to vector<1x2x4x16xf32>
    tpu.vector_store %arg3[%c4_126, %c0_127, %c0_128, %c0_129], %192 {strides = array<i32>} : memref<8x2x4x16xf32, #tpu.memory_space<vmem>>, vector<1x2x4x16xf32>,
    %c0_130 = arith.constant 0 : index
    %c0_131 = arith.constant 0 : index
    %c0_132 = arith.constant 0 : index
    %193 = vector.load %arg4[%c0_130, %c0_131, %c0_132] : memref<2x4x16xf32, #tpu.memory_space<vmem>>, vector<2x4x16xf32>
    %194 = arith.truncf %193 : vector<2x4x16xf32> to vector<2x4x16xbf16>
    %c0_133 = arith.constant 0 : index
    %c0_134 = arith.constant 0 : index
    %c0_135 = arith.constant 0 : index
    %195 = vector.load %arg2[%c0_133, %c0_134, %c0_135] : memref<2x16x64xbf16, #tpu.memory_space<vmem>>, vector<2x16x64xbf16>
    "tpu.trace_start"() <{level = 10 : i32, message = "dbh,dhg->dbg"}> : () -> ()
    %cst_136 = arith.constant dense<0.000000e+00> : vector<2x4x64xf32>
    %196 = tpu.matmul %194, %195, %cst_136 {dimension_numbers = #tpu.dot_dimension_numbers<[2], [1], [1], [2], [0, 0, 0, 1, 1, 2], [0], [0]>} : vector<2x4x16xbf16>, vector<2x16x64xbf16>, vector<2x4x64xf32> -> vector<2x4x64xf32>
    "tpu.trace_stop"() : () -> ()
    %c5 = arith.constant 5 : index
    %c0_137 = arith.constant 0 : index
    %c0_138 = arith.constant 0 : index
    %c0_139 = arith.constant 0 : index
    %197 = vector.load %arg1[%c5, %c0_137, %c0_138, %c0_139] : memref<8x2x4x64xf32, #tpu.memory_space<vmem>>, vector<1x2x4x64xf32>
    %198 = vector.shape_cast %197 : vector<1x2x4x64xf32> to vector<2x4x64xf32>
    %199 = arith.addf %198, %196 : vector<2x4x64xf32>
    %200 = vector.extract_strided_slice %199 {offsets = [0, 0, 0], sizes = [2, 4, 16], strides = [1, 1, 1]} : vector<2x4x64xf32> to vector<2x4x16xf32>
    %201 = arith.negf %200 : vector<2x4x16xf32>
    %202 = math.exp %201 : vector<2x4x16xf32>
    %cst_140 = arith.constant 1.000000e+00 : f32
    %203 = vector.broadcast %cst_140 : f32 to vector<2x4x16xf32>
    %204 = arith.addf %203, %202 : vector<2x4x16xf32>
    %205 = arith.divf %203, %204 : vector<2x4x16xf32>
    %206 = vector.extract_strided_slice %199 {offsets = [0, 0, 16], sizes = [2, 4, 16], strides = [1, 1, 1]} : vector<2x4x64xf32> to vector<2x4x16xf32>
    %207 = arith.negf %206 : vector<2x4x16xf32>
    %208 = math.exp %207 : vector<2x4x16xf32>
    %cst_141 = arith.constant 1.000000e+00 : f32
    %209 = vector.broadcast %cst_141 : f32 to vector<2x4x16xf32>
    %210 = arith.addf %209, %208 : vector<2x4x16xf32>
    %211 = arith.divf %209, %210 : vector<2x4x16xf32>
    %212 = vector.extract_strided_slice %199 {offsets = [0, 0, 32], sizes = [2, 4, 16], strides = [1, 1, 1]} : vector<2x4x64xf32> to vector<2x4x16xf32>
    %213 = math.tanh %212 : vector<2x4x16xf32>
    %214 = vector.extract_strided_slice %199 {offsets = [0, 0, 48], sizes = [2, 4, 16], strides = [1, 1, 1]} : vector<2x4x64xf32> to vector<2x4x16xf32>
    %215 = arith.negf %214 : vector<2x4x16xf32>
    %216 = math.exp %215 : vector<2x4x16xf32>
    %cst_142 = arith.constant 1.000000e+00 : f32
    %217 = vector.broadcast %cst_142 : f32 to vector<2x4x16xf32>
    %218 = arith.addf %217, %216 : vector<2x4x16xf32>
    %219 = arith.divf %217, %218 : vector<2x4x16xf32>
    %c0_143 = arith.constant 0 : index
    %c0_144 = arith.constant 0 : index
    %c0_145 = arith.constant 0 : index
    %220 = vector.load %arg5[%c0_143, %c0_144, %c0_145] : memref<2x4x16xf32, #tpu.memory_space<vmem>>, vector<2x4x16xf32>
    %221 = arith.mulf %211, %220 : vector<2x4x16xf32>
    %222 = arith.mulf %205, %213 : vector<2x4x16xf32>
    %223 = arith.addf %221, %222 : vector<2x4x16xf32>
    %224 = math.tanh %223 : vector<2x4x16xf32>
    %225 = arith.mulf %219, %224 : vector<2x4x16xf32>
    %c0_146 = arith.constant 0 : index
    %c0_147 = arith.constant 0 : index
    %c0_148 = arith.constant 0 : index
    %226 = vector.load %arg5[%c0_146, %c0_147, %c0_148] : memref<2x4x16xf32, #tpu.memory_space<vmem>>, vector<2x4x16xf32>
    tpu.vector_store %arg5[%c0_146, %c0_147, %c0_148], %223 {strides = array<i32>} : memref<2x4x16xf32, #tpu.memory_space<vmem>>, vector<2x4x16xf32>,
    %c0_149 = arith.constant 0 : index
    %c0_150 = arith.constant 0 : index
    %c0_151 = arith.constant 0 : index
    %227 = vector.load %arg4[%c0_149, %c0_150, %c0_151] : memref<2x4x16xf32, #tpu.memory_space<vmem>>, vector<2x4x16xf32>
    tpu.vector_store %arg4[%c0_149, %c0_150, %c0_151], %225 {strides = array<i32>} : memref<2x4x16xf32, #tpu.memory_space<vmem>>, vector<2x4x16xf32>,
    %c5_152 = arith.constant 5 : index
    %c0_153 = arith.constant 0 : index
    %c0_154 = arith.constant 0 : index
    %c0_155 = arith.constant 0 : index
    %228 = vector.load %arg3[%c5_152, %c0_153, %c0_154, %c0_155] : memref<8x2x4x16xf32, #tpu.memory_space<vmem>>, vector<1x2x4x16xf32>
    %229 = vector.shape_cast %228 : vector<1x2x4x16xf32> to vector<2x4x16xf32>
    %230 = vector.shape_cast %225 : vector<2x4x16xf32> to vector<1x2x4x16xf32>
    tpu.vector_store %arg3[%c5_152, %c0_153, %c0_154, %c0_155], %230 {strides = array<i32>} : memref<8x2x4x16xf32, #tpu.memory_space<vmem>>, vector<1x2x4x16xf32>,
    %c0_156 = arith.constant 0 : index
    %c0_157 = arith.constant 0 : index
    %c0_158 = arith.constant 0 : index
    %231 = vector.load %arg4[%c0_156, %c0_157, %c0_158] : memref<2x4x16xf32, #tpu.memory_space<vmem>>, vector<2x4x16xf32>
    %232 = arith.truncf %231 : vector<2x4x16xf32> to vector<2x4x16xbf16>
    %c0_159 = arith.constant 0 : index
    %c0_160 = arith.constant 0 : index
    %c0_161 = arith.constant 0 : index
    %233 = vector.load %arg2[%c0_159, %c0_160, %c0_161] : memref<2x16x64xbf16, #tpu.memory_space<vmem>>, vector<2x16x64xbf16>
    "tpu.trace_start"() <{level = 10 : i32, message = "dbh,dhg->dbg"}> : () -> ()
    %cst_162 = arith.constant dense<0.000000e+00> : vector<2x4x64xf32>
    %234 = tpu.matmul %232, %233, %cst_162 {dimension_numbers = #tpu.dot_dimension_numbers<[2], [1], [1], [2], [0, 0, 0, 1, 1, 2], [0], [0]>} : vector<2x4x16xbf16>, vector<2x16x64xbf16>, vector<2x4x64xf32> -> vector<2x4x64xf32>
    "tpu.trace_stop"() : () -> ()
    %c6 = arith.constant 6 : index
    %c0_163 = arith.constant 0 : index
    %c0_164 = arith.constant 0 : index
    %c0_165 = arith.constant 0 : index
    %235 = vector.load %arg1[%c6, %c0_163, %c0_164, %c0_165] : memref<8x2x4x64xf32, #tpu.memory_space<vmem>>, vector<1x2x4x64xf32>
    %236 = vector.shape_cast %235 : vector<1x2x4x64xf32> to vector<2x4x64xf32>
    %237 = arith.addf %236, %234 : vector<2x4x64xf32>
    %238 = vector.extract_strided_slice %237 {offsets = [0, 0, 0], sizes = [2, 4, 16], strides = [1, 1, 1]} : vector<2x4x64xf32> to vector<2x4x16xf32>
    %239 = arith.negf %238 : vector<2x4x16xf32>
    %240 = math.exp %239 : vector<2x4x16xf32>
    %cst_166 = arith.constant 1.000000e+00 : f32
    %241 = vector.broadcast %cst_166 : f32 to vector<2x4x16xf32>
    %242 = arith.addf %241, %240 : vector<2x4x16xf32>
    %243 = arith.divf %241, %242 : vector<2x4x16xf32>
    %244 = vector.extract_strided_slice %237 {offsets = [0, 0, 16], sizes = [2, 4, 16], strides = [1, 1, 1]} : vector<2x4x64xf32> to vector<2x4x16xf32>
    %245 = arith.negf %244 : vector<2x4x16xf32>
    %246 = math.exp %245 : vector<2x4x16xf32>
    %cst_167 = arith.constant 1.000000e+00 : f32
    %247 = vector.broadcast %cst_167 : f32 to vector<2x4x16xf32>
    %248 = arith.addf %247, %246 : vector<2x4x16xf32>
    %249 = arith.divf %247, %248 : vector<2x4x16xf32>
    %250 = vector.extract_strided_slice %237 {offsets = [0, 0, 32], sizes = [2, 4, 16], strides = [1, 1, 1]} : vector<2x4x64xf32> to vector<2x4x16xf32>
    %251 = math.tanh %250 : vector<2x4x16xf32>
    %252 = vector.extract_strided_slice %237 {offsets = [0, 0, 48], sizes = [2, 4, 16], strides = [1, 1, 1]} : vector<2x4x64xf32> to vector<2x4x16xf32>
    %253 = arith.negf %252 : vector<2x4x16xf32>
    %254 = math.exp %253 : vector<2x4x16xf32>
    %cst_168 = arith.constant 1.000000e+00 : f32
    %255 = vector.broadcast %cst_168 : f32 to vector<2x4x16xf32>
    %256 = arith.addf %255, %254 : vector<2x4x16xf32>
    %257 = arith.divf %255, %256 : vector<2x4x16xf32>
    %c0_169 = arith.constant 0 : index
    %c0_170 = arith.constant 0 : index
    %c0_171 = arith.constant 0 : index
    %258 = vector.load %arg5[%c0_169, %c0_170, %c0_171] : memref<2x4x16xf32, #tpu.memory_space<vmem>>, vector<2x4x16xf32>
    %259 = arith.mulf %249, %258 : vector<2x4x16xf32>
    %260 = arith.mulf %243, %251 : vector<2x4x16xf32>
    %261 = arith.addf %259, %260 : vector<2x4x16xf32>
    %262 = math.tanh %261 : vector<2x4x16xf32>
    %263 = arith.mulf %257, %262 : vector<2x4x16xf32>
    %c0_172 = arith.constant 0 : index
    %c0_173 = arith.constant 0 : index
    %c0_174 = arith.constant 0 : index
    %264 = vector.load %arg5[%c0_172, %c0_173, %c0_174] : memref<2x4x16xf32, #tpu.memory_space<vmem>>, vector<2x4x16xf32>
    tpu.vector_store %arg5[%c0_172, %c0_173, %c0_174], %261 {strides = array<i32>} : memref<2x4x16xf32, #tpu.memory_space<vmem>>, vector<2x4x16xf32>,
    %c0_175 = arith.constant 0 : index
    %c0_176 = arith.constant 0 : index
    %c0_177 = arith.constant 0 : index
    %265 = vector.load %arg4[%c0_175, %c0_176, %c0_177] : memref<2x4x16xf32, #tpu.memory_space<vmem>>, vector<2x4x16xf32>
    tpu.vector_store %arg4[%c0_175, %c0_176, %c0_177], %263 {strides = array<i32>} : memref<2x4x16xf32, #tpu.memory_space<vmem>>, vector<2x4x16xf32>,
    %c6_178 = arith.constant 6 : index
    %c0_179 = arith.constant 0 : index
    %c0_180 = arith.constant 0 : index
    %c0_181 = arith.constant 0 : index
    %266 = vector.load %arg3[%c6_178, %c0_179, %c0_180, %c0_181] : memref<8x2x4x16xf32, #tpu.memory_space<vmem>>, vector<1x2x4x16xf32>
    %267 = vector.shape_cast %266 : vector<1x2x4x16xf32> to vector<2x4x16xf32>
    %268 = vector.shape_cast %263 : vector<2x4x16xf32> to vector<1x2x4x16xf32>
    tpu.vector_store %arg3[%c6_178, %c0_179, %c0_180, %c0_181], %268 {strides = array<i32>} : memref<8x2x4x16xf32, #tpu.memory_space<vmem>>, vector<1x2x4x16xf32>,
    %c0_182 = arith.constant 0 : index
    %c0_183 = arith.constant 0 : index
    %c0_184 = arith.constant 0 : index
    %269 = vector.load %arg4[%c0_182, %c0_183, %c0_184] : memref<2x4x16xf32, #tpu.memory_space<vmem>>, vector<2x4x16xf32>
    %270 = arith.truncf %269 : vector<2x4x16xf32> to vector<2x4x16xbf16>
    %c0_185 = arith.constant 0 : index
    %c0_186 = arith.constant 0 : index
    %c0_187 = arith.constant 0 : index
    %271 = vector.load %arg2[%c0_185, %c0_186, %c0_187] : memref<2x16x64xbf16, #tpu.memory_space<vmem>>, vector<2x16x64xbf16>
    "tpu.trace_start"() <{level = 10 : i32, message = "dbh,dhg->dbg"}> : () -> ()
    %cst_188 = arith.constant dense<0.000000e+00> : vector<2x4x64xf32>
    %272 = tpu.matmul %270, %271, %cst_188 {dimension_numbers = #tpu.dot_dimension_numbers<[2], [1], [1], [2], [0, 0, 0, 1, 1, 2], [0], [0]>} : vector<2x4x16xbf16>, vector<2x16x64xbf16>, vector<2x4x64xf32> -> vector<2x4x64xf32>
    "tpu.trace_stop"() : () -> ()
    %c7 = arith.constant 7 : index
    %c0_189 = arith.constant 0 : index
    %c0_190 = arith.constant 0 : index
    %c0_191 = arith.constant 0 : index
    %273 = vector.load %arg1[%c7, %c0_189, %c0_190, %c0_191] : memref<8x2x4x64xf32, #tpu.memory_space<vmem>>, vector<1x2x4x64xf32>
    %274 = vector.shape_cast %273 : vector<1x2x4x64xf32> to vector<2x4x64xf32>
    %275 = arith.addf %274, %272 : vector<2x4x64xf32>
    %276 = vector.extract_strided_slice %275 {offsets = [0, 0, 0], sizes = [2, 4, 16], strides = [1, 1, 1]} : vector<2x4x64xf32> to vector<2x4x16xf32>
    %277 = arith.negf %276 : vector<2x4x16xf32>
    %278 = math.exp %277 : vector<2x4x16xf32>
    %cst_192 = arith.constant 1.000000e+00 : f32
    %279 = vector.broadcast %cst_192 : f32 to vector<2x4x16xf32>
    %280 = arith.addf %279, %278 : vector<2x4x16xf32>
    %281 = arith.divf %279, %280 : vector<2x4x16xf32>
    %282 = vector.extract_strided_slice %275 {offsets = [0, 0, 16], sizes = [2, 4, 16], strides = [1, 1, 1]} : vector<2x4x64xf32> to vector<2x4x16xf32>
    %283 = arith.negf %282 : vector<2x4x16xf32>
    %284 = math.exp %283 : vector<2x4x16xf32>
    %cst_193 = arith.constant 1.000000e+00 : f32
    %285 = vector.broadcast %cst_193 : f32 to vector<2x4x16xf32>
    %286 = arith.addf %285, %284 : vector<2x4x16xf32>
    %287 = arith.divf %285, %286 : vector<2x4x16xf32>
    %288 = vector.extract_strided_slice %275 {offsets = [0, 0, 32], sizes = [2, 4, 16], strides = [1, 1, 1]} : vector<2x4x64xf32> to vector<2x4x16xf32>
    %289 = math.tanh %288 : vector<2x4x16xf32>
    %290 = vector.extract_strided_slice %275 {offsets = [0, 0, 48], sizes = [2, 4, 16], strides = [1, 1, 1]} : vector<2x4x64xf32> to vector<2x4x16xf32>
    %291 = arith.negf %290 : vector<2x4x16xf32>
    %292 = math.exp %291 : vector<2x4x16xf32>
    %cst_194 = arith.constant 1.000000e+00 : f32
    %293 = vector.broadcast %cst_194 : f32 to vector<2x4x16xf32>
    %294 = arith.addf %293, %292 : vector<2x4x16xf32>
    %295 = arith.divf %293, %294 : vector<2x4x16xf32>
    %c0_195 = arith.constant 0 : index
    %c0_196 = arith.constant 0 : index
    %c0_197 = arith.constant 0 : index
    %296 = vector.load %arg5[%c0_195, %c0_196, %c0_197] : memref<2x4x16xf32, #tpu.memory_space<vmem>>, vector<2x4x16xf32>
    %297 = arith.mulf %287, %296 : vector<2x4x16xf32>
    %298 = arith.mulf %281, %289 : vector<2x4x16xf32>
    %299 = arith.addf %297, %298 : vector<2x4x16xf32>
    %300 = math.tanh %299 : vector<2x4x16xf32>
    %301 = arith.mulf %295, %300 : vector<2x4x16xf32>
    %c0_198 = arith.constant 0 : index
    %c0_199 = arith.constant 0 : index
    %c0_200 = arith.constant 0 : index
    %302 = vector.load %arg5[%c0_198, %c0_199, %c0_200] : memref<2x4x16xf32, #tpu.memory_space<vmem>>, vector<2x4x16xf32>
    tpu.vector_store %arg5[%c0_198, %c0_199, %c0_200], %299 {strides = array<i32>} : memref<2x4x16xf32, #tpu.memory_space<vmem>>, vector<2x4x16xf32>,
    %c0_201 = arith.constant 0 : index
    %c0_202 = arith.constant 0 : index
    %c0_203 = arith.constant 0 : index
    %303 = vector.load %arg4[%c0_201, %c0_202, %c0_203] : memref<2x4x16xf32, #tpu.memory_space<vmem>>, vector<2x4x16xf32>
    tpu.vector_store %arg4[%c0_201, %c0_202, %c0_203], %301 {strides = array<i32>} : memref<2x4x16xf32, #tpu.memory_space<vmem>>, vector<2x4x16xf32>,
    %c7_204 = arith.constant 7 : index
    %c0_205 = arith.constant 0 : index
    %c0_206 = arith.constant 0 : index
    %c0_207 = arith.constant 0 : index
    %304 = vector.load %arg3[%c7_204, %c0_205, %c0_206, %c0_207] : memref<8x2x4x16xf32, #tpu.memory_space<vmem>>, vector<1x2x4x16xf32>
    %305 = vector.shape_cast %304 : vector<1x2x4x16xf32> to vector<2x4x16xf32>
    %306 = vector.shape_cast %301 : vector<2x4x16xf32> to vector<1x2x4x16xf32>
    tpu.vector_store %arg3[%c7_204, %c0_205, %c0_206, %c0_207], %306 {strides = array<i32>} : memref<8x2x4x16xf32, #tpu.memory_space<vmem>>, vector<1x2x4x16xf32>,
    return
  }
  func.func @transform_0(%arg0: i32) -> (i32, i32, i32, i32) {
    %c0_i32 = arith.constant 0 : i32
    %c0_i32_0 = arith.constant 0 : i32
    %c0_i32_1 = arith.constant 0 : i32
    %c0_i32_2 = arith.constant 0 : i32
    return %arg0, %c0_i32, %c0_i32_0, %c0_i32_1 : i32, i32, i32, i32
  }
  func.func @transform_1(%arg0: i32) -> (i32, i32, i32) {
    %c0_i32 = arith.constant 0 : i32
    %c0_i32_0 = arith.constant 0 : i32
    %c0_i32_1 = arith.constant 0 : i32
    %c0_i32_2 = arith.constant 0 : i32
    return %c0_i32, %c0_i32_0, %c0_i32_1 : i32, i32, i32
  }
  func.func @transform_2(%arg0: i32) -> (i32, i32, i32, i32) {
    %c0_i32 = arith.constant 0 : i32
    %c0_i32_0 = arith.constant 0 : i32
    %c0_i32_1 = arith.constant 0 : i32
    %c0_i32_2 = arith.constant 0 : i32
    return %arg0, %c0_i32, %c0_i32_0, %c0_i32_1 : i32, i32, i32, i32
  }
}

module attributes {stable_mosaic.version = 11 : i64} {
  func.func @_max_time_kernel(%arg0: memref<8x2x4x16xf32, #tpu.memory_space<vmem>>, %arg1: memref<2x4x16xf32, #tpu.memory_space<vmem>>) attributes {dimension_semantics = [], scalar_prefetch = 0 : i64, scratch_operands = 0 : i64, tpu.core_type = #tpu.core_type<tc>} {
    %c0 = arith.constant 0 : index
    %c0_0 = arith.constant 0 : index
    %c0_1 = arith.constant 0 : index
    %c0_2 = arith.constant 0 : index
    %0 = vector.load %arg0[%c0, %c0_0, %c0_1, %c0_2] : memref<8x2x4x16xf32, #tpu.memory_space<vmem>>, vector<8x2x4x16xf32>
    %cst = arith.constant dense<0xFF800000> : vector<2x4x16xf32>
    %1 = vector.multi_reduction <maximumf>, %0, %cst [0] : vector<8x2x4x16xf32> to vector<2x4x16xf32>
    %c0_3 = arith.constant 0 : index
    %c0_4 = arith.constant 0 : index
    %c0_5 = arith.constant 0 : index
    %2 = vector.load %arg1[%c0_3, %c0_4, %c0_5] : memref<2x4x16xf32, #tpu.memory_space<vmem>>, vector<2x4x16xf32>
    tpu.vector_store %arg1[%c0_3, %c0_4, %c0_5], %1 {strides = array<i32>} : memref<2x4x16xf32, #tpu.memory_space<vmem>>, vector<2x4x16xf32>,
    return
  }
}

module attributes {stable_mosaic.version = 11 : i64} {
  func.func @_matmul_kernel(%arg0: i32, %arg1: i32, %arg2: i32, %arg3: memref<32x128xbf16, #tpu.memory_space<vmem>>, %arg4: memref<128x128xbf16, #tpu.memory_space<vmem>>, %arg5: memref<1x128xf32, #tpu.memory_space<vmem>>, %arg6: memref<1x128xf32, #tpu.memory_space<vmem>>, %arg7: memref<32x128xf32, #tpu.memory_space<vmem>>, %arg8: memref<32x128xf32, #tpu.memory_space<vmem>>) attributes {dimension_semantics = [#tpu.dimension_semantics<parallel>, #tpu.dimension_semantics<parallel>, #tpu.dimension_semantics<arbitrary>], iteration_bounds = array<i64: 1, 1, 1>, scalar_prefetch = 0 : i64, scratch_operands = 1 : i64, tpu.core_type = #tpu.core_type<tc>, window_params = [{transform_indices = @transform_0, window_bounds = array<i64: 32, 128>}, {transform_indices = @transform_1, window_bounds = array<i64: 128, 128>}, {transform_indices = @transform_2, window_bounds = array<i64: 1, 128>}, {transform_indices = @transform_3, window_bounds = array<i64: 1, 128>}, {transform_indices = @transform_4, window_bounds = array<i64: 32, 128>}]} {
    %c0_i32 = arith.constant 0 : i32
    %0 = arith.cmpi eq, %arg2, %c0_i32 : i32
    %1 = arith.extui %0 : i1 to i32
    %c0_i32_0 = arith.constant 0 : i32
    %2 = arith.cmpi ne, %1, %c0_i32_0 : i32
    scf.if %2 {
      %cst_10 = arith.constant 0.000000e+00 : f32
      %12 = vector.broadcast %cst_10 : f32 to vector<32x128xf32>
      %c0_11 = arith.constant 0 : index
      %c0_12 = arith.constant 0 : index
      %13 = vector.load %arg8[%c0_11, %c0_12] : memref<32x128xf32, #tpu.memory_space<vmem>>, vector<32x128xf32>
      tpu.vector_store %arg8[%c0_11, %c0_12], %12 {strides = array<i32>} : memref<32x128xf32, #tpu.memory_space<vmem>>, vector<32x128xf32>,
    } else {
    }
    %c0 = arith.constant 0 : index
    %c0_1 = arith.constant 0 : index
    %3 = vector.load %arg8[%c0, %c0_1] : memref<32x128xf32, #tpu.memory_space<vmem>>, vector<32x128xf32>
    %c0_2 = arith.constant 0 : index
    %c0_3 = arith.constant 0 : index
    %4 = vector.load %arg3[%c0_2, %c0_3] : memref<32x128xbf16, #tpu.memory_space<vmem>>, vector<32x128xbf16>
    %c0_4 = arith.constant 0 : index
    %c0_5 = arith.constant 0 : index
    %5 = vector.load %arg4[%c0_4, %c0_5] : memref<128x128xbf16, #tpu.memory_space<vmem>>, vector<128x128xbf16>
    %cst = arith.constant dense<0.000000e+00> : vector<32x128xf32>
    %6 = tpu.matmul %4, %5, %cst {dimension_numbers = #tpu.dot_dimension_numbers<[1], [0], [0], [1], [0, 0, 1, 1], [], []>} : vector<32x128xbf16>, vector<128x128xbf16>, vector<32x128xf32> -> vector<32x128xf32>
    %7 = arith.addf %3, %6 : vector<32x128xf32>
    %c0_6 = arith.constant 0 : index
    %c0_7 = arith.constant 0 : index
    %8 = vector.load %arg8[%c0_6, %c0_7] : memref<32x128xf32, #tpu.memory_space<vmem>>, vector<32x128xf32>
    tpu.vector_store %arg8[%c0_6, %c0_7], %7 {strides = array<i32>} : memref<32x128xf32, #tpu.memory_space<vmem>>, vector<32x128xf32>,
    %c0_i32_8 = arith.constant 0 : i32
    %9 = arith.cmpi eq, %arg2, %c0_i32_8 : i32
    %10 = arith.extui %9 : i1 to i32
    %c0_i32_9 = arith.constant 0 : i32
    %11 = arith.cmpi ne, %10, %c0_i32_9 : i32
    scf.if %11 {
      %c0_10 = arith.constant 0 : index
      %c0_11 = arith.constant 0 : index
      %12 = vector.load %arg8[%c0_10, %c0_11] : memref<32x128xf32, #tpu.memory_space<vmem>>, vector<32x128xf32>
      %c0_12 = arith.constant 0 : index
      %c0_13 = arith.constant 0 : index
      %13 = vector.load %arg5[%c0_12, %c0_13] : memref<1x128xf32, #tpu.memory_space<vmem>>, vector<1x128xf32>
      %14 = vector.broadcast %13 : vector<1x128xf32> to vector<32x128xf32>
      %15 = arith.mulf %12, %14 : vector<32x128xf32>
      %c0_14 = arith.constant 0 : index
      %c0_15 = arith.constant 0 : index
      %16 = vector.load %arg6[%c0_14, %c0_15] : memref<1x128xf32, #tpu.memory_space<vmem>>, vector<1x128xf32>
      %17 = vector.broadcast %16 : vector<1x128xf32> to vector<32x128xf32>
      %18 = arith.addf %15, %17 : vector<32x128xf32>
      %c0_16 = arith.constant 0 : index
      %c0_17 = arith.constant 0 : index
      %19 = vector.load %arg7[%c0_16, %c0_17] : memref<32x128xf32, #tpu.memory_space<vmem>>, vector<32x128xf32>
      tpu.vector_store %arg7[%c0_16, %c0_17], %18 {strides = array<i32>} : memref<32x128xf32, #tpu.memory_space<vmem>>, vector<32x128xf32>,
    } else {
    }
    return
  }
  func.func @transform_0(%arg0: i32, %arg1: i32, %arg2: i32) -> (i32, i32) {
    %c0_i32 = arith.constant 0 : i32
    return %arg0, %arg2 : i32, i32
  }
  func.func @transform_1(%arg0: i32, %arg1: i32, %arg2: i32) -> (i32, i32) {
    %c0_i32 = arith.constant 0 : i32
    return %arg2, %arg1 : i32, i32
  }
  func.func @transform_2(%arg0: i32, %arg1: i32, %arg2: i32) -> (i32, i32) {
    %c0_i32 = arith.constant 0 : i32
    %c0_i32_0 = arith.constant 0 : i32
    return %c0_i32, %arg1 : i32, i32
  }
  func.func @transform_3(%arg0: i32, %arg1: i32, %arg2: i32) -> (i32, i32) {
    %c0_i32 = arith.constant 0 : i32
    %c0_i32_0 = arith.constant 0 : i32
    return %c0_i32, %arg1 : i32, i32
  }
  func.func @transform_4(%arg0: i32, %arg1: i32, %arg2: i32) -> (i32, i32) {
    %c0_i32 = arith.constant 0 : i32
    return %arg0, %arg1 : i32, i32
  }
}

module attributes {stable_mosaic.version = 11 : i64} {
  func.func @_embed_norm_kernel(%arg0: memref<4x32xbf16, #tpu.memory_space<vmem>>, %arg1: memref<32x128xbf16, #tpu.memory_space<vmem>>, %arg2: memref<1x128xf32, #tpu.memory_space<vmem>>, %arg3: memref<4x128xf32, #tpu.memory_space<vmem>>) attributes {dimension_semantics = [], scalar_prefetch = 0 : i64, scratch_operands = 0 : i64, tpu.core_type = #tpu.core_type<tc>} {
    %c0 = arith.constant 0 : index
    %c0_0 = arith.constant 0 : index
    %0 = vector.load %arg0[%c0, %c0_0] : memref<4x32xbf16, #tpu.memory_space<vmem>>, vector<4x32xbf16>
    %c0_1 = arith.constant 0 : index
    %c0_2 = arith.constant 0 : index
    %1 = vector.load %arg1[%c0_1, %c0_2] : memref<32x128xbf16, #tpu.memory_space<vmem>>, vector<32x128xbf16>
    %cst = arith.constant dense<0.000000e+00> : vector<4x128xf32>
    %2 = tpu.matmul %0, %1, %cst {dimension_numbers = #tpu.dot_dimension_numbers<[1], [0], [0], [1], [0, 0, 1, 1], [], []>} : vector<4x32xbf16>, vector<32x128xbf16>, vector<4x128xf32> -> vector<4x128xf32>
    %c0_3 = arith.constant 0 : index
    %c0_4 = arith.constant 0 : index
    %3 = vector.load %arg2[%c0_3, %c0_4] : memref<1x128xf32, #tpu.memory_space<vmem>>, vector<1x128xf32>
    %4 = vector.broadcast %3 : vector<1x128xf32> to vector<4x128xf32>
    %5 = arith.addf %2, %4 : vector<4x128xf32>
    %6 = arith.mulf %5, %5 : vector<4x128xf32>
    %cst_5 = arith.constant dense<0.000000e+00> : vector<4xf32>
    %7 = vector.multi_reduction <add>, %6, %cst_5 [1] : vector<4x128xf32> to vector<4xf32>
    %8 = vector.shape_cast %7 : vector<4xf32> to vector<4x1xf32>
    %cst_6 = arith.constant 1.000000e-24 : f32
    %9 = vector.broadcast %cst_6 : f32 to vector<4x1xf32>
    %10 = arith.maximumf %8, %9 : vector<4x1xf32>
    %11 = math.rsqrt %10 : vector<4x1xf32>
    %12 = vector.broadcast %11 : vector<4x1xf32> to vector<4x128xf32>
    %13 = arith.mulf %5, %12 : vector<4x128xf32>
    %c0_7 = arith.constant 0 : index
    %c0_8 = arith.constant 0 : index
    %14 = vector.load %arg3[%c0_7, %c0_8] : memref<4x128xf32, #tpu.memory_space<vmem>>, vector<4x128xf32>
    tpu.vector_store %arg3[%c0_7, %c0_8], %13 {strides = array<i32>} : memref<4x128xf32, #tpu.memory_space<vmem>>, vector<4x128xf32>,
    return
  }
}

</mosaic_0001>

<bundles_post_ra>
// kernel: vitaa_forward.9
= control target key start
LH: loop header
LB: loop body
LE: loop exit
PB: predicated region body
PF: predicated region fallthrough
CT: control target
= control target key end

     0   :  { %s1831_s15 = smov 0   ;;  %s1833_s16 = smov 0   ;;  %s2143_s0 = inlined_call_operand.vmem [shape: bf16[2,288,128], index: 0, kind: input, shape index: {}]   ;;  %s2144_s1 = inlined_call_operand.vmem [shape: bf16[3,128,128], index: 1, kind: input, shape index: {}]   ;;  %s2145_s2 = inlined_call_operand.vmem [shape: f32[1,128], index: 2, kind: input, shape index: {}]   ;;  %s2146_s3 = inlined_call_operand.vmem [shape: f32[1,128], index: 3, kind: input, shape index: {}]   ;;  %s2147_s4 = inlined_call_operand.vmem [shape: bf16[2,256,128], index: 4, kind: output, shape index: {}]  }
   0x1   :  { %s1835_s17 = smov 0  }
   0x2 LB: > { %s26_s18 = sadd.s32 1, %s1800_s16  ;;  %p1312_p0 = scmp.ge.s32.totalorder %s1804_s17, 1  ;;  %s1804_s17 = sphi %s1835_s17, %s14_s17   ;;  %s1800_s16 = sphi %s1833_s16, %s2149_s16   ;;  %s1796_s15 = sphi %s1831_s15, %s2148_s15  }
   0x3   : > { %p28_p1 = scmp.ge.s32.totalorder %s26_s18, 2  ;;  %p201_p2 = scmp.lt.s32.totalorder %s1804_s17, 3 }
   0x5   : > { %s2151_s18 = smov (%p28_p1, %s26_s18), 0  ;;  %p202_p3 = pnand %p1312_p0, %p201_p2 }
   0x6   : > { %p240_p4 = scmp.lt.s32.totalorder (!%p202_p3), %s1796_s15, 1 }
   0x7   : > { %205 = sbr.rel (%p202_p3) target bundleno = 373 (0x175), region = 36 }
   0xc   : > { %v1611_v0 = vld [vmem:[%s2144_s1 + $0x78] sm:$0xff]  ;;  %v1610_v3 = vld [vmem:[%s2144_s1 + $0x70] sm:$0xff]  ;;  %v1609_v6 = vld [vmem:[%s2144_s1 + $0x68] sm:$0xff]  ;;  %s2153_s15 = smov (!%p240_p4, %s1796_s15), 1 }
   0xd   : > { %v1602_v1 = vld [vmem:[%s2144_s1 + $0x38] sm:$0xff]  ;;  %474 = vmatpush.bf16.msra.mxu0 %v1611_v0  ;;  %1731 = vmatpush.bf16.msra.mxu3 %v1611_v0  ;;  %v1601_v4 = vld [vmem:[%s2144_s1 + $0x30] sm:$0xff]  ;;  %v1600_v7 = vld [vmem:[%s2144_s1 + $0x28] sm:$0xff]  ;;  %s1755_s9 = smul.u32 144, %s2153_s15  ;;  %s1578_s5 = sshll.u32 %s2153_s15, 7 }
   0xe   : > { %v1860_v2 = vld [vmem:[%s2144_s1 + $0xb8] sm:$0xff]  ;;  %617 = vmatpush.bf16.msra.mxu1 %v1602_v1  ;;  %v1872_v5 = vld [vmem:[%s2144_s1 + $0xb0] sm:$0xff]  ;;  %v1884_v8 = vld [vmem:[%s2144_s1 + $0xa8] sm:$0xff]  ;;  %s2008_s8 = scalar_lea.vmem %s2147_s4, %s1578_s5 }
   0xf   : > { %899 = vmatpush.bf16.msra.mxu2 %v1860_v2  ;;  %v1608_v9 = vld [vmem:[%s2144_s1 + $0x60] sm:$0xff]  ;;  %v1607_v12 = vld [vmem:[%s2144_s1 + $0x58] sm:$0xff]  ;;  %v1606_v15 = vld [vmem:[%s2144_s1 + $0x50] sm:$0xff]  ;;  %s1940_s22 = scalar_lea.vmem %s2143_s0, %s1755_s9 }
  0x10   : > { %v1599_v10 = vld [vmem:[%s2144_s1 + $0x20] sm:$0xff]  ;;  %v1598_v13 = vld [vmem:[%s2144_s1 + $0x18] sm:$0xff]  ;;  %v1597_v16 = vld [vmem:[%s2144_s1 + $0x10] sm:$0xff] }
  0x11   : > { %475 = vmatpush.bf16.msra.mxu0 %v1610_v3  ;;  %1732 = vmatpush.bf16.msra.mxu3 %v1610_v3  ;;  %v1896_v11 = vld [vmem:[%s2144_s1 + $0xa0] sm:$0xff]  ;;  %v1909_v14 = vld [vmem:[%s2144_s1 + $0x98] sm:$0xff]  ;;  %v1630_v17 = vld [vmem:[%s2144_s1 + $0x90] sm:$0xff] }
  0x12   : > { %618 = vmatpush.bf16.msra.mxu1 %v1601_v4  ;;  %v1605_v18 = vld [vmem:[%s2144_s1 + $0x48] sm:$0xff]  ;;  %v1604_v21 = vld [vmem:[%s2144_s1 + $0x40] sm:$0xff]  ;;  %v1612_v27 = vld [vmem:[%s1940_s22 + $0x10] sm:$0xff] }
  0x13   : > { %900 = vmatpush.bf16.msra.mxu2 %v1872_v5  ;;  %v1596_v19 = vld [vmem:[%s2144_s1 + $0x8] sm:$0xff]  ;;  %v1595_v22 = vld [vmem:[%s2144_s1] sm:$0xff]  ;;  %v1581_v28 = vld [vmem:[%s1940_s22 + $0x10] sm:$0xff] }
  0x14   : > { %v1629_v20 = vld [vmem:[%s2144_s1 + $0x88] sm:$0xff]  ;;  %v1628_v23 = vld [vmem:[%s2144_s1 + $0x80] sm:$0xff]  ;;  %v1593_v29 = vld [vmem:[%s1940_s22 + $0x70] sm:$0xff] }
  0x15   : > { %476 = vmatpush.bf16.msra.mxu0 %v1609_v6  ;;  %1733 = vmatpush.bf16.msra.mxu3 %v1609_v6  ;;  %v1580_v24 = vld [vmem:[%s1940_s22 + $0x8] sm:$0xff]  ;;  %v1579_v26 = vld [vmem:[%s1940_s22] sm:$0xff]  ;;  %v1613_v30 = vld [vmem:[%s1940_s22 + $0x18] sm:$0xff] }
  0x16   : > { %619 = vmatpush.bf16.msra.mxu1 %v1600_v7  ;;  %v1592_v25 = vld [vmem:[%s1940_s22 + $0x68] sm:$0xff]  ;;  %v1582_v31 = vld [vmem:[%s1940_s22 + $0x18] sm:$0xff]  ;;  %v1614_v33 = vld [vmem:[%s1940_s22 + $0x20] sm:$0xff] }
  0x17   : > { %901 = vmatpush.bf16.msra.mxu2 %v1884_v8  ;;  %v1594_v32 = vld [vmem:[%s1940_s22 + $0x78] sm:$0xff]  ;;  %v1583_v34 = vld [vmem:[%s1940_s22 + $0x20] sm:$0xff]  ;;  %v1615_v36 = vld [vmem:[%s1940_s22 + $0x28] sm:$0xff] }
  0x18   : > { %v1603_v35 = vld [vmem:[%s1940_s22 + $0x80] sm:$0xff]  ;;  %v1584_v37 = vld [vmem:[%s1940_s22 + $0x28] sm:$0xff]  ;;  %v1616_v39 = vld [vmem:[%s1940_s22 + $0x30] sm:$0xff] }
  0x19   : > { %477 = vmatpush.bf16.msra.mxu0 %v1608_v9  ;;  %1734 = vmatpush.bf16.msra.mxu3 %v1608_v9  ;;  %v1968_v38 = vld [vmem:[%s1940_s22 + $0x60] sm:$0xff]  ;;  %v1585_v40 = vld [vmem:[%s1940_s22 + $0x30] sm:$0xff]  ;;  %v1617_v41 = vld [vmem:[%s1940_s22 + $0x38] sm:$0xff] }
  0x1a   : > { %620 = vmatpush.bf16.msra.mxu1 %v1599_v10  ;;  %v1586_v42 = vld [vmem:[%s1940_s22 + $0x38] sm:$0xff]  ;;  %v1618_v43 = vld [vmem:[%s1940_s22 + $0x40] sm:$0xff]  ;;  %v1619_v45 = vld [vmem:[%s1940_s22 + $0x48] sm:$0xff] }
  0x1b   : > { %902 = vmatpush.bf16.msra.mxu2 %v1896_v11  ;;  %v1587_v44 = vld [vmem:[%s1940_s22 + $0x40] sm:$0xff]  ;;  %v1588_v46 = vld [vmem:[%s1940_s22 + $0x48] sm:$0xff]  ;;  %v1624_v47 = vld [vmem:[%s1940_s22 + $0x70] sm:$0xff] }
  0x1c   : > { %v1620_v49 = vld [vmem:[%s1940_s22 + $0x50] sm:$0xff]  ;;  %v1986_v57 = vld [vmem:[%s2145_s2] ss:$0 sm:$0xff]  ;;  %v1625_v0 = vld [vmem:[%s1940_s22 + $0x78] sm:$0xff] }
  0x1d   : > { %478 = vmatpush.bf16.msra.mxu0 %v1607_v12  ;;  %1735 = vmatpush.bf16.msra.mxu3 %v1607_v12  ;;  %v1992_v59 = vld [vmem:[%s2146_s3] ss:$0 sm:$0xff]  ;;  %v1589_v63 = vld [vmem:[%s1940_s22 + $0x50] sm:$0xff]  ;;  %v1621_v3 = vld [vmem:[%s1940_s22 + $0x58] sm:$0xff] }
  0x1e   : > { %621 = vmatpush.bf16.msra.mxu1 %v1598_v13 }
  0x1f   : > { %903 = vmatpush.bf16.msra.mxu2 %v1909_v14 }
  0x21   : > { %479 = vmatpush.bf16.msra.mxu0 %v1606_v15  ;;  %1736 = vmatpush.bf16.msra.mxu3 %v1606_v15 }
  0x22   : > { %622 = vmatpush.bf16.msra.mxu1 %v1597_v16 }
  0x23   : > { %904 = vmatpush.bf16.msra.mxu2 %v1630_v17 }
  0x25   : > { %480 = vmatpush.bf16.msra.mxu0 %v1605_v18  ;;  %1737 = vmatpush.bf16.msra.mxu3 %v1605_v18 }
  0x26   : > { %623 = vmatpush.bf16.msra.mxu1 %v1596_v19 }
  0x27   : > { %905 = vmatpush.bf16.msra.mxu2 %v1629_v20 }
  0x29   : > { %481 = vmatpush.bf16.msra.mxu0 %v1604_v21  ;;  %1738 = vmatpush.bf16.msra.mxu3 %v1604_v21  ;;  %v1590_v21 = vld [vmem:[%s1940_s22 + $0x58] sm:$0xff] }
  0x2a   : > { %624 = vmatpush.bf16.msra.mxu1 %v1595_v22 }
  0x2b   : > { %906 = vmatpush.bf16.msra.mxu2 %v1628_v23 }
  0x2c   : > { %482 = vmatmul.bf16.vlgmr.msra.gmra.mxu0 %v1580_v24  ;;  %542 = vmatmul.bf16.vlgmr.msra.gmra.mxu3 %v1592_v25 }
  0x2d   : > { %1739 = vmatpush.bf16.msrb.mxu3 %v1602_v1  ;;  %625 = vmatmul.bf16.vlgmr.msra.gmra.mxu1 %v1579_v26 }
  0x2e   : > { %907 = vmatmul.bf16.vlgmr.msra.gmra.mxu2 %v1612_v27 }
  0x31   : > { %1740 = vmatpush.bf16.msrb.mxu3 %v1601_v4 }
  0x35   : > { %1741 = vmatpush.bf16.msrb.mxu3 %v1600_v7 }
  0x39   : > { %1742 = vmatpush.bf16.msrb.mxu3 %v1599_v10 }
  0x3c   : > { %487 = vmatmul.bf16.gmra.mxu0 %v1581_v28  ;;  %547 = vmatmul.bf16.gmra.mxu3 %v1593_v29 }
  0x3d   : > { %1743 = vmatpush.bf16.msrb.mxu3 %v1598_v13  ;;  %630 = vmatmul.bf16.gmra.mxu1 %v1580_v24 }
  0x3e   : > { %912 = vmatmul.bf16.gmra.mxu2 %v1613_v30 }
  0x41   : > { %1744 = vmatpush.bf16.msrb.mxu3 %v1597_v16 }
  0x45   : > { %1745 = vmatpush.bf16.msrb.mxu3 %v1596_v19 }
  0x49   : > { %1746 = vmatpush.bf16.msrb.mxu3 %v1595_v22  ;;  %v1626_v22 = vld [vmem:[%s1940_s22 + $0x80] sm:$0xff] }
  0x4c   : > { %492 = vmatmul.bf16.gmra.mxu0 %v1582_v31  ;;  %552 = vmatmul.bf16.gmra.mxu3 %v1594_v32 }
  0x4d   : > { %1747 = vmatpush.bf16.msra.mxu3 %v1860_v2  ;;  %635 = vmatmul.bf16.gmra.mxu1 %v1581_v28 }
  0x4e   : > { %917 = vmatmul.bf16.gmra.mxu2 %v1614_v33 }
  0x51   : > { %1748 = vmatpush.bf16.msra.mxu3 %v1872_v5 }
  0x55   : > { %1749 = vmatpush.bf16.msra.mxu3 %v1884_v8 }
  0x59   : > { %1750 = vmatpush.bf16.msra.mxu3 %v1896_v11 }
  0x5c   : > { %497 = vmatmul.bf16.gmra.mxu0 %v1583_v34  ;;  %557 = vmatmul.bf16.gmra.mxu3 %v1603_v35 }
  0x5d   : > { %1751 = vmatpush.bf16.msra.mxu3 %v1909_v14  ;;  %640 = vmatmul.bf16.gmra.mxu1 %v1582_v31 }
  0x5e   : > { %922 = vmatmul.bf16.gmra.mxu2 %v1615_v36 }
  0x61   : > { %1752 = vmatpush.bf16.msra.mxu3 %v1630_v17 }
  0x65   : > { %1753 = vmatpush.bf16.msra.mxu3 %v1629_v20 }
  0x69   : > { %1754 = vmatpush.bf16.msra.mxu3 %v1628_v23 }
  0x6c   : > { %502 = vmatmul.bf16.gmra.mxu0 %v1584_v37  ;;  %685 = vmatmul.bf16.vlgmr.msrb.gmra.mxu3 %v1968_v38 }
  0x6d   : > { %645 = vmatmul.bf16.gmra.mxu1 %v1583_v34 }
  0x6e   : > { %927 = vmatmul.bf16.gmra.mxu2 %v1616_v39 }
  0x7c   : > { %507 = vmatmul.bf16.gmra.mxu0 %v1585_v40  ;;  %690 = vmatmul.bf16.gmra.mxu3 %v1592_v25  ;;  %v1622_v25 = vld [vmem:[%s1940_s22 + $0x60] sm:$0xff] }
  0x7d   : > { %650 = vmatmul.bf16.gmra.mxu1 %v1584_v37 }
  0x7e   : > { %932 = vmatmul.bf16.gmra.mxu2 %v1617_v41 }
  0x8c   : > { %512 = vmatmul.bf16.gmra.mxu0 %v1586_v42  ;;  %695 = vmatmul.bf16.gmra.mxu3 %v1593_v29 }
  0x8d   : > { %655 = vmatmul.bf16.gmra.mxu1 %v1585_v40 }
  0x8e   : > { %937 = vmatmul.bf16.gmra.mxu2 %v1618_v43 }
  0x9c   : > { %517 = vmatmul.bf16.gmra.mxu0 %v1587_v44  ;;  %700 = vmatmul.bf16.gmra.mxu3 %v1594_v32 }
  0x9d   : > { %660 = vmatmul.bf16.gmra.mxu1 %v1586_v42 }
  0x9e   : > { %942 = vmatmul.bf16.gmra.mxu2 %v1619_v45 }
  0xa9   : > { %v483_v48 = vpop.f32.mrf.mxu0 }
  0xaa   : > { %v626_v50 = vpop.f32.mrf.mxu1 }
  0xab   : > { %v627_v51 = vadd.f32 %v626_v50, %v483_v48 }
  0xac   : > { %522 = vmatmul.bf16.gmra.mxu0 %v1588_v46  ;;  %967 = vmatmul.bf16.vlgmr.msra.gmra.mxu3 %v1624_v47  ;;  %v1623_v47 = vld [vmem:[%s1940_s22 + $0x68] sm:$0xff] }
  0xad   : > { %665 = vmatmul.bf16.gmra.mxu1 %v1587_v44  ;;  %v1627_v44 = vld [vmem:[%s1940_s22 + $0x88] sm:$0xff] }
  0xae   : > { %947 = vmatmul.bf16.gmra.mxu2 %v1620_v49 }
  0xaf   : > { %v1981_v52 = vpop.f32.mrf.mxu3 }
  0xb1   : > { %v908_v53 = vpop.f32.mrf.mxu2  ;;  %v485_v54 = vpop.f32.mrf.mxu0 }
  0xb2   : > { %v628_v55 = vpop.f32.mrf.mxu1  ;;  %v988_v56 = vadd.f32 %v908_v53, %v627_v51 }
  0xb3   : > { %v629_v60 = vadd.f32 %v628_v55, %v485_v54 }
  0xb4   : > { %v1024_v58 = vmul.f32 %v1986_v57, %v988_v56 }
  0xb6   : > { %v1060_v5 = vadd.f32 %v1992_v59, %v1024_v58 }
  0xb7   : > { %v1994_v61 = vpop.f32.mrf.mxu3 }
  0xb8   : > { %v1092_v8 = vmax.f32 %v1060_v5, 0.0 }
  0xb9   : > { %v910_v62 = vpop.f32.mrf.mxu2  ;;  %v488_v2 = vpop.f32.mrf.mxu0 }
  0xba   : > { %v989_v1 = vadd.f32 %v910_v62, %v629_v60  ;;  %v631_v4 = vpop.f32.mrf.mxu1 }
  0xbb   : > { %v632_v10 = vadd.f32 %v631_v4, %v488_v2 }
  0xbc   : > { %v1025_v6 = vmul.f32 %v1986_v57, %v989_v1  ;;  %527 = vmatmul.bf16.gmra.mxu0 %v1589_v63  ;;  %972 = vmatmul.bf16.gmra.mxu3 %v1625_v0 }
  0xbd   : > { %670 = vmatmul.bf16.gmra.mxu1 %v1588_v46 }
  0xbe   : > { %v1061_v7 = vadd.f32 %v1992_v59, %v1025_v6  ;;  %952 = vmatmul.bf16.gmra.mxu2 %v1621_v3 }
  0xbf   : > { %v2003_v11 = vpop.f32.mrf.mxu3 }
  0xc0   : > { %v1093_v9 = vmax.f32 %v1061_v7, 0.0 }
  0xc1   : > { %v913_v12 = vpop.f32.mrf.mxu2  ;;  %v490_v14 = vpop.f32.mrf.mxu0 }
  0xc2   : > { %v1639_v13 = vpack.c.bf16 %v1093_v9, %v1092_v8  ;;  %v633_v15 = vpop.f32.mrf.mxu1  ;;  %v990_v16 = vadd.f32 %v913_v12, %v632_v10 }
  0xc3   : > { %v634_v18 = vadd.f32 %v633_v15, %v490_v14 }
  0xc4   : > { %1640 = vst [vmem:[%s2008_s8] sm:$0xff] %v1639_v13   ;;  %v1026_v17 = vmul.f32 %v1986_v57, %v990_v16 }
  0xc6   : > { %v1062_v27 = vadd.f32 %v1992_v59, %v1026_v17 }
  0xc7   : > { %v2012_v19 = vpop.f32.mrf.mxu3 }
  0xc8   : > { %v1094_v30 = vmax.f32 %v1062_v27, 0.0 }
  0xc9   : > { %v915_v20 = vpop.f32.mrf.mxu2  ;;  %v493_v24 = vpop.f32.mrf.mxu0 }
  0xca   : > { %v991_v23 = vadd.f32 %v915_v20, %v634_v18  ;;  %v636_v26 = vpop.f32.mrf.mxu1 }
  0xcb   : > { %v637_v32 = vadd.f32 %v636_v26, %v493_v24 }
  0xcc   : > { %v1027_v28 = vmul.f32 %v1986_v57, %v991_v23  ;;  %532 = vmatmul.bf16.gmra.mxu0 %v1590_v21  ;;  %977 = vmatmul.bf16.gmra.mxu3 %v1626_v22 }
  0xcd   : > { %675 = vmatmul.bf16.gmra.mxu1 %v1589_v63 }
  0xce   : > { %v1063_v29 = vadd.f32 %v1992_v59, %v1027_v28  ;;  %957 = vmatmul.bf16.gmra.mxu2 %v1622_v25 }
  0xcf   : > { %v2020_v33 = vpop.f32.mrf.mxu3 }
  0xd0   : > { %v1095_v31 = vmax.f32 %v1063_v29, 0.0 }
  0xd1   : > { %v918_v34 = vpop.f32.mrf.mxu2  ;;  %v495_v36 = vpop.f32.mrf.mxu0 }
  0xd2   : > { %v1644_v35 = vpack.c.bf16 %v1095_v31, %v1094_v30  ;;  %v638_v37 = vpop.f32.mrf.mxu1  ;;  %v992_v39 = vadd.f32 %v918_v34, %v637_v32 }
  0xd3   : > { %v639_v41 = vadd.f32 %v638_v37, %v495_v36 }
  0xd4   : > { %1716 = vst [vmem:[%s2008_s8 + $0x8] sm:$0xff] %v1644_v35   ;;  %v1028_v40 = vmul.f32 %v1986_v57, %v992_v39 }
  0xd6   : > { %v1064_v49 = vadd.f32 %v1992_v59, %v1028_v40 }
  0xd7   : > { %v2024_v42 = vpop.f32.mrf.mxu3 }
  0xd8   : > { %v1096_v53 = vmax.f32 %v1064_v49, 0.0 }
  0xd9   : > { %v920_v43 = vpop.f32.mrf.mxu2  ;;  %v498_v46 = vpop.f32.mrf.mxu0 }
  0xda   : > { %v993_v45 = vadd.f32 %v920_v43, %v639_v41  ;;  %v641_v48 = vpop.f32.mrf.mxu1 }
  0xdb   : > { %v642_v55 = vadd.f32 %v641_v48, %v498_v46 }
  0xdc   : > { %v1029_v50 = vmul.f32 %v1986_v57, %v993_v45  ;;  %537 = vmatmul.bf16.gmra.mxu0 %v1968_v38  ;;  %982 = vmatmul.bf16.gmra.mxu3 %v1627_v44 }
  0xdd   : > { %680 = vmatmul.bf16.gmra.mxu1 %v1590_v21 }
  0xde   : > { %v1065_v51 = vadd.f32 %v1992_v59, %v1029_v50  ;;  %962 = vmatmul.bf16.gmra.mxu2 %v1623_v47 }
  0xdf   : > { %v2032_v56 = vpop.f32.mrf.mxu3 }
  0xe0   : > { %v1097_v54 = vmax.f32 %v1065_v51, 0.0 }
  0xe1   : > { %v923_v58 = vpop.f32.mrf.mxu2  ;;  %v500_v62 = vpop.f32.mrf.mxu0 }
  0xe2   : > { %v1649_v60 = vpack.c.bf16 %v1097_v54, %v1096_v53  ;;  %v643_v63 = vpop.f32.mrf.mxu1  ;;  %v994_v0 = vadd.f32 %v923_v58, %v642_v55 }
  0xe3   : > { %v644_v2 = vadd.f32 %v643_v63, %v500_v62 }
  0xe4   : > { %1717 = vst [vmem:[%s2008_s8 + $0x10] sm:$0xff] %v1649_v60   ;;  %v1030_v1 = vmul.f32 %v1986_v57, %v994_v0 }
  0xe6   : > { %v1066_v7 = vadd.f32 %v1992_v59, %v1030_v1 }
  0xe7   : > { %v2036_v38 = vpop.f32.mrf.mxu3 }
  0xe8   : > { %v1098_v10 = vmax.f32 %v1066_v7, 0.0 }
  0xe9   : > { %v925_v3 = vpop.f32.mrf.mxu2  ;;  %v503_v5 = vpop.f32.mrf.mxu0 }
  0xea   : > { %v995_v4 = vadd.f32 %v925_v3, %v644_v2  ;;  %v646_v6 = vpop.f32.mrf.mxu1 }
  0xeb   : > { %v647_v13 = vadd.f32 %v646_v6, %v503_v5 }
  0xec   : > { %v1031_v8 = vmul.f32 %v1986_v57, %v995_v4 }
  0xee   : > { %v1067_v9 = vadd.f32 %v1992_v59, %v1031_v8 }
  0xef   : > { %v686_v14 = vpop.f32.mrf.mxu3 }
  0xf0   : > { %v1099_v12 = vmax.f32 %v1067_v9, 0.0  ;;  %v2042_v15 = vadd.f32 %v686_v14, %v1981_v52 }
  0xf1   : > { %v928_v16 = vpop.f32.mrf.mxu2  ;;  %v505_v18 = vpop.f32.mrf.mxu0 }
  0xf2   : > { %v1654_v17 = vpack.c.bf16 %v1099_v12, %v1098_v10  ;;  %v648_v20 = vpop.f32.mrf.mxu1  ;;  %v996_v21 = vadd.f32 %v928_v16, %v647_v13 }
  0xf3   : > { %v649_v23 = vadd.f32 %v648_v20, %v505_v18 }
  0xf4   : > { %1718 = vst [vmem:[%s2008_s8 + $0x18] sm:$0xff] %v1654_v17   ;;  %v1032_v22 = vmul.f32 %v1986_v57, %v996_v21 }
  0xf6   : > { %v1068_v29 = vadd.f32 %v1992_v59, %v1032_v22 }
  0xf7   : > { %v2046_v24 = vpop.f32.mrf.mxu3 }
  0xf8   : > { %v1100_v31 = vmax.f32 %v1068_v29, 0.0 }
  0xf9   : > { %v930_v25 = vpop.f32.mrf.mxu2  ;;  %v508_v27 = vpop.f32.mrf.mxu0 }
  0xfa   : > { %v997_v26 = vadd.f32 %v930_v25, %v649_v23  ;;  %v651_v28 = vpop.f32.mrf.mxu1 }
  0xfb   : > { %v652_v34 = vadd.f32 %v651_v28, %v508_v27 }
  0xfc   : > { %v1033_v52 = vmul.f32 %v1986_v57, %v997_v26 }
  0xfe   : > { %v1069_v30 = vadd.f32 %v1992_v59, %v1033_v52 }
  0xff   : > { %v691_v35 = vpop.f32.mrf.mxu3 }
 0x100   : > { %v1101_v32 = vmax.f32 %v1069_v30, 0.0  ;;  %v2052_v36 = vadd.f32 %v691_v35, %v2003_v11 }
 0x101   : > { %v933_v37 = vpop.f32.mrf.mxu2  ;;  %v510_v40 = vpop.f32.mrf.mxu0 }
 0x102   : > { %v1659_v39 = vpack.c.bf16 %v1101_v32, %v1100_v31  ;;  %v653_v41 = vpop.f32.mrf.mxu1  ;;  %v998_v43 = vadd.f32 %v933_v37, %v652_v34 }
 0x103   : > { %v654_v45 = vadd.f32 %v653_v41, %v510_v40 }
 0x104   : > { %1719 = vst [vmem:[%s2008_s8 + $0x20] sm:$0xff] %v1659_v39   ;;  %v1034_v44 = vmul.f32 %v1986_v57, %v998_v43 }
 0x106   : > { %v1070_v51 = vadd.f32 %v1992_v59, %v1034_v44 }
 0x107   : > { %v2056_v46 = vpop.f32.mrf.mxu3 }
 0x108   : > { %v1102_v54 = vmax.f32 %v1070_v51, 0.0 }
 0x109   : > { %v935_v47 = vpop.f32.mrf.mxu2  ;;  %v513_v49 = vpop.f32.mrf.mxu0 }
 0x10a   : > { %v999_v48 = vadd.f32 %v935_v47, %v654_v45  ;;  %v656_v50 = vpop.f32.mrf.mxu1 }
 0x10b   : > { %v657_v58 = vadd.f32 %v656_v50, %v513_v49  ;;  %v689_v50 = vadd.f32 %v2046_v24, %v1994_v61 }
 0x10c   : > { %v1035_v11 = vmul.f32 %v1986_v57, %v999_v48 }
 0x10e   : > { %v1071_v53 = vadd.f32 %v1992_v59, %v1035_v11 }
 0x10f   : > { %v696_v60 = vpop.f32.mrf.mxu3 }
 0x110   : > { %v1103_v55 = vmax.f32 %v1071_v53, 0.0  ;;  %v2062_v62 = vadd.f32 %v696_v60, %v2020_v33 }
 0x111   : > { %v938_v63 = vpop.f32.mrf.mxu2  ;;  %v515_v1 = vpop.f32.mrf.mxu0 }
 0x112   : > { %v1664_v0 = vpack.c.bf16 %v1103_v55, %v1102_v54  ;;  %v658_v2 = vpop.f32.mrf.mxu1  ;;  %v1000_v3 = vadd.f32 %v938_v63, %v657_v58 }
 0x113   : > { %v659_v5 = vadd.f32 %v658_v2, %v515_v1 }
 0x114   : > { %1720 = vst [vmem:[%s2008_s8 + $0x28] sm:$0xff] %v1664_v0   ;;  %v1036_v4 = vmul.f32 %v1986_v57, %v1000_v3 }
 0x116   : > { %v1072_v12 = vadd.f32 %v1992_v59, %v1036_v4 }
 0x117   : > { %v2066_v6 = vpop.f32.mrf.mxu3 }
 0x118   : > { %v1104_v14 = vmax.f32 %v1072_v12, 0.0 }
 0x119   : > { %v940_v7 = vpop.f32.mrf.mxu2  ;;  %v518_v9 = vpop.f32.mrf.mxu0 }
 0x11a   : > { %v1001_v8 = vadd.f32 %v940_v7, %v659_v5  ;;  %v661_v10 = vpop.f32.mrf.mxu1 }
 0x11b   : > { %v662_v17 = vadd.f32 %v661_v10, %v518_v9 }
 0x11c   : > { %v1037_v33 = vmul.f32 %v1986_v57, %v1001_v8 }
 0x11e   : > { %v1073_v13 = vadd.f32 %v1992_v59, %v1037_v33 }
 0x11f   : > { %v701_v18 = vpop.f32.mrf.mxu3 }
 0x120   : > { %v1105_v16 = vmax.f32 %v1073_v13, 0.0  ;;  %v2072_v20 = vadd.f32 %v701_v18, %v2032_v56 }
 0x121   : > { %v943_v21 = vpop.f32.mrf.mxu2  ;;  %v520_v23 = vpop.f32.mrf.mxu0 }
 0x122   : > { %v1669_v22 = vpack.c.bf16 %v1105_v16, %v1104_v14  ;;  %v663_v25 = vpop.f32.mrf.mxu1  ;;  %v1002_v26 = vadd.f32 %v943_v21, %v662_v17  ;;  %v694_v21 = vadd.f32 %v2056_v46, %v2012_v19 }
 0x123   : > { %v664_v28 = vadd.f32 %v663_v25, %v520_v23 }
 0x124   : > { %1721 = vst [vmem:[%s2008_s8 + $0x30] sm:$0xff] %v1669_v22   ;;  %v1038_v27 = vmul.f32 %v1986_v57, %v1002_v26 }
 0x126   : > { %v1074_v34 = vadd.f32 %v1992_v59, %v1038_v27 }
 0x127   : > { %v2076_v29 = vpop.f32.mrf.mxu3 }
 0x128   : > { %v1106_v37 = vmax.f32 %v1074_v34, 0.0 }
 0x129   : > { %v945_v52 = vpop.f32.mrf.mxu2  ;;  %v523_v31 = vpop.f32.mrf.mxu0 }
 0x12a   : > { %v1003_v30 = vadd.f32 %v945_v52, %v664_v28  ;;  %v666_v32 = vpop.f32.mrf.mxu1 }
 0x12b   : > { %v667_v40 = vadd.f32 %v666_v32, %v523_v31 }
 0x12c   : > { %v1039_v56 = vmul.f32 %v1986_v57, %v1003_v30 }
 0x12e   : > { %v1075_v35 = vadd.f32 %v1992_v59, %v1039_v56 }
 0x12f   : > { %v968_v41 = vpop.f32.mrf.mxu3 }
 0x130   : > { %v1107_v39 = vmax.f32 %v1075_v35, 0.0  ;;  %v1012_v47 = vadd.f32 %v968_v41, %v2042_v15 }
 0x131   : > { %v948_v43 = vpop.f32.mrf.mxu2  ;;  %v525_v45 = vpop.f32.mrf.mxu0 }
 0x132   : > { %v1674_v44 = vpack.c.bf16 %v1107_v39, %v1106_v37  ;;  %v668_v48 = vpop.f32.mrf.mxu1  ;;  %v1004_v49 = vadd.f32 %v948_v43, %v667_v40  ;;  %v1048_v51 = vmul.f32 %v1986_v57, %v1012_v47 }
 0x133   : > { %v669_v53 = vadd.f32 %v668_v48, %v525_v45 }
 0x134   : > { %1722 = vst [vmem:[%s2008_s8 + $0x38] sm:$0xff] %v1674_v44   ;;  %v1040_v11 = vmul.f32 %v1986_v57, %v1004_v49  ;;  %v1084_v0 = vadd.f32 %v1992_v59, %v1048_v51 }
 0x136   : > { %v1076_v2 = vadd.f32 %v1992_v59, %v1040_v11  ;;  %v1116_v4 = vmax.f32 %v1084_v0, 0.0  ;;  %v699_v11 = vadd.f32 %v2066_v6, %v2024_v42 }
 0x137   : > { %v970_v54 = vpop.f32.mrf.mxu3 }
 0x138   : > { %v1013_v58 = vadd.f32 %v970_v54, %v689_v50  ;;  %v1108_v7 = vmax.f32 %v1076_v2, 0.0 }
 0x139   : > { %v950_v55 = vpop.f32.mrf.mxu2  ;;  %v528_v63 = vpop.f32.mrf.mxu0 }
 0x13a   : > { %v1005_v60 = vadd.f32 %v950_v55, %v669_v53  ;;  %v1049_v15 = vmul.f32 %v1986_v57, %v1013_v58  ;;  %v671_v1 = vpop.f32.mrf.mxu1 }
 0x13b   : > { %v672_v9 = vadd.f32 %v671_v1, %v528_v63 }
 0x13c   : > { %v1041_v61 = vmul.f32 %v1986_v57, %v1005_v60  ;;  %v1085_v24 = vadd.f32 %v1992_v59, %v1049_v15 }
 0x13e   : > { %v1077_v3 = vadd.f32 %v1992_v59, %v1041_v61  ;;  %v1117_v5 = vmax.f32 %v1085_v24, 0.0 }
 0x13f   : > { %v973_v10 = vpop.f32.mrf.mxu3 }
 0x140   : > { %v1109_v8 = vmax.f32 %v1077_v3, 0.0  ;;  %v1699_v12 = vpack.c.bf16 %v1117_v5, %v1116_v4  ;;  %v1014_v16 = vadd.f32 %v973_v10, %v2052_v36 }
 0x141   : > { %v953_v33 = vpop.f32.mrf.mxu2  ;;  %v530_v14 = vpop.f32.mrf.mxu0 }
 0x142   : > { %v1679_v13 = vpack.c.bf16 %v1109_v8, %v1108_v7  ;;  %1727 = vst [vmem:[%s2008_s8 + $0x60] sm:$0xff] %v1699_v12   ;;  %v673_v17 = vpop.f32.mrf.mxu1  ;;  %v1006_v18 = vadd.f32 %v953_v33, %v672_v9  ;;  %v1050_v22 = vmul.f32 %v1986_v57, %v1014_v16 }
 0x143   : > { %v674_v25 = vadd.f32 %v673_v17, %v530_v14 }
 0x144   : > { %1723 = vst [vmem:[%s2008_s8 + $0x40] sm:$0xff] %v1679_v13   ;;  %v1042_v23 = vmul.f32 %v1986_v57, %v1006_v18  ;;  %v1086_v31 = vadd.f32 %v1992_v59, %v1050_v22  ;;  %v704_v18 = vadd.f32 %v2076_v29, %v2036_v38 }
 0x146   : > { %v1078_v34 = vadd.f32 %v1992_v59, %v1042_v23  ;;  %v1118_v35 = vmax.f32 %v1086_v31, 0.0 }
 0x147   : > { %v975_v26 = vpop.f32.mrf.mxu3 }
 0x148   : > { %v1015_v28 = vadd.f32 %v975_v26, %v694_v21  ;;  %v1110_v39 = vmax.f32 %v1078_v34, 0.0 }
 0x149   : > { %v955_v27 = vpop.f32.mrf.mxu2  ;;  %v533_v30 = vpop.f32.mrf.mxu0 }
 0x14a   : > { %v1007_v52 = vadd.f32 %v955_v27, %v674_v25  ;;  %v1051_v36 = vmul.f32 %v1986_v57, %v1015_v28  ;;  %v676_v32 = vpop.f32.mrf.mxu1 }
 0x14b   : > { %v677_v41 = vadd.f32 %v676_v32, %v533_v30 }
 0x14c   : > { %v1043_v19 = vmul.f32 %v1986_v57, %v1007_v52  ;;  %v1087_v46 = vadd.f32 %v1992_v59, %v1051_v36 }
 0x14e   : > { %v1079_v56 = vadd.f32 %v1992_v59, %v1043_v19  ;;  %v1119_v37 = vmax.f32 %v1087_v46, 0.0 }
 0x14f   : > { %v978_v43 = vpop.f32.mrf.mxu3 }
 0x150   : > { %v1111_v40 = vmax.f32 %v1079_v56, 0.0  ;;  %v1704_v44 = vpack.c.bf16 %v1119_v37, %v1118_v35  ;;  %v1016_v49 = vadd.f32 %v978_v43, %v2062_v62 }
 0x151   : > { %v958_v45 = vpop.f32.mrf.mxu2  ;;  %v535_v48 = vpop.f32.mrf.mxu0 }
 0x152   : > { %v1684_v47 = vpack.c.bf16 %v1111_v40, %v1110_v39  ;;  %1728 = vst [vmem:[%s2008_s8 + $0x68] sm:$0xff] %v1704_v44   ;;  %v678_v50 = vpop.f32.mrf.mxu1  ;;  %v1008_v51 = vadd.f32 %v958_v45, %v677_v41  ;;  %v1052_v53 = vmul.f32 %v1986_v57, %v1016_v49 }
 0x153   : > { %v679_v55 = vadd.f32 %v678_v50, %v535_v48 }
 0x154   : > { %1724 = vst [vmem:[%s2008_s8 + $0x48] sm:$0xff] %v1684_v47   ;;  %v1044_v54 = vmul.f32 %v1986_v57, %v1008_v51  ;;  %v1088_v15 = vadd.f32 %v1992_v59, %v1052_v53 }
 0x156   : > { %v1080_v61 = vadd.f32 %v1992_v59, %v1044_v54  ;;  %v1120_v3 = vmax.f32 %v1088_v15, 0.0 }
 0x157   : > { %v980_v58 = vpop.f32.mrf.mxu3 }
 0x158   : > { %v1017_v63 = vadd.f32 %v980_v58, %v699_v11  ;;  %v1112_v5 = vmax.f32 %v1080_v61, 0.0 }
 0x159   : > { %v960_v60 = vpop.f32.mrf.mxu2  ;;  %v538_v62 = vpop.f32.mrf.mxu0 }
 0x15a   : > { %v1009_v0 = vadd.f32 %v960_v60, %v679_v55  ;;  %v1053_v1 = vmul.f32 %v1986_v57, %v1017_v63  ;;  %v681_v2 = vpop.f32.mrf.mxu1 }
 0x15b   : > { %v682_v8 = vadd.f32 %v681_v2, %v538_v62 }
 0x15c   : > { %v1045_v42 = vmul.f32 %v1986_v57, %v1009_v0  ;;  %v1089_v6 = vadd.f32 %v1992_v59, %v1053_v1 }
 0x15e   : > { %v1081_v24 = vadd.f32 %v1992_v59, %v1045_v42  ;;  %v1121_v4 = vmax.f32 %v1089_v6, 0.0 }
 0x15f   : > { %v983_v9 = vpop.f32.mrf.mxu3 }
 0x160   : > { %v1113_v7 = vmax.f32 %v1081_v24, 0.0  ;;  %v1709_v10 = vpack.c.bf16 %v1121_v4, %v1120_v3  ;;  %v1018_v13 = vadd.f32 %v983_v9, %v2072_v20 }
 0x161   : > { %v963_v12 = vpop.f32.mrf.mxu2  ;;  %v540_v16 = vpop.f32.mrf.mxu0 }
 0x162   : > { %v1689_v33 = vpack.c.bf16 %v1113_v7, %v1112_v5  ;;  %1729 = vst [vmem:[%s2008_s8 + $0x70] sm:$0xff] %v1709_v10   ;;  %v1010_v14 = vadd.f32 %v963_v12, %v682_v8  ;;  %v683_v17 = vpop.f32.mrf.mxu1  ;;  %v1054_v21 = vmul.f32 %v1986_v57, %v1018_v13 }
 0x163   : > { %v684_v23 = vadd.f32 %v683_v17, %v540_v16 }
 0x164   : > { %1725 = vst [vmem:[%s2008_s8 + $0x50] sm:$0xff] %v1689_v33   ;;  %v1046_v22 = vmul.f32 %v1986_v57, %v1010_v14  ;;  %v1090_v20 = vadd.f32 %v1992_v59, %v1054_v21 }
 0x166   : > { %v1082_v30 = vadd.f32 %v1992_v59, %v1046_v22  ;;  %v1122_v36 = vmax.f32 %v1090_v20, 0.0 }
 0x167   : > { %v985_v25 = vpop.f32.mrf.mxu3 }
 0x168   : > { %v1019_v27 = vadd.f32 %v985_v25, %v704_v18  ;;  %v1114_v34 = vmax.f32 %v1082_v30, 0.0 }
 0x169   : > { %v965_v26 = vpop.f32.mrf.mxu2 }
 0x16a   : > { %v1011_v28 = vadd.f32 %v965_v26, %v684_v23  ;;  %v1055_v52 = vmul.f32 %v1986_v57, %v1019_v27 }
 0x16c   : > { %v1047_v31 = vmul.f32 %v1986_v57, %v1011_v28  ;;  %v1091_v38 = vadd.f32 %v1992_v59, %v1055_v52 }
 0x16e   : > { %v1083_v29 = vadd.f32 %v1992_v59, %v1047_v31  ;;  %v1123_v32 = vmax.f32 %v1091_v38, 0.0 }
 0x170   : > { %v1115_v19 = vmax.f32 %v1083_v29, 0.0  ;;  %v1714_v46 = vpack.c.bf16 %v1123_v32, %v1122_v36 }
 0x172   : > { %v1694_v56 = vpack.c.bf16 %v1115_v19, %v1114_v34  ;;  %1730 = vst [vmem:[%s2008_s8 + $0x78] sm:$0xff] %v1714_v46  }
 0x174   : > { %1726 = vst [vmem:[%s2008_s8 + $0x58] sm:$0xff] %v1694_v56  }
 0x175 PF: > { %s14_s17 = sadd.s32 1, %s1804_s17   ;;  %s2148_s15 = smov %s1800_s16 }
 0x176   : > { %p11_p5 = scmp.ge.s32.totalorder %s14_s17, 4   ;;  %s2149_s16 = smov %s2151_s18 }
 0x178   :  { %13 = sbr.rel (!%p11_p5) target bundleno = 2 (0x2), region = 77 }

// kernel: vitaa_forward.16
= control target key start
LH: loop header
LB: loop body
LE: loop exit
PB: predicated region body
PF: predicated region fallthrough
CT: control target
= control target key end

     0   :  { %s255_s0 = inlined_call_operand.vmem [shape: bf16[2,128], index: 0, kind: input, shape index: {}]   ;;  %s256_s1 = inlined_call_operand.vmem [shape: bf16[128,128], index: 1, kind: input, shape index: {}]   ;;  %s257_s2 = inlined_call_operand.vmem [shape: f32[1,128], index: 2, kind: input, shape index: {}]   ;;  %s258_s3 = inlined_call_operand.hbm [shape: f32[2,128], index: 3, kind: output, shape index: {}]  }
   0x1   :  { %v170_v0 = vld [vmem:[%s256_s1 + $0x38] sm:$0xff]  ;;  %v169_v1 = vld [vmem:[%s256_s1 + $0x30] sm:$0xff] }
   0x2   :  { %84 = vmatpush.bf16.msra.mxu0 %v170_v0 }
   0x3   :  { %8 = vsyncpa [#allocation3], 0  ;;  %v168_v2 = vld [vmem:[%s256_s1 + $0x28] sm:$0xff]  ;;  %v167_v3 = vld [vmem:[%s256_s1 + $0x20] sm:$0xff]  ;;  %vm98_vm0 = vcmask 1041408   ;;  %s122_s6 = sshll.u32 %s258_s3, 4  ;;  %s123_s6 = int_to_ptr.hbm [resolvable:$true] %s122_s6 }
   0x4   :  { %v166_v4 = vld [vmem:[%s256_s1 + $0x18] sm:$0xff]  ;;  %v165_v5 = vld [vmem:[%s256_s1 + $0x10] sm:$0xff]  ;;  %v164_v6 = vld [vmem:[%s256_s1 + $0x8] sm:$0xff] }
   0x5   :  { %v163_v7 = vld [vmem:[%s256_s1] sm:$0xff] }
   0x6   :  { %85 = vmatpush.bf16.msra.mxu0 %v169_v1  ;;  %v15_v8 = vld [vmem:[%s255_s0] sm:$0x1]  ;;  %s201_s0 = smov [#allocation2]  }
   0x7   :  { %v172_v9 = vld [vmem:[%s257_s2] ss:$0 sm:$0xff]  ;;  %s120_s1 = sshll.u32 %s201_s0, 4  ;;  %s121_s1 = int_to_ptr.vmem [resolvable:$true] %s120_s1 }
   0xa   :  { %86 = vmatpush.bf16.msra.mxu0 %v168_v2 }
   0xe   :  { %87 = vmatpush.bf16.msra.mxu0 %v167_v3 }
  0x12   :  { %88 = vmatpush.bf16.msra.mxu0 %v166_v4 }
  0x16   :  { %89 = vmatpush.bf16.msra.mxu0 %v165_v5 }
  0x1a   :  { %90 = vmatpush.bf16.msra.mxu0 %v164_v6 }
  0x1e   :  { %91 = vmatpush.bf16.msra.mxu0 %v163_v7 }
  0x21   :  { %92 = vmatmul.bf16.vlgmr.msra.gmra.mxu0 %v15_v8 }
  0x9e   :  { %v93_v10 = vpop.f32.mrf.mxu0 }
  0x9f   :  { %v94_v11 = vadd.f32 %v172_v9, %v93_v10 }
  0xa1   :  { %v97_v12 = vmul.f32 %v94_v11, %v94_v11 }
  0xa3   :  { %v99_v13 = vsel %vm98_vm0, %v97_v12, 0.0 }
  0xa4   :  { %100 = vadd.xlane.f32.xlu0 %v99_v13 }
  0xa6   :  { %v95_v14 = vpop.f32.mrf.mxu0 }
 0x117   :  { %v101_v15 = vpop.xlane.xlu0 %100 }
 0x118   :  { %v102_v16 = vmax.f32 %v101_v15, 1e-24 }
 0x11a   :  { %173 = vrsqrt.f32 %v102_v16  ;;  %vm109_vm2 = vweird.f32 %v102_v16 }
 0x120   :  { %v174_v17 = vpop.eup %173 }
 0x121   :  { %v104_v18 = vmul.f32 %v174_v17, %v102_v16  ;;  %vm110_vm1 = vweird.f32 %v174_v17 }
 0x122   :  { %vm111_vm3 = vmor %vm109_vm2, %vm110_vm1 }
 0x123   :  { %v105_v19 = vmul.f32 %v174_v17, %v104_v18 }
 0x125   :  { %v106_v20 = vmul.f32 0.5, %v105_v19 }
 0x127   :  { %v107_v21 = vsub.f32 1.5, %v106_v20 }
 0x129   :  { %v108_v22 = vmul.f32 %v174_v17, %v107_v21 }
 0x12b   :  { %v112_v23 = vsel %vm111_vm3, %v174_v17, %v108_v22 }
 0x12c   :  { %v113_v24 = vmul.f32 %v112_v23, %v94_v11 }
 0x12e   :  { %114 = vst [vmem:[#allocation2] sm:$0x3] %v113_v24 }
 0x12f   :  { %125 = dma.vmem_to_hbm [thread:$0]  %s121_s1, 32, %s123_s6, [#allocation3]  }
 0x130   :  { %199 = dma.done.wait [#allocation3], 32  }
 0x131   :  { %200 = vsyncadd [#allocation3], 4294967264 }
 0x132   :  { %130 = vsyncpa [#allocation3], 1 }

// kernel: vitaa_forward.10
= control target key start
LH: loop header
LB: loop body
LE: loop exit
PB: predicated region body
PF: predicated region fallthrough
CT: control target
= control target key end

     0   :  { %s3779_s15 = smov 0   ;;  %s3781_s16 = smov 0   ;;  %s4640_s0 = inlined_call_operand.vmem [shape: bf16[2,288,384], index: 0, kind: input, shape index: {}]   ;;  %s4641_s1 = inlined_call_operand.vmem [shape: bf16[3,384,128], index: 1, kind: input, shape index: {}]   ;;  %s4642_s2 = inlined_call_operand.vmem [shape: f32[1,128], index: 2, kind: input, shape index: {}]   ;;  %s4643_s3 = inlined_call_operand.vmem [shape: f32[1,128], index: 3, kind: input, shape index: {}]   ;;  %s4644_s4 = inlined_call_operand.vmem [shape: bf16[2,256,128], index: 4, kind: output, shape index: {}]  }
   0x1   :  { %s3783_s17 = smov 0  }
   0x2 LB: > { %s26_s18 = sadd.s32 1, %s3748_s16  ;;  %p2626_p0 = scmp.ge.s32.totalorder %s3752_s17, 1  ;;  %s3752_s17 = sphi %s3783_s17, %s14_s17   ;;  %s3748_s16 = sphi %s3781_s16, %s4662_s16   ;;  %s3744_s15 = sphi %s3779_s15, %s4661_s15  }
   0x3   : > { %p28_p1 = scmp.ge.s32.totalorder %s26_s18, 2  ;;  %p201_p2 = scmp.lt.s32.totalorder %s3752_s17, 3 }
   0x5   : > { %s4664_s18 = smov (%p28_p1, %s26_s18), 0  ;;  %p202_p3 = pnand %p2626_p0, %p201_p2 }
   0x7   : > { %205 = sbr.rel (%p202_p3) target bundleno = 760 (0x2f8), region = 36 }
   0xc   : > { %v3495_v0 = vld [vmem:[%s4641_s1 + $0xf8] sm:$0xff]  ;;  %v3494_v1 = vld [vmem:[%s4641_s1 + $0xf0] sm:$0xff]  ;;  %v3493_v2 = vld [vmem:[%s4641_s1 + $0xe8] sm:$0xff]  ;;  %p240_p4 = scmp.lt.s32.totalorder %s3744_s15, 1 }
   0xd   : > { %828 = vmatpush.bf16.msra.mxu0 %v3495_v0  ;;  %3679 = vmatpush.bf16.msra.mxu1 %v3495_v0  ;;  %v3492_v3 = vld [vmem:[%s4641_s1 + $0xe0] sm:$0xff]  ;;  %v3491_v4 = vld [vmem:[%s4641_s1 + $0xd8] sm:$0xff]  ;;  %v3490_v5 = vld [vmem:[%s4641_s1 + $0xd0] sm:$0xff] }
   0xe   : > { %3680 = vmatpush.bf16.msra.mxu2 %v3495_v0  ;;  %3681 = vmatpush.bf16.msra.mxu3 %v3495_v0  ;;  %s4666_s15 = smov (!%p240_p4, %s3744_s15), 1  ;;  %v3489_v6 = vld [vmem:[%s4641_s1 + $0xc8] sm:$0xff]  ;;  %v3488_v7 = vld [vmem:[%s4641_s1 + $0xc0] sm:$0xff]  ;;  %v3511_v16 = vld [vmem:[%s4641_s1 + $0x178] sm:$0xff] }
   0xf   : > { %s3703_s5 = smul.u32 432, %s4666_s15  ;;  %v3468_v17 = vld [vmem:[%s4641_s1 + $0x38] sm:$0xff]  ;;  %v3510_v24 = vld [vmem:[%s4641_s1 + $0x170] sm:$0xff]  ;;  %v3509_v28 = vld [vmem:[%s4641_s1 + $0x168] sm:$0xff]  ;;  %s3412_s23 = sshll.u32 %s4666_s15, 7 }
  0x10   : > { %v3503_v22 = vld [vmem:[%s4641_s1 + $0x138] sm:$0xff]  ;;  %v3467_v25 = vld [vmem:[%s4641_s1 + $0x30] sm:$0xff]  ;;  %v3466_v29 = vld [vmem:[%s4641_s1 + $0x28] sm:$0xff]  ;;  %s4481_s26 = scalar_lea.vmem %s4644_s4, %s3412_s23 }
  0x11   : > { %829 = vmatpush.bf16.msra.mxu0 %v3494_v1  ;;  %3682 = vmatpush.bf16.msra.mxu1 %v3494_v1  ;;  %s3828_s10 = scalar_lea.vmem %s4640_s0, %s3703_s5  ;;  %v3476_v23 = vld [vmem:[%s4641_s1 + $0x78] sm:$0xff]  ;;  %v3502_v26 = vld [vmem:[%s4641_s1 + $0x130] sm:$0xff]  ;;  %v3501_v30 = vld [vmem:[%s4641_s1 + $0x128] sm:$0xff] }
  0x12   : > { %3683 = vmatpush.bf16.msra.mxu2 %v3494_v1  ;;  %3684 = vmatpush.bf16.msra.mxu3 %v3494_v1  ;;  %v2680_v8 = vld [vmem:[%s3828_s10 + $0x18] sm:$0xf]  ;;  %v3417_v9 = vld [vmem:[%s3828_s10 + $0x20] sm:$0xf0]  ;;  %v3475_v27 = vld [vmem:[%s4641_s1 + $0x70] sm:$0xff] }
  0x13   : > { %v2728_v10 = vld [vmem:[%s3828_s10 + $0x78] sm:$0xf]  ;;  %v3429_v11 = vld [vmem:[%s3828_s10 + $0x80] sm:$0xf0]  ;;  %v3847_v18 = vor.u32 %v3417_v9, %v2680_v8  ;;  %v3474_v31 = vld [vmem:[%s4641_s1 + $0x68] sm:$0xff] }
  0x14   : > { %v2776_v12 = vld [vmem:[%s3828_s10 + $0xd8] sm:$0xf]  ;;  %v3441_v13 = vld [vmem:[%s3828_s10 + $0xe0] sm:$0xf0]  ;;  %v3849_v19 = vor.u32 %v3429_v11, %v2728_v10  ;;  %v2692_v32 = vld [vmem:[%s3828_s10 + $0x30] sm:$0xf] }
  0x15   : > { %830 = vmatpush.bf16.msra.mxu0 %v3493_v2  ;;  %3685 = vmatpush.bf16.msra.mxu1 %v3493_v2  ;;  %v2824_v14 = vld [vmem:[%s3828_s10 + $0x138] sm:$0xf]  ;;  %v3453_v15 = vld [vmem:[%s3828_s10 + $0x140] sm:$0xf0]  ;;  %v3851_v20 = vor.u32 %v3441_v13, %v2776_v12  ;;  %v3420_v35 = vld [vmem:[%s3828_s10 + $0x38] sm:$0xf0] }
  0x16   : > { %3686 = vmatpush.bf16.msra.mxu2 %v3493_v2  ;;  %3687 = vmatpush.bf16.msra.mxu3 %v3493_v2  ;;  %v3853_v21 = vor.u32 %v3453_v15, %v2824_v14  ;;  %v3508_v33 = vld [vmem:[%s4641_s1 + $0x160] sm:$0xff]  ;;  %v2740_v36 = vld [vmem:[%s3828_s10 + $0x90] sm:$0xf]  ;;  %v3432_v37 = vld [vmem:[%s3828_s10 + $0x98] sm:$0xf0]  ;;  %v3915_v46 = vor.u32 %v3420_v35, %v2692_v32 }
  0x17   : > { %v3465_v34 = vld [vmem:[%s4641_s1 + $0x20] sm:$0xff]  ;;  %v2788_v38 = vld [vmem:[%s3828_s10 + $0xf0] sm:$0xf]  ;;  %v3444_v39 = vld [vmem:[%s3828_s10 + $0xf8] sm:$0xf0]  ;;  %v3917_v47 = vor.u32 %v3432_v37, %v2740_v36 }
  0x18   : > { %v2836_v40 = vld [vmem:[%s3828_s10 + $0x150] sm:$0xf]  ;;  %v3456_v41 = vld [vmem:[%s3828_s10 + $0x158] sm:$0xf0]  ;;  %v3500_v42 = vld [vmem:[%s4641_s1 + $0x120] sm:$0xff]  ;;  %v3919_v48 = vor.u32 %v3444_v39, %v2788_v38 }
  0x19   : > { %831 = vmatpush.bf16.msra.mxu0 %v3492_v3  ;;  %3688 = vmatpush.bf16.msra.mxu1 %v3492_v3  ;;  %v3473_v43 = vld [vmem:[%s4641_s1 + $0x60] sm:$0xff]  ;;  %v3507_v44 = vld [vmem:[%s4641_s1 + $0x158] sm:$0xff]  ;;  %v3921_v49 = vor.u32 %v3456_v41, %v2836_v40  ;;  %v3506_v52 = vld [vmem:[%s4641_s1 + $0x150] sm:$0xff] }
  0x1a   : > { %3689 = vmatpush.bf16.msra.mxu2 %v3492_v3  ;;  %3690 = vmatpush.bf16.msra.mxu3 %v3492_v3  ;;  %v3464_v45 = vld [vmem:[%s4641_s1 + $0x18] sm:$0xff]  ;;  %v3463_v53 = vld [vmem:[%s4641_s1 + $0x10] sm:$0xff]  ;;  %v3505_v56 = vld [vmem:[%s4641_s1 + $0x148] sm:$0xff] }
  0x1b   : > { %v3499_v50 = vld [vmem:[%s4641_s1 + $0x118] sm:$0xff]  ;;  %v3498_v54 = vld [vmem:[%s4641_s1 + $0x110] sm:$0xff]  ;;  %v3462_v57 = vld [vmem:[%s4641_s1 + $0x8] sm:$0xff] }
  0x1c   : > { %v3472_v51 = vld [vmem:[%s4641_s1 + $0x58] sm:$0xff]  ;;  %v3471_v55 = vld [vmem:[%s4641_s1 + $0x50] sm:$0xff]  ;;  %v3497_v58 = vld [vmem:[%s4641_s1 + $0x108] sm:$0xff] }
  0x1d   : > { %832 = vmatpush.bf16.msra.mxu0 %v3491_v4  ;;  %3691 = vmatpush.bf16.msra.mxu1 %v3491_v4  ;;  %v3470_v59 = vld [vmem:[%s4641_s1 + $0x48] sm:$0xff]  ;;  %v3504_v61 = vld [vmem:[%s4641_s1 + $0x140] sm:$0xff]  ;;  %v3423_v63 = vld [vmem:[%s3828_s10 + $0x50] sm:$0xf0] }
  0x1e   : > { %3692 = vmatpush.bf16.msra.mxu2 %v3491_v4  ;;  %3693 = vmatpush.bf16.msra.mxu3 %v3491_v4  ;;  %v2704_v60 = vld [vmem:[%s3828_s10 + $0x48] sm:$0xf]  ;;  %v3461_v62 = vld [vmem:[%s4641_s1] sm:$0xff]  ;;  %v3435_v1 = vld [vmem:[%s3828_s10 + $0xb0] sm:$0xf0] }
  0x1f   : > { %v2752_v0 = vld [vmem:[%s3828_s10 + $0xa8] sm:$0xf]  ;;  %v3447_v3 = vld [vmem:[%s3828_s10 + $0x110] sm:$0xf0]  ;;  %v3977_v8 = vor.u32 %v3423_v63, %v2704_v60  ;;  %v3567_v12 = vld [vmem:[%s4641_s1 + $0x1b8] sm:$0xff] }
  0x20   : > { %v2800_v2 = vld [vmem:[%s3828_s10 + $0x108] sm:$0xf]  ;;  %v3979_v9 = vor.u32 %v3435_v1, %v2752_v0  ;;  %v3575_v13 = vld [vmem:[%s4641_s1 + $0x1f8] sm:$0xff]  ;;  %v3413_v35 = vld [vmem:[%s3828_s10 + $0x4] sm:$0xf] }
  0x21   : > { %833 = vmatpush.bf16.msra.mxu0 %v3490_v5  ;;  %3694 = vmatpush.bf16.msra.mxu1 %v3490_v5  ;;  %v2848_v4 = vld [vmem:[%s3828_s10 + $0x168] sm:$0xf]  ;;  %v3981_v10 = vor.u32 %v3447_v3, %v2800_v2  ;;  %v3484_v14 = vld [vmem:[%s4641_s1 + $0xb8] sm:$0xff]  ;;  %v2970_v36 = vld [vmem:[%s3828_s10 + $0xc] sm:$0xf0] }
  0x22   : > { %3695 = vmatpush.bf16.msra.mxu2 %v3490_v5  ;;  %3696 = vmatpush.bf16.msra.mxu3 %v3490_v5  ;;  %v3459_v5 = vld [vmem:[%s3828_s10 + $0x170] sm:$0xf0]  ;;  %v3583_v15 = vld [vmem:[%s4641_s1 + $0x238] sm:$0xff]  ;;  %v3418_v37 = vld [vmem:[%s3828_s10 + $0x28] sm:$0xf0]  ;;  %v2973_v41 = vor.u32 %v3413_v35, %v2970_v36 }
  0x23   : > { %v3983_v11 = vor.u32 %v3459_v5, %v2848_v4  ;;  %v3416_v32 = vld [vmem:[%s3828_s10 + $0x1c] sm:$0xf]  ;;  %v2968_v38 = vld [vmem:[%s3828_s10] sm:$0xf]  ;;  %v3414_v39 = vld [vmem:[%s3828_s10 + $0x8] sm:$0xf0] }
  0x24   : > { %v2712_v60 = vld [vmem:[%s3828_s10 + $0x50] sm:$0xf]  ;;  %v3573_v0 = vld [vmem:[%s4641_s1 + $0x1e8] sm:$0xff]  ;;  %v3425_v2 = vld [vmem:[%s3828_s10 + $0x64] sm:$0xf] }
  0x25   : > { %834 = vmatpush.bf16.msra.mxu0 %v3489_v6  ;;  %3697 = vmatpush.bf16.msra.mxu1 %v3489_v6  ;;  %v3482_v1 = vld [vmem:[%s4641_s1 + $0xa8] sm:$0xff]  ;;  %v2718_v3 = vld [vmem:[%s3828_s10 + $0x6c] sm:$0xf0]  ;;  %v3427_v5 = vld [vmem:[%s3828_s10 + $0x70] sm:$0xf0] }
  0x26   : > { %3698 = vmatpush.bf16.msra.mxu2 %v3489_v6  ;;  %3699 = vmatpush.bf16.msra.mxu3 %v3489_v6  ;;  %v3496_v6 = vld [vmem:[%s4641_s1 + $0x100] sm:$0xff]  ;;  %v2724_v4 = vld [vmem:[%s3828_s10 + $0x68] sm:$0xf]  ;;  %v2748_v35 = vld [vmem:[%s3828_s10 + $0x98] sm:$0xf] }
  0x27   : > { %v3433_v36 = vld [vmem:[%s3828_s10 + $0xa0] sm:$0xf0] }
  0x29   : > { %835 = vmatpush.bf16.msra.mxu0 %v3488_v7  ;;  %3700 = vmatpush.bf16.msra.mxu1 %v3488_v7 }
  0x2a   : > { %3701 = vmatpush.bf16.msra.mxu2 %v3488_v7  ;;  %3702 = vmatpush.bf16.msra.mxu3 %v3488_v7  ;;  %v3469_v7 = vld [vmem:[%s4641_s1 + $0x40] sm:$0xff] }
  0x2c   : > { %836 = vmatmul.bf16.vlgmr.msra.gmra.mxu0 %v3847_v18  ;;  %856 = vmatmul.bf16.vlgmr.msra.gmra.mxu1 %v3849_v19 }
  0x2d   : > { %876 = vmatmul.bf16.vlgmr.msra.gmra.mxu2 %v3851_v20  ;;  %896 = vmatmul.bf16.vlgmr.msra.gmra.mxu3 %v3853_v21 }
  0x2e   : > { %1006 = vmatpush.bf16.msrb.mxu2 %v3511_v16  ;;  %1255 = vmatpush.bf16.msrb.mxu3 %v3468_v17  ;;  %v2716_v16 = vld [vmem:[%s3828_s10 + $0x60] sm:$0xf]  ;;  %v3426_v17 = vld [vmem:[%s3828_s10 + $0x68] sm:$0xf0] }
  0x2f   : > { %917 = vmatpush.bf16.msrb.mxu1 %v3503_v22  ;;  %1344 = vmatpush.bf16.msrb.mxu0 %v3476_v23  ;;  %v2764_v22 = vld [vmem:[%s3828_s10 + $0xc0] sm:$0xf]  ;;  %v3438_v23 = vld [vmem:[%s3828_s10 + $0xc8] sm:$0xf0] }
  0x32   : > { %1007 = vmatpush.bf16.msrb.mxu2 %v3510_v24  ;;  %1256 = vmatpush.bf16.msrb.mxu3 %v3467_v25  ;;  %v2812_v24 = vld [vmem:[%s3828_s10 + $0x120] sm:$0xf]  ;;  %v3450_v25 = vld [vmem:[%s3828_s10 + $0x128] sm:$0xf0] }
  0x33   : > { %918 = vmatpush.bf16.msrb.mxu1 %v3502_v26  ;;  %1345 = vmatpush.bf16.msrb.mxu0 %v3475_v27  ;;  %v2860_v26 = vld [vmem:[%s3828_s10 + $0x180] sm:$0xf]  ;;  %v3486_v27 = vld [vmem:[%s3828_s10 + $0x188] sm:$0xf0] }
  0x36   : > { %1008 = vmatpush.bf16.msrb.mxu2 %v3509_v28  ;;  %1257 = vmatpush.bf16.msrb.mxu3 %v3466_v29  ;;  %v4009_v28 = vor.u32 %v3426_v17, %v2716_v16  ;;  %v4011_v29 = vor.u32 %v3438_v23, %v2764_v22 }
  0x37   : > { %919 = vmatpush.bf16.msrb.mxu1 %v3501_v30  ;;  %1346 = vmatpush.bf16.msrb.mxu0 %v3474_v31  ;;  %v4013_v30 = vor.u32 %v3450_v25, %v2812_v24  ;;  %v2861_v31 = vor.u32 %v3486_v27, %v2860_v26  ;;  %v3572_v24 = vld [vmem:[%s4641_s1 + $0x1e0] sm:$0xff] }
  0x3a   : > { %1009 = vmatpush.bf16.msrb.mxu2 %v3508_v33  ;;  %1258 = vmatpush.bf16.msrb.mxu3 %v3465_v34  ;;  %v2682_v33 = vld [vmem:[%s3828_s10 + $0x24] sm:$0xf0]  ;;  %v2688_v34 = vld [vmem:[%s3828_s10 + $0x20] sm:$0xf] }
  0x3b   : > { %920 = vmatpush.bf16.msrb.mxu1 %v3500_v42  ;;  %1347 = vmatpush.bf16.msrb.mxu0 %v3473_v43  ;;  %v2685_v40 = vor.u32 %v3416_v32, %v2682_v33  ;;  %v4026_v42 = vor.u32 %v3418_v37, %v2688_v34  ;;  %v2969_v43 = vor.u32 %v3414_v39, %v2968_v38  ;;  %v3580_v32 = vld [vmem:[%s4641_s1 + $0x220] sm:$0xff]  ;;  %v3431_v33 = vld [vmem:[%s3828_s10 + $0x94] sm:$0xf] }
  0x3c   : > { %841 = vmatmul.bf16.gmra.mxu0 %v3915_v46  ;;  %861 = vmatmul.bf16.gmra.mxu1 %v3917_v47  ;;  %v2742_v34 = vld [vmem:[%s3828_s10 + $0x9c] sm:$0xf0] }
  0x3d   : > { %881 = vmatmul.bf16.gmra.mxu2 %v3919_v48  ;;  %901 = vmatmul.bf16.gmra.mxu3 %v3921_v49  ;;  %v2745_v39 = vor.u32 %v3431_v33, %v2742_v34 }
  0x3e   : > { %1010 = vmatpush.bf16.msrb.mxu2 %v3507_v44  ;;  %1259 = vmatpush.bf16.msrb.mxu3 %v3464_v45  ;;  %v3566_v44 = vld [vmem:[%s4641_s1 + $0x1b0] sm:$0xff] }
  0x3f   : > { %921 = vmatpush.bf16.msrb.mxu1 %v3499_v50  ;;  %1348 = vmatpush.bf16.msrb.mxu0 %v3472_v51  ;;  %v3574_v45 = vld [vmem:[%s4641_s1 + $0x1f0] sm:$0xff] }
  0x40   : > { %v3483_v50 = vld [vmem:[%s4641_s1 + $0xb0] sm:$0xff] }
  0x41   : > { %v3582_v51 = vld [vmem:[%s4641_s1 + $0x230] sm:$0xff] }
  0x42   : > { %1011 = vmatpush.bf16.msrb.mxu2 %v3506_v52  ;;  %1260 = vmatpush.bf16.msrb.mxu3 %v3463_v53  ;;  %v3419_v52 = vld [vmem:[%s3828_s10 + $0x34] sm:$0xf]  ;;  %v2694_v53 = vld [vmem:[%s3828_s10 + $0x3c] sm:$0xf0] }
  0x43   : > { %922 = vmatpush.bf16.msrb.mxu1 %v3498_v54  ;;  %1349 = vmatpush.bf16.msrb.mxu0 %v3471_v55  ;;  %v2700_v54 = vld [vmem:[%s3828_s10 + $0x38] sm:$0xf]  ;;  %v3421_v55 = vld [vmem:[%s3828_s10 + $0x40] sm:$0xf0] }
  0x46   : > { %1012 = vmatpush.bf16.msrb.mxu2 %v3505_v56  ;;  %1261 = vmatpush.bf16.msrb.mxu3 %v3462_v57  ;;  %v2697_v56 = vor.u32 %v3419_v52, %v2694_v53  ;;  %v4045_v57 = vor.u32 %v3421_v55, %v2700_v54  ;;  %v3434_v52 = vld [vmem:[%s3828_s10 + $0xac] sm:$0xf]  ;;  %v2754_v53 = vld [vmem:[%s3828_s10 + $0xb4] sm:$0xf0]  ;;  %v2760_v54 = vld [vmem:[%s3828_s10 + $0xb0] sm:$0xf] }
  0x47   : > { %923 = vmatpush.bf16.msrb.mxu1 %v3497_v58  ;;  %1350 = vmatpush.bf16.msrb.mxu0 %v3470_v59  ;;  %v3422_v58 = vld [vmem:[%s3828_s10 + $0x4c] sm:$0xf]  ;;  %v2706_v59 = vld [vmem:[%s3828_s10 + $0x54] sm:$0xf0]  ;;  %v3436_v55 = vld [vmem:[%s3828_s10 + $0xb8] sm:$0xf0] }
  0x4a   : > { %1013 = vmatpush.bf16.msrb.mxu2 %v3504_v61  ;;  %1262 = vmatpush.bf16.msrb.mxu3 %v3461_v62  ;;  %v3424_v61 = vld [vmem:[%s3828_s10 + $0x58] sm:$0xf0]  ;;  %v2709_v62 = vor.u32 %v3422_v58, %v2706_v59  ;;  %v2757_v59 = vor.u32 %v3434_v52, %v2754_v53  ;;  %v3442_v52 = vld [vmem:[%s3828_s10 + $0xe8] sm:$0xf0] }
  0x4b   : > { %924 = vmatpush.bf16.msrb.mxu1 %v3496_v6  ;;  %1351 = vmatpush.bf16.msrb.mxu0 %v3469_v7  ;;  %v4053_v63 = vor.u32 %v3424_v61, %v2712_v60  ;;  %v2721_v6 = vor.u32 %v3425_v2, %v2718_v3  ;;  %v4073_v7 = vor.u32 %v3427_v5, %v2724_v4  ;;  %v3579_v3 = vld [vmem:[%s4641_s1 + $0x218] sm:$0xff]  ;;  %v3437_v4 = vld [vmem:[%s3828_s10 + $0xc4] sm:$0xf]  ;;  %v2766_v5 = vld [vmem:[%s3828_s10 + $0xcc] sm:$0xf0] }
  0x4c   : > { %846 = vmatmul.bf16.gmra.mxu0 %v3977_v8  ;;  %866 = vmatmul.bf16.gmra.mxu1 %v3979_v9  ;;  %v4145_v61 = vor.u32 %v3436_v55, %v2760_v54 }
  0x4d   : > { %886 = vmatmul.bf16.gmra.mxu2 %v3981_v10  ;;  %906 = vmatmul.bf16.gmra.mxu3 %v3983_v11 }
  0x4e   : > { %2035 = vmatpush.bf16.msra.mxu2 %v3567_v12  ;;  %2124 = vmatpush.bf16.msra.mxu3 %v3575_v13  ;;  %v3428_v12 = vld [vmem:[%s3828_s10 + $0x7c] sm:$0xf]  ;;  %v2730_v13 = vld [vmem:[%s3828_s10 + $0x84] sm:$0xf0] }
  0x4f   : > { %1433 = vmatpush.bf16.msra.mxu1 %v3484_v14  ;;  %2213 = vmatpush.bf16.msra.mxu0 %v3583_v15  ;;  %v2736_v14 = vld [vmem:[%s3828_s10 + $0x80] sm:$0xf]  ;;  %v3430_v15 = vld [vmem:[%s3828_s10 + $0x88] sm:$0xf0]  ;;  %v2733_v16 = vor.u32 %v3428_v12, %v2730_v13  ;;  %v3439_v12 = vld [vmem:[%s3828_s10 + $0xd0] sm:$0xf0] }
  0x50   : > { %v4085_v23 = vor.u32 %v3430_v15, %v2736_v14  ;;  %v2769_v15 = vor.u32 %v3437_v4, %v2766_v5 }
  0x52   : > { %2036 = vmatpush.bf16.msra.mxu2 %v3566_v44  ;;  %2125 = vmatpush.bf16.msra.mxu3 %v3574_v45 }
  0x53   : > { %1434 = vmatpush.bf16.msra.mxu1 %v3483_v50  ;;  %2214 = vmatpush.bf16.msra.mxu0 %v3582_v51 }
  0x56   : > { %2126 = vmatpush.bf16.msra.mxu3 %v3573_v0 }
  0x57   : > { %1435 = vmatpush.bf16.msra.mxu1 %v3482_v1 }
  0x5a   : > { %2127 = vmatpush.bf16.msra.mxu3 %v3572_v24 }
  0x5c   : > { %851 = vmatmul.bf16.gmra.mxu0 %v4009_v28  ;;  %871 = vmatmul.bf16.gmra.mxu1 %v4011_v29 }
  0x5d   : > { %891 = vmatmul.bf16.gmra.mxu2 %v4013_v30  ;;  %911 = vmatmul.bf16.gmra.mxu3 %v2861_v31 }
  0x6c   : > { %925 = vmatmul.bf16.vlgmr.msrb.gmra.mxu1 %v2685_v40  ;;  %1352 = vmatmul.bf16.vlgmr.msrb.gmra.mxu0 %v2973_v41 }
  0x6d   : > { %1014 = vmatmul.bf16.vlgmr.msrb.gmra.mxu2 %v4026_v42  ;;  %1263 = vmatmul.bf16.vlgmr.msrb.gmra.mxu3 %v2969_v43  ;;  %v4121_v43 = vor.u32 %v3433_v36, %v2748_v35  ;;  %v3440_v35 = vld [vmem:[%s3828_s10 + $0xdc] sm:$0xf]  ;;  %v2778_v36 = vld [vmem:[%s3828_s10 + $0xe4] sm:$0xf0] }
  0x6e   : > { %v2781_v55 = vor.u32 %v3440_v35, %v2778_v36  ;;  %v3479_v35 = vld [vmem:[%s4641_s1 + $0x90] sm:$0xff] }
  0x6f   : > { %v3578_v36 = vld [vmem:[%s4641_s1 + $0x210] sm:$0xff] }
  0x7c   : > { %930 = vmatmul.bf16.gmra.mxu1 %v2697_v56  ;;  %1357 = vmatmul.bf16.gmra.mxu0 %v2685_v40 }
  0x7d   : > { %1019 = vmatmul.bf16.gmra.mxu2 %v4045_v57  ;;  %1268 = vmatmul.bf16.gmra.mxu3 %v3847_v18  ;;  %v3565_v18 = vld [vmem:[%s4641_s1 + $0x1a8] sm:$0xff] }
  0x7e   : > { %2037 = vmatpush.bf16.msra.mxu2 %v3565_v18  ;;  %v3571_v18 = vld [vmem:[%s4641_s1 + $0x1d8] sm:$0xff] }
  0x7f   : > { %2128 = vmatpush.bf16.msra.mxu3 %v3571_v18 }
  0x8c   : > { %935 = vmatmul.bf16.gmra.mxu1 %v2709_v62  ;;  %1362 = vmatmul.bf16.gmra.mxu0 %v2697_v56 }
  0x8d   : > { %1024 = vmatmul.bf16.gmra.mxu2 %v4053_v63  ;;  %1273 = vmatmul.bf16.gmra.mxu3 %v3915_v46  ;;  %v3581_v46 = vld [vmem:[%s4641_s1 + $0x228] sm:$0xff] }
  0x8e   : > { %2215 = vmatpush.bf16.msra.mxu0 %v3581_v46 }
  0x92   : > { %2216 = vmatpush.bf16.msra.mxu0 %v3580_v32 }
  0x96   : > { %2217 = vmatpush.bf16.msra.mxu0 %v3579_v3  ;;  %v3570_v3 = vld [vmem:[%s4641_s1 + $0x1d0] sm:$0xff] }
  0x97   : > { %2129 = vmatpush.bf16.msra.mxu3 %v3570_v3 }
  0x9a   : > { %2218 = vmatpush.bf16.msra.mxu0 %v3578_v36 }
  0x9c   : > { %940 = vmatmul.bf16.gmra.mxu1 %v2721_v6  ;;  %1367 = vmatmul.bf16.gmra.mxu0 %v2709_v62  ;;  %v3563_v62 = vld [vmem:[%s4641_s1 + $0x198] sm:$0xff] }
  0x9d   : > { %1029 = vmatmul.bf16.gmra.mxu2 %v4073_v7  ;;  %1278 = vmatmul.bf16.gmra.mxu3 %v3977_v8  ;;  %v3564_v8 = vld [vmem:[%s4641_s1 + $0x1a0] sm:$0xff] }
  0x9e   : > { %2038 = vmatpush.bf16.msra.mxu2 %v3564_v8 }
  0xa2   : > { %2039 = vmatpush.bf16.msra.mxu2 %v3563_v62 }
  0xa9   : > { %v4081_v17 = vpop.f32.mrf.mxu0  ;;  %v4083_v22 = vpop.f32.mrf.mxu1 }
  0xac   : > { %945 = vmatmul.bf16.gmra.mxu1 %v2733_v16  ;;  %1372 = vmatmul.bf16.gmra.mxu0 %v2721_v6  ;;  %v2772_v6 = vld [vmem:[%s3828_s10 + $0xc8] sm:$0xf] }
  0xad   : > { %1034 = vmatmul.bf16.gmra.mxu2 %v4085_v23  ;;  %1283 = vmatmul.bf16.gmra.mxu3 %v4009_v28  ;;  %v3481_v28 = vld [vmem:[%s4641_s1 + $0xa0] sm:$0xff]  ;;  %v4181_v24 = vor.u32 %v3439_v12, %v2772_v6 }
  0xae   : > { %1436 = vmatpush.bf16.msra.mxu1 %v3481_v28 }
  0xaf   : > { %4649 = vst [vmem:[#allocation2_spill] sm:$0xff] %v4181_v24 }
  0xb0   : > { %v4095_v25 = vpop.f32.mrf.mxu2  ;;  %v4097_v26 = vpop.f32.mrf.mxu3 }
  0xb1   : > { %v4099_v27 = vpop.f32.mrf.mxu0  ;;  %v4101_v31 = vpop.f32.mrf.mxu1 }
  0xb8   : > { %v4113_v37 = vpop.f32.mrf.mxu2  ;;  %v4115_v38 = vpop.f32.mrf.mxu3 }
  0xb9   : > { %v4117_v40 = vpop.f32.mrf.mxu0  ;;  %v4119_v41 = vpop.f32.mrf.mxu1 }
  0xbc   : > { %950 = vmatmul.bf16.gmra.mxu1 %v2745_v39  ;;  %1377 = vmatmul.bf16.gmra.mxu0 %v2733_v16 }
  0xbd   : > { %1039 = vmatmul.bf16.gmra.mxu2 %v4121_v43  ;;  %1288 = vmatmul.bf16.gmra.mxu3 %v3849_v19 }
  0xc0   : > { %v4125_v44 = vpop.f32.mrf.mxu2  ;;  %v4127_v45 = vpop.f32.mrf.mxu3 }
  0xc1   : > { %v4129_v50 = vpop.f32.mrf.mxu0  ;;  %v4131_v51 = vpop.f32.mrf.mxu1 }
  0xc8   : > { %v4137_v56 = vpop.f32.mrf.mxu2  ;;  %v4139_v58 = vpop.f32.mrf.mxu3 }
  0xc9   : > { %v4141_v60 = vpop.f32.mrf.mxu0  ;;  %v4143_v19 = vpop.f32.mrf.mxu1 }
  0xcc   : > { %955 = vmatmul.bf16.gmra.mxu1 %v2757_v59  ;;  %1382 = vmatmul.bf16.gmra.mxu0 %v2745_v39  ;;  %v2784_v39 = vld [vmem:[%s3828_s10 + $0xe0] sm:$0xf] }
  0xcd   : > { %1044 = vmatmul.bf16.gmra.mxu2 %v4145_v61  ;;  %1293 = vmatmul.bf16.gmra.mxu3 %v3917_v47  ;;  %v3480_v47 = vld [vmem:[%s4641_s1 + $0x98] sm:$0xff] }
  0xce   : > { %1437 = vmatpush.bf16.msra.mxu1 %v3480_v47  ;;  %v3562_v47 = vld [vmem:[%s4641_s1 + $0x190] sm:$0xff] }
  0xcf   : > { %2040 = vmatpush.bf16.msra.mxu2 %v3562_v47  ;;  %v3445_v47 = vld [vmem:[%s3828_s10 + $0x100] sm:$0xf0] }
  0xd0   : > { %v4155_v0 = vpop.f32.mrf.mxu2  ;;  %v4157_v1 = vpop.f32.mrf.mxu3 }
  0xd1   : > { %v4159_v46 = vpop.f32.mrf.mxu0  ;;  %v4161_v2 = vpop.f32.mrf.mxu1 }
  0xd2   : > { %1438 = vmatpush.bf16.msra.mxu1 %v3479_v35 }
  0xd8   : > { %v4173_v13 = vpop.f32.mrf.mxu2  ;;  %v4175_v14 = vpop.f32.mrf.mxu3 }
  0xd9   : > { %v4177_v16 = vpop.f32.mrf.mxu0  ;;  %v4179_v8 = vpop.f32.mrf.mxu1 }
  0xdc   : > { %960 = vmatmul.bf16.gmra.mxu1 %v2769_v15  ;;  %1387 = vmatmul.bf16.gmra.mxu0 %v2757_v59 }
  0xdd   : > { %1049 = vmatmul.bf16.gmra.mxu2 %v4181_v24  ;;  %1298 = vmatmul.bf16.gmra.mxu3 %v3979_v9  ;;  %v4201_v9 = vor.u32 %v3442_v52, %v2784_v39  ;;  %v3443_v39 = vld [vmem:[%s3828_s10 + $0xf4] sm:$0xf]  ;;  %v2790_v52 = vld [vmem:[%s3828_s10 + $0xfc] sm:$0xf0] }
  0xdf   : > { %4651 = vst [vmem:[#allocation4_spill] sm:$0xff] %v4201_v9 }
  0xe0   : > { %v4185_v28 = vpop.f32.mrf.mxu2  ;;  %v4187_v32 = vpop.f32.mrf.mxu3 }
  0xe1   : > { %v4189_v33 = vpop.f32.mrf.mxu0  ;;  %v4191_v34 = vpop.f32.mrf.mxu1 }
  0xe8   : > { %v4197_v53 = vpop.f32.mrf.mxu2  ;;  %v4199_v54 = vpop.f32.mrf.mxu3 }
  0xe9   : > { %4650 = vst [vmem:[#allocation3_spill] sm:$0xff] %v4199_v54  ;;  %v926_v59 = vpop.f32.mrf.mxu1  ;;  %v1353_v62 = vpop.f32.mrf.mxu0 }
  0xea   : > { %v927_v18 = vadd.f32 %v926_v59, %v4081_v17 }
  0xec   : > { %965 = vmatmul.bf16.gmra.mxu1 %v2781_v55  ;;  %1392 = vmatmul.bf16.gmra.mxu0 %v2769_v15 }
  0xed   : > { %1054 = vmatmul.bf16.gmra.mxu2 %v4201_v9  ;;  %1303 = vmatmul.bf16.gmra.mxu3 %v4011_v29 }
  0xf0   : > { %v1015_v17 = vpop.f32.mrf.mxu2  ;;  %v1264_v4 = vpop.f32.mrf.mxu3 }
  0xf1   : > { %v1016_v5 = vadd.f32 %v1015_v17, %v927_v18  ;;  %v928_v6 = vpop.f32.mrf.mxu1  ;;  %v1355_v12 = vpop.f32.mrf.mxu0  ;;  %v2796_v18 = vld [vmem:[%s3828_s10 + $0xf8] sm:$0xf] }
  0xf2   : > { %v929_v15 = vadd.f32 %v928_v6, %v4099_v27  ;;  %v2793_v27 = vor.u32 %v3443_v39, %v2790_v52  ;;  %v4225_v9 = vor.u32 %v3445_v47, %v2796_v18  ;;  %v2802_v47 = vld [vmem:[%s3828_s10 + $0x114] sm:$0xf0] }
  0xf3   : > { %v1265_v29 = vadd.f32 %v1264_v4, %v1016_v5 }
  0xf4   : > { %4652 = vst [vmem:[#allocation5_spill] sm:$0xff] %v4225_v9 }
  0xf5   : > { %v4221_v59 = vadd.f32 %v1353_v62, %v1265_v29 }
  0xf8   : > { %v1017_v3 = vpop.f32.mrf.mxu2  ;;  %v1266_v17 = vpop.f32.mrf.mxu3 }
  0xf9   : > { %v1018_v4 = vadd.f32 %v1017_v3, %v929_v15  ;;  %v931_v5 = vpop.f32.mrf.mxu1  ;;  %v1358_v6 = vpop.f32.mrf.mxu0 }
  0xfa   : > { %v932_v24 = vadd.f32 %v931_v5, %v4117_v40  ;;  %v3446_v40 = vld [vmem:[%s3828_s10 + $0x10c] sm:$0xf] }
  0xfb   : > { %v1267_v54 = vadd.f32 %v1266_v17, %v1018_v4  ;;  %v2808_v17 = vld [vmem:[%s3828_s10 + $0x110] sm:$0xf] }
  0xfc   : > { %970 = vmatmul.bf16.gmra.mxu1 %v2793_v27  ;;  %1397 = vmatmul.bf16.gmra.mxu0 %v2781_v55  ;;  %v3448_v55 = vld [vmem:[%s3828_s10 + $0x118] sm:$0xf0] }
  0xfd   : > { %1059 = vmatmul.bf16.gmra.mxu2 %v4225_v9  ;;  %1308 = vmatmul.bf16.gmra.mxu3 %v3851_v20  ;;  %v4230_v62 = vadd.f32 %v1355_v12, %v1267_v54  ;;  %v2805_v9 = vor.u32 %v3446_v40, %v2802_v47  ;;  %v3478_v40 = vld [vmem:[%s4641_s1 + $0x88] sm:$0xff]  ;;  %v3449_v47 = vld [vmem:[%s3828_s10 + $0x124] sm:$0xf] }
  0xfe   : > { %1439 = vmatpush.bf16.msra.mxu1 %v3478_v40 }
  0xff   : > { %4653 = vst [vmem:[#allocation6_spill] sm:$0xff] %v4230_v62  ;;  %v4239_v62 = vor.u32 %v3448_v55, %v2808_v17  ;;  %v2814_v17 = vld [vmem:[%s3828_s10 + $0x12c] sm:$0xf0] }
 0x100   : > { %v1020_v15 = vpop.f32.mrf.mxu2  ;;  %v1269_v29 = vpop.f32.mrf.mxu3 }
 0x101   : > { %v1021_v35 = vadd.f32 %v1020_v15, %v932_v24  ;;  %v933_v36 = vpop.f32.mrf.mxu1  ;;  %v1360_v39 = vpop.f32.mrf.mxu0 }
 0x102   : > { %v934_v52 = vadd.f32 %v933_v36, %v4129_v50  ;;  %v3561_v50 = vld [vmem:[%s4641_s1 + $0x188] sm:$0xff] }
 0x103   : > { %v1270_v18 = vadd.f32 %v1269_v29, %v1021_v35  ;;  %2041 = vmatpush.bf16.msra.mxu2 %v3561_v50 }
 0x105   : > { %v4235_v3 = vadd.f32 %v1358_v6, %v1270_v18  ;;  %v3569_v6 = vld [vmem:[%s4641_s1 + $0x1c8] sm:$0xff] }
 0x106   : > { %2130 = vmatpush.bf16.msra.mxu3 %v3569_v6 }
 0x108   : > { %v1022_v4 = vpop.f32.mrf.mxu2  ;;  %v1271_v5 = vpop.f32.mrf.mxu3 }
 0x109   : > { %v1023_v20 = vadd.f32 %v1022_v4, %v934_v52  ;;  %v936_v54 = vpop.f32.mrf.mxu1  ;;  %v1363_v12 = vpop.f32.mrf.mxu0  ;;  %v2820_v4 = vld [vmem:[%s3828_s10 + $0x128] sm:$0xf] }
 0x10a   : > { %v937_v24 = vadd.f32 %v936_v54, %v4141_v60 }
 0x10b   : > { %v1272_v15 = vadd.f32 %v1271_v5, %v1023_v20  ;;  %v3451_v5 = vld [vmem:[%s3828_s10 + $0x130] sm:$0xf0] }
 0x10c   : > { %975 = vmatmul.bf16.gmra.mxu1 %v2805_v9  ;;  %1402 = vmatmul.bf16.gmra.mxu0 %v2793_v27  ;;  %v4265_v6 = vor.u32 %v3451_v5, %v2820_v4  ;;  %v2832_v5 = vld [vmem:[%s3828_s10 + $0x140] sm:$0xf] }
 0x10d   : > { %1064 = vmatmul.bf16.gmra.mxu2 %v4239_v62  ;;  %1313 = vmatmul.bf16.gmra.mxu3 %v3919_v48  ;;  %v4250_v29 = vadd.f32 %v1360_v39, %v1272_v15  ;;  %v3577_v39 = vld [vmem:[%s4641_s1 + $0x208] sm:$0xff] }
 0x10e   : > { %2219 = vmatpush.bf16.msra.mxu0 %v3577_v39 }
 0x110   : > { %v1025_v60 = vpop.f32.mrf.mxu2  ;;  %v1274_v27 = vpop.f32.mrf.mxu3 }
 0x111   : > { %v1026_v35 = vadd.f32 %v1025_v60, %v937_v24  ;;  %v938_v36 = vpop.f32.mrf.mxu1  ;;  %v1365_v48 = vpop.f32.mrf.mxu0 }
 0x112   : > { %v939_v52 = vadd.f32 %v938_v36, %v4159_v46  ;;  %v2817_v46 = vor.u32 %v3449_v47, %v2814_v17  ;;  %v2826_v17 = vld [vmem:[%s3828_s10 + $0x144] sm:$0xf0] }
 0x113   : > { %v1275_v18 = vadd.f32 %v1274_v27, %v1026_v35 }
 0x115   : > { %v4261_v55 = vadd.f32 %v1363_v12, %v1275_v18 }
 0x118   : > { %v1027_v20 = vpop.f32.mrf.mxu2  ;;  %v1276_v54 = vpop.f32.mrf.mxu3 }
 0x119   : > { %v1028_v24 = vadd.f32 %v1027_v20, %v939_v52  ;;  %v941_v15 = vpop.f32.mrf.mxu1  ;;  %v1368_v50 = vpop.f32.mrf.mxu0 }
 0x11a   : > { %v942_v60 = vadd.f32 %v941_v15, %v4177_v16  ;;  %v3452_v16 = vld [vmem:[%s3828_s10 + $0x13c] sm:$0xf] }
 0x11b   : > { %v1277_v27 = vadd.f32 %v1276_v54, %v1028_v24  ;;  %v2829_v24 = vor.u32 %v3452_v16, %v2826_v17  ;;  %v3477_v16 = vld [vmem:[%s4641_s1 + $0x80] sm:$0xff]  ;;  %v3455_v17 = vld [vmem:[%s3828_s10 + $0x154] sm:$0xf] }
 0x11c   : > { %980 = vmatmul.bf16.gmra.mxu1 %v2817_v46  ;;  %1407 = vmatmul.bf16.gmra.mxu0 %v2805_v9  ;;  %v3454_v9 = vld [vmem:[%s3828_s10 + $0x148] sm:$0xf0] }
 0x11d   : > { %1069 = vmatmul.bf16.gmra.mxu2 %v4265_v6  ;;  %1318 = vmatmul.bf16.gmra.mxu3 %v3981_v10  ;;  %v4270_v12 = vadd.f32 %v1365_v48, %v1277_v27  ;;  %v4279_v27 = vor.u32 %v3454_v9, %v2832_v5  ;;  %v2844_v9 = vld [vmem:[%s3828_s10 + $0x158] sm:$0xf] }
 0x11e   : > { %1440 = vmatpush.bf16.msra.mxu1 %v3477_v16 }
 0x120   : > { %v1030_v35 = vpop.f32.mrf.mxu2  ;;  %v1279_v36 = vpop.f32.mrf.mxu3 }
 0x121   : > { %v1031_v52 = vadd.f32 %v1030_v35, %v942_v60  ;;  %v943_v18 = vpop.f32.mrf.mxu1  ;;  %v1370_v40 = vpop.f32.mrf.mxu0 }
 0x122   : > { %v944_v39 = vadd.f32 %v943_v18, %v4189_v33  ;;  %v3560_v33 = vld [vmem:[%s4641_s1 + $0x180] sm:$0xff] }
 0x123   : > { %v1280_v47 = vadd.f32 %v1279_v36, %v1031_v52  ;;  %2042 = vmatpush.bf16.msra.mxu2 %v3560_v33 }
 0x125   : > { %v4275_v4 = vadd.f32 %v1368_v50, %v1280_v47  ;;  %v3568_v50 = vld [vmem:[%s4641_s1 + $0x1c0] sm:$0xff] }
 0x126   : > { %2131 = vmatpush.bf16.msra.mxu3 %v3568_v50 }
 0x128   : > { %v1032_v20 = vpop.f32.mrf.mxu2  ;;  %v1281_v54 = vpop.f32.mrf.mxu3 }
 0x129   : > { %v1033_v10 = vadd.f32 %v1032_v20, %v944_v39  ;;  %v946_v48 = vpop.f32.mrf.mxu1  ;;  %v1373_v15 = vpop.f32.mrf.mxu0  ;;  %v3457_v20 = vld [vmem:[%s3828_s10 + $0x160] sm:$0xf0] }
 0x12a   : > { %v947_v36 = vadd.f32 %v946_v48, %v4083_v22  ;;  %v2838_v22 = vld [vmem:[%s3828_s10 + $0x15c] sm:$0xf0] }
 0x12b   : > { %v1282_v60 = vadd.f32 %v1281_v54, %v1033_v10 }
 0x12c   : > { %985 = vmatmul.bf16.gmra.mxu1 %v2829_v24  ;;  %1412 = vmatmul.bf16.gmra.mxu0 %v2817_v46 }
 0x12d   : > { %1074 = vmatmul.bf16.gmra.mxu2 %v4279_v27  ;;  %1323 = vmatmul.bf16.gmra.mxu3 %v4013_v30  ;;  %v4289_v35 = vadd.f32 %v1370_v40, %v1282_v60  ;;  %v3576_v40 = vld [vmem:[%s4641_s1 + $0x200] sm:$0xff]  ;;  %v2841_v60 = vor.u32 %v3455_v17, %v2838_v22  ;;  %v3458_v22 = vld [vmem:[%s3828_s10 + $0x16c] sm:$0xf] }
 0x12e   : > { %2220 = vmatpush.bf16.msra.mxu0 %v3576_v40 }
 0x130   : > { %v1035_v46 = vpop.f32.mrf.mxu2  ;;  %v1284_v52 = vpop.f32.mrf.mxu3 }
 0x131   : > { %v1036_v30 = vadd.f32 %v1035_v46, %v947_v36  ;;  %v948_v18 = vpop.f32.mrf.mxu1  ;;  %v1375_v39 = vpop.f32.mrf.mxu0  ;;  %v4305_v46 = vor.u32 %v3457_v20, %v2844_v9  ;;  %v2850_v9 = vld [vmem:[%s3828_s10 + $0x174] sm:$0xf0] }
 0x132   : > { %v949_v54 = vadd.f32 %v948_v18, %v4101_v31 }
 0x133   : > { %v1285_v47 = vadd.f32 %v1284_v52, %v1036_v30 }
 0x135   : > { %v4300_v5 = vadd.f32 %v1373_v15, %v1285_v47 }
 0x138   : > { %v1037_v10 = vpop.f32.mrf.mxu2  ;;  %v1286_v48 = vpop.f32.mrf.mxu3 }
 0x139   : > { %v1038_v33 = vadd.f32 %v1037_v10, %v949_v54  ;;  %v951_v50 = vpop.f32.mrf.mxu1  ;;  %v1378_v36 = vpop.f32.mrf.mxu0  ;;  %v2856_v54 = vld [vmem:[%s3828_s10 + $0x170] sm:$0xf] }
 0x13a   : > { %v952_v15 = vadd.f32 %v951_v50, %v4119_v41 }
 0x13b   : > { %v1287_v52 = vadd.f32 %v1286_v48, %v1038_v33 }
 0x13c   : > { %990 = vmatmul.bf16.gmra.mxu1 %v2841_v60  ;;  %1417 = vmatmul.bf16.gmra.mxu0 %v2829_v24  ;;  %v3460_v24 = vld [vmem:[%s3828_s10 + $0x178] sm:$0xf0] }
 0x13d   : > { %1079 = vmatmul.bf16.gmra.mxu2 %v4305_v46  ;;  %1328 = vmatmul.bf16.gmra.mxu3 %v3853_v21  ;;  %v4309_v31 = vadd.f32 %v1375_v39, %v1287_v52  ;;  %v2853_v39 = vor.u32 %v3458_v22, %v2850_v9  ;;  %v4319_v50 = vor.u32 %v3460_v24, %v2856_v54  ;;  %v3485_v9 = vld [vmem:[%s3828_s10 + $0x184] sm:$0xf]  ;;  %v2862_v54 = vld [vmem:[%s3828_s10 + $0x18c] sm:$0xf0] }
 0x13f   : > { %4654 = vst [vmem:[#allocation7_spill] sm:$0xff] %v4319_v50 }
 0x140   : > { %v1040_v30 = vpop.f32.mrf.mxu2  ;;  %v1289_v18 = vpop.f32.mrf.mxu3 }
 0x141   : > { %v1041_v47 = vadd.f32 %v1040_v30, %v952_v15  ;;  %v953_v16 = vpop.f32.mrf.mxu1  ;;  %v1380_v40 = vpop.f32.mrf.mxu0 }
 0x142   : > { %v954_v10 = vadd.f32 %v953_v16, %v4131_v51 }
 0x143   : > { %v1290_v17 = vadd.f32 %v1289_v18, %v1041_v47 }
 0x145   : > { %v4314_v20 = vadd.f32 %v1378_v36, %v1290_v17 }
 0x148   : > { %v1042_v48 = vpop.f32.mrf.mxu2  ;;  %v1291_v21 = vpop.f32.mrf.mxu3 }
 0x149   : > { %v1043_v33 = vadd.f32 %v1042_v48, %v954_v10  ;;  %v956_v52 = vpop.f32.mrf.mxu1  ;;  %v1383_v41 = vpop.f32.mrf.mxu0  ;;  %v2868_v10 = vld [vmem:[%s3828_s10 + $0x188] sm:$0xf] }
 0x14a   : > { %v957_v36 = vadd.f32 %v956_v52, %v4143_v19 }
 0x14b   : > { %v1292_v15 = vadd.f32 %v1291_v21, %v1043_v33 }
 0x14c   : > { %995 = vmatmul.bf16.gmra.mxu1 %v2853_v39  ;;  %1422 = vmatmul.bf16.gmra.mxu0 %v2841_v60  ;;  %v3487_v60 = vld [vmem:[%s3828_s10 + $0x190] sm:$0xf0] }
 0x14d   : > { %1084 = vmatmul.bf16.gmra.mxu2 %v4319_v50  ;;  %1333 = vmatmul.bf16.gmra.mxu3 %v3921_v49  ;;  %v4323_v51 = vadd.f32 %v1380_v40, %v1292_v15  ;;  %v2865_v40 = vor.u32 %v3485_v9, %v2862_v54  ;;  %v2869_v52 = vor.u32 %v3487_v60, %v2868_v10  ;;  %v2976_v54 = vld [vmem:[%s3828_s10 + $0x8] sm:$0xf]  ;;  %v3415_v10 = vld [vmem:[%s3828_s10 + $0x10] sm:$0xf0]  ;;  %v3124_v60 = vld [vmem:[%s3828_s10 + $0x30] sm:$0xf] }
 0x150   : > { %v1045_v30 = vpop.f32.mrf.mxu2  ;;  %v1294_v18 = vpop.f32.mrf.mxu3 }
 0x151   : > { %v1046_v47 = vadd.f32 %v1045_v30, %v957_v36  ;;  %v958_v16 = vpop.f32.mrf.mxu1  ;;  %v1385_v17 = vpop.f32.mrf.mxu0 }
 0x152   : > { %v959_v48 = vadd.f32 %v958_v16, %v4161_v2 }
 0x153   : > { %v1295_v22 = vadd.f32 %v1294_v18, %v1046_v47 }
 0x155   : > { %v4328_v24 = vadd.f32 %v1383_v41, %v1295_v22 }
 0x158   : > { %v1047_v21 = vpop.f32.mrf.mxu2  ;;  %v1296_v49 = vpop.f32.mrf.mxu3 }
 0x159   : > { %v1048_v33 = vadd.f32 %v1047_v21, %v959_v48  ;;  %v961_v15 = vpop.f32.mrf.mxu1  ;;  %v1388_v19 = vpop.f32.mrf.mxu0  ;;  %v3514_v48 = vld [vmem:[%s3828_s10 + $0x40] sm:$0xf0] }
 0x15a   : > { %v962_v41 = vadd.f32 %v961_v15, %v4179_v8  ;;  %v2977_v15 = vor.u32 %v3415_v10, %v2976_v54 }
 0x15b   : > { %v1297_v36 = vadd.f32 %v1296_v49, %v1048_v33  ;;  %v3512_v49 = vld [vmem:[%s3828_s10 + $0x34] sm:$0xf] }
 0x15c   : > { %1000 = vmatmul.bf16.gmra.mxu1 %v2865_v40  ;;  %1427 = vmatmul.bf16.gmra.mxu0 %v2853_v39  ;;  %v3132_v39 = vld [vmem:[%s3828_s10 + $0x38] sm:$0xf] }
 0x15d   : > { %1089 = vmatmul.bf16.gmra.mxu2 %v2869_v52  ;;  %1338 = vmatmul.bf16.gmra.mxu3 %v3983_v11  ;;  %v4334_v2 = vadd.f32 %v1385_v17, %v1297_v36  ;;  %v3513_v11 = vld [vmem:[%s3828_s10 + $0x38] sm:$0xf0]  ;;  %v3126_v17 = vld [vmem:[%s3828_s10 + $0x3c] sm:$0xf0]  ;;  %v3133_v52 = vor.u32 %v3514_v48, %v3132_v39  ;;  %v3136_v48 = vld [vmem:[%s3828_s10 + $0x48] sm:$0xf] }
 0x160   : > { %v1050_v30 = vpop.f32.mrf.mxu2  ;;  %v1299_v18 = vpop.f32.mrf.mxu3 }
 0x161   : > { %v1051_v47 = vadd.f32 %v1050_v30, %v962_v41  ;;  %v963_v16 = vpop.f32.mrf.mxu1  ;;  %v1390_v22 = vpop.f32.mrf.mxu0 }
 0x162   : > { %v964_v40 = vadd.f32 %v963_v16, %v4191_v34 }
 0x163   : > { %v1300_v9 = vadd.f32 %v1299_v18, %v1051_v47  ;;  %v3125_v18 = vor.u32 %v3513_v11, %v3124_v60  ;;  %v3129_v47 = vor.u32 %v3512_v49, %v3126_v17  ;;  %v3144_v11 = vld [vmem:[%s3828_s10 + $0x50] sm:$0xf]  ;;  %v3517_v49 = vld [vmem:[%s3828_s10 + $0x58] sm:$0xf0] }
 0x165   : > { %v4342_v21 = vadd.f32 %v1388_v19, %v1300_v9 }
 0x168   : > { %v1052_v33 = vpop.f32.mrf.mxu2  ;;  %v1301_v8 = vpop.f32.mrf.mxu3 }
 0x169   : > { %v1053_v36 = vadd.f32 %v1052_v33, %v964_v40  ;;  %v966_v41 = vpop.f32.mrf.mxu1  ;;  %v1393_v30 = vpop.f32.mrf.mxu0  ;;  %v3516_v40 = vld [vmem:[%s3828_s10 + $0x50] sm:$0xf0]  ;;  %v3515_v33 = vld [vmem:[%s3828_s10 + $0x4c] sm:$0xf] }
 0x16a   : > { %v967_v19 = vadd.f32 %v966_v41, %v4095_v25 }
 0x16b   : > { %v1302_v50 = vadd.f32 %v1301_v8, %v1053_v36  ;;  %v3138_v8 = vld [vmem:[%s3828_s10 + $0x54] sm:$0xf0] }
 0x16c   : > { %1441 = vmatmul.bf16.vlgmr.msra.gmra.mxu1 %v2977_v15  ;;  %2221 = vmatmul.bf16.vlgmr.msra.gmra.mxu0 %v3133_v52  ;;  %v3145_v52 = vor.u32 %v3517_v49, %v3144_v11  ;;  %v3148_v11 = vld [vmem:[%s3828_s10 + $0x60] sm:$0xf]  ;;  %v3156_v49 = vld [vmem:[%s3828_s10 + $0x68] sm:$0xf] }
 0x16d   : > { %2043 = vmatmul.bf16.vlgmr.msra.gmra.mxu2 %v3125_v18  ;;  %2132 = vmatmul.bf16.vlgmr.msra.gmra.mxu3 %v3129_v47  ;;  %v4348_v34 = vadd.f32 %v1390_v22, %v1302_v50  ;;  %v3137_v18 = vor.u32 %v3516_v40, %v3136_v48  ;;  %v3141_v47 = vor.u32 %v3515_v33, %v3138_v8  ;;  %v3520_v40 = vld [vmem:[%s3828_s10 + $0x70] sm:$0xf0]  ;;  %v3519_v33 = vld [vmem:[%s3828_s10 + $0x68] sm:$0xf0]  ;;  %v3518_v8 = vld [vmem:[%s3828_s10 + $0x64] sm:$0xf] }
 0x170   : > { %v1055_v16 = vpop.f32.mrf.mxu2  ;;  %v1304_v9 = vpop.f32.mrf.mxu3 }
 0x171   : > { %v1056_v54 = vadd.f32 %v1055_v16, %v967_v19  ;;  %v968_v10 = vpop.f32.mrf.mxu1  ;;  %v1395_v60 = vpop.f32.mrf.mxu0 }
 0x172   : > { %v969_v15 = vadd.f32 %v968_v10, %v4113_v37 }
 0x173   : > { %v1305_v39 = vadd.f32 %v1304_v9, %v1056_v54 }
 0x175   : > { %v4354_v17 = vadd.f32 %v1393_v30, %v1305_v39 }
 0x178   : > { %v1057_v50 = vpop.f32.mrf.mxu2  ;;  %v1306_v22 = vpop.f32.mrf.mxu3 }
 0x179   : > { %v1058_v25 = vadd.f32 %v1057_v50, %v969_v15  ;;  %v971_v36 = vpop.f32.mrf.mxu1  ;;  %v1398_v41 = vpop.f32.mrf.mxu0  ;;  %v3150_v15 = vld [vmem:[%s3828_s10 + $0x6c] sm:$0xf0] }
 0x17a   : > { %v972_v30 = vadd.f32 %v971_v36, %v4125_v44 }
 0x17b   : > { %v1307_v19 = vadd.f32 %v1306_v22, %v1058_v25 }
 0x17c   : > { %1446 = vmatmul.bf16.gmra.mxu1 %v4026_v42  ;;  %2226 = vmatmul.bf16.gmra.mxu0 %v3145_v52  ;;  %v3157_v52 = vor.u32 %v3520_v40, %v3156_v49  ;;  %v3168_v49 = vld [vmem:[%s3828_s10 + $0x80] sm:$0xf]  ;;  %v3523_v40 = vld [vmem:[%s3828_s10 + $0x88] sm:$0xf0] }
 0x17d   : > { %2048 = vmatmul.bf16.gmra.mxu2 %v3137_v18  ;;  %2137 = vmatmul.bf16.gmra.mxu3 %v3141_v47  ;;  %v4361_v37 = vadd.f32 %v1395_v60, %v1307_v19  ;;  %v3149_v18 = vor.u32 %v3519_v33, %v3148_v11  ;;  %v3153_v47 = vor.u32 %v3518_v8, %v3150_v15  ;;  %v3160_v11 = vld [vmem:[%s3828_s10 + $0x78] sm:$0xf]  ;;  %v3522_v33 = vld [vmem:[%s3828_s10 + $0x80] sm:$0xf0]  ;;  %v3521_v8 = vld [vmem:[%s3828_s10 + $0x7c] sm:$0xf] }
 0x17e   : > { %v3162_v15 = vld [vmem:[%s3828_s10 + $0x84] sm:$0xf0] }
 0x180   : > { %v1060_v16 = vpop.f32.mrf.mxu2  ;;  %v1309_v9 = vpop.f32.mrf.mxu3 }
 0x181   : > { %v1061_v54 = vadd.f32 %v1060_v16, %v972_v30  ;;  %v973_v10 = vpop.f32.mrf.mxu1  ;;  %v1400_v39 = vpop.f32.mrf.mxu0 }
 0x182   : > { %v974_v50 = vadd.f32 %v973_v10, %v4137_v56 }
 0x183   : > { %v1310_v48 = vadd.f32 %v1309_v9, %v1061_v54 }
 0x185   : > { %v4367_v42 = vadd.f32 %v1398_v41, %v1310_v48 }
 0x188   : > { %v1062_v60 = vpop.f32.mrf.mxu2  ;;  %v1311_v22 = vpop.f32.mrf.mxu3 }
 0x189   : > { %v1063_v44 = vadd.f32 %v1062_v60, %v974_v50  ;;  %v976_v25 = vpop.f32.mrf.mxu1  ;;  %v1403_v36 = vpop.f32.mrf.mxu0 }
 0x18a   : > { %v977_v41 = vadd.f32 %v976_v25, %v4155_v0  ;;  %v3161_v25 = vor.u32 %v3522_v33, %v3160_v11  ;;  %v3180_v11 = vld [vmem:[%s3828_s10 + $0x98] sm:$0xf]  ;;  %v3524_v33 = vld [vmem:[%s3828_s10 + $0x94] sm:$0xf] }
 0x18b   : > { %v1312_v19 = vadd.f32 %v1311_v22, %v1063_v44  ;;  %v3169_v22 = vor.u32 %v3523_v40, %v3168_v49  ;;  %v3526_v49 = vld [vmem:[%s3828_s10 + $0xa0] sm:$0xf0]  ;;  %v3525_v40 = vld [vmem:[%s3828_s10 + $0x98] sm:$0xf0] }
 0x18c   : > { %1451 = vmatmul.bf16.gmra.mxu1 %v4045_v57  ;;  %2231 = vmatmul.bf16.gmra.mxu0 %v3157_v52 }
 0x18d   : > { %2053 = vmatmul.bf16.gmra.mxu2 %v3149_v18  ;;  %2142 = vmatmul.bf16.gmra.mxu3 %v3153_v47  ;;  %v4374_v56 = vadd.f32 %v1400_v39, %v1312_v19  ;;  %v3165_v18 = vor.u32 %v3521_v8, %v3162_v15  ;;  %v3174_v8 = vld [vmem:[%s3828_s10 + $0x9c] sm:$0xf0] }
 0x190   : > { %v1065_v30 = vpop.f32.mrf.mxu2  ;;  %v1314_v16 = vpop.f32.mrf.mxu3 }
 0x191   : > { %v1066_v9 = vadd.f32 %v1065_v30, %v977_v41  ;;  %v978_v54 = vpop.f32.mrf.mxu1  ;;  %v1405_v10 = vpop.f32.mrf.mxu0 }
 0x192   : > { %v979_v50 = vadd.f32 %v978_v54, %v4173_v13 }
 0x193   : > { %v1315_v48 = vadd.f32 %v1314_v16, %v1066_v9 }
 0x195   : > { %v4380_v57 = vadd.f32 %v1403_v36, %v1315_v48  ;;  %v3172_v48 = vld [vmem:[%s3828_s10 + $0x90] sm:$0xf] }
 0x198   : > { %v1067_v39 = vpop.f32.mrf.mxu2  ;;  %v1316_v60 = vpop.f32.mrf.mxu3 }
 0x199   : > { %v1068_v0 = vadd.f32 %v1067_v39, %v979_v50  ;;  %v981_v52 = vpop.f32.mrf.mxu1  ;;  %v1408_v44 = vpop.f32.mrf.mxu0  ;;  %v3181_v39 = vor.u32 %v3526_v49, %v3180_v11  ;;  %v3528_v11 = vld [vmem:[%s3828_s10 + $0xb0] sm:$0xf0]  ;;  %v3527_v49 = vld [vmem:[%s3828_s10 + $0xac] sm:$0xf] }
 0x19a   : > { %v982_v36 = vadd.f32 %v981_v52, %v4185_v28  ;;  %v3177_v52 = vor.u32 %v3524_v33, %v3174_v8 }
 0x19b   : > { %v1317_v47 = vadd.f32 %v1316_v60, %v1068_v0  ;;  %v3173_v0 = vor.u32 %v3525_v40, %v3172_v48  ;;  %v3529_v48 = vld [vmem:[%s3828_s10 + $0xb8] sm:$0xf0]  ;;  %v3186_v40 = vld [vmem:[%s3828_s10 + $0xb4] sm:$0xf0] }
 0x19c   : > { %1456 = vmatmul.bf16.gmra.mxu1 %v4053_v63  ;;  %2236 = vmatmul.bf16.gmra.mxu0 %v3169_v22 }
 0x19d   : > { %2058 = vmatmul.bf16.gmra.mxu2 %v3161_v25  ;;  %2147 = vmatmul.bf16.gmra.mxu3 %v3165_v18  ;;  %v4387_v13 = vadd.f32 %v1405_v10, %v1317_v47 }
 0x1a0   : > { %v1070_v19 = vpop.f32.mrf.mxu2  ;;  %v1319_v41 = vpop.f32.mrf.mxu3 }
 0x1a1   : > { %v1071_v30 = vadd.f32 %v1070_v19, %v982_v36  ;;  %v983_v16 = vpop.f32.mrf.mxu1  ;;  %v1410_v9 = vpop.f32.mrf.mxu0 }
 0x1a2   : > { %v984_v15 = vadd.f32 %v983_v16, %v4197_v53  ;;  %v3184_v16 = vld [vmem:[%s3828_s10 + $0xa8] sm:$0xf] }
 0x1a3   : > { %v1320_v54 = vadd.f32 %v1319_v41, %v1071_v30 }
 0x1a5   : > { %v4393_v63 = vadd.f32 %v1408_v44, %v1320_v54  ;;  %v3192_v54 = vld [vmem:[%s3828_s10 + $0xb0] sm:$0xf] }
 0x1a8   : > { %v1072_v10 = vpop.f32.mrf.mxu2  ;;  %v1321_v50 = vpop.f32.mrf.mxu3 }
 0x1a9   : > { %v1073_v28 = vadd.f32 %v1072_v10, %v984_v15  ;;  %v986_v60 = vpop.f32.mrf.mxu1  ;;  %v1413_v22 = vpop.f32.mrf.mxu0  ;;  %v3193_v15 = vor.u32 %v3529_v48, %v3192_v54  ;;  %v3530_v54 = vld [vmem:[%s3828_s10 + $0xc4] sm:$0xf]  ;;  %v3198_v48 = vld [vmem:[%s3828_s10 + $0xcc] sm:$0xf0] }
 0x1aa   : > { %v987_v44 = vadd.f32 %v986_v60, %v4097_v26 }
 0x1ab   : > { %v1322_v25 = vadd.f32 %v1321_v50, %v1073_v28  ;;  %v3189_v28 = vor.u32 %v3527_v49, %v3186_v40 }
 0x1ac   : > { %1461 = vmatmul.bf16.gmra.mxu1 %v4073_v7  ;;  %2241 = vmatmul.bf16.gmra.mxu0 %v3181_v39  ;;  %v3185_v39 = vor.u32 %v3528_v11, %v3184_v16  ;;  %v3531_v16 = vld [vmem:[%s3828_s10 + $0xc8] sm:$0xf0] }
 0x1ad   : > { %2063 = vmatmul.bf16.gmra.mxu2 %v3173_v0  ;;  %2152 = vmatmul.bf16.gmra.mxu3 %v3177_v52  ;;  %v4400_v53 = vadd.f32 %v1410_v9, %v1322_v25 }
 0x1b0   : > { %v1075_v18 = vpop.f32.mrf.mxu2  ;;  %v1324_v47 = vpop.f32.mrf.mxu3 }
 0x1b1   : > { %v1076_v36 = vadd.f32 %v1075_v18, %v987_v44  ;;  %v988_v19 = vpop.f32.mrf.mxu1  ;;  %v1415_v41 = vpop.f32.mrf.mxu0 }
 0x1b2   : > { %v989_v33 = vadd.f32 %v988_v19, %v4115_v38  ;;  %v3204_v19 = vld [vmem:[%s3828_s10 + $0xc8] sm:$0xf] }
 0x1b3   : > { %v1325_v30 = vadd.f32 %v1324_v47, %v1076_v36  ;;  %v3196_v36 = vld [vmem:[%s3828_s10 + $0xc0] sm:$0xf] }
 0x1b5   : > { %v4406_v7 = vadd.f32 %v1413_v22, %v1325_v30  ;;  %v3532_v30 = vld [vmem:[%s3828_s10 + $0xd0] sm:$0xf0] }
 0x1b6   : > { %v3205_v40 = vor.u32 %v3532_v30, %v3204_v19  ;;  %v3210_v19 = vld [vmem:[%s3828_s10 + $0xe4] sm:$0xf0] }
 0x1b8   : > { %v1077_v9 = vpop.f32.mrf.mxu2  ;;  %v1326_v8 = vpop.f32.mrf.mxu3 }
 0x1b9   : > { %v1078_v26 = vadd.f32 %v1077_v9, %v989_v33  ;;  %v991_v10 = vpop.f32.mrf.mxu1  ;;  %v1418_v50 = vpop.f32.mrf.mxu0 }
 0x1ba   : > { %v992_v22 = vadd.f32 %v991_v10, %v4127_v45 }
 0x1bb   : > { %v1327_v60 = vadd.f32 %v1326_v8, %v1078_v26  ;;  %v3197_v8 = vor.u32 %v3531_v16, %v3196_v36  ;;  %v3533_v36 = vld [vmem:[%s3828_s10 + $0xdc] sm:$0xf] }
 0x1bc   : > { %1466 = vmatmul.bf16.gmra.mxu1 %v4085_v23  ;;  %2246 = vmatmul.bf16.gmra.mxu0 %v3193_v15  ;;  %v3201_v15 = vor.u32 %v3530_v54, %v3198_v48 }
 0x1bd   : > { %2068 = vmatmul.bf16.gmra.mxu2 %v3185_v39  ;;  %2157 = vmatmul.bf16.gmra.mxu3 %v3189_v28  ;;  %v4413_v38 = vadd.f32 %v1415_v41, %v1327_v60 }
 0x1c0   : > { %v1080_v0 = vpop.f32.mrf.mxu2  ;;  %v1329_v52 = vpop.f32.mrf.mxu3 }
 0x1c1   : > { %v1081_v25 = vadd.f32 %v1080_v0, %v992_v22  ;;  %v993_v44 = vpop.f32.mrf.mxu1  ;;  %v1420_v18 = vpop.f32.mrf.mxu0 }
 0x1c2   : > { %v994_v11 = vadd.f32 %v993_v44, %v4139_v58  ;;  %v3535_v44 = vld [vmem:[%s3828_s10 + $0xe8] sm:$0xf0] }
 0x1c3   : > { %v1330_v47 = vadd.f32 %v1329_v52, %v1081_v25  ;;  %v3208_v52 = vld [vmem:[%s3828_s10 + $0xd8] sm:$0xf]  ;;  %v3216_v25 = vld [vmem:[%s3828_s10 + $0xe0] sm:$0xf] }
 0x1c4   : > { %v3217_v54 = vor.u32 %v3535_v44, %v3216_v25  ;;  %v4655_v25 = vld [vmem:[#allocation3_spill] sm:$0xff] }
 0x1c5   : > { %v4419_v23 = vadd.f32 %v1418_v50, %v1330_v47  ;;  %v3534_v47 = vld [vmem:[%s3828_s10 + $0xe0] sm:$0xf0] }
 0x1c8   : > { %v1082_v41 = vpop.f32.mrf.mxu2  ;;  %v1331_v49 = vpop.f32.mrf.mxu3 }
 0x1c9   : > { %v1083_v45 = vadd.f32 %v1082_v41, %v994_v11  ;;  %v996_v33 = vpop.f32.mrf.mxu1  ;;  %v1423_v9 = vpop.f32.mrf.mxu0  ;;  %v3209_v41 = vor.u32 %v3534_v47, %v3208_v52  ;;  %v3222_v52 = vld [vmem:[%s3828_s10 + $0xfc] sm:$0xf0] }
 0x1ca   : > { %v997_v10 = vadd.f32 %v996_v33, %v4157_v1 }
 0x1cb   : > { %v1332_v26 = vadd.f32 %v1331_v49, %v1083_v45  ;;  %v3213_v49 = vor.u32 %v3533_v36, %v3210_v19 }
 0x1cc   : > { %1471 = vmatmul.bf16.gmra.mxu1 %v4121_v43  ;;  %2251 = vmatmul.bf16.gmra.mxu0 %v3205_v40 }
 0x1cd   : > { %2073 = vmatmul.bf16.gmra.mxu2 %v3197_v8  ;;  %2162 = vmatmul.bf16.gmra.mxu3 %v3201_v15  ;;  %v4426_v58 = vadd.f32 %v1420_v18, %v1332_v26 }
 0x1d0   : > { %v1085_v50 = vpop.f32.mrf.mxu2  ;;  %v1334_v39 = vpop.f32.mrf.mxu3 }
 0x1d1   : > { %v1086_v28 = vadd.f32 %v1085_v50, %v997_v10  ;;  %v998_v60 = vpop.f32.mrf.mxu1  ;;  %v1425_v22 = vpop.f32.mrf.mxu0  ;;  %v3220_v50 = vld [vmem:[%s3828_s10 + $0xf0] sm:$0xf] }
 0x1d2   : > { %v999_v30 = vadd.f32 %v998_v60, %v4175_v14  ;;  %v3537_v60 = vld [vmem:[%s3828_s10 + $0xf8] sm:$0xf0] }
 0x1d3   : > { %v1335_v0 = vadd.f32 %v1334_v39, %v1086_v28  ;;  %v3228_v39 = vld [vmem:[%s3828_s10 + $0xf8] sm:$0xf]  ;;  %v3538_v28 = vld [vmem:[%s3828_s10 + $0x100] sm:$0xf0] }
 0x1d4   : > { %v3229_v36 = vor.u32 %v3538_v28, %v3228_v39  ;;  %v3539_v39 = vld [vmem:[%s3828_s10 + $0x10c] sm:$0xf]  ;;  %v3234_v28 = vld [vmem:[%s3828_s10 + $0x114] sm:$0xf0] }
 0x1d5   : > { %v4432_v43 = vadd.f32 %v1423_v9, %v1335_v0  ;;  %v3536_v0 = vld [vmem:[%s3828_s10 + $0xf4] sm:$0xf] }
 0x1d8   : > { %v1087_v18 = vpop.f32.mrf.mxu2  ;;  %v1336_v16 = vpop.f32.mrf.mxu3 }
 0x1d9   : > { %v1088_v1 = vadd.f32 %v1087_v18, %v999_v30  ;;  %v1001_v48 = vpop.f32.mrf.mxu1  ;;  %v1428_v11 = vpop.f32.mrf.mxu0  ;;  %v3221_v18 = vor.u32 %v3537_v60, %v3220_v50  ;;  %v3540_v50 = vld [vmem:[%s3828_s10 + $0x110] sm:$0xf0] }
 0x1da   : > { %v1002_v45 = vadd.f32 %v1001_v48, %v4187_v32 }
 0x1db   : > { %v1337_v40 = vadd.f32 %v1336_v16, %v1088_v1  ;;  %v3225_v16 = vor.u32 %v3536_v0, %v3222_v52  ;;  %v4656_v1 = vld [vmem:[#allocation2_spill] sm:$0xff] }
 0x1dc   : > { %1476 = vmatmul.bf16.gmra.mxu1 %v4145_v61  ;;  %2256 = vmatmul.bf16.gmra.mxu0 %v3217_v54 }
 0x1dd   : > { %2078 = vmatmul.bf16.gmra.mxu2 %v3209_v41  ;;  %2167 = vmatmul.bf16.gmra.mxu3 %v3213_v49  ;;  %v4439_v14 = vadd.f32 %v1425_v22, %v1337_v40 }
 0x1e0   : > { %v1090_v33 = vpop.f32.mrf.mxu2  ;;  %v1339_v9 = vpop.f32.mrf.mxu3 }
 0x1e1   : > { %v1091_v8 = vadd.f32 %v1090_v33, %v1002_v45  ;;  %v1003_v15 = vpop.f32.mrf.mxu1  ;;  %v1430_v26 = vpop.f32.mrf.mxu0 }
 0x1e2   : > { %v1004_v44 = vadd.f32 %v1003_v15, %v4655_v25  ;;  %v3240_v15 = vld [vmem:[%s3828_s10 + $0x110] sm:$0xf] }
 0x1e3   : > { %v1340_v10 = vadd.f32 %v1339_v9, %v1091_v8  ;;  %v3232_v8 = vld [vmem:[%s3828_s10 + $0x108] sm:$0xf] }
 0x1e5   : > { %v4445_v61 = vadd.f32 %v1428_v11, %v1340_v10  ;;  %v3541_v10 = vld [vmem:[%s3828_s10 + $0x118] sm:$0xf0] }
 0x1e6   : > { %v3241_v25 = vor.u32 %v3541_v10, %v3240_v15 }
 0x1e8   : > { %v1092_v22 = vpop.f32.mrf.mxu2  ;;  %v1341_v47 = vpop.f32.mrf.mxu3 }
 0x1e9   : > { %v1093_v32 = vadd.f32 %v1092_v22, %v1004_v44  ;;  %v1442_v19 = vpop.f32.mrf.mxu1  ;;  %v2222_v30 = vpop.f32.mrf.mxu0 }
 0x1ea   : > { %v1443_v9 = vadd.f32 %v1442_v19, %v4221_v59  ;;  %v3233_v59 = vor.u32 %v3540_v50, %v3232_v8  ;;  %v4470_v19 = vld [vmem:[%s4643_s3] ss:$0 sm:$0xff] }
 0x1eb   : > { %v1342_v54 = vadd.f32 %v1341_v47, %v1093_v32 }
 0x1ec   : > { %1481 = vmatmul.bf16.gmra.mxu1 %v4656_v1  ;;  %2261 = vmatmul.bf16.gmra.mxu0 %v3229_v36  ;;  %v3237_v36 = vor.u32 %v3539_v39, %v3234_v28 }
 0x1ed   : > { %2083 = vmatmul.bf16.gmra.mxu2 %v3221_v18  ;;  %2172 = vmatmul.bf16.gmra.mxu3 %v3225_v16  ;;  %v4452_v48 = vadd.f32 %v1430_v26, %v1342_v54  ;;  %v4464_v26 = vld [vmem:[%s4642_s2] ss:$0 sm:$0xff]  ;;  %v4658_v54 = vld [vmem:[#allocation4_spill] sm:$0xff] }
 0x1f0   : > { %v2044_v11 = vpop.f32.mrf.mxu2  ;;  %v2133_v41 = vpop.f32.mrf.mxu3 }
 0x1f1   : > { %v2134_v49 = vadd.f32 %v2133_v41, %v2044_v11  ;;  %v1444_v40 = vpop.f32.mrf.mxu1  ;;  %v2224_v45 = vpop.f32.mrf.mxu0 }
 0x1f3   : > { %v2223_v33 = vadd.f32 %v2222_v30, %v2134_v49  ;;  %v4657_v30 = vld [vmem:[#allocation6_spill] sm:$0xff] }
 0x1f4   : > { %v1445_v18 = vadd.f32 %v1444_v40, %v4657_v30 }
 0x1f5   : > { %v2302_v60 = vadd.f32 %v2223_v33, %v1443_v9 }
 0x1f7   : > { %v2338_v32 = vmul.f32 %v4464_v26, %v2302_v60  ;;  %v3244_v60 = vld [vmem:[%s3828_s10 + $0x120] sm:$0xf] }
 0x1f8   : > { %v2046_v0 = vpop.f32.mrf.mxu2  ;;  %v2135_v52 = vpop.f32.mrf.mxu3 }
 0x1f9   : > { %v2136_v44 = vadd.f32 %v2135_v52, %v2046_v0  ;;  %v1447_v22 = vpop.f32.mrf.mxu1  ;;  %v2227_v47 = vpop.f32.mrf.mxu0  ;;  %v2374_v11 = vadd.f32 %v4470_v19, %v2338_v32  ;;  %v3252_v0 = vld [vmem:[%s3828_s10 + $0x128] sm:$0xf]  ;;  %v3544_v52 = vld [vmem:[%s3828_s10 + $0x130] sm:$0xf0] }
 0x1fa   : > { %v1448_v28 = vadd.f32 %v1447_v22, %v4235_v3 }
 0x1fb   : > { %v2225_v16 = vadd.f32 %v2224_v45, %v2136_v44  ;;  %v2406_v15 = vmax.f32 %v2374_v11, 0.0  ;;  %v3542_v44 = vld [vmem:[%s3828_s10 + $0x124] sm:$0xf] }
 0x1fc   : > { %1486 = vmatmul.bf16.gmra.mxu1 %v4658_v54  ;;  %2266 = vmatmul.bf16.gmra.mxu0 %v3241_v25  ;;  %v3543_v25 = vld [vmem:[%s3828_s10 + $0x128] sm:$0xf0] }
 0x1fd   : > { %v2303_v1 = vadd.f32 %v2225_v16, %v1445_v18  ;;  %2088 = vmatmul.bf16.gmra.mxu2 %v3233_v59  ;;  %2177 = vmatmul.bf16.gmra.mxu3 %v3237_v36  ;;  %v3246_v59 = vld [vmem:[%s3828_s10 + $0x12c] sm:$0xf0] }
 0x1fe   : > { %v3249_v11 = vor.u32 %v3542_v44, %v3246_v59  ;;  %v3264_v44 = vld [vmem:[%s3828_s10 + $0x140] sm:$0xf]  ;;  %v3547_v59 = vld [vmem:[%s3828_s10 + $0x148] sm:$0xf0] }
 0x1ff   : > { %v2339_v41 = vmul.f32 %v4464_v26, %v2303_v1  ;;  %v3245_v1 = vor.u32 %v3543_v25, %v3244_v60  ;;  %v3256_v25 = vld [vmem:[%s3828_s10 + $0x138] sm:$0xf] }
 0x200   : > { %v2049_v49 = vpop.f32.mrf.mxu2  ;;  %v2138_v33 = vpop.f32.mrf.mxu3 }
 0x201   : > { %v2375_v40 = vadd.f32 %v4470_v19, %v2339_v41  ;;  %v2139_v45 = vadd.f32 %v2138_v33, %v2049_v49  ;;  %v1449_v9 = vpop.f32.mrf.mxu1  ;;  %v2229_v8 = vpop.f32.mrf.mxu0  ;;  %v4659_v49 = vld [vmem:[#allocation5_spill] sm:$0xff] }
 0x202   : > { %v1450_v3 = vadd.f32 %v1449_v9, %v4250_v29 }
 0x203   : > { %v2407_v10 = vmax.f32 %v2375_v40, 0.0  ;;  %v2228_v50 = vadd.f32 %v2227_v47, %v2139_v45  ;;  %v3253_v47 = vor.u32 %v3544_v52, %v3252_v0 }
 0x205   : > { %v3587_v39 = vpack.c.bf16 %v2407_v10, %v2406_v15  ;;  %v2304_v36 = vadd.f32 %v2228_v50, %v1448_v28 }
 0x207   : > { %3588 = vst [vmem:[%s4481_s26] sm:$0xff] %v3587_v39   ;;  %v2340_v41 = vmul.f32 %v4464_v26, %v2304_v36  ;;  %v3546_v36 = vld [vmem:[%s3828_s10 + $0x140] sm:$0xf0] }
 0x208   : > { %v2051_v32 = vpop.f32.mrf.mxu2  ;;  %v2140_v30 = vpop.f32.mrf.mxu3 }
 0x209   : > { %v2141_v18 = vadd.f32 %v2140_v30, %v2051_v32  ;;  %v1452_v16 = vpop.f32.mrf.mxu1  ;;  %v2232_v54 = vpop.f32.mrf.mxu0  ;;  %v2376_v40 = vadd.f32 %v4470_v19, %v2340_v41  ;;  %v3545_v32 = vld [vmem:[%s3828_s10 + $0x13c] sm:$0xf]  ;;  %v3258_v30 = vld [vmem:[%s3828_s10 + $0x144] sm:$0xf0] }
 0x20a   : > { %v1453_v52 = vadd.f32 %v1452_v16, %v4261_v55 }
 0x20b   : > { %v2230_v22 = vadd.f32 %v2229_v8, %v2141_v18  ;;  %v2408_v39 = vmax.f32 %v2376_v40, 0.0 }
 0x20c   : > { %1491 = vmatmul.bf16.gmra.mxu1 %v4659_v49  ;;  %2271 = vmatmul.bf16.gmra.mxu0 %v3253_v47  ;;  %v3257_v49 = vor.u32 %v3546_v36, %v3256_v25  ;;  %v3276_v25 = vld [vmem:[%s3828_s10 + $0x158] sm:$0xf]  ;;  %v3548_v36 = vld [vmem:[%s3828_s10 + $0x154] sm:$0xf] }
 0x20d   : > { %v2305_v33 = vadd.f32 %v2230_v22, %v1450_v3  ;;  %2093 = vmatmul.bf16.gmra.mxu2 %v3245_v1  ;;  %2182 = vmatmul.bf16.gmra.mxu3 %v3249_v11  ;;  %v3265_v11 = vor.u32 %v3547_v59, %v3264_v44  ;;  %v3550_v44 = vld [vmem:[%s3828_s10 + $0x160] sm:$0xf0]  ;;  %v3549_v59 = vld [vmem:[%s3828_s10 + $0x158] sm:$0xf0] }
 0x20f   : > { %v2341_v45 = vmul.f32 %v4464_v26, %v2305_v33  ;;  %v3261_v33 = vor.u32 %v3545_v32, %v3258_v30  ;;  %v3270_v32 = vld [vmem:[%s3828_s10 + $0x15c] sm:$0xf0] }
 0x210   : > { %v2054_v15 = vpop.f32.mrf.mxu2  ;;  %v2143_v10 = vpop.f32.mrf.mxu3 }
 0x211   : > { %v2377_v29 = vadd.f32 %v4470_v19, %v2341_v45  ;;  %v2144_v9 = vadd.f32 %v2143_v10, %v2054_v15  ;;  %v1454_v8 = vpop.f32.mrf.mxu1  ;;  %v2234_v50 = vpop.f32.mrf.mxu0 }
 0x212   : > { %v1455_v55 = vadd.f32 %v1454_v8, %v4270_v12 }
 0x213   : > { %v2409_v28 = vmax.f32 %v2377_v29, 0.0  ;;  %v2233_v60 = vadd.f32 %v2232_v54, %v2144_v9 }
 0x215   : > { %v3592_v0 = vpack.c.bf16 %v2409_v28, %v2408_v39  ;;  %v2306_v47 = vadd.f32 %v2233_v60, %v1453_v52  ;;  %v3268_v52 = vld [vmem:[%s3828_s10 + $0x150] sm:$0xf] }
 0x217   : > { %3664 = vst [vmem:[%s4481_s26 + $0x8] sm:$0xff] %v3592_v0   ;;  %v2342_v54 = vmul.f32 %v4464_v26, %v2306_v47 }
 0x218   : > { %v2056_v18 = vpop.f32.mrf.mxu2  ;;  %v2145_v1 = vpop.f32.mrf.mxu3 }
 0x219   : > { %v2146_v41 = vadd.f32 %v2145_v1, %v2056_v18  ;;  %v1457_v3 = vpop.f32.mrf.mxu1  ;;  %v2237_v22 = vpop.f32.mrf.mxu0  ;;  %v2378_v45 = vadd.f32 %v4470_v19, %v2342_v54  ;;  %v3277_v1 = vor.u32 %v3550_v44, %v3276_v25  ;;  %v3273_v54 = vor.u32 %v3548_v36, %v3270_v32  ;;  %v3282_v25 = vld [vmem:[%s3828_s10 + $0x174] sm:$0xf0] }
 0x21a   : > { %v1458_v0 = vadd.f32 %v1457_v3, %v4275_v4 }
 0x21b   : > { %v2235_v16 = vadd.f32 %v2234_v50, %v2146_v41  ;;  %v2410_v50 = vmax.f32 %v2378_v45, 0.0 }
 0x21c   : > { %1496 = vmatmul.bf16.gmra.mxu1 %v4239_v62  ;;  %2276 = vmatmul.bf16.gmra.mxu0 %v3265_v11 }
 0x21d   : > { %v2307_v40 = vadd.f32 %v2235_v16, %v1455_v55  ;;  %2098 = vmatmul.bf16.gmra.mxu2 %v3257_v49  ;;  %2187 = vmatmul.bf16.gmra.mxu3 %v3261_v33  ;;  %v3269_v33 = vor.u32 %v3549_v59, %v3268_v52  ;;  %v3551_v52 = vld [vmem:[%s3828_s10 + $0x16c] sm:$0xf] }
 0x21f   : > { %v2343_v15 = vmul.f32 %v4464_v26, %v2307_v40 }
 0x220   : > { %v2059_v10 = vpop.f32.mrf.mxu2  ;;  %v2148_v29 = vpop.f32.mrf.mxu3 }
 0x221   : > { %v2379_v12 = vadd.f32 %v4470_v19, %v2343_v15  ;;  %v2149_v62 = vadd.f32 %v2148_v29, %v2059_v10  ;;  %v1459_v9 = vpop.f32.mrf.mxu1  ;;  %v2239_v8 = vpop.f32.mrf.mxu0 }
 0x222   : > { %v1460_v4 = vadd.f32 %v1459_v9, %v4289_v35 }
 0x223   : > { %v2411_v39 = vmax.f32 %v2379_v12, 0.0  ;;  %v2238_v28 = vadd.f32 %v2237_v22, %v2149_v62 }
 0x225   : > { %v3597_v60 = vpack.c.bf16 %v2411_v39, %v2410_v50  ;;  %v2308_v30 = vadd.f32 %v2238_v28, %v1458_v0  ;;  %v3280_v39 = vld [vmem:[%s3828_s10 + $0x168] sm:$0xf]  ;;  %v3288_v28 = vld [vmem:[%s3828_s10 + $0x170] sm:$0xf]  ;;  %v3552_v0 = vld [vmem:[%s3828_s10 + $0x170] sm:$0xf0] }
 0x227   : > { %3665 = vst [vmem:[%s4481_s26 + $0x10] sm:$0xff] %v3597_v60   ;;  %v2344_v22 = vmul.f32 %v4464_v26, %v2308_v30  ;;  %v3553_v60 = vld [vmem:[%s3828_s10 + $0x178] sm:$0xf0] }
 0x228   : > { %v2061_v47 = vpop.f32.mrf.mxu2  ;;  %v2150_v18 = vpop.f32.mrf.mxu3  ;;  %v3289_v32 = vor.u32 %v3553_v60, %v3288_v28 }
 0x229   : > { %v2151_v11 = vadd.f32 %v2150_v18, %v2061_v47  ;;  %v1462_v41 = vpop.f32.mrf.mxu1  ;;  %v2242_v49 = vpop.f32.mrf.mxu0  ;;  %v2380_v16 = vadd.f32 %v4470_v19, %v2344_v22 }
 0x22a   : > { %v1463_v50 = vadd.f32 %v1462_v41, %v4300_v5 }
 0x22b   : > { %v2240_v3 = vadd.f32 %v2239_v8, %v2151_v11  ;;  %v2412_v12 = vmax.f32 %v2380_v16, 0.0  ;;  %v3285_v11 = vor.u32 %v3551_v52, %v3282_v25 }
 0x22c   : > { %1501 = vmatmul.bf16.gmra.mxu1 %v4265_v6  ;;  %2281 = vmatmul.bf16.gmra.mxu0 %v3277_v1  ;;  %v3281_v1 = vor.u32 %v3552_v0, %v3280_v39 }
 0x22d   : > { %v2309_v55 = vadd.f32 %v2240_v3, %v1460_v4  ;;  %2103 = vmatmul.bf16.gmra.mxu2 %v3269_v33  ;;  %2192 = vmatmul.bf16.gmra.mxu3 %v3273_v54 }
 0x22f   : > { %v2345_v40 = vmul.f32 %v4464_v26, %v2309_v55 }
 0x230   : > { %v2064_v45 = vpop.f32.mrf.mxu2  ;;  %v2153_v15 = vpop.f32.mrf.mxu3 }
 0x231   : > { %v2381_v35 = vadd.f32 %v4470_v19, %v2345_v40  ;;  %v2154_v6 = vadd.f32 %v2153_v15, %v2064_v45  ;;  %v1464_v10 = vpop.f32.mrf.mxu1  ;;  %v2244_v29 = vpop.f32.mrf.mxu0 }
 0x232   : > { %v1465_v5 = vadd.f32 %v1464_v10, %v4309_v31  ;;  %v3292_v10 = vld [vmem:[%s3828_s10 + $0x180] sm:$0xf] }
 0x233   : > { %v2413_v62 = vmax.f32 %v2381_v35, 0.0  ;;  %v2243_v9 = vadd.f32 %v2242_v49, %v2154_v6 }
 0x235   : > { %v3602_v8 = vpack.c.bf16 %v2413_v62, %v2412_v12  ;;  %v2310_v44 = vadd.f32 %v2243_v9, %v1463_v50  ;;  %v3556_v12 = vld [vmem:[%s3828_s10 + $0x190] sm:$0xf0]  ;;  %v3555_v62 = vld [vmem:[%s3828_s10 + $0x188] sm:$0xf0]  ;;  %v3554_v9 = vld [vmem:[%s3828_s10 + $0x184] sm:$0xf] }
 0x237   : > { %3666 = vst [vmem:[%s4481_s26 + $0x18] sm:$0xff] %v3602_v8   ;;  %v2346_v49 = vmul.f32 %v4464_v26, %v2310_v44  ;;  %v3294_v8 = vld [vmem:[%s3828_s10 + $0x18c] sm:$0xf0]  ;;  %v3293_v44 = vor.u32 %v3555_v62, %v3292_v10 }
 0x238   : > { %v2066_v59 = vpop.f32.mrf.mxu2  ;;  %v2155_v36 = vpop.f32.mrf.mxu3 }
 0x239   : > { %v2156_v30 = vadd.f32 %v2155_v36, %v2066_v59  ;;  %v1467_v47 = vpop.f32.mrf.mxu1  ;;  %v2247_v18 = vpop.f32.mrf.mxu0  ;;  %v2382_v54 = vadd.f32 %v4470_v19, %v2346_v49  ;;  %v3297_v59 = vor.u32 %v3554_v9, %v3294_v8 }
 0x23a   : > { %v1468_v6 = vadd.f32 %v1467_v47, %v4314_v20 }
 0x23b   : > { %v2245_v41 = vadd.f32 %v2244_v29, %v2156_v30  ;;  %v2414_v40 = vmax.f32 %v2382_v54, 0.0  ;;  %v3300_v29 = vld [vmem:[%s3828_s10 + $0x188] sm:$0xf] }
 0x23c   : > { %1506 = vmatmul.bf16.gmra.mxu1 %v4279_v27  ;;  %2286 = vmatmul.bf16.gmra.mxu0 %v3289_v32  ;;  %v3301_v60 = vor.u32 %v3556_v12, %v3300_v29 }
 0x23d   : > { %v2311_v33 = vadd.f32 %v2245_v41, %v1465_v5  ;;  %2108 = vmatmul.bf16.gmra.mxu2 %v3281_v1  ;;  %2197 = vmatmul.bf16.gmra.mxu3 %v3285_v11 }
 0x23f   : > { %v2347_v22 = vmul.f32 %v4464_v26, %v2311_v33 }
 0x240   : > { %v2069_v4 = vpop.f32.mrf.mxu2  ;;  %v2158_v3 = vpop.f32.mrf.mxu3 }
 0x241   : > { %v2383_v31 = vadd.f32 %v4470_v19, %v2347_v22  ;;  %v2159_v27 = vadd.f32 %v2158_v3, %v2069_v4  ;;  %v1469_v55 = vpop.f32.mrf.mxu1  ;;  %v2249_v16 = vpop.f32.mrf.mxu0  ;;  %v3304_v3 = vld [vmem:[%s3828_s10 + $0x198] sm:$0xf] }
 0x242   : > { %v1470_v20 = vadd.f32 %v1469_v55, %v4323_v51  ;;  %v3558_v55 = vld [vmem:[%s3828_s10 + $0x1a0] sm:$0xf0] }
 0x243   : > { %v2415_v45 = vmax.f32 %v2383_v31, 0.0  ;;  %v2248_v15 = vadd.f32 %v2247_v18, %v2159_v27  ;;  %v3312_v31 = vld [vmem:[%s3828_s10 + $0x1a0] sm:$0xf]  ;;  %v3559_v27 = vld [vmem:[%s3828_s10 + $0x1a8] sm:$0xf0]  ;;  %v3305_v62 = vor.u32 %v3558_v55, %v3304_v3 }
 0x245   : > { %v3607_v35 = vpack.c.bf16 %v2415_v45, %v2414_v40  ;;  %v2312_v50 = vadd.f32 %v2248_v15, %v1468_v6  ;;  %v3306_v40 = vld [vmem:[%s3828_s10 + $0x1a4] sm:$0xf0]  ;;  %v3313_v6 = vor.u32 %v3559_v27, %v3312_v31 }
 0x247   : > { %3667 = vst [vmem:[%s4481_s26 + $0x20] sm:$0xff] %v3607_v35   ;;  %v2348_v36 = vmul.f32 %v4464_v26, %v2312_v50 }
 0x248   : > { %v2071_v39 = vpop.f32.mrf.mxu2  ;;  %v2160_v28 = vpop.f32.mrf.mxu3 }
 0x249   : > { %v2161_v0 = vadd.f32 %v2160_v28, %v2071_v39  ;;  %v1472_v52 = vpop.f32.mrf.mxu1  ;;  %v2252_v25 = vpop.f32.mrf.mxu0  ;;  %v2384_v47 = vadd.f32 %v4470_v19, %v2348_v36  ;;  %v4660_v39 = vld [vmem:[#allocation7_spill] sm:$0xff] }
 0x24a   : > { %v1473_v4 = vadd.f32 %v1472_v52, %v4328_v24 }
 0x24b   : > { %v2250_v32 = vadd.f32 %v2249_v16, %v2161_v0  ;;  %v2416_v41 = vmax.f32 %v2384_v47, 0.0  ;;  %v3557_v16 = vld [vmem:[%s3828_s10 + $0x19c] sm:$0xf] }
 0x24c   : > { %1511 = vmatmul.bf16.gmra.mxu1 %v4305_v46  ;;  %2291 = vmatmul.bf16.gmra.mxu0 %v3301_v60  ;;  %v3309_v9 = vor.u32 %v3557_v16, %v3306_v40 }
 0x24d   : > { %v2313_v30 = vadd.f32 %v2250_v32, %v1470_v20  ;;  %2113 = vmatmul.bf16.gmra.mxu2 %v3293_v44  ;;  %2202 = vmatmul.bf16.gmra.mxu3 %v3297_v59 }
 0x24f   : > { %v2349_v18 = vmul.f32 %v4464_v26, %v2313_v30 }
 0x250   : > { %v2074_v1 = vpop.f32.mrf.mxu2  ;;  %v2163_v11 = vpop.f32.mrf.mxu3 }
 0x251   : > { %v2385_v51 = vadd.f32 %v4470_v19, %v2349_v18  ;;  %v2164_v46 = vadd.f32 %v2163_v11, %v2074_v1  ;;  %v1474_v49 = vpop.f32.mrf.mxu1  ;;  %v2254_v5 = vpop.f32.mrf.mxu0 }
 0x252   : > { %v1475_v24 = vadd.f32 %v1474_v49, %v4334_v2 }
 0x253   : > { %v2417_v33 = vmax.f32 %v2385_v51, 0.0  ;;  %v2253_v54 = vadd.f32 %v2252_v25, %v2164_v46 }
 0x255   : > { %v3612_v22 = vpack.c.bf16 %v2417_v33, %v2416_v41  ;;  %v2314_v45 = vadd.f32 %v2253_v54, %v1473_v4 }
 0x257   : > { %3668 = vst [vmem:[%s4481_s26 + $0x28] sm:$0xff] %v3612_v22   ;;  %v2350_v8 = vmul.f32 %v4464_v26, %v2314_v45 }
 0x258   : > { %v2076_v15 = vpop.f32.mrf.mxu2  ;;  %v2165_v35 = vpop.f32.mrf.mxu3 }
 0x259   : > { %v2166_v10 = vadd.f32 %v2165_v35, %v2076_v15  ;;  %v1477_v29 = vpop.f32.mrf.mxu1  ;;  %v2257_v12 = vpop.f32.mrf.mxu0  ;;  %v2386_v60 = vadd.f32 %v4470_v19, %v2350_v8 }
 0x25a   : > { %v1478_v18 = vadd.f32 %v1477_v29, %v4342_v21 }
 0x25b   : > { %v2255_v50 = vadd.f32 %v2254_v5, %v2166_v10  ;;  %v2418_v2 = vmax.f32 %v2386_v60, 0.0 }
 0x25c   : > { %1516 = vmatmul.bf16.gmra.mxu1 %v4660_v39  ;;  %2296 = vmatmul.bf16.gmra.mxu0 %v3313_v6 }
 0x25d   : > { %v2315_v28 = vadd.f32 %v2255_v50, %v1475_v24  ;;  %2118 = vmatmul.bf16.gmra.mxu2 %v3305_v62  ;;  %2207 = vmatmul.bf16.gmra.mxu3 %v3309_v9 }
 0x25f   : > { %v2351_v0 = vmul.f32 %v4464_v26, %v2315_v28 }
 0x260   : > { %v2079_v52 = vpop.f32.mrf.mxu2  ;;  %v2168_v25 = vpop.f32.mrf.mxu3 }
 0x261   : > { %v2387_v44 = vadd.f32 %v4470_v19, %v2351_v0  ;;  %v2169_v59 = vadd.f32 %v2168_v25, %v2079_v52  ;;  %v1479_v36 = vpop.f32.mrf.mxu1  ;;  %v2259_v20 = vpop.f32.mrf.mxu0 }
 0x262   : > { %v1480_v33 = vadd.f32 %v1479_v36, %v4348_v34 }
 0x263   : > { %v2419_v32 = vmax.f32 %v2387_v44, 0.0  ;;  %v2258_v30 = vadd.f32 %v2257_v12, %v2169_v59 }
 0x265   : > { %v3617_v47 = vpack.c.bf16 %v2419_v32, %v2418_v2  ;;  %v2316_v1 = vadd.f32 %v2258_v30, %v1478_v18 }
 0x267   : > { %3669 = vst [vmem:[%s4481_s26 + $0x30] sm:$0xff] %v3617_v47   ;;  %v2352_v41 = vmul.f32 %v4464_v26, %v2316_v1 }
 0x268   : > { %v2081_v11 = vpop.f32.mrf.mxu2  ;;  %v2170_v51 = vpop.f32.mrf.mxu3 }
 0x269   : > { %v2171_v46 = vadd.f32 %v2170_v51, %v2081_v11  ;;  %v1482_v49 = vpop.f32.mrf.mxu1  ;;  %v2262_v5 = vpop.f32.mrf.mxu0  ;;  %v2388_v4 = vadd.f32 %v4470_v19, %v2352_v41 }
 0x26a   : > { %v1483_v34 = vadd.f32 %v1482_v49, %v4354_v17 }
 0x26b   : > { %v2260_v54 = vadd.f32 %v2259_v20, %v2171_v46  ;;  %v2420_v45 = vmax.f32 %v2388_v4, 0.0 }
 0x26d   : > { %v2317_v22 = vadd.f32 %v2260_v54, %v1480_v33 }
 0x26f   : > { %v2353_v3 = vmul.f32 %v4464_v26, %v2317_v22 }
 0x270   : > { %v2084_v31 = vpop.f32.mrf.mxu2  ;;  %v2173_v21 = vpop.f32.mrf.mxu3 }
 0x271   : > { %v2389_v27 = vadd.f32 %v4470_v19, %v2353_v3  ;;  %v2174_v55 = vadd.f32 %v2173_v21, %v2084_v31  ;;  %v1484_v16 = vpop.f32.mrf.mxu1  ;;  %v2264_v40 = vpop.f32.mrf.mxu0 }
 0x272   : > { %v1485_v50 = vadd.f32 %v1484_v16, %v4361_v37 }
 0x273   : > { %v2421_v15 = vmax.f32 %v2389_v27, 0.0  ;;  %v2263_v35 = vadd.f32 %v2262_v5, %v2174_v55 }
 0x275   : > { %v3622_v6 = vpack.c.bf16 %v2421_v15, %v2420_v45  ;;  %v2318_v10 = vadd.f32 %v2263_v35, %v1483_v34 }
 0x277   : > { %3670 = vst [vmem:[%s4481_s26 + $0x38] sm:$0xff] %v3622_v6   ;;  %v2354_v24 = vmul.f32 %v4464_v26, %v2318_v10 }
 0x278   : > { %v2086_v29 = vpop.f32.mrf.mxu2  ;;  %v2175_v12 = vpop.f32.mrf.mxu3 }
 0x279   : > { %v2176_v62 = vadd.f32 %v2175_v12, %v2086_v29  ;;  %v1487_v9 = vpop.f32.mrf.mxu1  ;;  %v2267_v8 = vpop.f32.mrf.mxu0  ;;  %v2390_v60 = vadd.f32 %v4470_v19, %v2354_v24 }
 0x27a   : > { %v1488_v37 = vadd.f32 %v1487_v9, %v4367_v42 }
 0x27b   : > { %v2265_v39 = vadd.f32 %v2264_v40, %v2176_v62  ;;  %v2422_v20 = vmax.f32 %v2390_v60, 0.0 }
 0x27d   : > { %v2319_v28 = vadd.f32 %v2265_v39, %v1485_v50 }
 0x27f   : > { %v2355_v0 = vmul.f32 %v4464_v26, %v2319_v28 }
 0x280   : > { %v2089_v52 = vpop.f32.mrf.mxu2  ;;  %v2178_v17 = vpop.f32.mrf.mxu3 }
 0x281   : > { %v2391_v25 = vadd.f32 %v4470_v19, %v2355_v0  ;;  %v2179_v44 = vadd.f32 %v2178_v17, %v2089_v52  ;;  %v1489_v59 = vpop.f32.mrf.mxu1  ;;  %v2269_v36 = vpop.f32.mrf.mxu0 }
 0x282   : > { %v1490_v5 = vadd.f32 %v1489_v59, %v4374_v56 }
 0x283   : > { %v2423_v2 = vmax.f32 %v2391_v25, 0.0  ;;  %v2268_v32 = vadd.f32 %v2267_v8, %v2179_v44 }
 0x285   : > { %v3627_v30 = vpack.c.bf16 %v2423_v2, %v2422_v20  ;;  %v2320_v47 = vadd.f32 %v2268_v32, %v1488_v37 }
 0x287   : > { %3671 = vst [vmem:[%s4481_s26 + $0x40] sm:$0xff] %v3627_v30   ;;  %v2356_v49 = vmul.f32 %v4464_v26, %v2320_v47 }
 0x288   : > { %v2091_v18 = vpop.f32.mrf.mxu2  ;;  %v2180_v1 = vpop.f32.mrf.mxu3 }
 0x289   : > { %v2181_v11 = vadd.f32 %v2180_v1, %v2091_v18  ;;  %v1492_v51 = vpop.f32.mrf.mxu1  ;;  %v2272_v46 = vpop.f32.mrf.mxu0  ;;  %v2392_v54 = vadd.f32 %v4470_v19, %v2356_v49 }
 0x28a   : > { %v1493_v56 = vadd.f32 %v1492_v51, %v4380_v57 }
 0x28b   : > { %v2270_v41 = vadd.f32 %v2269_v36, %v2181_v11  ;;  %v2424_v55 = vmax.f32 %v2392_v54, 0.0 }
 0x28d   : > { %v2321_v33 = vadd.f32 %v2270_v41, %v1490_v5 }
 0x28f   : > { %v2357_v22 = vmul.f32 %v4464_v26, %v2321_v33 }
 0x290   : > { %v2094_v4 = vpop.f32.mrf.mxu2  ;;  %v2183_v42 = vpop.f32.mrf.mxu3 }
 0x291   : > { %v2393_v3 = vadd.f32 %v4470_v19, %v2357_v22  ;;  %v2184_v31 = vadd.f32 %v2183_v42, %v2094_v4  ;;  %v1494_v21 = vpop.f32.mrf.mxu1  ;;  %v2274_v27 = vpop.f32.mrf.mxu0 }
 0x292   : > { %v1495_v62 = vadd.f32 %v1494_v21, %v4387_v13 }
 0x293   : > { %v2425_v16 = vmax.f32 %v2393_v3, 0.0  ;;  %v2273_v40 = vadd.f32 %v2272_v46, %v2184_v31 }
 0x295   : > { %v3632_v45 = vpack.c.bf16 %v2425_v16, %v2424_v55  ;;  %v2322_v15 = vadd.f32 %v2273_v40, %v1493_v56 }
 0x297   : > { %3672 = vst [vmem:[%s4481_s26 + $0x48] sm:$0xff] %v3632_v45   ;;  %v2358_v12 = vmul.f32 %v4464_v26, %v2322_v15 }
 0x298   : > { %v2096_v35 = vpop.f32.mrf.mxu2  ;;  %v2185_v6 = vpop.f32.mrf.mxu3 }
 0x299   : > { %v2186_v34 = vadd.f32 %v2185_v6, %v2096_v35  ;;  %v1497_v10 = vpop.f32.mrf.mxu1  ;;  %v2277_v29 = vpop.f32.mrf.mxu0  ;;  %v2394_v24 = vadd.f32 %v4470_v19, %v2358_v12 }
 0x29a   : > { %v1498_v13 = vadd.f32 %v1497_v10, %v4393_v63 }
 0x29b   : > { %v2275_v9 = vadd.f32 %v2274_v27, %v2186_v34  ;;  %v2426_v17 = vmax.f32 %v2394_v24, 0.0 }
 0x29d   : > { %v2323_v8 = vadd.f32 %v2275_v9, %v1495_v62 }
 0x29f   : > { %v2359_v50 = vmul.f32 %v4464_v26, %v2323_v8 }
 0x2a0   : > { %v2099_v39 = vpop.f32.mrf.mxu2  ;;  %v2188_v57 = vpop.f32.mrf.mxu3 }
 0x2a1   : > { %v2395_v28 = vadd.f32 %v4470_v19, %v2359_v50  ;;  %v2189_v60 = vadd.f32 %v2188_v57, %v2099_v39  ;;  %v1499_v0 = vpop.f32.mrf.mxu1  ;;  %v2279_v52 = vpop.f32.mrf.mxu0 }
 0x2a2   : > { %v1500_v18 = vadd.f32 %v1499_v0, %v4400_v53 }
 0x2a3   : > { %v2427_v25 = vmax.f32 %v2395_v28, 0.0  ;;  %v2278_v44 = vadd.f32 %v2277_v29, %v2189_v60 }
 0x2a5   : > { %v3637_v59 = vpack.c.bf16 %v2427_v25, %v2426_v17  ;;  %v2324_v36 = vadd.f32 %v2278_v44, %v1498_v13 }
 0x2a7   : > { %3673 = vst [vmem:[%s4481_s26 + $0x50] sm:$0xff] %v3637_v59   ;;  %v2360_v47 = vmul.f32 %v4464_v26, %v2324_v36 }
 0x2a8   : > { %v2101_v20 = vpop.f32.mrf.mxu2  ;;  %v2190_v2 = vpop.f32.mrf.mxu3 }
 0x2a9   : > { %v2191_v32 = vadd.f32 %v2190_v2, %v2101_v20  ;;  %v1502_v30 = vpop.f32.mrf.mxu1  ;;  %v2282_v37 = vpop.f32.mrf.mxu0  ;;  %v2396_v51 = vadd.f32 %v4470_v19, %v2360_v47 }
 0x2aa   : > { %v1503_v53 = vadd.f32 %v1502_v30, %v4406_v7 }
 0x2ab   : > { %v2280_v1 = vadd.f32 %v2279_v52, %v2191_v32  ;;  %v2428_v22 = vmax.f32 %v2396_v51, 0.0 }
 0x2ad   : > { %v2325_v11 = vadd.f32 %v2280_v1, %v1500_v18 }
 0x2af   : > { %v2361_v46 = vmul.f32 %v4464_v26, %v2325_v11 }
 0x2b0   : > { %v2104_v49 = vpop.f32.mrf.mxu2  ;;  %v2193_v63 = vpop.f32.mrf.mxu3 }
 0x2b1   : > { %v2397_v5 = vadd.f32 %v4470_v19, %v2361_v46  ;;  %v2194_v41 = vadd.f32 %v2193_v63, %v2104_v49  ;;  %v1504_v33 = vpop.f32.mrf.mxu1  ;;  %v2284_v54 = vpop.f32.mrf.mxu0 }
 0x2b2   : > { %v1505_v56 = vadd.f32 %v1504_v33, %v4413_v38 }
 0x2b3   : > { %v2429_v4 = vmax.f32 %v2397_v5, 0.0  ;;  %v2283_v42 = vadd.f32 %v2282_v37, %v2194_v41 }
 0x2b5   : > { %v3642_v3 = vpack.c.bf16 %v2429_v4, %v2428_v22  ;;  %v2326_v31 = vadd.f32 %v2283_v42, %v1503_v53 }
 0x2b7   : > { %3674 = vst [vmem:[%s4481_s26 + $0x58] sm:$0xff] %v3642_v3   ;;  %v2362_v45 = vmul.f32 %v4464_v26, %v2326_v31 }
 0x2b8   : > { %v2106_v21 = vpop.f32.mrf.mxu2  ;;  %v2195_v27 = vpop.f32.mrf.mxu3 }
 0x2b9   : > { %v2196_v55 = vadd.f32 %v2195_v27, %v2106_v21  ;;  %v1507_v16 = vpop.f32.mrf.mxu1  ;;  %v2287_v40 = vpop.f32.mrf.mxu0  ;;  %v2398_v6 = vadd.f32 %v4470_v19, %v2362_v45 }
 0x2ba   : > { %v1508_v38 = vadd.f32 %v1507_v16, %v4419_v23 }
 0x2bb   : > { %v2285_v15 = vadd.f32 %v2284_v54, %v2196_v55  ;;  %v2430_v8 = vmax.f32 %v2398_v6, 0.0 }
 0x2bd   : > { %v2327_v35 = vadd.f32 %v2285_v15, %v1505_v56 }
 0x2bf   : > { %v2363_v34 = vmul.f32 %v4464_v26, %v2327_v35 }
 0x2c0   : > { %v2109_v10 = vpop.f32.mrf.mxu2  ;;  %v2198_v7 = vpop.f32.mrf.mxu3 }
 0x2c1   : > { %v2399_v29 = vadd.f32 %v4470_v19, %v2363_v34  ;;  %v2199_v12 = vadd.f32 %v2198_v7, %v2109_v10  ;;  %v1509_v62 = vpop.f32.mrf.mxu1  ;;  %v2289_v9 = vpop.f32.mrf.mxu0 }
 0x2c2   : > { %v1510_v25 = vadd.f32 %v1509_v62, %v4426_v58 }
 0x2c3   : > { %v2431_v24 = vmax.f32 %v2399_v29, 0.0  ;;  %v2288_v50 = vadd.f32 %v2287_v40, %v2199_v12 }
 0x2c5   : > { %v3647_v39 = vpack.c.bf16 %v2431_v24, %v2430_v8  ;;  %v2328_v57 = vadd.f32 %v2288_v50, %v1508_v38 }
 0x2c7   : > { %3675 = vst [vmem:[%s4481_s26 + $0x60] sm:$0xff] %v3647_v39   ;;  %v2364_v17 = vmul.f32 %v4464_v26, %v2328_v57 }
 0x2c8   : > { %v2111_v28 = vpop.f32.mrf.mxu2  ;;  %v2200_v60 = vpop.f32.mrf.mxu3 }
 0x2c9   : > { %v2201_v0 = vadd.f32 %v2200_v60, %v2111_v28  ;;  %v1512_v52 = vpop.f32.mrf.mxu1  ;;  %v2292_v59 = vpop.f32.mrf.mxu0  ;;  %v2400_v36 = vadd.f32 %v4470_v19, %v2364_v17 }
 0x2ca   : > { %v1513_v58 = vadd.f32 %v1512_v52, %v4432_v43 }
 0x2cb   : > { %v2290_v44 = vadd.f32 %v2289_v9, %v2201_v0  ;;  %v2432_v37 = vmax.f32 %v2400_v36, 0.0 }
 0x2cd   : > { %v2329_v13 = vadd.f32 %v2290_v44, %v1510_v25 }
 0x2cf   : > { %v2365_v20 = vmul.f32 %v4464_v26, %v2329_v13 }
 0x2d0   : > { %v2114_v2 = vpop.f32.mrf.mxu2  ;;  %v2203_v23 = vpop.f32.mrf.mxu3 }
 0x2d1   : > { %v2401_v32 = vadd.f32 %v4470_v19, %v2365_v20  ;;  %v2204_v30 = vadd.f32 %v2203_v23, %v2114_v2  ;;  %v1514_v1 = vpop.f32.mrf.mxu1  ;;  %v2294_v51 = vpop.f32.mrf.mxu0 }
 0x2d2   : > { %v1515_v33 = vadd.f32 %v1514_v1, %v4439_v14 }
 0x2d3   : > { %v2433_v47 = vmax.f32 %v2401_v32, 0.0  ;;  %v2293_v18 = vadd.f32 %v2292_v59, %v2204_v30 }
 0x2d5   : > { %v3652_v11 = vpack.c.bf16 %v2433_v47, %v2432_v37  ;;  %v2330_v46 = vadd.f32 %v2293_v18, %v1513_v58 }
 0x2d7   : > { %3676 = vst [vmem:[%s4481_s26 + $0x68] sm:$0xff] %v3652_v11   ;;  %v2366_v41 = vmul.f32 %v4464_v26, %v2330_v46 }
 0x2d8   : > { %v2116_v49 = vpop.f32.mrf.mxu2  ;;  %v2205_v63 = vpop.f32.mrf.mxu3 }
 0x2d9   : > { %v2206_v5 = vadd.f32 %v2205_v63, %v2116_v49  ;;  %v1517_v4 = vpop.f32.mrf.mxu1  ;;  %v2402_v42 = vadd.f32 %v4470_v19, %v2366_v41  ;;  %v2297_v53 = vpop.f32.mrf.mxu0 }
 0x2da   : > { %v1518_v14 = vadd.f32 %v1517_v4, %v4445_v61 }
 0x2db   : > { %v2295_v54 = vadd.f32 %v2294_v51, %v2206_v5  ;;  %v2434_v55 = vmax.f32 %v2402_v42, 0.0 }
 0x2dd   : > { %v2331_v22 = vadd.f32 %v2295_v54, %v1515_v33 }
 0x2df   : > { %v2367_v3 = vmul.f32 %v4464_v26, %v2331_v22 }
 0x2e0   : > { %v2119_v43 = vpop.f32.mrf.mxu2  ;;  %v2208_v31 = vpop.f32.mrf.mxu3 }
 0x2e1   : > { %v2403_v21 = vadd.f32 %v4470_v19, %v2367_v3  ;;  %v2209_v27 = vadd.f32 %v2208_v31, %v2119_v43  ;;  %v1519_v15 = vpop.f32.mrf.mxu1  ;;  %v2299_v10 = vpop.f32.mrf.mxu0 }
 0x2e2   : > { %v1520_v29 = vadd.f32 %v1519_v15, %v4452_v48 }
 0x2e3   : > { %v2435_v16 = vmax.f32 %v2403_v21, 0.0  ;;  %v2298_v40 = vadd.f32 %v2297_v53, %v2209_v27 }
 0x2e5   : > { %v3657_v45 = vpack.c.bf16 %v2435_v16, %v2434_v55  ;;  %v2332_v56 = vadd.f32 %v2298_v40, %v1518_v14 }
 0x2e7   : > { %3677 = vst [vmem:[%s4481_s26 + $0x70] sm:$0xff] %v3657_v45   ;;  %v2368_v7 = vmul.f32 %v4464_v26, %v2332_v56 }
 0x2e8   : > { %v2121_v35 = vpop.f32.mrf.mxu2  ;;  %v2210_v6 = vpop.f32.mrf.mxu3 }
 0x2e9   : > { %v2211_v34 = vadd.f32 %v2210_v6, %v2121_v35  ;;  %v2404_v9 = vadd.f32 %v4470_v19, %v2368_v7 }
 0x2eb   : > { %v2300_v12 = vadd.f32 %v2299_v10, %v2211_v34  ;;  %v2436_v24 = vmax.f32 %v2404_v9, 0.0 }
 0x2ed   : > { %v2333_v62 = vadd.f32 %v2300_v12, %v1520_v29 }
 0x2ef   : > { %v2369_v8 = vmul.f32 %v4464_v26, %v2333_v62 }
 0x2f1   : > { %v2405_v61 = vadd.f32 %v4470_v19, %v2369_v8 }
 0x2f3   : > { %v2437_v50 = vmax.f32 %v2405_v61, 0.0 }
 0x2f5   : > { %v3662_v39 = vpack.c.bf16 %v2437_v50, %v2436_v24 }
 0x2f7   : > { %3678 = vst [vmem:[%s4481_s26 + $0x78] sm:$0xff] %v3662_v39  }
 0x2f8 PF: > { %s14_s17 = sadd.s32 1, %s3752_s17   ;;  %s4661_s15 = smov %s3748_s16 }
 0x2f9   : > { %p11_p5 = scmp.ge.s32.totalorder %s14_s17, 4   ;;  %s4662_s16 = smov %s4664_s18 }
 0x2fb   :  { %13 = sbr.rel (!%p11_p5) target bundleno = 2 (0x2), region = 77 }

// kernel: vitaa_forward.12
= control target key start
LH: loop header
LB: loop body
LE: loop exit
PB: predicated region body
PF: predicated region fallthrough
CT: control target
= control target key end

     0   :  { %s208_s12 = smov [#allocation3]   ;;  %s233_s0 = inlined_call_operand.vmem [shape: s32[32], index: 0, kind: input, shape index: {}]   ;;  %s234_s1 = inlined_call_operand.vmem [shape: f32[32,1,16], index: 1, kind: input, shape index: {}]   ;;  %s235_s2 = inlined_call_operand.vmem [shape: f32[32,1,16], index: 2, kind: output, shape index: {}]  }
   0x1   :  { %s8_s11 = sshll.u32 %s233_s0, 4  ;;  %s9_s11 = int_to_ptr.vmem [resolvable:$true] %s8_s11 }
   0x2   :  { %11 = dma.vmem_to_smem %s9_s11, 16, %s208_s12, [#allocation2] }
   0x3   :  { %202 = dma.done.wait [#allocation2], 16 }
   0x4   :  { %203 = vsyncadd [#allocation2], 4294967280 }
   0x5   :  { %14 = sfence }
   0x6   :  { %s204_s13 = smov 0  }
   0x7 LB: > { %s170_s14 = sadd.s32 4294967295, %s206_s13   ;;  %p174_p0 = scmp.ge.s32.totalorder %s206_s13, 1  ;;  %s206_s13 = sphi %s204_s13, %s20_s13  }
   0x8   : > { %p98_p1 = scmp.lt.s32.totalorder %s206_s13, 33 }
   0xa   : > { %p99_p2 = pnand %p174_p0, %p98_p1 }
   0xb   : > { %s115_s15 = sld [smem:[#allocation3 + %s170_s14]] (!%p99_p2)  ;;  %p120_p3 = scmp.lt.s32.totalorder (!%p99_p2), %s170_s14, 31 }
   0xc   : > { %102 = sbr.rel (%p99_p2) target bundleno = 23 (0x17), region = 24 }
  0x11   : > { %s237_s14 = smov (!%p120_p3, %s170_s14), 31  ;;  %p116_p4 = scmp.lt.s32.totalorder %s115_s15, 31  ;;  %vm124_vm0 = vcmask 122880  }
  0x12   : > { %s122_s17 = scalar_lea.vmem %s235_s2, %s237_s14 }
  0x13   : > { %s239_s15 = smov (!%p116_p4, %s115_s15), 31 }
  0x14   : > { %s118_s20 = scalar_lea.vmem %s234_s1, %s239_s15 }
  0x15   : > { %v123_v0 = vld [vmem:[%s118_s20] sm:$0x1] }
  0x16   : > { %125 = vst.msk [vmem:[%s122_s17] sm:$0x1] %vm124_vm0, %v123_v0 }
  0x17 PF: > { %s20_s13 = sadd.s32 1, %s206_s13  }
  0x18   : > { %p17_p5 = scmp.ge.s32.totalorder %s20_s13, 34  }
  0x1a   :  { %19 = sbr.rel (!%p17_p5) target bundleno = 7 (0x7), region = 54 }

// kernel: vitaa_forward.11
= control target key start
LH: loop header
LB: loop body
LE: loop exit
PB: predicated region body
PF: predicated region fallthrough
CT: control target
= control target key end

     0   :  { %s3912_s18 = smov 0   ;;  %s3914_s19 = smov 0   ;;  %s4778_s0 = inlined_call_operand.vmem [shape: bf16[2,288,384], index: 0, kind: input, shape index: {}]   ;;  %s4779_s1 = inlined_call_operand.vmem [shape: bf16[3,384,128], index: 1, kind: input, shape index: {}]   ;;  %s4780_s2 = inlined_call_operand.vmem [shape: f32[1,128], index: 2, kind: input, shape index: {}]   ;;  %s4781_s3 = inlined_call_operand.vmem [shape: f32[1,128], index: 3, kind: input, shape index: {}]   ;;  %s4782_s4 = inlined_call_operand.vmem [shape: bf16[2,256,128], index: 4, kind: input, shape index: {}]   ;;  %s4783_s5 = inlined_call_operand.vmem [shape: f32[2,1,128], index: 5, kind: output, shape index: {}]  }
   0x1   :  { %s3916_s20 = smov 0  }
   0x2 LB: > { %s27_s21 = sadd.s32 1, %s3875_s19  ;;  %p2764_p0 = scmp.ge.s32.totalorder %s3879_s20, 1  ;;  %s3879_s20 = sphi %s3916_s20, %s15_s20   ;;  %s3875_s19 = sphi %s3914_s19, %s4801_s19   ;;  %s3871_s18 = sphi %s3912_s18, %s4800_s18  }
   0x3   : > { %p29_p1 = scmp.ge.s32.totalorder %s27_s21, 2  ;;  %p241_p2 = scmp.lt.s32.totalorder %s3879_s20, 3 }
   0x5   : > { %s4803_s21 = smov (%p29_p1, %s27_s21), 0  ;;  %p242_p3 = pnand %p2764_p0, %p241_p2 }
   0x7   : > { %245 = sbr.rel (%p242_p3) target bundleno = 776 (0x308), region = 40 }
   0xc   : > { %v3633_v0 = vld [vmem:[%s4779_s1 + $0xf8] sm:$0xff]  ;;  %v3632_v1 = vld [vmem:[%s4779_s1 + $0xf0] sm:$0xff]  ;;  %v3631_v2 = vld [vmem:[%s4779_s1 + $0xe8] sm:$0xff]  ;;  %p288_p4 = scmp.lt.s32.totalorder %s3871_s18, 1 }
   0xd   : > { %882 = vmatpush.bf16.msra.mxu0 %v3633_v0  ;;  %3801 = vmatpush.bf16.msra.mxu1 %v3633_v0  ;;  %v3630_v3 = vld [vmem:[%s4779_s1 + $0xe0] sm:$0xff]  ;;  %v3629_v4 = vld [vmem:[%s4779_s1 + $0xd8] sm:$0xff]  ;;  %v3628_v5 = vld [vmem:[%s4779_s1 + $0xd0] sm:$0xff] }
   0xe   : > { %3802 = vmatpush.bf16.msra.mxu2 %v3633_v0  ;;  %3803 = vmatpush.bf16.msra.mxu3 %v3633_v0  ;;  %s4805_s18 = smov (!%p288_p4, %s3871_s18), 1  ;;  %v3627_v6 = vld [vmem:[%s4779_s1 + $0xc8] sm:$0xff]  ;;  %v3626_v7 = vld [vmem:[%s4779_s1 + $0xc0] sm:$0xff]  ;;  %v3649_v16 = vld [vmem:[%s4779_s1 + $0x178] sm:$0xff] }
   0xf   : > { %s3825_s9 = smul.u32 432, %s4805_s18  ;;  %v3606_v17 = vld [vmem:[%s4779_s1 + $0x38] sm:$0xff]  ;;  %v3648_v24 = vld [vmem:[%s4779_s1 + $0x170] sm:$0xff]  ;;  %v3647_v28 = vld [vmem:[%s4779_s1 + $0x168] sm:$0xff]  ;;  %s3550_s29 = sshll.u32 %s4805_s18, 7 }
  0x10   : > { %v3641_v22 = vld [vmem:[%s4779_s1 + $0x138] sm:$0xff]  ;;  %v3605_v25 = vld [vmem:[%s4779_s1 + $0x30] sm:$0xff]  ;;  %v3604_v29 = vld [vmem:[%s4779_s1 + $0x28] sm:$0xff]  ;;  %s316_s22 = scalar_lea.vmem %s4783_s5, %s4805_s18 }
  0x11   : > { %883 = vmatpush.bf16.msra.mxu0 %v3632_v1  ;;  %3804 = vmatpush.bf16.msra.mxu1 %v3632_v1  ;;  %s3961_s14 = scalar_lea.vmem %s4778_s0, %s3825_s9  ;;  %v3614_v23 = vld [vmem:[%s4779_s1 + $0x78] sm:$0xff]  ;;  %v3640_v26 = vld [vmem:[%s4779_s1 + $0x130] sm:$0xff]  ;;  %v3639_v30 = vld [vmem:[%s4779_s1 + $0x128] sm:$0xff]  ;;  %s4604_s9 = scalar_lea.vmem %s4782_s4, %s3550_s29 }
  0x12   : > { %3805 = vmatpush.bf16.msra.mxu2 %v3632_v1  ;;  %3806 = vmatpush.bf16.msra.mxu3 %v3632_v1  ;;  %v2818_v8 = vld [vmem:[%s3961_s14 + $0x18] sm:$0xf]  ;;  %v3555_v9 = vld [vmem:[%s3961_s14 + $0x20] sm:$0xf0]  ;;  %v3613_v27 = vld [vmem:[%s4779_s1 + $0x70] sm:$0xff] }
  0x13   : > { %v2866_v10 = vld [vmem:[%s3961_s14 + $0x78] sm:$0xf]  ;;  %v3567_v11 = vld [vmem:[%s3961_s14 + $0x80] sm:$0xf0]  ;;  %v3980_v18 = vor.u32 %v3555_v9, %v2818_v8  ;;  %v3612_v31 = vld [vmem:[%s4779_s1 + $0x68] sm:$0xff] }
  0x14   : > { %v2914_v12 = vld [vmem:[%s3961_s14 + $0xd8] sm:$0xf]  ;;  %v3579_v13 = vld [vmem:[%s3961_s14 + $0xe0] sm:$0xf0]  ;;  %v3982_v19 = vor.u32 %v3567_v11, %v2866_v10  ;;  %v2830_v32 = vld [vmem:[%s3961_s14 + $0x30] sm:$0xf] }
  0x15   : > { %884 = vmatpush.bf16.msra.mxu0 %v3631_v2  ;;  %3807 = vmatpush.bf16.msra.mxu1 %v3631_v2  ;;  %v2962_v14 = vld [vmem:[%s3961_s14 + $0x138] sm:$0xf]  ;;  %v3591_v15 = vld [vmem:[%s3961_s14 + $0x140] sm:$0xf0]  ;;  %v3984_v20 = vor.u32 %v3579_v13, %v2914_v12  ;;  %v3558_v35 = vld [vmem:[%s3961_s14 + $0x38] sm:$0xf0] }
  0x16   : > { %3808 = vmatpush.bf16.msra.mxu2 %v3631_v2  ;;  %3809 = vmatpush.bf16.msra.mxu3 %v3631_v2  ;;  %v3986_v21 = vor.u32 %v3591_v15, %v2962_v14  ;;  %v3646_v33 = vld [vmem:[%s4779_s1 + $0x160] sm:$0xff]  ;;  %v2878_v36 = vld [vmem:[%s3961_s14 + $0x90] sm:$0xf]  ;;  %v3570_v37 = vld [vmem:[%s3961_s14 + $0x98] sm:$0xf0]  ;;  %v4048_v46 = vor.u32 %v3558_v35, %v2830_v32 }
  0x17   : > { %v3603_v34 = vld [vmem:[%s4779_s1 + $0x20] sm:$0xff]  ;;  %v2926_v38 = vld [vmem:[%s3961_s14 + $0xf0] sm:$0xf]  ;;  %v3582_v39 = vld [vmem:[%s3961_s14 + $0xf8] sm:$0xf0]  ;;  %v4050_v47 = vor.u32 %v3570_v37, %v2878_v36 }
  0x18   : > { %v2974_v40 = vld [vmem:[%s3961_s14 + $0x150] sm:$0xf]  ;;  %v3594_v41 = vld [vmem:[%s3961_s14 + $0x158] sm:$0xf0]  ;;  %v3638_v42 = vld [vmem:[%s4779_s1 + $0x120] sm:$0xff]  ;;  %v4052_v48 = vor.u32 %v3582_v39, %v2926_v38 }
  0x19   : > { %885 = vmatpush.bf16.msra.mxu0 %v3630_v3  ;;  %3810 = vmatpush.bf16.msra.mxu1 %v3630_v3  ;;  %v3611_v43 = vld [vmem:[%s4779_s1 + $0x60] sm:$0xff]  ;;  %v3645_v44 = vld [vmem:[%s4779_s1 + $0x158] sm:$0xff]  ;;  %v4054_v49 = vor.u32 %v3594_v41, %v2974_v40  ;;  %v3644_v52 = vld [vmem:[%s4779_s1 + $0x150] sm:$0xff] }
  0x1a   : > { %3811 = vmatpush.bf16.msra.mxu2 %v3630_v3  ;;  %3812 = vmatpush.bf16.msra.mxu3 %v3630_v3  ;;  %v3602_v45 = vld [vmem:[%s4779_s1 + $0x18] sm:$0xff]  ;;  %v3601_v53 = vld [vmem:[%s4779_s1 + $0x10] sm:$0xff]  ;;  %v3643_v56 = vld [vmem:[%s4779_s1 + $0x148] sm:$0xff] }
  0x1b   : > { %v3637_v50 = vld [vmem:[%s4779_s1 + $0x118] sm:$0xff]  ;;  %v3636_v54 = vld [vmem:[%s4779_s1 + $0x110] sm:$0xff]  ;;  %v3600_v57 = vld [vmem:[%s4779_s1 + $0x8] sm:$0xff] }
  0x1c   : > { %v3610_v51 = vld [vmem:[%s4779_s1 + $0x58] sm:$0xff]  ;;  %v3609_v55 = vld [vmem:[%s4779_s1 + $0x50] sm:$0xff]  ;;  %v3635_v58 = vld [vmem:[%s4779_s1 + $0x108] sm:$0xff] }
  0x1d   : > { %886 = vmatpush.bf16.msra.mxu0 %v3629_v4  ;;  %3813 = vmatpush.bf16.msra.mxu1 %v3629_v4  ;;  %v3608_v59 = vld [vmem:[%s4779_s1 + $0x48] sm:$0xff]  ;;  %v3642_v61 = vld [vmem:[%s4779_s1 + $0x140] sm:$0xff]  ;;  %v3561_v63 = vld [vmem:[%s3961_s14 + $0x50] sm:$0xf0] }
  0x1e   : > { %3814 = vmatpush.bf16.msra.mxu2 %v3629_v4  ;;  %3815 = vmatpush.bf16.msra.mxu3 %v3629_v4  ;;  %v2842_v60 = vld [vmem:[%s3961_s14 + $0x48] sm:$0xf]  ;;  %v3599_v62 = vld [vmem:[%s4779_s1] sm:$0xff]  ;;  %v3573_v1 = vld [vmem:[%s3961_s14 + $0xb0] sm:$0xf0] }
  0x1f   : > { %v2890_v0 = vld [vmem:[%s3961_s14 + $0xa8] sm:$0xf]  ;;  %v3585_v3 = vld [vmem:[%s3961_s14 + $0x110] sm:$0xf0]  ;;  %v4110_v8 = vor.u32 %v3561_v63, %v2842_v60  ;;  %v3705_v12 = vld [vmem:[%s4779_s1 + $0x1b8] sm:$0xff] }
  0x20   : > { %v2938_v2 = vld [vmem:[%s3961_s14 + $0x108] sm:$0xf]  ;;  %v4112_v9 = vor.u32 %v3573_v1, %v2890_v0  ;;  %v3713_v13 = vld [vmem:[%s4779_s1 + $0x1f8] sm:$0xff]  ;;  %v3551_v35 = vld [vmem:[%s3961_s14 + $0x4] sm:$0xf] }
  0x21   : > { %887 = vmatpush.bf16.msra.mxu0 %v3628_v5  ;;  %3816 = vmatpush.bf16.msra.mxu1 %v3628_v5  ;;  %v2986_v4 = vld [vmem:[%s3961_s14 + $0x168] sm:$0xf]  ;;  %v4114_v10 = vor.u32 %v3585_v3, %v2938_v2  ;;  %v3622_v14 = vld [vmem:[%s4779_s1 + $0xb8] sm:$0xff]  ;;  %v3108_v36 = vld [vmem:[%s3961_s14 + $0xc] sm:$0xf0] }
  0x22   : > { %3817 = vmatpush.bf16.msra.mxu2 %v3628_v5  ;;  %3818 = vmatpush.bf16.msra.mxu3 %v3628_v5  ;;  %v3597_v5 = vld [vmem:[%s3961_s14 + $0x170] sm:$0xf0]  ;;  %v3721_v15 = vld [vmem:[%s4779_s1 + $0x238] sm:$0xff]  ;;  %v3556_v37 = vld [vmem:[%s3961_s14 + $0x28] sm:$0xf0]  ;;  %v3111_v41 = vor.u32 %v3551_v35, %v3108_v36 }
  0x23   : > { %v4116_v11 = vor.u32 %v3597_v5, %v2986_v4  ;;  %v3554_v32 = vld [vmem:[%s3961_s14 + $0x1c] sm:$0xf]  ;;  %v3106_v38 = vld [vmem:[%s3961_s14] sm:$0xf]  ;;  %v3552_v39 = vld [vmem:[%s3961_s14 + $0x8] sm:$0xf0] }
  0x24   : > { %v2850_v60 = vld [vmem:[%s3961_s14 + $0x50] sm:$0xf]  ;;  %v3711_v0 = vld [vmem:[%s4779_s1 + $0x1e8] sm:$0xff]  ;;  %v3563_v2 = vld [vmem:[%s3961_s14 + $0x64] sm:$0xf] }
  0x25   : > { %888 = vmatpush.bf16.msra.mxu0 %v3627_v6  ;;  %3819 = vmatpush.bf16.msra.mxu1 %v3627_v6  ;;  %v3620_v1 = vld [vmem:[%s4779_s1 + $0xa8] sm:$0xff]  ;;  %v2856_v3 = vld [vmem:[%s3961_s14 + $0x6c] sm:$0xf0]  ;;  %v3565_v5 = vld [vmem:[%s3961_s14 + $0x70] sm:$0xf0] }
  0x26   : > { %3820 = vmatpush.bf16.msra.mxu2 %v3627_v6  ;;  %3821 = vmatpush.bf16.msra.mxu3 %v3627_v6  ;;  %v3634_v6 = vld [vmem:[%s4779_s1 + $0x100] sm:$0xff]  ;;  %v2862_v4 = vld [vmem:[%s3961_s14 + $0x68] sm:$0xf]  ;;  %v2886_v35 = vld [vmem:[%s3961_s14 + $0x98] sm:$0xf] }
  0x27   : > { %v3571_v36 = vld [vmem:[%s3961_s14 + $0xa0] sm:$0xf0] }
  0x29   : > { %889 = vmatpush.bf16.msra.mxu0 %v3626_v7  ;;  %3822 = vmatpush.bf16.msra.mxu1 %v3626_v7 }
  0x2a   : > { %3823 = vmatpush.bf16.msra.mxu2 %v3626_v7  ;;  %3824 = vmatpush.bf16.msra.mxu3 %v3626_v7  ;;  %v3607_v7 = vld [vmem:[%s4779_s1 + $0x40] sm:$0xff] }
  0x2c   : > { %890 = vmatmul.bf16.vlgmr.msra.gmra.mxu0 %v3980_v18  ;;  %910 = vmatmul.bf16.vlgmr.msra.gmra.mxu1 %v3982_v19 }
  0x2d   : > { %930 = vmatmul.bf16.vlgmr.msra.gmra.mxu2 %v3984_v20  ;;  %950 = vmatmul.bf16.vlgmr.msra.gmra.mxu3 %v3986_v21 }
  0x2e   : > { %1060 = vmatpush.bf16.msrb.mxu2 %v3649_v16  ;;  %1309 = vmatpush.bf16.msrb.mxu3 %v3606_v17  ;;  %v2854_v16 = vld [vmem:[%s3961_s14 + $0x60] sm:$0xf]  ;;  %v3564_v17 = vld [vmem:[%s3961_s14 + $0x68] sm:$0xf0] }
  0x2f   : > { %971 = vmatpush.bf16.msrb.mxu1 %v3641_v22  ;;  %1398 = vmatpush.bf16.msrb.mxu0 %v3614_v23  ;;  %v2902_v22 = vld [vmem:[%s3961_s14 + $0xc0] sm:$0xf]  ;;  %v3576_v23 = vld [vmem:[%s3961_s14 + $0xc8] sm:$0xf0] }
  0x32   : > { %1061 = vmatpush.bf16.msrb.mxu2 %v3648_v24  ;;  %1310 = vmatpush.bf16.msrb.mxu3 %v3605_v25  ;;  %v2950_v24 = vld [vmem:[%s3961_s14 + $0x120] sm:$0xf]  ;;  %v3588_v25 = vld [vmem:[%s3961_s14 + $0x128] sm:$0xf0] }
  0x33   : > { %972 = vmatpush.bf16.msrb.mxu1 %v3640_v26  ;;  %1399 = vmatpush.bf16.msrb.mxu0 %v3613_v27  ;;  %v2998_v26 = vld [vmem:[%s3961_s14 + $0x180] sm:$0xf]  ;;  %v3624_v27 = vld [vmem:[%s3961_s14 + $0x188] sm:$0xf0] }
  0x36   : > { %1062 = vmatpush.bf16.msrb.mxu2 %v3647_v28  ;;  %1311 = vmatpush.bf16.msrb.mxu3 %v3604_v29  ;;  %v4142_v28 = vor.u32 %v3564_v17, %v2854_v16  ;;  %v4144_v29 = vor.u32 %v3576_v23, %v2902_v22 }
  0x37   : > { %973 = vmatpush.bf16.msrb.mxu1 %v3639_v30  ;;  %1400 = vmatpush.bf16.msrb.mxu0 %v3612_v31  ;;  %v4146_v30 = vor.u32 %v3588_v25, %v2950_v24  ;;  %v2999_v31 = vor.u32 %v3624_v27, %v2998_v26  ;;  %v3710_v24 = vld [vmem:[%s4779_s1 + $0x1e0] sm:$0xff] }
  0x3a   : > { %1063 = vmatpush.bf16.msrb.mxu2 %v3646_v33  ;;  %1312 = vmatpush.bf16.msrb.mxu3 %v3603_v34  ;;  %v2820_v33 = vld [vmem:[%s3961_s14 + $0x24] sm:$0xf0]  ;;  %v2826_v34 = vld [vmem:[%s3961_s14 + $0x20] sm:$0xf] }
  0x3b   : > { %974 = vmatpush.bf16.msrb.mxu1 %v3638_v42  ;;  %1401 = vmatpush.bf16.msrb.mxu0 %v3611_v43  ;;  %v2823_v40 = vor.u32 %v3554_v32, %v2820_v33  ;;  %v4159_v42 = vor.u32 %v3556_v37, %v2826_v34  ;;  %v3107_v43 = vor.u32 %v3552_v39, %v3106_v38  ;;  %v3718_v32 = vld [vmem:[%s4779_s1 + $0x220] sm:$0xff]  ;;  %v3569_v33 = vld [vmem:[%s3961_s14 + $0x94] sm:$0xf] }
  0x3c   : > { %895 = vmatmul.bf16.gmra.mxu0 %v4048_v46  ;;  %915 = vmatmul.bf16.gmra.mxu1 %v4050_v47  ;;  %v2880_v34 = vld [vmem:[%s3961_s14 + $0x9c] sm:$0xf0] }
  0x3d   : > { %935 = vmatmul.bf16.gmra.mxu2 %v4052_v48  ;;  %955 = vmatmul.bf16.gmra.mxu3 %v4054_v49  ;;  %v2883_v39 = vor.u32 %v3569_v33, %v2880_v34 }
  0x3e   : > { %1064 = vmatpush.bf16.msrb.mxu2 %v3645_v44  ;;  %1313 = vmatpush.bf16.msrb.mxu3 %v3602_v45  ;;  %v3704_v44 = vld [vmem:[%s4779_s1 + $0x1b0] sm:$0xff] }
  0x3f   : > { %975 = vmatpush.bf16.msrb.mxu1 %v3637_v50  ;;  %1402 = vmatpush.bf16.msrb.mxu0 %v3610_v51  ;;  %v3712_v45 = vld [vmem:[%s4779_s1 + $0x1f0] sm:$0xff] }
  0x40   : > { %v3621_v50 = vld [vmem:[%s4779_s1 + $0xb0] sm:$0xff] }
  0x41   : > { %v3720_v51 = vld [vmem:[%s4779_s1 + $0x230] sm:$0xff] }
  0x42   : > { %1065 = vmatpush.bf16.msrb.mxu2 %v3644_v52  ;;  %1314 = vmatpush.bf16.msrb.mxu3 %v3601_v53  ;;  %v3557_v52 = vld [vmem:[%s3961_s14 + $0x34] sm:$0xf]  ;;  %v2832_v53 = vld [vmem:[%s3961_s14 + $0x3c] sm:$0xf0] }
  0x43   : > { %976 = vmatpush.bf16.msrb.mxu1 %v3636_v54  ;;  %1403 = vmatpush.bf16.msrb.mxu0 %v3609_v55  ;;  %v2838_v54 = vld [vmem:[%s3961_s14 + $0x38] sm:$0xf]  ;;  %v3559_v55 = vld [vmem:[%s3961_s14 + $0x40] sm:$0xf0] }
  0x46   : > { %1066 = vmatpush.bf16.msrb.mxu2 %v3643_v56  ;;  %1315 = vmatpush.bf16.msrb.mxu3 %v3600_v57  ;;  %v2835_v56 = vor.u32 %v3557_v52, %v2832_v53  ;;  %v4178_v57 = vor.u32 %v3559_v55, %v2838_v54  ;;  %v3572_v52 = vld [vmem:[%s3961_s14 + $0xac] sm:$0xf]  ;;  %v2892_v53 = vld [vmem:[%s3961_s14 + $0xb4] sm:$0xf0]  ;;  %v2898_v54 = vld [vmem:[%s3961_s14 + $0xb0] sm:$0xf] }
  0x47   : > { %977 = vmatpush.bf16.msrb.mxu1 %v3635_v58  ;;  %1404 = vmatpush.bf16.msrb.mxu0 %v3608_v59  ;;  %v3560_v58 = vld [vmem:[%s3961_s14 + $0x4c] sm:$0xf]  ;;  %v2844_v59 = vld [vmem:[%s3961_s14 + $0x54] sm:$0xf0]  ;;  %v3574_v55 = vld [vmem:[%s3961_s14 + $0xb8] sm:$0xf0] }
  0x4a   : > { %1067 = vmatpush.bf16.msrb.mxu2 %v3642_v61  ;;  %1316 = vmatpush.bf16.msrb.mxu3 %v3599_v62  ;;  %v3562_v61 = vld [vmem:[%s3961_s14 + $0x58] sm:$0xf0]  ;;  %v2847_v62 = vor.u32 %v3560_v58, %v2844_v59  ;;  %v2895_v59 = vor.u32 %v3572_v52, %v2892_v53  ;;  %v3580_v52 = vld [vmem:[%s3961_s14 + $0xe8] sm:$0xf0] }
  0x4b   : > { %978 = vmatpush.bf16.msrb.mxu1 %v3634_v6  ;;  %1405 = vmatpush.bf16.msrb.mxu0 %v3607_v7  ;;  %v4186_v63 = vor.u32 %v3562_v61, %v2850_v60  ;;  %v2859_v6 = vor.u32 %v3563_v2, %v2856_v3  ;;  %v4206_v7 = vor.u32 %v3565_v5, %v2862_v4  ;;  %v3717_v3 = vld [vmem:[%s4779_s1 + $0x218] sm:$0xff]  ;;  %v3575_v4 = vld [vmem:[%s3961_s14 + $0xc4] sm:$0xf]  ;;  %v2904_v5 = vld [vmem:[%s3961_s14 + $0xcc] sm:$0xf0] }
  0x4c   : > { %900 = vmatmul.bf16.gmra.mxu0 %v4110_v8  ;;  %920 = vmatmul.bf16.gmra.mxu1 %v4112_v9  ;;  %v4278_v61 = vor.u32 %v3574_v55, %v2898_v54 }
  0x4d   : > { %940 = vmatmul.bf16.gmra.mxu2 %v4114_v10  ;;  %960 = vmatmul.bf16.gmra.mxu3 %v4116_v11 }
  0x4e   : > { %2089 = vmatpush.bf16.msra.mxu2 %v3705_v12  ;;  %2178 = vmatpush.bf16.msra.mxu3 %v3713_v13  ;;  %v3566_v12 = vld [vmem:[%s3961_s14 + $0x7c] sm:$0xf]  ;;  %v2868_v13 = vld [vmem:[%s3961_s14 + $0x84] sm:$0xf0] }
  0x4f   : > { %1487 = vmatpush.bf16.msra.mxu1 %v3622_v14  ;;  %2267 = vmatpush.bf16.msra.mxu0 %v3721_v15  ;;  %v2874_v14 = vld [vmem:[%s3961_s14 + $0x80] sm:$0xf]  ;;  %v3568_v15 = vld [vmem:[%s3961_s14 + $0x88] sm:$0xf0]  ;;  %v2871_v16 = vor.u32 %v3566_v12, %v2868_v13  ;;  %v3577_v12 = vld [vmem:[%s3961_s14 + $0xd0] sm:$0xf0] }
  0x50   : > { %v4218_v23 = vor.u32 %v3568_v15, %v2874_v14  ;;  %v2907_v15 = vor.u32 %v3575_v4, %v2904_v5 }
  0x52   : > { %2090 = vmatpush.bf16.msra.mxu2 %v3704_v44  ;;  %2179 = vmatpush.bf16.msra.mxu3 %v3712_v45 }
  0x53   : > { %1488 = vmatpush.bf16.msra.mxu1 %v3621_v50  ;;  %2268 = vmatpush.bf16.msra.mxu0 %v3720_v51 }
  0x56   : > { %2180 = vmatpush.bf16.msra.mxu3 %v3711_v0 }
  0x57   : > { %1489 = vmatpush.bf16.msra.mxu1 %v3620_v1 }
  0x5a   : > { %2181 = vmatpush.bf16.msra.mxu3 %v3710_v24 }
  0x5c   : > { %905 = vmatmul.bf16.gmra.mxu0 %v4142_v28  ;;  %925 = vmatmul.bf16.gmra.mxu1 %v4144_v29 }
  0x5d   : > { %945 = vmatmul.bf16.gmra.mxu2 %v4146_v30  ;;  %965 = vmatmul.bf16.gmra.mxu3 %v2999_v31 }
  0x6c   : > { %979 = vmatmul.bf16.vlgmr.msrb.gmra.mxu1 %v2823_v40  ;;  %1406 = vmatmul.bf16.vlgmr.msrb.gmra.mxu0 %v3111_v41 }
  0x6d   : > { %1068 = vmatmul.bf16.vlgmr.msrb.gmra.mxu2 %v4159_v42  ;;  %1317 = vmatmul.bf16.vlgmr.msrb.gmra.mxu3 %v3107_v43  ;;  %v4254_v43 = vor.u32 %v3571_v36, %v2886_v35  ;;  %v3578_v35 = vld [vmem:[%s3961_s14 + $0xdc] sm:$0xf]  ;;  %v2916_v36 = vld [vmem:[%s3961_s14 + $0xe4] sm:$0xf0] }
  0x6e   : > { %v2919_v55 = vor.u32 %v3578_v35, %v2916_v36  ;;  %v3617_v35 = vld [vmem:[%s4779_s1 + $0x90] sm:$0xff] }
  0x6f   : > { %v3716_v36 = vld [vmem:[%s4779_s1 + $0x210] sm:$0xff] }
  0x7c   : > { %984 = vmatmul.bf16.gmra.mxu1 %v2835_v56  ;;  %1411 = vmatmul.bf16.gmra.mxu0 %v2823_v40 }
  0x7d   : > { %1073 = vmatmul.bf16.gmra.mxu2 %v4178_v57  ;;  %1322 = vmatmul.bf16.gmra.mxu3 %v3980_v18  ;;  %v3703_v18 = vld [vmem:[%s4779_s1 + $0x1a8] sm:$0xff] }
  0x7e   : > { %2091 = vmatpush.bf16.msra.mxu2 %v3703_v18  ;;  %v3709_v18 = vld [vmem:[%s4779_s1 + $0x1d8] sm:$0xff] }
  0x7f   : > { %2182 = vmatpush.bf16.msra.mxu3 %v3709_v18 }
  0x8c   : > { %989 = vmatmul.bf16.gmra.mxu1 %v2847_v62  ;;  %1416 = vmatmul.bf16.gmra.mxu0 %v2835_v56 }
  0x8d   : > { %1078 = vmatmul.bf16.gmra.mxu2 %v4186_v63  ;;  %1327 = vmatmul.bf16.gmra.mxu3 %v4048_v46  ;;  %v3719_v46 = vld [vmem:[%s4779_s1 + $0x228] sm:$0xff] }
  0x8e   : > { %2269 = vmatpush.bf16.msra.mxu0 %v3719_v46 }
  0x92   : > { %2270 = vmatpush.bf16.msra.mxu0 %v3718_v32 }
  0x96   : > { %2271 = vmatpush.bf16.msra.mxu0 %v3717_v3  ;;  %v3708_v3 = vld [vmem:[%s4779_s1 + $0x1d0] sm:$0xff] }
  0x97   : > { %2183 = vmatpush.bf16.msra.mxu3 %v3708_v3 }
  0x9a   : > { %2272 = vmatpush.bf16.msra.mxu0 %v3716_v36 }
  0x9c   : > { %994 = vmatmul.bf16.gmra.mxu1 %v2859_v6  ;;  %1421 = vmatmul.bf16.gmra.mxu0 %v2847_v62  ;;  %v3701_v62 = vld [vmem:[%s4779_s1 + $0x198] sm:$0xff] }
  0x9d   : > { %1083 = vmatmul.bf16.gmra.mxu2 %v4206_v7  ;;  %1332 = vmatmul.bf16.gmra.mxu3 %v4110_v8  ;;  %v3702_v8 = vld [vmem:[%s4779_s1 + $0x1a0] sm:$0xff] }
  0x9e   : > { %2092 = vmatpush.bf16.msra.mxu2 %v3702_v8 }
  0xa2   : > { %2093 = vmatpush.bf16.msra.mxu2 %v3701_v62 }
  0xa9   : > { %v4214_v17 = vpop.f32.mrf.mxu0  ;;  %v4216_v22 = vpop.f32.mrf.mxu1 }
  0xac   : > { %999 = vmatmul.bf16.gmra.mxu1 %v2871_v16  ;;  %1426 = vmatmul.bf16.gmra.mxu0 %v2859_v6  ;;  %v2910_v6 = vld [vmem:[%s3961_s14 + $0xc8] sm:$0xf] }
  0xad   : > { %1088 = vmatmul.bf16.gmra.mxu2 %v4218_v23  ;;  %1337 = vmatmul.bf16.gmra.mxu3 %v4142_v28  ;;  %v3619_v28 = vld [vmem:[%s4779_s1 + $0xa0] sm:$0xff]  ;;  %v4314_v24 = vor.u32 %v3577_v12, %v2910_v6 }
  0xae   : > { %1490 = vmatpush.bf16.msra.mxu1 %v3619_v28 }
  0xaf   : > { %4788 = vst [vmem:[#allocation2_spill] sm:$0xff] %v4314_v24 }
  0xb0   : > { %v4228_v25 = vpop.f32.mrf.mxu2  ;;  %v4230_v26 = vpop.f32.mrf.mxu3 }
  0xb1   : > { %v4232_v27 = vpop.f32.mrf.mxu0  ;;  %v4234_v31 = vpop.f32.mrf.mxu1 }
  0xb8   : > { %v4246_v37 = vpop.f32.mrf.mxu2  ;;  %v4248_v38 = vpop.f32.mrf.mxu3 }
  0xb9   : > { %v4250_v40 = vpop.f32.mrf.mxu0  ;;  %v4252_v41 = vpop.f32.mrf.mxu1 }
  0xbc   : > { %1004 = vmatmul.bf16.gmra.mxu1 %v2883_v39  ;;  %1431 = vmatmul.bf16.gmra.mxu0 %v2871_v16 }
  0xbd   : > { %1093 = vmatmul.bf16.gmra.mxu2 %v4254_v43  ;;  %1342 = vmatmul.bf16.gmra.mxu3 %v3982_v19 }
  0xc0   : > { %v4258_v44 = vpop.f32.mrf.mxu2  ;;  %v4260_v45 = vpop.f32.mrf.mxu3 }
  0xc1   : > { %v4262_v50 = vpop.f32.mrf.mxu0  ;;  %v4264_v51 = vpop.f32.mrf.mxu1 }
  0xc8   : > { %v4270_v56 = vpop.f32.mrf.mxu2  ;;  %v4272_v58 = vpop.f32.mrf.mxu3 }
  0xc9   : > { %v4274_v60 = vpop.f32.mrf.mxu0  ;;  %v4276_v19 = vpop.f32.mrf.mxu1 }
  0xcc   : > { %1009 = vmatmul.bf16.gmra.mxu1 %v2895_v59  ;;  %1436 = vmatmul.bf16.gmra.mxu0 %v2883_v39  ;;  %v2922_v39 = vld [vmem:[%s3961_s14 + $0xe0] sm:$0xf] }
  0xcd   : > { %1098 = vmatmul.bf16.gmra.mxu2 %v4278_v61  ;;  %1347 = vmatmul.bf16.gmra.mxu3 %v4050_v47  ;;  %v3618_v47 = vld [vmem:[%s4779_s1 + $0x98] sm:$0xff] }
  0xce   : > { %1491 = vmatpush.bf16.msra.mxu1 %v3618_v47  ;;  %v3700_v47 = vld [vmem:[%s4779_s1 + $0x190] sm:$0xff] }
  0xcf   : > { %2094 = vmatpush.bf16.msra.mxu2 %v3700_v47  ;;  %v3583_v47 = vld [vmem:[%s3961_s14 + $0x100] sm:$0xf0] }
  0xd0   : > { %v4288_v0 = vpop.f32.mrf.mxu2  ;;  %v4290_v1 = vpop.f32.mrf.mxu3 }
  0xd1   : > { %v4292_v46 = vpop.f32.mrf.mxu0  ;;  %v4294_v2 = vpop.f32.mrf.mxu1 }
  0xd2   : > { %1492 = vmatpush.bf16.msra.mxu1 %v3617_v35 }
  0xd8   : > { %v4306_v13 = vpop.f32.mrf.mxu2  ;;  %v4308_v14 = vpop.f32.mrf.mxu3 }
  0xd9   : > { %v4310_v16 = vpop.f32.mrf.mxu0  ;;  %v4312_v8 = vpop.f32.mrf.mxu1 }
  0xdc   : > { %1014 = vmatmul.bf16.gmra.mxu1 %v2907_v15  ;;  %1441 = vmatmul.bf16.gmra.mxu0 %v2895_v59 }
  0xdd   : > { %1103 = vmatmul.bf16.gmra.mxu2 %v4314_v24  ;;  %1352 = vmatmul.bf16.gmra.mxu3 %v4112_v9  ;;  %v4334_v9 = vor.u32 %v3580_v52, %v2922_v39  ;;  %v3581_v39 = vld [vmem:[%s3961_s14 + $0xf4] sm:$0xf]  ;;  %v2928_v52 = vld [vmem:[%s3961_s14 + $0xfc] sm:$0xf0] }
  0xdf   : > { %4790 = vst [vmem:[#allocation4_spill] sm:$0xff] %v4334_v9 }
  0xe0   : > { %v4318_v28 = vpop.f32.mrf.mxu2  ;;  %v4320_v32 = vpop.f32.mrf.mxu3 }
  0xe1   : > { %v4322_v33 = vpop.f32.mrf.mxu0  ;;  %v4324_v34 = vpop.f32.mrf.mxu1 }
  0xe8   : > { %v4330_v53 = vpop.f32.mrf.mxu2  ;;  %v4332_v54 = vpop.f32.mrf.mxu3 }
  0xe9   : > { %4789 = vst [vmem:[#allocation3_spill] sm:$0xff] %v4332_v54  ;;  %v980_v59 = vpop.f32.mrf.mxu1  ;;  %v1407_v62 = vpop.f32.mrf.mxu0 }
  0xea   : > { %v981_v18 = vadd.f32 %v980_v59, %v4214_v17 }
  0xec   : > { %1019 = vmatmul.bf16.gmra.mxu1 %v2919_v55  ;;  %1446 = vmatmul.bf16.gmra.mxu0 %v2907_v15 }
  0xed   : > { %1108 = vmatmul.bf16.gmra.mxu2 %v4334_v9  ;;  %1357 = vmatmul.bf16.gmra.mxu3 %v4144_v29 }
  0xf0   : > { %v1069_v17 = vpop.f32.mrf.mxu2  ;;  %v1318_v4 = vpop.f32.mrf.mxu3 }
  0xf1   : > { %v1070_v5 = vadd.f32 %v1069_v17, %v981_v18  ;;  %v982_v6 = vpop.f32.mrf.mxu1  ;;  %v1409_v12 = vpop.f32.mrf.mxu0  ;;  %v2934_v18 = vld [vmem:[%s3961_s14 + $0xf8] sm:$0xf] }
  0xf2   : > { %v983_v15 = vadd.f32 %v982_v6, %v4232_v27  ;;  %v2931_v27 = vor.u32 %v3581_v39, %v2928_v52  ;;  %v4358_v9 = vor.u32 %v3583_v47, %v2934_v18  ;;  %v2940_v47 = vld [vmem:[%s3961_s14 + $0x114] sm:$0xf0] }
  0xf3   : > { %v1319_v29 = vadd.f32 %v1318_v4, %v1070_v5 }
  0xf4   : > { %4791 = vst [vmem:[#allocation5_spill] sm:$0xff] %v4358_v9 }
  0xf5   : > { %v4354_v59 = vadd.f32 %v1407_v62, %v1319_v29 }
  0xf8   : > { %v1071_v3 = vpop.f32.mrf.mxu2  ;;  %v1320_v17 = vpop.f32.mrf.mxu3 }
  0xf9   : > { %v1072_v4 = vadd.f32 %v1071_v3, %v983_v15  ;;  %v985_v5 = vpop.f32.mrf.mxu1  ;;  %v1412_v6 = vpop.f32.mrf.mxu0 }
  0xfa   : > { %v986_v24 = vadd.f32 %v985_v5, %v4250_v40  ;;  %v3584_v40 = vld [vmem:[%s3961_s14 + $0x10c] sm:$0xf] }
  0xfb   : > { %v1321_v54 = vadd.f32 %v1320_v17, %v1072_v4  ;;  %v2946_v17 = vld [vmem:[%s3961_s14 + $0x110] sm:$0xf] }
  0xfc   : > { %1024 = vmatmul.bf16.gmra.mxu1 %v2931_v27  ;;  %1451 = vmatmul.bf16.gmra.mxu0 %v2919_v55  ;;  %v3586_v55 = vld [vmem:[%s3961_s14 + $0x118] sm:$0xf0] }
  0xfd   : > { %1113 = vmatmul.bf16.gmra.mxu2 %v4358_v9  ;;  %1362 = vmatmul.bf16.gmra.mxu3 %v3984_v20  ;;  %v4363_v62 = vadd.f32 %v1409_v12, %v1321_v54  ;;  %v2943_v9 = vor.u32 %v3584_v40, %v2940_v47  ;;  %v3616_v40 = vld [vmem:[%s4779_s1 + $0x88] sm:$0xff]  ;;  %v3587_v47 = vld [vmem:[%s3961_s14 + $0x124] sm:$0xf] }
  0xfe   : > { %1493 = vmatpush.bf16.msra.mxu1 %v3616_v40 }
  0xff   : > { %4792 = vst [vmem:[#allocation6_spill] sm:$0xff] %v4363_v62  ;;  %v4372_v62 = vor.u32 %v3586_v55, %v2946_v17  ;;  %v2952_v17 = vld [vmem:[%s3961_s14 + $0x12c] sm:$0xf0] }
 0x100   : > { %v1074_v15 = vpop.f32.mrf.mxu2  ;;  %v1323_v29 = vpop.f32.mrf.mxu3 }
 0x101   : > { %v1075_v35 = vadd.f32 %v1074_v15, %v986_v24  ;;  %v987_v36 = vpop.f32.mrf.mxu1  ;;  %v1414_v39 = vpop.f32.mrf.mxu0 }
 0x102   : > { %v988_v52 = vadd.f32 %v987_v36, %v4262_v50  ;;  %v3699_v50 = vld [vmem:[%s4779_s1 + $0x188] sm:$0xff] }
 0x103   : > { %v1324_v18 = vadd.f32 %v1323_v29, %v1075_v35  ;;  %2095 = vmatpush.bf16.msra.mxu2 %v3699_v50 }
 0x105   : > { %v4368_v3 = vadd.f32 %v1412_v6, %v1324_v18  ;;  %v3707_v6 = vld [vmem:[%s4779_s1 + $0x1c8] sm:$0xff] }
 0x106   : > { %2184 = vmatpush.bf16.msra.mxu3 %v3707_v6 }
 0x108   : > { %v1076_v4 = vpop.f32.mrf.mxu2  ;;  %v1325_v5 = vpop.f32.mrf.mxu3 }
 0x109   : > { %v1077_v20 = vadd.f32 %v1076_v4, %v988_v52  ;;  %v990_v54 = vpop.f32.mrf.mxu1  ;;  %v1417_v12 = vpop.f32.mrf.mxu0  ;;  %v2958_v4 = vld [vmem:[%s3961_s14 + $0x128] sm:$0xf] }
 0x10a   : > { %v991_v24 = vadd.f32 %v990_v54, %v4274_v60 }
 0x10b   : > { %v1326_v15 = vadd.f32 %v1325_v5, %v1077_v20  ;;  %v3589_v5 = vld [vmem:[%s3961_s14 + $0x130] sm:$0xf0] }
 0x10c   : > { %1029 = vmatmul.bf16.gmra.mxu1 %v2943_v9  ;;  %1456 = vmatmul.bf16.gmra.mxu0 %v2931_v27  ;;  %v4398_v6 = vor.u32 %v3589_v5, %v2958_v4  ;;  %v2970_v5 = vld [vmem:[%s3961_s14 + $0x140] sm:$0xf] }
 0x10d   : > { %1118 = vmatmul.bf16.gmra.mxu2 %v4372_v62  ;;  %1367 = vmatmul.bf16.gmra.mxu3 %v4052_v48  ;;  %v4383_v29 = vadd.f32 %v1414_v39, %v1326_v15  ;;  %v3715_v39 = vld [vmem:[%s4779_s1 + $0x208] sm:$0xff] }
 0x10e   : > { %2273 = vmatpush.bf16.msra.mxu0 %v3715_v39 }
 0x110   : > { %v1079_v60 = vpop.f32.mrf.mxu2  ;;  %v1328_v27 = vpop.f32.mrf.mxu3 }
 0x111   : > { %v1080_v35 = vadd.f32 %v1079_v60, %v991_v24  ;;  %v992_v36 = vpop.f32.mrf.mxu1  ;;  %v1419_v48 = vpop.f32.mrf.mxu0 }
 0x112   : > { %v993_v52 = vadd.f32 %v992_v36, %v4292_v46  ;;  %v2955_v46 = vor.u32 %v3587_v47, %v2952_v17  ;;  %v2964_v17 = vld [vmem:[%s3961_s14 + $0x144] sm:$0xf0] }
 0x113   : > { %v1329_v18 = vadd.f32 %v1328_v27, %v1080_v35 }
 0x115   : > { %v4394_v55 = vadd.f32 %v1417_v12, %v1329_v18 }
 0x118   : > { %v1081_v20 = vpop.f32.mrf.mxu2  ;;  %v1330_v54 = vpop.f32.mrf.mxu3 }
 0x119   : > { %v1082_v24 = vadd.f32 %v1081_v20, %v993_v52  ;;  %v995_v15 = vpop.f32.mrf.mxu1  ;;  %v1422_v50 = vpop.f32.mrf.mxu0 }
 0x11a   : > { %v996_v60 = vadd.f32 %v995_v15, %v4310_v16  ;;  %v3590_v16 = vld [vmem:[%s3961_s14 + $0x13c] sm:$0xf] }
 0x11b   : > { %v1331_v27 = vadd.f32 %v1330_v54, %v1082_v24  ;;  %v2967_v24 = vor.u32 %v3590_v16, %v2964_v17  ;;  %v3615_v16 = vld [vmem:[%s4779_s1 + $0x80] sm:$0xff]  ;;  %v3593_v17 = vld [vmem:[%s3961_s14 + $0x154] sm:$0xf] }
 0x11c   : > { %1034 = vmatmul.bf16.gmra.mxu1 %v2955_v46  ;;  %1461 = vmatmul.bf16.gmra.mxu0 %v2943_v9  ;;  %v3592_v9 = vld [vmem:[%s3961_s14 + $0x148] sm:$0xf0] }
 0x11d   : > { %1123 = vmatmul.bf16.gmra.mxu2 %v4398_v6  ;;  %1372 = vmatmul.bf16.gmra.mxu3 %v4114_v10  ;;  %v4403_v12 = vadd.f32 %v1419_v48, %v1331_v27  ;;  %v4412_v27 = vor.u32 %v3592_v9, %v2970_v5  ;;  %v2982_v9 = vld [vmem:[%s3961_s14 + $0x158] sm:$0xf] }
 0x11e   : > { %1494 = vmatpush.bf16.msra.mxu1 %v3615_v16 }
 0x120   : > { %v1084_v35 = vpop.f32.mrf.mxu2  ;;  %v1333_v36 = vpop.f32.mrf.mxu3 }
 0x121   : > { %v1085_v52 = vadd.f32 %v1084_v35, %v996_v60  ;;  %v997_v18 = vpop.f32.mrf.mxu1  ;;  %v1424_v40 = vpop.f32.mrf.mxu0 }
 0x122   : > { %v998_v39 = vadd.f32 %v997_v18, %v4322_v33  ;;  %v3698_v33 = vld [vmem:[%s4779_s1 + $0x180] sm:$0xff] }
 0x123   : > { %v1334_v47 = vadd.f32 %v1333_v36, %v1085_v52  ;;  %2096 = vmatpush.bf16.msra.mxu2 %v3698_v33 }
 0x125   : > { %v4408_v4 = vadd.f32 %v1422_v50, %v1334_v47  ;;  %v3706_v50 = vld [vmem:[%s4779_s1 + $0x1c0] sm:$0xff] }
 0x126   : > { %2185 = vmatpush.bf16.msra.mxu3 %v3706_v50 }
 0x128   : > { %v1086_v20 = vpop.f32.mrf.mxu2  ;;  %v1335_v54 = vpop.f32.mrf.mxu3 }
 0x129   : > { %v1087_v10 = vadd.f32 %v1086_v20, %v998_v39  ;;  %v1000_v48 = vpop.f32.mrf.mxu1  ;;  %v1427_v15 = vpop.f32.mrf.mxu0  ;;  %v3595_v20 = vld [vmem:[%s3961_s14 + $0x160] sm:$0xf0] }
 0x12a   : > { %v1001_v36 = vadd.f32 %v1000_v48, %v4216_v22  ;;  %v2976_v22 = vld [vmem:[%s3961_s14 + $0x15c] sm:$0xf0] }
 0x12b   : > { %v1336_v60 = vadd.f32 %v1335_v54, %v1087_v10 }
 0x12c   : > { %1039 = vmatmul.bf16.gmra.mxu1 %v2967_v24  ;;  %1466 = vmatmul.bf16.gmra.mxu0 %v2955_v46 }
 0x12d   : > { %1128 = vmatmul.bf16.gmra.mxu2 %v4412_v27  ;;  %1377 = vmatmul.bf16.gmra.mxu3 %v4146_v30  ;;  %v4422_v35 = vadd.f32 %v1424_v40, %v1336_v60  ;;  %v3714_v40 = vld [vmem:[%s4779_s1 + $0x200] sm:$0xff]  ;;  %v2979_v60 = vor.u32 %v3593_v17, %v2976_v22  ;;  %v3596_v22 = vld [vmem:[%s3961_s14 + $0x16c] sm:$0xf] }
 0x12e   : > { %2274 = vmatpush.bf16.msra.mxu0 %v3714_v40 }
 0x130   : > { %v1089_v46 = vpop.f32.mrf.mxu2  ;;  %v1338_v52 = vpop.f32.mrf.mxu3 }
 0x131   : > { %v1090_v30 = vadd.f32 %v1089_v46, %v1001_v36  ;;  %v1002_v18 = vpop.f32.mrf.mxu1  ;;  %v1429_v39 = vpop.f32.mrf.mxu0  ;;  %v4438_v46 = vor.u32 %v3595_v20, %v2982_v9  ;;  %v2988_v9 = vld [vmem:[%s3961_s14 + $0x174] sm:$0xf0] }
 0x132   : > { %v1003_v54 = vadd.f32 %v1002_v18, %v4234_v31 }
 0x133   : > { %v1339_v47 = vadd.f32 %v1338_v52, %v1090_v30 }
 0x135   : > { %v4433_v5 = vadd.f32 %v1427_v15, %v1339_v47 }
 0x138   : > { %v1091_v10 = vpop.f32.mrf.mxu2  ;;  %v1340_v48 = vpop.f32.mrf.mxu3 }
 0x139   : > { %v1092_v33 = vadd.f32 %v1091_v10, %v1003_v54  ;;  %v1005_v50 = vpop.f32.mrf.mxu1  ;;  %v1432_v36 = vpop.f32.mrf.mxu0  ;;  %v2994_v54 = vld [vmem:[%s3961_s14 + $0x170] sm:$0xf] }
 0x13a   : > { %v1006_v15 = vadd.f32 %v1005_v50, %v4252_v41 }
 0x13b   : > { %v1341_v52 = vadd.f32 %v1340_v48, %v1092_v33 }
 0x13c   : > { %1044 = vmatmul.bf16.gmra.mxu1 %v2979_v60  ;;  %1471 = vmatmul.bf16.gmra.mxu0 %v2967_v24  ;;  %v3598_v24 = vld [vmem:[%s3961_s14 + $0x178] sm:$0xf0] }
 0x13d   : > { %1133 = vmatmul.bf16.gmra.mxu2 %v4438_v46  ;;  %1382 = vmatmul.bf16.gmra.mxu3 %v3986_v21  ;;  %v4442_v31 = vadd.f32 %v1429_v39, %v1341_v52  ;;  %v2991_v39 = vor.u32 %v3596_v22, %v2988_v9  ;;  %v4452_v50 = vor.u32 %v3598_v24, %v2994_v54  ;;  %v3623_v9 = vld [vmem:[%s3961_s14 + $0x184] sm:$0xf]  ;;  %v3000_v54 = vld [vmem:[%s3961_s14 + $0x18c] sm:$0xf0] }
 0x13f   : > { %4793 = vst [vmem:[#allocation7_spill] sm:$0xff] %v4452_v50 }
 0x140   : > { %v1094_v30 = vpop.f32.mrf.mxu2  ;;  %v1343_v18 = vpop.f32.mrf.mxu3 }
 0x141   : > { %v1095_v47 = vadd.f32 %v1094_v30, %v1006_v15  ;;  %v1007_v16 = vpop.f32.mrf.mxu1  ;;  %v1434_v40 = vpop.f32.mrf.mxu0 }
 0x142   : > { %v1008_v10 = vadd.f32 %v1007_v16, %v4264_v51 }
 0x143   : > { %v1344_v17 = vadd.f32 %v1343_v18, %v1095_v47 }
 0x145   : > { %v4447_v20 = vadd.f32 %v1432_v36, %v1344_v17 }
 0x148   : > { %v1096_v48 = vpop.f32.mrf.mxu2  ;;  %v1345_v21 = vpop.f32.mrf.mxu3 }
 0x149   : > { %v1097_v33 = vadd.f32 %v1096_v48, %v1008_v10  ;;  %v1010_v52 = vpop.f32.mrf.mxu1  ;;  %v1437_v41 = vpop.f32.mrf.mxu0  ;;  %v3006_v10 = vld [vmem:[%s3961_s14 + $0x188] sm:$0xf] }
 0x14a   : > { %v1011_v36 = vadd.f32 %v1010_v52, %v4276_v19 }
 0x14b   : > { %v1346_v15 = vadd.f32 %v1345_v21, %v1097_v33 }
 0x14c   : > { %1049 = vmatmul.bf16.gmra.mxu1 %v2991_v39  ;;  %1476 = vmatmul.bf16.gmra.mxu0 %v2979_v60  ;;  %v3625_v60 = vld [vmem:[%s3961_s14 + $0x190] sm:$0xf0] }
 0x14d   : > { %1138 = vmatmul.bf16.gmra.mxu2 %v4452_v50  ;;  %1387 = vmatmul.bf16.gmra.mxu3 %v4054_v49  ;;  %v4456_v51 = vadd.f32 %v1434_v40, %v1346_v15  ;;  %v3003_v40 = vor.u32 %v3623_v9, %v3000_v54  ;;  %v3007_v52 = vor.u32 %v3625_v60, %v3006_v10  ;;  %v3114_v54 = vld [vmem:[%s3961_s14 + $0x8] sm:$0xf]  ;;  %v3553_v10 = vld [vmem:[%s3961_s14 + $0x10] sm:$0xf0]  ;;  %v3262_v60 = vld [vmem:[%s3961_s14 + $0x30] sm:$0xf] }
 0x150   : > { %v1099_v30 = vpop.f32.mrf.mxu2  ;;  %v1348_v18 = vpop.f32.mrf.mxu3 }
 0x151   : > { %v1100_v47 = vadd.f32 %v1099_v30, %v1011_v36  ;;  %v1012_v16 = vpop.f32.mrf.mxu1  ;;  %v1439_v17 = vpop.f32.mrf.mxu0 }
 0x152   : > { %v1013_v48 = vadd.f32 %v1012_v16, %v4294_v2 }
 0x153   : > { %v1349_v22 = vadd.f32 %v1348_v18, %v1100_v47 }
 0x155   : > { %v4461_v24 = vadd.f32 %v1437_v41, %v1349_v22 }
 0x158   : > { %v1101_v21 = vpop.f32.mrf.mxu2  ;;  %v1350_v49 = vpop.f32.mrf.mxu3 }
 0x159   : > { %v1102_v33 = vadd.f32 %v1101_v21, %v1013_v48  ;;  %v1015_v15 = vpop.f32.mrf.mxu1  ;;  %v1442_v19 = vpop.f32.mrf.mxu0  ;;  %v3652_v48 = vld [vmem:[%s3961_s14 + $0x40] sm:$0xf0] }
 0x15a   : > { %v1016_v41 = vadd.f32 %v1015_v15, %v4312_v8  ;;  %v3115_v15 = vor.u32 %v3553_v10, %v3114_v54 }
 0x15b   : > { %v1351_v36 = vadd.f32 %v1350_v49, %v1102_v33  ;;  %v3650_v49 = vld [vmem:[%s3961_s14 + $0x34] sm:$0xf] }
 0x15c   : > { %1054 = vmatmul.bf16.gmra.mxu1 %v3003_v40  ;;  %1481 = vmatmul.bf16.gmra.mxu0 %v2991_v39  ;;  %v3270_v39 = vld [vmem:[%s3961_s14 + $0x38] sm:$0xf] }
 0x15d   : > { %1143 = vmatmul.bf16.gmra.mxu2 %v3007_v52  ;;  %1392 = vmatmul.bf16.gmra.mxu3 %v4116_v11  ;;  %v4467_v2 = vadd.f32 %v1439_v17, %v1351_v36  ;;  %v3651_v11 = vld [vmem:[%s3961_s14 + $0x38] sm:$0xf0]  ;;  %v3264_v17 = vld [vmem:[%s3961_s14 + $0x3c] sm:$0xf0]  ;;  %v3271_v52 = vor.u32 %v3652_v48, %v3270_v39  ;;  %v3274_v48 = vld [vmem:[%s3961_s14 + $0x48] sm:$0xf] }
 0x160   : > { %v1104_v30 = vpop.f32.mrf.mxu2  ;;  %v1353_v18 = vpop.f32.mrf.mxu3 }
 0x161   : > { %v1105_v47 = vadd.f32 %v1104_v30, %v1016_v41  ;;  %v1017_v16 = vpop.f32.mrf.mxu1  ;;  %v1444_v22 = vpop.f32.mrf.mxu0 }
 0x162   : > { %v1018_v40 = vadd.f32 %v1017_v16, %v4324_v34 }
 0x163   : > { %v1354_v9 = vadd.f32 %v1353_v18, %v1105_v47  ;;  %v3263_v18 = vor.u32 %v3651_v11, %v3262_v60  ;;  %v3267_v47 = vor.u32 %v3650_v49, %v3264_v17  ;;  %v3282_v11 = vld [vmem:[%s3961_s14 + $0x50] sm:$0xf]  ;;  %v3655_v49 = vld [vmem:[%s3961_s14 + $0x58] sm:$0xf0] }
 0x165   : > { %v4475_v21 = vadd.f32 %v1442_v19, %v1354_v9 }
 0x168   : > { %v1106_v33 = vpop.f32.mrf.mxu2  ;;  %v1355_v8 = vpop.f32.mrf.mxu3 }
 0x169   : > { %v1107_v36 = vadd.f32 %v1106_v33, %v1018_v40  ;;  %v1020_v41 = vpop.f32.mrf.mxu1  ;;  %v1447_v30 = vpop.f32.mrf.mxu0  ;;  %v3654_v40 = vld [vmem:[%s3961_s14 + $0x50] sm:$0xf0]  ;;  %v3653_v33 = vld [vmem:[%s3961_s14 + $0x4c] sm:$0xf] }
 0x16a   : > { %v1021_v19 = vadd.f32 %v1020_v41, %v4228_v25 }
 0x16b   : > { %v1356_v50 = vadd.f32 %v1355_v8, %v1107_v36  ;;  %v3276_v8 = vld [vmem:[%s3961_s14 + $0x54] sm:$0xf0] }
 0x16c   : > { %1495 = vmatmul.bf16.vlgmr.msra.gmra.mxu1 %v3115_v15  ;;  %2275 = vmatmul.bf16.vlgmr.msra.gmra.mxu0 %v3271_v52  ;;  %v3283_v52 = vor.u32 %v3655_v49, %v3282_v11  ;;  %v3286_v11 = vld [vmem:[%s3961_s14 + $0x60] sm:$0xf]  ;;  %v3294_v49 = vld [vmem:[%s3961_s14 + $0x68] sm:$0xf] }
 0x16d   : > { %2097 = vmatmul.bf16.vlgmr.msra.gmra.mxu2 %v3263_v18  ;;  %2186 = vmatmul.bf16.vlgmr.msra.gmra.mxu3 %v3267_v47  ;;  %v4481_v34 = vadd.f32 %v1444_v22, %v1356_v50  ;;  %v3275_v18 = vor.u32 %v3654_v40, %v3274_v48  ;;  %v3279_v47 = vor.u32 %v3653_v33, %v3276_v8  ;;  %v3658_v40 = vld [vmem:[%s3961_s14 + $0x70] sm:$0xf0]  ;;  %v3657_v33 = vld [vmem:[%s3961_s14 + $0x68] sm:$0xf0]  ;;  %v3656_v8 = vld [vmem:[%s3961_s14 + $0x64] sm:$0xf] }
 0x170   : > { %v1109_v16 = vpop.f32.mrf.mxu2  ;;  %v1358_v9 = vpop.f32.mrf.mxu3 }
 0x171   : > { %v1110_v54 = vadd.f32 %v1109_v16, %v1021_v19  ;;  %v1022_v10 = vpop.f32.mrf.mxu1  ;;  %v1449_v60 = vpop.f32.mrf.mxu0 }
 0x172   : > { %v1023_v15 = vadd.f32 %v1022_v10, %v4246_v37 }
 0x173   : > { %v1359_v39 = vadd.f32 %v1358_v9, %v1110_v54 }
 0x175   : > { %v4487_v17 = vadd.f32 %v1447_v30, %v1359_v39 }
 0x178   : > { %v1111_v50 = vpop.f32.mrf.mxu2  ;;  %v1360_v22 = vpop.f32.mrf.mxu3 }
 0x179   : > { %v1112_v25 = vadd.f32 %v1111_v50, %v1023_v15  ;;  %v1025_v36 = vpop.f32.mrf.mxu1  ;;  %v1452_v41 = vpop.f32.mrf.mxu0  ;;  %v3288_v15 = vld [vmem:[%s3961_s14 + $0x6c] sm:$0xf0] }
 0x17a   : > { %v1026_v30 = vadd.f32 %v1025_v36, %v4258_v44 }
 0x17b   : > { %v1361_v19 = vadd.f32 %v1360_v22, %v1112_v25 }
 0x17c   : > { %1500 = vmatmul.bf16.gmra.mxu1 %v4159_v42  ;;  %2280 = vmatmul.bf16.gmra.mxu0 %v3283_v52  ;;  %v3295_v52 = vor.u32 %v3658_v40, %v3294_v49  ;;  %v3306_v49 = vld [vmem:[%s3961_s14 + $0x80] sm:$0xf]  ;;  %v3661_v40 = vld [vmem:[%s3961_s14 + $0x88] sm:$0xf0] }
 0x17d   : > { %2102 = vmatmul.bf16.gmra.mxu2 %v3275_v18  ;;  %2191 = vmatmul.bf16.gmra.mxu3 %v3279_v47  ;;  %v4494_v37 = vadd.f32 %v1449_v60, %v1361_v19  ;;  %v3287_v18 = vor.u32 %v3657_v33, %v3286_v11  ;;  %v3291_v47 = vor.u32 %v3656_v8, %v3288_v15  ;;  %v3298_v11 = vld [vmem:[%s3961_s14 + $0x78] sm:$0xf]  ;;  %v3660_v33 = vld [vmem:[%s3961_s14 + $0x80] sm:$0xf0]  ;;  %v3659_v8 = vld [vmem:[%s3961_s14 + $0x7c] sm:$0xf] }
 0x17e   : > { %v3300_v15 = vld [vmem:[%s3961_s14 + $0x84] sm:$0xf0] }
 0x180   : > { %v1114_v16 = vpop.f32.mrf.mxu2  ;;  %v1363_v9 = vpop.f32.mrf.mxu3 }
 0x181   : > { %v1115_v54 = vadd.f32 %v1114_v16, %v1026_v30  ;;  %v1027_v10 = vpop.f32.mrf.mxu1  ;;  %v1454_v39 = vpop.f32.mrf.mxu0 }
 0x182   : > { %v1028_v50 = vadd.f32 %v1027_v10, %v4270_v56 }
 0x183   : > { %v1364_v48 = vadd.f32 %v1363_v9, %v1115_v54 }
 0x185   : > { %v4500_v42 = vadd.f32 %v1452_v41, %v1364_v48 }
 0x188   : > { %v1116_v60 = vpop.f32.mrf.mxu2  ;;  %v1365_v22 = vpop.f32.mrf.mxu3 }
 0x189   : > { %v1117_v44 = vadd.f32 %v1116_v60, %v1028_v50  ;;  %v1030_v25 = vpop.f32.mrf.mxu1  ;;  %v1457_v36 = vpop.f32.mrf.mxu0 }
 0x18a   : > { %v1031_v41 = vadd.f32 %v1030_v25, %v4288_v0  ;;  %v3299_v25 = vor.u32 %v3660_v33, %v3298_v11  ;;  %v3318_v11 = vld [vmem:[%s3961_s14 + $0x98] sm:$0xf]  ;;  %v3662_v33 = vld [vmem:[%s3961_s14 + $0x94] sm:$0xf] }
 0x18b   : > { %v1366_v19 = vadd.f32 %v1365_v22, %v1117_v44  ;;  %v3307_v22 = vor.u32 %v3661_v40, %v3306_v49  ;;  %v3664_v49 = vld [vmem:[%s3961_s14 + $0xa0] sm:$0xf0]  ;;  %v3663_v40 = vld [vmem:[%s3961_s14 + $0x98] sm:$0xf0] }
 0x18c   : > { %1505 = vmatmul.bf16.gmra.mxu1 %v4178_v57  ;;  %2285 = vmatmul.bf16.gmra.mxu0 %v3295_v52 }
 0x18d   : > { %2107 = vmatmul.bf16.gmra.mxu2 %v3287_v18  ;;  %2196 = vmatmul.bf16.gmra.mxu3 %v3291_v47  ;;  %v4507_v56 = vadd.f32 %v1454_v39, %v1366_v19  ;;  %v3303_v18 = vor.u32 %v3659_v8, %v3300_v15  ;;  %v3312_v8 = vld [vmem:[%s3961_s14 + $0x9c] sm:$0xf0] }
 0x190   : > { %v1119_v30 = vpop.f32.mrf.mxu2  ;;  %v1368_v16 = vpop.f32.mrf.mxu3 }
 0x191   : > { %v1120_v9 = vadd.f32 %v1119_v30, %v1031_v41  ;;  %v1032_v54 = vpop.f32.mrf.mxu1  ;;  %v1459_v10 = vpop.f32.mrf.mxu0 }
 0x192   : > { %v1033_v50 = vadd.f32 %v1032_v54, %v4306_v13 }
 0x193   : > { %v1369_v48 = vadd.f32 %v1368_v16, %v1120_v9 }
 0x195   : > { %v4513_v57 = vadd.f32 %v1457_v36, %v1369_v48  ;;  %v3310_v48 = vld [vmem:[%s3961_s14 + $0x90] sm:$0xf] }
 0x198   : > { %v1121_v39 = vpop.f32.mrf.mxu2  ;;  %v1370_v60 = vpop.f32.mrf.mxu3 }
 0x199   : > { %v1122_v0 = vadd.f32 %v1121_v39, %v1033_v50  ;;  %v1035_v52 = vpop.f32.mrf.mxu1  ;;  %v1462_v44 = vpop.f32.mrf.mxu0  ;;  %v3319_v39 = vor.u32 %v3664_v49, %v3318_v11  ;;  %v3666_v11 = vld [vmem:[%s3961_s14 + $0xb0] sm:$0xf0]  ;;  %v3665_v49 = vld [vmem:[%s3961_s14 + $0xac] sm:$0xf] }
 0x19a   : > { %v1036_v36 = vadd.f32 %v1035_v52, %v4318_v28  ;;  %v3315_v52 = vor.u32 %v3662_v33, %v3312_v8 }
 0x19b   : > { %v1371_v47 = vadd.f32 %v1370_v60, %v1122_v0  ;;  %v3311_v0 = vor.u32 %v3663_v40, %v3310_v48  ;;  %v3667_v48 = vld [vmem:[%s3961_s14 + $0xb8] sm:$0xf0]  ;;  %v3324_v40 = vld [vmem:[%s3961_s14 + $0xb4] sm:$0xf0] }
 0x19c   : > { %1510 = vmatmul.bf16.gmra.mxu1 %v4186_v63  ;;  %2290 = vmatmul.bf16.gmra.mxu0 %v3307_v22 }
 0x19d   : > { %2112 = vmatmul.bf16.gmra.mxu2 %v3299_v25  ;;  %2201 = vmatmul.bf16.gmra.mxu3 %v3303_v18  ;;  %v4520_v13 = vadd.f32 %v1459_v10, %v1371_v47 }
 0x1a0   : > { %v1124_v19 = vpop.f32.mrf.mxu2  ;;  %v1373_v41 = vpop.f32.mrf.mxu3 }
 0x1a1   : > { %v1125_v30 = vadd.f32 %v1124_v19, %v1036_v36  ;;  %v1037_v16 = vpop.f32.mrf.mxu1  ;;  %v1464_v9 = vpop.f32.mrf.mxu0 }
 0x1a2   : > { %v1038_v15 = vadd.f32 %v1037_v16, %v4330_v53  ;;  %v3322_v16 = vld [vmem:[%s3961_s14 + $0xa8] sm:$0xf] }
 0x1a3   : > { %v1374_v54 = vadd.f32 %v1373_v41, %v1125_v30 }
 0x1a5   : > { %v4526_v63 = vadd.f32 %v1462_v44, %v1374_v54  ;;  %v3330_v54 = vld [vmem:[%s3961_s14 + $0xb0] sm:$0xf] }
 0x1a8   : > { %v1126_v10 = vpop.f32.mrf.mxu2  ;;  %v1375_v50 = vpop.f32.mrf.mxu3 }
 0x1a9   : > { %v1127_v28 = vadd.f32 %v1126_v10, %v1038_v15  ;;  %v1040_v60 = vpop.f32.mrf.mxu1  ;;  %v1467_v22 = vpop.f32.mrf.mxu0  ;;  %v3331_v15 = vor.u32 %v3667_v48, %v3330_v54  ;;  %v3668_v54 = vld [vmem:[%s3961_s14 + $0xc4] sm:$0xf]  ;;  %v3336_v48 = vld [vmem:[%s3961_s14 + $0xcc] sm:$0xf0] }
 0x1aa   : > { %v1041_v44 = vadd.f32 %v1040_v60, %v4230_v26 }
 0x1ab   : > { %v1376_v25 = vadd.f32 %v1375_v50, %v1127_v28  ;;  %v3327_v28 = vor.u32 %v3665_v49, %v3324_v40 }
 0x1ac   : > { %1515 = vmatmul.bf16.gmra.mxu1 %v4206_v7  ;;  %2295 = vmatmul.bf16.gmra.mxu0 %v3319_v39  ;;  %v3323_v39 = vor.u32 %v3666_v11, %v3322_v16  ;;  %v3669_v16 = vld [vmem:[%s3961_s14 + $0xc8] sm:$0xf0] }
 0x1ad   : > { %2117 = vmatmul.bf16.gmra.mxu2 %v3311_v0  ;;  %2206 = vmatmul.bf16.gmra.mxu3 %v3315_v52  ;;  %v4533_v53 = vadd.f32 %v1464_v9, %v1376_v25 }
 0x1b0   : > { %v1129_v18 = vpop.f32.mrf.mxu2  ;;  %v1378_v47 = vpop.f32.mrf.mxu3 }
 0x1b1   : > { %v1130_v36 = vadd.f32 %v1129_v18, %v1041_v44  ;;  %v1042_v19 = vpop.f32.mrf.mxu1  ;;  %v1469_v41 = vpop.f32.mrf.mxu0 }
 0x1b2   : > { %v1043_v33 = vadd.f32 %v1042_v19, %v4248_v38  ;;  %v3342_v19 = vld [vmem:[%s3961_s14 + $0xc8] sm:$0xf] }
 0x1b3   : > { %v1379_v30 = vadd.f32 %v1378_v47, %v1130_v36  ;;  %v3334_v36 = vld [vmem:[%s3961_s14 + $0xc0] sm:$0xf] }
 0x1b5   : > { %v4539_v7 = vadd.f32 %v1467_v22, %v1379_v30  ;;  %v3670_v30 = vld [vmem:[%s3961_s14 + $0xd0] sm:$0xf0] }
 0x1b6   : > { %v3343_v40 = vor.u32 %v3670_v30, %v3342_v19  ;;  %v3348_v19 = vld [vmem:[%s3961_s14 + $0xe4] sm:$0xf0] }
 0x1b8   : > { %v1131_v9 = vpop.f32.mrf.mxu2  ;;  %v1380_v8 = vpop.f32.mrf.mxu3 }
 0x1b9   : > { %v1132_v26 = vadd.f32 %v1131_v9, %v1043_v33  ;;  %v1045_v10 = vpop.f32.mrf.mxu1  ;;  %v1472_v50 = vpop.f32.mrf.mxu0 }
 0x1ba   : > { %v1046_v22 = vadd.f32 %v1045_v10, %v4260_v45 }
 0x1bb   : > { %v1381_v60 = vadd.f32 %v1380_v8, %v1132_v26  ;;  %v3335_v8 = vor.u32 %v3669_v16, %v3334_v36  ;;  %v3671_v36 = vld [vmem:[%s3961_s14 + $0xdc] sm:$0xf] }
 0x1bc   : > { %1520 = vmatmul.bf16.gmra.mxu1 %v4218_v23  ;;  %2300 = vmatmul.bf16.gmra.mxu0 %v3331_v15  ;;  %v3339_v15 = vor.u32 %v3668_v54, %v3336_v48 }
 0x1bd   : > { %2122 = vmatmul.bf16.gmra.mxu2 %v3323_v39  ;;  %2211 = vmatmul.bf16.gmra.mxu3 %v3327_v28  ;;  %v4546_v38 = vadd.f32 %v1469_v41, %v1381_v60 }
 0x1c0   : > { %v1134_v0 = vpop.f32.mrf.mxu2  ;;  %v1383_v52 = vpop.f32.mrf.mxu3 }
 0x1c1   : > { %v1135_v25 = vadd.f32 %v1134_v0, %v1046_v22  ;;  %v1047_v44 = vpop.f32.mrf.mxu1  ;;  %v1474_v18 = vpop.f32.mrf.mxu0 }
 0x1c2   : > { %v1048_v11 = vadd.f32 %v1047_v44, %v4272_v58  ;;  %v3673_v44 = vld [vmem:[%s3961_s14 + $0xe8] sm:$0xf0] }
 0x1c3   : > { %v1384_v47 = vadd.f32 %v1383_v52, %v1135_v25  ;;  %v3346_v52 = vld [vmem:[%s3961_s14 + $0xd8] sm:$0xf]  ;;  %v3354_v25 = vld [vmem:[%s3961_s14 + $0xe0] sm:$0xf] }
 0x1c4   : > { %v3355_v54 = vor.u32 %v3673_v44, %v3354_v25  ;;  %v4794_v25 = vld [vmem:[#allocation3_spill] sm:$0xff] }
 0x1c5   : > { %v4552_v23 = vadd.f32 %v1472_v50, %v1384_v47  ;;  %v3672_v47 = vld [vmem:[%s3961_s14 + $0xe0] sm:$0xf0] }
 0x1c8   : > { %v1136_v41 = vpop.f32.mrf.mxu2  ;;  %v1385_v49 = vpop.f32.mrf.mxu3 }
 0x1c9   : > { %v1137_v45 = vadd.f32 %v1136_v41, %v1048_v11  ;;  %v1050_v33 = vpop.f32.mrf.mxu1  ;;  %v1477_v9 = vpop.f32.mrf.mxu0  ;;  %v3347_v41 = vor.u32 %v3672_v47, %v3346_v52  ;;  %v3360_v52 = vld [vmem:[%s3961_s14 + $0xfc] sm:$0xf0] }
 0x1ca   : > { %v1051_v10 = vadd.f32 %v1050_v33, %v4290_v1 }
 0x1cb   : > { %v1386_v26 = vadd.f32 %v1385_v49, %v1137_v45  ;;  %v3351_v49 = vor.u32 %v3671_v36, %v3348_v19 }
 0x1cc   : > { %1525 = vmatmul.bf16.gmra.mxu1 %v4254_v43  ;;  %2305 = vmatmul.bf16.gmra.mxu0 %v3343_v40 }
 0x1cd   : > { %2127 = vmatmul.bf16.gmra.mxu2 %v3335_v8  ;;  %2216 = vmatmul.bf16.gmra.mxu3 %v3339_v15  ;;  %v4559_v58 = vadd.f32 %v1474_v18, %v1386_v26 }
 0x1d0   : > { %v1139_v50 = vpop.f32.mrf.mxu2  ;;  %v1388_v39 = vpop.f32.mrf.mxu3 }
 0x1d1   : > { %v1140_v28 = vadd.f32 %v1139_v50, %v1051_v10  ;;  %v1052_v60 = vpop.f32.mrf.mxu1  ;;  %v1479_v22 = vpop.f32.mrf.mxu0  ;;  %v3358_v50 = vld [vmem:[%s3961_s14 + $0xf0] sm:$0xf] }
 0x1d2   : > { %v1053_v30 = vadd.f32 %v1052_v60, %v4308_v14  ;;  %v3675_v60 = vld [vmem:[%s3961_s14 + $0xf8] sm:$0xf0] }
 0x1d3   : > { %v1389_v0 = vadd.f32 %v1388_v39, %v1140_v28  ;;  %v3366_v39 = vld [vmem:[%s3961_s14 + $0xf8] sm:$0xf]  ;;  %v3676_v28 = vld [vmem:[%s3961_s14 + $0x100] sm:$0xf0] }
 0x1d4   : > { %v3367_v36 = vor.u32 %v3676_v28, %v3366_v39  ;;  %v3378_v39 = vld [vmem:[%s3961_s14 + $0x110] sm:$0xf]  ;;  %v3678_v28 = vld [vmem:[%s3961_s14 + $0x110] sm:$0xf0] }
 0x1d5   : > { %v4565_v43 = vadd.f32 %v1477_v9, %v1389_v0  ;;  %v3674_v0 = vld [vmem:[%s3961_s14 + $0xf4] sm:$0xf] }
 0x1d8   : > { %v1141_v18 = vpop.f32.mrf.mxu2  ;;  %v1390_v16 = vpop.f32.mrf.mxu3 }
 0x1d9   : > { %v1142_v1 = vadd.f32 %v1141_v18, %v1053_v30  ;;  %v1055_v48 = vpop.f32.mrf.mxu1  ;;  %v1482_v11 = vpop.f32.mrf.mxu0  ;;  %v3359_v18 = vor.u32 %v3675_v60, %v3358_v50  ;;  %v3370_v50 = vld [vmem:[%s3961_s14 + $0x108] sm:$0xf]  ;;  %v3677_v60 = vld [vmem:[%s3961_s14 + $0x10c] sm:$0xf] }
 0x1da   : > { %v1056_v45 = vadd.f32 %v1055_v48, %v4320_v32  ;;  %v4795_v48 = vld [vmem:[#allocation2_spill] sm:$0xff] }
 0x1db   : > { %v1391_v40 = vadd.f32 %v1390_v16, %v1142_v1  ;;  %v3363_v16 = vor.u32 %v3674_v0, %v3360_v52  ;;  %v3372_v0 = vld [vmem:[%s3961_s14 + $0x114] sm:$0xf0] }
 0x1dc   : > { %1530 = vmatmul.bf16.gmra.mxu1 %v4278_v61  ;;  %2310 = vmatmul.bf16.gmra.mxu0 %v3355_v54 }
 0x1dd   : > { %2132 = vmatmul.bf16.gmra.mxu2 %v3347_v41  ;;  %2221 = vmatmul.bf16.gmra.mxu3 %v3351_v49  ;;  %v4572_v14 = vadd.f32 %v1479_v22, %v1391_v40 }
 0x1e0   : > { %v1144_v33 = vpop.f32.mrf.mxu2  ;;  %v1393_v9 = vpop.f32.mrf.mxu3 }
 0x1e1   : > { %v1145_v8 = vadd.f32 %v1144_v33, %v1056_v45  ;;  %v1057_v15 = vpop.f32.mrf.mxu1  ;;  %v1484_v26 = vpop.f32.mrf.mxu0 }
 0x1e2   : > { %v1058_v44 = vadd.f32 %v1057_v15, %v4794_v25  ;;  %v4593_v15 = vld [vmem:[%s4780_s2] ss:$0 sm:$0xff] }
 0x1e3   : > { %v1394_v10 = vadd.f32 %v1393_v9, %v1145_v8 }
 0x1e5   : > { %v4578_v61 = vadd.f32 %v1482_v11, %v1394_v10 }
 0x1e8   : > { %v1146_v22 = vpop.f32.mrf.mxu2  ;;  %v1395_v47 = vpop.f32.mrf.mxu3 }
 0x1e9   : > { %v1147_v32 = vadd.f32 %v1146_v22, %v1058_v44  ;;  %v1496_v19 = vpop.f32.mrf.mxu1  ;;  %v2276_v30 = vpop.f32.mrf.mxu0 }
 0x1ea   : > { %v1497_v54 = vadd.f32 %v1496_v19, %v4354_v59  ;;  %v4796_v59 = vld [vmem:[#allocation6_spill] sm:$0xff] }
 0x1eb   : > { %v1396_v1 = vadd.f32 %v1395_v47, %v1147_v32  ;;  %v4610_v47 = vld [vmem:[%s4781_s3] ss:$0 sm:$0xff] }
 0x1ec   : > { %1535 = vmatmul.bf16.gmra.mxu1 %v4795_v48  ;;  %2315 = vmatmul.bf16.gmra.mxu0 %v3367_v36  ;;  %v4797_v48 = vld [vmem:[#allocation4_spill] sm:$0xff] }
 0x1ed   : > { %2137 = vmatmul.bf16.gmra.mxu2 %v3359_v18  ;;  %2226 = vmatmul.bf16.gmra.mxu3 %v3363_v16  ;;  %v4586_v11 = vadd.f32 %v1484_v26, %v1396_v1  ;;  %v3679_v26 = vld [vmem:[%s3961_s14 + $0x118] sm:$0xf0]  ;;  %v3375_v18 = vor.u32 %v3677_v60, %v3372_v0  ;;  %v3723_v16 = vld [vmem:[%s4604_s9] sm:$0xff]   ;;  %v3786_v0 = vld [vmem:[%s4604_s9 + $0x8] sm:$0xff]  }
 0x1ee   : > { %v3379_v44 = vor.u32 %v3679_v26, %v3378_v39 }
 0x1f0   : > { %v2098_v41 = vpop.f32.mrf.mxu2  ;;  %v2187_v49 = vpop.f32.mrf.mxu3 }
 0x1f1   : > { %v2188_v40 = vadd.f32 %v2187_v49, %v2098_v41  ;;  %v1498_v45 = vpop.f32.mrf.mxu1  ;;  %v2278_v33 = vpop.f32.mrf.mxu0  ;;  %v3724_v49 = vunpack.c.l.bf16 %v3723_v16 }
 0x1f2   : > { %v1499_v9 = vadd.f32 %v1498_v45, %v4796_v59  ;;  %v3725_v59 = vunpack.c.h.bf16 %v3723_v16  ;;  %v3384_v16 = vld [vmem:[%s3961_s14 + $0x12c] sm:$0xf0] }
 0x1f3   : > { %v2277_v8 = vadd.f32 %v2276_v30, %v2188_v40  ;;  %v3371_v30 = vor.u32 %v3678_v28, %v3370_v50 }
 0x1f5   : > { %v2356_v10 = vadd.f32 %v2277_v8, %v1497_v54 }
 0x1f7   : > { %v2392_v22 = vmul.f32 %v4593_v15, %v2356_v10 }
 0x1f8   : > { %v2100_v52 = vpop.f32.mrf.mxu2  ;;  %v2189_v25 = vpop.f32.mrf.mxu3 }
 0x1f9   : > { %v2190_v36 = vadd.f32 %v2189_v25, %v2100_v52  ;;  %v1501_v32 = vpop.f32.mrf.mxu1  ;;  %v2281_v19 = vpop.f32.mrf.mxu0  ;;  %v2428_v41 = vadd.f32 %v4610_v47, %v2392_v22  ;;  %v3382_v52 = vld [vmem:[%s3961_s14 + $0x120] sm:$0xf] }
 0x1fa   : > { %v1502_v54 = vadd.f32 %v1501_v32, %v4368_v3  ;;  %v3682_v32 = vld [vmem:[%s3961_s14 + $0x130] sm:$0xf0] }
 0x1fb   : > { %v2279_v1 = vadd.f32 %v2278_v33, %v2190_v36  ;;  %v2524_v3 = vadd.f32 %v3724_v49, %v2428_v41  ;;  %v3390_v36 = vld [vmem:[%s3961_s14 + $0x128] sm:$0xf]  ;;  %v3728_v41 = vunpack.c.l.bf16 %v3786_v0 }
 0x1fc   : > { %1540 = vmatmul.bf16.gmra.mxu1 %v4797_v48  ;;  %2320 = vmatmul.bf16.gmra.mxu0 %v3379_v44 }
 0x1fd   : > { %v2357_v40 = vadd.f32 %v2279_v1, %v1499_v9  ;;  %2142 = vmatmul.bf16.gmra.mxu2 %v3371_v30  ;;  %2231 = vmatmul.bf16.gmra.mxu3 %v3375_v18  ;;  %v2556_v25 = vmax.f32 %v2524_v3, 0.0  ;;  %v3681_v30 = vld [vmem:[%s3961_s14 + $0x128] sm:$0xf0]  ;;  %v3680_v18 = vld [vmem:[%s3961_s14 + $0x124] sm:$0xf] }
 0x1fe   : > { %v3387_v3 = vor.u32 %v3680_v18, %v3384_v16 }
 0x1ff   : > { %v2393_v45 = vmul.f32 %v4593_v15, %v2357_v40 }
 0x200   : > { %v2103_v8 = vpop.f32.mrf.mxu2  ;;  %v2192_v10 = vpop.f32.mrf.mxu3 }
 0x201   : > { %v2429_v33 = vadd.f32 %v4610_v47, %v2393_v45  ;;  %v2193_v50 = vadd.f32 %v2192_v10, %v2103_v8  ;;  %v1503_v39 = vpop.f32.mrf.mxu1  ;;  %v2283_v26 = vpop.f32.mrf.mxu0  ;;  %v3391_v45 = vor.u32 %v3682_v32, %v3390_v36  ;;  %v3383_v10 = vor.u32 %v3681_v30, %v3382_v52 }
 0x202   : > { %v1504_v9 = vadd.f32 %v1503_v39, %v4383_v29  ;;  %v4798_v39 = vld [vmem:[#allocation5_spill] sm:$0xff]  ;;  %v3729_v52 = vunpack.c.h.bf16 %v3786_v0  ;;  %v3685_v0 = vld [vmem:[%s3961_s14 + $0x148] sm:$0xf0] }
 0x203   : > { %v2525_v28 = vadd.f32 %v3725_v59, %v2429_v33  ;;  %v2282_v60 = vadd.f32 %v2281_v19, %v2193_v50 }
 0x205   : > { %v2557_v44 = vmax.f32 %v2525_v28, 0.0  ;;  %v2358_v22 = vadd.f32 %v2282_v60, %v1502_v54 }
 0x207   : > { %v2588_v1 = vadd.f32 %v2557_v44, %v2556_v25  ;;  %v2394_v48 = vmul.f32 %v4593_v15, %v2358_v22 }
 0x208   : > { %v2105_v49 = vpop.f32.mrf.mxu2  ;;  %v2194_v40 = vpop.f32.mrf.mxu3 }
 0x209   : > { %v2430_v29 = vadd.f32 %v4610_v47, %v2394_v48  ;;  %v2195_v19 = vadd.f32 %v2194_v40, %v2105_v49  ;;  %v1506_v59 = vpop.f32.mrf.mxu1  ;;  %v2286_v8 = vpop.f32.mrf.mxu0  ;;  %v3394_v48 = vld [vmem:[%s3961_s14 + $0x138] sm:$0xf]  ;;  %v3402_v40 = vld [vmem:[%s3961_s14 + $0x140] sm:$0xf] }
 0x20a   : > { %v1507_v54 = vadd.f32 %v1506_v59, %v4394_v55 }
 0x20b   : > { %v2526_v33 = vadd.f32 %v3728_v41, %v2430_v29  ;;  %v2284_v50 = vadd.f32 %v2283_v26, %v2195_v19  ;;  %v3683_v29 = vld [vmem:[%s3961_s14 + $0x13c] sm:$0xf]  ;;  %v3396_v19 = vld [vmem:[%s3961_s14 + $0x144] sm:$0xf0] }
 0x20c   : > { %1545 = vmatmul.bf16.gmra.mxu1 %v4798_v39  ;;  %2325 = vmatmul.bf16.gmra.mxu0 %v3391_v45  ;;  %v3684_v45 = vld [vmem:[%s3961_s14 + $0x140] sm:$0xf0]  ;;  %v3403_v39 = vor.u32 %v3685_v0, %v3402_v40  ;;  %v3788_v0 = vld [vmem:[%s4604_s9 + $0x18] sm:$0xff]  }
 0x20d   : > { %v2558_v28 = vmax.f32 %v2526_v33, 0.0  ;;  %v2359_v60 = vadd.f32 %v2284_v50, %v1504_v9  ;;  %2147 = vmatmul.bf16.gmra.mxu2 %v3383_v10  ;;  %2236 = vmatmul.bf16.gmra.mxu3 %v3387_v3 }
 0x20f   : > { %v2589_v25 = vadd.f32 %v2588_v1, %v2558_v28  ;;  %v2395_v44 = vmul.f32 %v4593_v15, %v2359_v60  ;;  %v3787_v1 = vld [vmem:[%s4604_s9 + $0x10] sm:$0xff]  }
 0x210   : > { %v2108_v22 = vpop.f32.mrf.mxu2  ;;  %v2197_v55 = vpop.f32.mrf.mxu3  ;;  %v3732_v3 = vunpack.c.l.bf16 %v3787_v1 }
 0x211   : > { %v2431_v26 = vadd.f32 %v4610_v47, %v2395_v44  ;;  %v2198_v36 = vadd.f32 %v2197_v55, %v2108_v22  ;;  %v1508_v32 = vpop.f32.mrf.mxu1  ;;  %v2288_v30 = vpop.f32.mrf.mxu0  ;;  %v3395_v44 = vor.u32 %v3684_v45, %v3394_v48  ;;  %v3406_v45 = vld [vmem:[%s3961_s14 + $0x150] sm:$0xf] }
 0x212   : > { %v1509_v9 = vadd.f32 %v1508_v32, %v4403_v12 }
 0x213   : > { %v2527_v18 = vadd.f32 %v3729_v52, %v2431_v26  ;;  %v2287_v16 = vadd.f32 %v2286_v8, %v2198_v36  ;;  %v3399_v52 = vor.u32 %v3683_v29, %v3396_v19 }
 0x215   : > { %v2559_v41 = vmax.f32 %v2527_v18, 0.0  ;;  %v2360_v49 = vadd.f32 %v2287_v16, %v1507_v54  ;;  %v3733_v18 = vunpack.c.h.bf16 %v3787_v1  ;;  %v3688_v1 = vld [vmem:[%s3961_s14 + $0x160] sm:$0xf0] }
 0x217   : > { %v2590_v59 = vadd.f32 %v2589_v25, %v2559_v41  ;;  %v2396_v10 = vmul.f32 %v4593_v15, %v2360_v49 }
 0x218   : > { %v2110_v33 = vpop.f32.mrf.mxu2  ;;  %v2199_v50 = vpop.f32.mrf.mxu3 }
 0x219   : > { %v2432_v12 = vadd.f32 %v4610_v47, %v2396_v10  ;;  %v2200_v28 = vadd.f32 %v2199_v50, %v2110_v33  ;;  %v1511_v8 = vpop.f32.mrf.mxu1  ;;  %v2291_v60 = vpop.f32.mrf.mxu0  ;;  %v3687_v10 = vld [vmem:[%s3961_s14 + $0x158] sm:$0xf0]  ;;  %v3408_v33 = vld [vmem:[%s3961_s14 + $0x15c] sm:$0xf0] }
 0x21a   : > { %v1512_v54 = vadd.f32 %v1511_v8, %v4408_v4 }
 0x21b   : > { %v2528_v22 = vadd.f32 %v3732_v3, %v2432_v12  ;;  %v2289_v55 = vadd.f32 %v2288_v30, %v2200_v28  ;;  %v3686_v3 = vld [vmem:[%s3961_s14 + $0x154] sm:$0xf]  ;;  %v3736_v12 = vunpack.c.l.bf16 %v3788_v0 }
 0x21c   : > { %1550 = vmatmul.bf16.gmra.mxu1 %v4372_v62  ;;  %2330 = vmatmul.bf16.gmra.mxu0 %v3403_v39 }
 0x21d   : > { %v2560_v25 = vmax.f32 %v2528_v22, 0.0  ;;  %v2361_v26 = vadd.f32 %v2289_v55, %v1509_v9  ;;  %2152 = vmatmul.bf16.gmra.mxu2 %v3395_v44  ;;  %2241 = vmatmul.bf16.gmra.mxu3 %v3399_v52  ;;  %v3407_v55 = vor.u32 %v3687_v10, %v3406_v45  ;;  %v3426_v10 = vld [vmem:[%s3961_s14 + $0x170] sm:$0xf] }
 0x21f   : > { %v2591_v36 = vadd.f32 %v2590_v59, %v2560_v25  ;;  %v2397_v32 = vmul.f32 %v4593_v15, %v2361_v26  ;;  %v3414_v59 = vld [vmem:[%s3961_s14 + $0x158] sm:$0xf]  ;;  %v3411_v25 = vor.u32 %v3686_v3, %v3408_v33  ;;  %v3690_v3 = vld [vmem:[%s3961_s14 + $0x170] sm:$0xf0]  ;;  %v3689_v33 = vld [vmem:[%s3961_s14 + $0x16c] sm:$0xf] }
 0x220   : > { %v2113_v16 = vpop.f32.mrf.mxu2  ;;  %v2202_v4 = vpop.f32.mrf.mxu3  ;;  %v3415_v44 = vor.u32 %v3688_v1, %v3414_v59 }
 0x221   : > { %v2433_v62 = vadd.f32 %v4610_v47, %v2397_v32  ;;  %v2203_v30 = vadd.f32 %v2202_v4, %v2113_v16  ;;  %v1513_v48 = vpop.f32.mrf.mxu1  ;;  %v2293_v41 = vpop.f32.mrf.mxu0 }
 0x222   : > { %v1514_v9 = vadd.f32 %v1513_v48, %v4422_v35 }
 0x223   : > { %v2529_v49 = vadd.f32 %v3733_v18, %v2433_v62  ;;  %v2292_v40 = vadd.f32 %v2291_v60, %v2203_v30  ;;  %v3737_v62 = vunpack.c.h.bf16 %v3788_v0  ;;  %v3691_v0 = vld [vmem:[%s3961_s14 + $0x178] sm:$0xf0] }
 0x225   : > { %v2561_v29 = vmax.f32 %v2529_v49, 0.0  ;;  %v2362_v19 = vadd.f32 %v2292_v40, %v1512_v54 }
 0x227   : > { %v2592_v50 = vadd.f32 %v2591_v36, %v2561_v29  ;;  %v2398_v39 = vmul.f32 %v4593_v15, %v2362_v19  ;;  %v3789_v29 = vld [vmem:[%s4604_s9 + $0x20] sm:$0xff]   ;;  %v3418_v19 = vld [vmem:[%s3961_s14 + $0x168] sm:$0xf] }
 0x228   : > { %v2115_v28 = vpop.f32.mrf.mxu2  ;;  %v2204_v8 = vpop.f32.mrf.mxu3 }
 0x229   : > { %v2434_v35 = vadd.f32 %v4610_v47, %v2398_v39  ;;  %v2205_v52 = vadd.f32 %v2204_v8, %v2115_v28  ;;  %v1516_v60 = vpop.f32.mrf.mxu1  ;;  %v2296_v22 = vpop.f32.mrf.mxu0  ;;  %v3740_v28 = vunpack.c.l.bf16 %v3789_v29 }
 0x22a   : > { %v1517_v54 = vadd.f32 %v1516_v60, %v4433_v5 }
 0x22b   : > { %v2530_v26 = vadd.f32 %v3736_v12, %v2434_v35  ;;  %v2294_v32 = vadd.f32 %v2293_v41, %v2205_v52  ;;  %v3427_v35 = vor.u32 %v3691_v0, %v3426_v10  ;;  %v3693_v10 = vld [vmem:[%s3961_s14 + $0x188] sm:$0xf0]  ;;  %v3692_v0 = vld [vmem:[%s3961_s14 + $0x184] sm:$0xf] }
 0x22c   : > { %1555 = vmatmul.bf16.gmra.mxu1 %v4398_v6  ;;  %2335 = vmatmul.bf16.gmra.mxu0 %v3415_v44 }
 0x22d   : > { %v2562_v36 = vmax.f32 %v2530_v26, 0.0  ;;  %v2363_v18 = vadd.f32 %v2294_v32, %v1514_v9  ;;  %2157 = vmatmul.bf16.gmra.mxu2 %v3407_v55  ;;  %2246 = vmatmul.bf16.gmra.mxu3 %v3411_v25  ;;  %v3419_v55 = vor.u32 %v3690_v3, %v3418_v19  ;;  %v3432_v3 = vld [vmem:[%s3961_s14 + $0x18c] sm:$0xf0] }
 0x22f   : > { %v2593_v16 = vadd.f32 %v2592_v50, %v2562_v36  ;;  %v2399_v4 = vmul.f32 %v4593_v15, %v2363_v18  ;;  %v3420_v50 = vld [vmem:[%s3961_s14 + $0x174] sm:$0xf0] }
 0x230   : > { %v2118_v30 = vpop.f32.mrf.mxu2  ;;  %v2207_v5 = vpop.f32.mrf.mxu3  ;;  %v3423_v25 = vor.u32 %v3689_v33, %v3420_v50 }
 0x231   : > { %v2435_v6 = vadd.f32 %v4610_v47, %v2399_v4  ;;  %v2208_v48 = vadd.f32 %v2207_v5, %v2118_v30  ;;  %v1518_v41 = vpop.f32.mrf.mxu1  ;;  %v2298_v49 = vpop.f32.mrf.mxu0 }
 0x232   : > { %v1519_v9 = vadd.f32 %v1518_v41, %v4442_v31 }
 0x233   : > { %v2531_v40 = vadd.f32 %v3737_v62, %v2435_v6  ;;  %v2297_v45 = vadd.f32 %v2296_v22, %v2208_v48  ;;  %v3741_v62 = vunpack.c.h.bf16 %v3789_v29  ;;  %v3694_v29 = vld [vmem:[%s3961_s14 + $0x190] sm:$0xf0] }
 0x235   : > { %v2563_v59 = vmax.f32 %v2531_v40, 0.0  ;;  %v2364_v1 = vadd.f32 %v2297_v45, %v1517_v54  ;;  %v3790_v40 = vld [vmem:[%s4604_s9 + $0x28] sm:$0xff]   ;;  %v3430_v45 = vld [vmem:[%s3961_s14 + $0x180] sm:$0xf] }
 0x237   : > { %v2594_v39 = vadd.f32 %v2593_v16, %v2563_v59  ;;  %v2400_v12 = vmul.f32 %v4593_v15, %v2364_v1  ;;  %v3438_v1 = vld [vmem:[%s3961_s14 + $0x188] sm:$0xf] }
 0x238   : > { %v2120_v8 = vpop.f32.mrf.mxu2  ;;  %v2209_v44 = vpop.f32.mrf.mxu3 }
 0x239   : > { %v2436_v31 = vadd.f32 %v4610_v47, %v2400_v12  ;;  %v2210_v52 = vadd.f32 %v2209_v44, %v2120_v8  ;;  %v1521_v60 = vpop.f32.mrf.mxu1  ;;  %v2301_v22 = vpop.f32.mrf.mxu0  ;;  %v3439_v8 = vor.u32 %v3694_v29, %v3438_v1 }
 0x23a   : > { %v1522_v54 = vadd.f32 %v1521_v60, %v4447_v20  ;;  %v3435_v60 = vor.u32 %v3692_v0, %v3432_v3 }
 0x23b   : > { %v2532_v26 = vadd.f32 %v3740_v28, %v2436_v31  ;;  %v2299_v32 = vadd.f32 %v2298_v49, %v2210_v52  ;;  %v3431_v52 = vor.u32 %v3693_v10, %v3430_v45  ;;  %v3696_v45 = vld [vmem:[%s3961_s14 + $0x1a0] sm:$0xf0] }
 0x23c   : > { %1560 = vmatmul.bf16.gmra.mxu1 %v4412_v27  ;;  %2340 = vmatmul.bf16.gmra.mxu0 %v3427_v35 }
 0x23d   : > { %v2564_v36 = vmax.f32 %v2532_v26, 0.0  ;;  %v2365_v18 = vadd.f32 %v2299_v32, %v1519_v9  ;;  %2162 = vmatmul.bf16.gmra.mxu2 %v3419_v55  ;;  %2251 = vmatmul.bf16.gmra.mxu3 %v3423_v25 }
 0x23f   : > { %v2595_v16 = vadd.f32 %v2594_v39, %v2564_v36  ;;  %v2401_v4 = vmul.f32 %v4593_v15, %v2365_v18  ;;  %v3744_v39 = vunpack.c.l.bf16 %v3790_v40  ;;  %v3745_v18 = vunpack.c.h.bf16 %v3790_v40  ;;  %v3697_v40 = vld [vmem:[%s3961_s14 + $0x1a8] sm:$0xf0] }
 0x240   : > { %v2123_v30 = vpop.f32.mrf.mxu2  ;;  %v2212_v20 = vpop.f32.mrf.mxu3 }
 0x241   : > { %v2437_v27 = vadd.f32 %v4610_v47, %v2401_v4  ;;  %v2213_v5 = vadd.f32 %v2212_v20, %v2123_v30  ;;  %v1523_v6 = vpop.f32.mrf.mxu1  ;;  %v2303_v48 = vpop.f32.mrf.mxu0 }
 0x242   : > { %v1524_v41 = vadd.f32 %v1523_v6, %v4456_v51  ;;  %v3791_v6 = vld [vmem:[%s4604_s9 + $0x30] sm:$0xff]  }
 0x243   : > { %v2533_v49 = vadd.f32 %v3741_v62, %v2437_v27  ;;  %v2302_v9 = vadd.f32 %v2301_v22, %v2213_v5  ;;  %v3748_v10 = vunpack.c.l.bf16 %v3791_v6 }
 0x245   : > { %v2565_v19 = vmax.f32 %v2533_v49, 0.0  ;;  %v2366_v59 = vadd.f32 %v2302_v9, %v1522_v54  ;;  %v3450_v9 = vld [vmem:[%s3961_s14 + $0x1a0] sm:$0xf] }
 0x247   : > { %v2596_v33 = vadd.f32 %v2595_v16, %v2565_v19  ;;  %v2402_v50 = vmul.f32 %v4593_v15, %v2366_v59  ;;  %v3695_v19 = vld [vmem:[%s3961_s14 + $0x19c] sm:$0xf]  ;;  %v3444_v59 = vld [vmem:[%s3961_s14 + $0x1a4] sm:$0xf0] }
 0x248   : > { %v2125_v12 = vpop.f32.mrf.mxu2  ;;  %v2214_v28 = vpop.f32.mrf.mxu3 }
 0x249   : > { %v2438_v51 = vadd.f32 %v4610_v47, %v2402_v50  ;;  %v2215_v44 = vadd.f32 %v2214_v28, %v2125_v12  ;;  %v1526_v35 = vpop.f32.mrf.mxu1  ;;  %v2306_v31 = vpop.f32.mrf.mxu0 }
 0x24a   : > { %v1527_v22 = vadd.f32 %v1526_v35, %v4461_v24 }
 0x24b   : > { %v2534_v55 = vadd.f32 %v3744_v39, %v2438_v51  ;;  %v2304_v25 = vadd.f32 %v2303_v48, %v2215_v44  ;;  %v3442_v48 = vld [vmem:[%s3961_s14 + $0x198] sm:$0xf] }
 0x24c   : > { %1565 = vmatmul.bf16.gmra.mxu1 %v4438_v46  ;;  %2345 = vmatmul.bf16.gmra.mxu0 %v3439_v8  ;;  %v3443_v28 = vor.u32 %v3696_v45, %v3442_v48  ;;  %v3447_v8 = vor.u32 %v3695_v19, %v3444_v59 }
 0x24d   : > { %v2566_v54 = vmax.f32 %v2534_v55, 0.0  ;;  %v2367_v26 = vadd.f32 %v2304_v25, %v1524_v41  ;;  %2167 = vmatmul.bf16.gmra.mxu2 %v3431_v52  ;;  %2256 = vmatmul.bf16.gmra.mxu3 %v3435_v60  ;;  %v3749_v25 = vunpack.c.h.bf16 %v3791_v6 }
 0x24f   : > { %v2597_v32 = vadd.f32 %v2596_v33, %v2566_v54  ;;  %v2403_v36 = vmul.f32 %v4593_v15, %v2367_v26  ;;  %v3451_v33 = vor.u32 %v3697_v40, %v3450_v9 }
 0x250   : > { %v2128_v16 = vpop.f32.mrf.mxu2  ;;  %v2217_v24 = vpop.f32.mrf.mxu3 }
 0x251   : > { %v2439_v46 = vadd.f32 %v4610_v47, %v2403_v36  ;;  %v2218_v4 = vadd.f32 %v2217_v24, %v2128_v16  ;;  %v1528_v62 = vpop.f32.mrf.mxu1  ;;  %v2308_v30 = vpop.f32.mrf.mxu0 }
 0x252   : > { %v1529_v20 = vadd.f32 %v1528_v62, %v4467_v2 }
 0x253   : > { %v2535_v27 = vadd.f32 %v3745_v18, %v2439_v46  ;;  %v2307_v5 = vadd.f32 %v2306_v31, %v2218_v4  ;;  %v4799_v31 = vld [vmem:[#allocation7_spill] sm:$0xff]  ;;  %v3792_v4 = vld [vmem:[%s4604_s9 + $0x38] sm:$0xff]  }
 0x255   : > { %v2567_v41 = vmax.f32 %v2535_v27, 0.0  ;;  %v2368_v49 = vadd.f32 %v2307_v5, %v1527_v22  ;;  %v3752_v5 = vunpack.c.l.bf16 %v3792_v4 }
 0x257   : > { %v2598_v1 = vadd.f32 %v2597_v32, %v2567_v41  ;;  %v2404_v29 = vmul.f32 %v4593_v15, %v2368_v49 }
 0x258   : > { %v2130_v0 = vpop.f32.mrf.mxu2  ;;  %v2219_v3 = vpop.f32.mrf.mxu3 }
 0x259   : > { %v2440_v2 = vadd.f32 %v4610_v47, %v2404_v29  ;;  %v2220_v50 = vadd.f32 %v2219_v3, %v2130_v0  ;;  %v1531_v39 = vpop.f32.mrf.mxu1  ;;  %v2311_v12 = vpop.f32.mrf.mxu0  ;;  %v3753_v0 = vunpack.c.h.bf16 %v3792_v4 }
 0x25a   : > { %v1532_v51 = vadd.f32 %v1531_v39, %v4475_v21 }
 0x25b   : > { %v2536_v44 = vadd.f32 %v3748_v10, %v2440_v2  ;;  %v2309_v35 = vadd.f32 %v2308_v30, %v2220_v50 }
 0x25c   : > { %1570 = vmatmul.bf16.gmra.mxu1 %v4799_v31  ;;  %2350 = vmatmul.bf16.gmra.mxu0 %v3451_v33 }
 0x25d   : > { %v2568_v52 = vmax.f32 %v2536_v44, 0.0  ;;  %v2369_v60 = vadd.f32 %v2309_v35, %v1529_v20  ;;  %2172 = vmatmul.bf16.gmra.mxu2 %v3443_v28  ;;  %2261 = vmatmul.bf16.gmra.mxu3 %v3447_v8 }
 0x25f   : > { %v2599_v22 = vadd.f32 %v2598_v1, %v2568_v52  ;;  %v2405_v55 = vmul.f32 %v4593_v15, %v2369_v60 }
 0x260   : > { %v2133_v54 = vpop.f32.mrf.mxu2  ;;  %v2222_v26 = vpop.f32.mrf.mxu3 }
 0x261   : > { %v2441_v32 = vadd.f32 %v4610_v47, %v2405_v55  ;;  %v2223_v36 = vadd.f32 %v2222_v26, %v2133_v54  ;;  %v1533_v21 = vpop.f32.mrf.mxu1  ;;  %v2313_v18 = vpop.f32.mrf.mxu0 }
 0x262   : > { %v1534_v16 = vadd.f32 %v1533_v21, %v4481_v34 }
 0x263   : > { %v2537_v24 = vadd.f32 %v3749_v25, %v2441_v32  ;;  %v2312_v46 = vadd.f32 %v2311_v12, %v2223_v36 }
 0x265   : > { %v2569_v62 = vmax.f32 %v2537_v24, 0.0  ;;  %v2370_v30 = vadd.f32 %v2312_v46, %v1532_v51  ;;  %v3793_v51 = vld [vmem:[%s4604_s9 + $0x40] sm:$0xff]  }
 0x266   : > { %v3756_v60 = vunpack.c.l.bf16 %v3793_v51  ;;  %v3757_v4 = vunpack.c.h.bf16 %v3793_v51 }
 0x267   : > { %v2600_v20 = vadd.f32 %v2599_v22, %v2569_v62  ;;  %v2406_v27 = vmul.f32 %v4593_v15, %v2370_v30 }
 0x268   : > { %v2135_v48 = vpop.f32.mrf.mxu2  ;;  %v2224_v6 = vpop.f32.mrf.mxu3 }
 0x269   : > { %v2442_v41 = vadd.f32 %v4610_v47, %v2406_v27  ;;  %v2225_v49 = vadd.f32 %v2224_v6, %v2135_v48  ;;  %v1536_v9 = vpop.f32.mrf.mxu1  ;;  %v2316_v40 = vpop.f32.mrf.mxu0 }
 0x26a   : > { %v1537_v45 = vadd.f32 %v1536_v9, %v4487_v17 }
 0x26b   : > { %v2538_v19 = vadd.f32 %v3752_v5, %v2442_v41  ;;  %v2314_v34 = vadd.f32 %v2313_v18, %v2225_v49  ;;  %v3794_v49 = vld [vmem:[%s4604_s9 + $0x48] sm:$0xff]  }
 0x26d   : > { %v2570_v59 = vmax.f32 %v2538_v19, 0.0  ;;  %v2371_v1 = vadd.f32 %v2314_v34, %v1534_v16  ;;  %v3760_v34 = vunpack.c.l.bf16 %v3794_v49 }
 0x26f   : > { %v2601_v29 = vadd.f32 %v2600_v20, %v2570_v59  ;;  %v2407_v10 = vmul.f32 %v4593_v15, %v2371_v1 }
 0x270   : > { %v2138_v3 = vpop.f32.mrf.mxu2  ;;  %v2227_v33 = vpop.f32.mrf.mxu3 }
 0x271   : > { %v2443_v2 = vadd.f32 %v4610_v47, %v2407_v10  ;;  %v2228_v50 = vadd.f32 %v2227_v33, %v2138_v3  ;;  %v1538_v39 = vpop.f32.mrf.mxu1  ;;  %v2318_v12 = vpop.f32.mrf.mxu0 }
 0x272   : > { %v1539_v28 = vadd.f32 %v1538_v39, %v4494_v37 }
 0x273   : > { %v2539_v8 = vadd.f32 %v3753_v0, %v2443_v2  ;;  %v2317_v17 = vadd.f32 %v2316_v40, %v2228_v50 }
 0x275   : > { %v2571_v44 = vmax.f32 %v2539_v8, 0.0  ;;  %v2372_v35 = vadd.f32 %v2317_v17, %v1537_v45  ;;  %v3761_v8 = vunpack.c.h.bf16 %v3794_v49 }
 0x277   : > { %v2602_v31 = vadd.f32 %v2601_v29, %v2571_v44  ;;  %v2408_v52 = vmul.f32 %v4593_v15, %v2372_v35 }
 0x278   : > { %v2140_v22 = vpop.f32.mrf.mxu2  ;;  %v2229_v55 = vpop.f32.mrf.mxu3 }
 0x279   : > { %v2444_v25 = vadd.f32 %v4610_v47, %v2408_v52  ;;  %v2230_v54 = vadd.f32 %v2229_v55, %v2140_v22  ;;  %v1541_v26 = vpop.f32.mrf.mxu1  ;;  %v2321_v32 = vpop.f32.mrf.mxu0  ;;  %v3795_v55 = vld [vmem:[%s4604_s9 + $0x50] sm:$0xff]  }
 0x27a   : > { %v1542_v36 = vadd.f32 %v1541_v26, %v4500_v42 }
 0x27b   : > { %v2540_v21 = vadd.f32 %v3756_v60, %v2444_v25  ;;  %v2319_v37 = vadd.f32 %v2318_v12, %v2230_v54 }
 0x27d   : > { %v2572_v18 = vmax.f32 %v2540_v21, 0.0  ;;  %v2373_v16 = vadd.f32 %v2319_v37, %v1539_v28 }
 0x27f   : > { %v2603_v24 = vadd.f32 %v2602_v31, %v2572_v18  ;;  %v2409_v46 = vmul.f32 %v4593_v15, %v2373_v16 }
 0x280   : > { %v2143_v62 = vpop.f32.mrf.mxu2  ;;  %v2232_v30 = vpop.f32.mrf.mxu3 }
 0x281   : > { %v2445_v20 = vadd.f32 %v4610_v47, %v2409_v46  ;;  %v2233_v27 = vadd.f32 %v2232_v30, %v2143_v62  ;;  %v1543_v5 = vpop.f32.mrf.mxu1  ;;  %v2323_v48 = vpop.f32.mrf.mxu0 }
 0x282   : > { %v1544_v6 = vadd.f32 %v1543_v5, %v4507_v56 }
 0x283   : > { %v2541_v41 = vadd.f32 %v3757_v4, %v2445_v20  ;;  %v2322_v42 = vadd.f32 %v2321_v32, %v2233_v27  ;;  %v3764_v32 = vunpack.c.l.bf16 %v3795_v55 }
 0x285   : > { %v2573_v9 = vmax.f32 %v2541_v41, 0.0  ;;  %v2374_v40 = vadd.f32 %v2322_v42, %v1542_v36 }
 0x287   : > { %v2604_v45 = vadd.f32 %v2603_v24, %v2573_v9  ;;  %v2410_v19 = vmul.f32 %v4593_v15, %v2374_v40 }
 0x288   : > { %v2145_v59 = vpop.f32.mrf.mxu2  ;;  %v2234_v1 = vpop.f32.mrf.mxu3 }
 0x289   : > { %v2446_v29 = vadd.f32 %v4610_v47, %v2410_v19  ;;  %v2235_v10 = vadd.f32 %v2234_v1, %v2145_v59  ;;  %v1546_v0 = vpop.f32.mrf.mxu1  ;;  %v2326_v3 = vpop.f32.mrf.mxu0 }
 0x28a   : > { %v1547_v33 = vadd.f32 %v1546_v0, %v4513_v57 }
 0x28b   : > { %v2542_v56 = vadd.f32 %v3760_v34, %v2446_v29  ;;  %v2324_v2 = vadd.f32 %v2323_v48, %v2235_v10  ;;  %v3765_v48 = vunpack.c.h.bf16 %v3795_v55 }
 0x28d   : > { %v2574_v50 = vmax.f32 %v2542_v56, 0.0  ;;  %v2375_v39 = vadd.f32 %v2324_v2, %v1544_v6 }
 0x28f   : > { %v2605_v12 = vadd.f32 %v2604_v45, %v2574_v50  ;;  %v2411_v28 = vmul.f32 %v4593_v15, %v2375_v39 }
 0x290   : > { %v2148_v17 = vpop.f32.mrf.mxu2  ;;  %v2237_v51 = vpop.f32.mrf.mxu3 }
 0x291   : > { %v2447_v44 = vadd.f32 %v4610_v47, %v2411_v28  ;;  %v2238_v35 = vadd.f32 %v2237_v51, %v2148_v17  ;;  %v1548_v31 = vpop.f32.mrf.mxu1  ;;  %v2328_v52 = vpop.f32.mrf.mxu0 }
 0x292   : > { %v1549_v4 = vadd.f32 %v1548_v31, %v4520_v13  ;;  %v3796_v13 = vld [vmem:[%s4604_s9 + $0x58] sm:$0xff]  }
 0x293   : > { %v2543_v60 = vadd.f32 %v3761_v8, %v2447_v44  ;;  %v2327_v22 = vadd.f32 %v2326_v3, %v2238_v35  ;;  %v3768_v0 = vunpack.c.l.bf16 %v3796_v13  ;;  %v3769_v35 = vunpack.c.h.bf16 %v3796_v13 }
 0x295   : > { %v2575_v57 = vmax.f32 %v2543_v60, 0.0  ;;  %v2376_v25 = vadd.f32 %v2327_v22, %v1547_v33 }
 0x297   : > { %v2606_v54 = vadd.f32 %v2605_v12, %v2575_v57  ;;  %v2412_v26 = vmul.f32 %v4593_v15, %v2376_v25 }
 0x298   : > { %v2150_v36 = vpop.f32.mrf.mxu2  ;;  %v2239_v21 = vpop.f32.mrf.mxu3 }
 0x299   : > { %v2448_v37 = vadd.f32 %v4610_v47, %v2412_v26  ;;  %v2240_v18 = vadd.f32 %v2239_v21, %v2150_v36  ;;  %v1551_v16 = vpop.f32.mrf.mxu1  ;;  %v2331_v24 = vpop.f32.mrf.mxu0 }
 0x29a   : > { %v1552_v19 = vadd.f32 %v1551_v16, %v4526_v63 }
 0x29b   : > { %v2544_v46 = vadd.f32 %v3764_v32, %v2448_v37  ;;  %v2329_v62 = vadd.f32 %v2328_v52, %v2240_v18 }
 0x29d   : > { %v2576_v30 = vmax.f32 %v2544_v46, 0.0  ;;  %v2377_v20 = vadd.f32 %v2329_v62, %v1549_v4 }
 0x29f   : > { %v2607_v27 = vadd.f32 %v2606_v54, %v2576_v30  ;;  %v2413_v5 = vmul.f32 %v4593_v15, %v2377_v20 }
 0x2a0   : > { %v2153_v6 = vpop.f32.mrf.mxu2  ;;  %v2242_v41 = vpop.f32.mrf.mxu3 }
 0x2a1   : > { %v2449_v42 = vadd.f32 %v4610_v47, %v2413_v5  ;;  %v2243_v49 = vadd.f32 %v2242_v41, %v2153_v6  ;;  %v1553_v9 = vpop.f32.mrf.mxu1  ;;  %v2333_v40 = vpop.f32.mrf.mxu0 }
 0x2a2   : > { %v1554_v28 = vadd.f32 %v1553_v9, %v4533_v53  ;;  %v3797_v53 = vld [vmem:[%s4604_s9 + $0x60] sm:$0xff]  }
 0x2a3   : > { %v2545_v45 = vadd.f32 %v3765_v48, %v2449_v42  ;;  %v2332_v34 = vadd.f32 %v2331_v24, %v2243_v49  ;;  %v3772_v18 = vunpack.c.l.bf16 %v3797_v53  ;;  %v3773_v42 = vunpack.c.h.bf16 %v3797_v53 }
 0x2a5   : > { %v2577_v59 = vmax.f32 %v2545_v45, 0.0  ;;  %v2378_v1 = vadd.f32 %v2332_v34, %v1552_v19 }
 0x2a7   : > { %v2608_v29 = vadd.f32 %v2607_v27, %v2577_v59  ;;  %v2414_v10 = vmul.f32 %v4593_v15, %v2378_v1 }
 0x2a8   : > { %v2155_v3 = vpop.f32.mrf.mxu2  ;;  %v2244_v33 = vpop.f32.mrf.mxu3 }
 0x2a9   : > { %v2450_v56 = vadd.f32 %v4610_v47, %v2414_v10  ;;  %v2245_v2 = vadd.f32 %v2244_v33, %v2155_v3  ;;  %v1556_v50 = vpop.f32.mrf.mxu1  ;;  %v2336_v39 = vpop.f32.mrf.mxu0 }
 0x2aa   : > { %v1557_v54 = vadd.f32 %v1556_v50, %v4539_v7 }
 0x2ab   : > { %v2546_v12 = vadd.f32 %v3768_v0, %v2450_v56  ;;  %v2334_v63 = vadd.f32 %v2333_v40, %v2245_v2 }
 0x2ad   : > { %v2578_v8 = vmax.f32 %v2546_v12, 0.0  ;;  %v2379_v17 = vadd.f32 %v2334_v63, %v1554_v28 }
 0x2af   : > { %v2609_v51 = vadd.f32 %v2608_v29, %v2578_v8  ;;  %v2415_v44 = vmul.f32 %v4593_v15, %v2379_v17 }
 0x2b0   : > { %v2158_v31 = vpop.f32.mrf.mxu2  ;;  %v2247_v52 = vpop.f32.mrf.mxu3 }
 0x2b1   : > { %v2451_v60 = vadd.f32 %v4610_v47, %v2415_v44  ;;  %v2248_v22 = vadd.f32 %v2247_v52, %v2158_v31  ;;  %v1558_v55 = vpop.f32.mrf.mxu1  ;;  %v2338_v57 = vpop.f32.mrf.mxu0 }
 0x2b2   : > { %v1559_v27 = vadd.f32 %v1558_v55, %v4546_v38  ;;  %v3798_v38 = vld [vmem:[%s4604_s9 + $0x68] sm:$0xff]  }
 0x2b3   : > { %v2547_v25 = vadd.f32 %v3769_v35, %v2451_v60  ;;  %v2337_v26 = vadd.f32 %v2336_v39, %v2248_v22  ;;  %v3776_v33 = vunpack.c.l.bf16 %v3798_v38  ;;  %v3777_v31 = vunpack.c.h.bf16 %v3798_v38 }
 0x2b5   : > { %v2579_v32 = vmax.f32 %v2547_v25, 0.0  ;;  %v2380_v36 = vadd.f32 %v2337_v26, %v1557_v54 }
 0x2b7   : > { %v2610_v21 = vadd.f32 %v2609_v51, %v2579_v32  ;;  %v2416_v37 = vmul.f32 %v4593_v15, %v2380_v36 }
 0x2b8   : > { %v2160_v16 = vpop.f32.mrf.mxu2  ;;  %v2249_v24 = vpop.f32.mrf.mxu3 }
 0x2b9   : > { %v2452_v46 = vadd.f32 %v4610_v47, %v2416_v37  ;;  %v2250_v4 = vadd.f32 %v2249_v24, %v2160_v16  ;;  %v1561_v62 = vpop.f32.mrf.mxu1  ;;  %v2341_v30 = vpop.f32.mrf.mxu0 }
 0x2ba   : > { %v1562_v59 = vadd.f32 %v1561_v62, %v4552_v23 }
 0x2bb   : > { %v2548_v20 = vadd.f32 %v3772_v18, %v2452_v46  ;;  %v2339_v7 = vadd.f32 %v2338_v57, %v2250_v4 }
 0x2bd   : > { %v2580_v5 = vmax.f32 %v2548_v20, 0.0  ;;  %v2381_v48 = vadd.f32 %v2339_v7, %v1559_v27 }
 0x2bf   : > { %v2611_v6 = vadd.f32 %v2610_v21, %v2580_v5  ;;  %v2417_v41 = vmul.f32 %v4593_v15, %v2381_v48  ;;  %v3855_v48 = vld [vmem:[%s4780_s2] ss:$0 sm:$0xff] }
 0x2c0   : > { %v2163_v49 = vpop.f32.mrf.mxu2  ;;  %v2252_v9 = vpop.f32.mrf.mxu3 }
 0x2c1   : > { %v2453_v40 = vadd.f32 %v4610_v47, %v2417_v41  ;;  %v2253_v45 = vadd.f32 %v2252_v9, %v2163_v49  ;;  %v1563_v19 = vpop.f32.mrf.mxu1  ;;  %v2343_v34 = vpop.f32.mrf.mxu0 }
 0x2c2   : > { %v1564_v63 = vadd.f32 %v1563_v19, %v4559_v58  ;;  %v3799_v58 = vld [vmem:[%s4604_s9 + $0x70] sm:$0xff]  }
 0x2c3   : > { %v2549_v13 = vadd.f32 %v3773_v42, %v2453_v40  ;;  %v2342_v1 = vadd.f32 %v2341_v30, %v2253_v45  ;;  %v3780_v18 = vunpack.c.l.bf16 %v3799_v58 }
 0x2c5   : > { %v2581_v29 = vmax.f32 %v2549_v13, 0.0  ;;  %v2382_v10 = vadd.f32 %v2342_v1, %v1562_v59 }
 0x2c7   : > { %v2612_v0 = vadd.f32 %v2611_v6, %v2581_v29  ;;  %v2418_v3 = vmul.f32 %v4593_v15, %v2382_v10  ;;  %v3781_v6 = vunpack.c.h.bf16 %v3799_v58 }
 0x2c8   : > { %v2165_v56 = vpop.f32.mrf.mxu2  ;;  %v2254_v2 = vpop.f32.mrf.mxu3 }
 0x2c9   : > { %v2454_v50 = vadd.f32 %v4610_v47, %v2418_v3  ;;  %v2255_v39 = vadd.f32 %v2254_v2, %v2165_v56  ;;  %v1566_v12 = vpop.f32.mrf.mxu1  ;;  %v2346_v23 = vpop.f32.mrf.mxu0  ;;  %v3881_v2 = vmov 256.0  }
 0x2ca   : > { %v1567_v25 = vadd.f32 %v1566_v12, %v4565_v43  ;;  %3853 = vrcp.f32 %v3881_v2 }
 0x2cb   : > { %v2550_v28 = vadd.f32 %v3776_v33, %v2454_v50  ;;  %v2344_v8 = vadd.f32 %v2343_v34, %v2255_v39  ;;  %v3800_v34 = vld [vmem:[%s4604_s9 + $0x78] sm:$0xff]   ;;  %v3856_v33 = vld [vmem:[%s4781_s3] ss:$0 sm:$0xff] }
 0x2cc   : > { %v3784_v29 = vunpack.c.l.bf16 %v3800_v34 }
 0x2cd   : > { %v2582_v17 = vmax.f32 %v2550_v28, 0.0  ;;  %v2383_v51 = vadd.f32 %v2344_v8, %v1564_v63 }
 0x2cf   : > { %v2613_v44 = vadd.f32 %v2612_v0, %v2582_v17  ;;  %v2419_v35 = vmul.f32 %v4593_v15, %v2383_v51  ;;  %v3785_v51 = vunpack.c.h.bf16 %v3800_v34 }
 0x2d0   : > { %v2168_v52 = vpop.f32.mrf.mxu2  ;;  %v2257_v60 = vpop.f32.mrf.mxu3 }
 0x2d1   : > { %v2455_v22 = vadd.f32 %v4610_v47, %v2419_v35  ;;  %v2258_v55 = vadd.f32 %v2257_v60, %v2168_v52  ;;  %v1568_v26 = vpop.f32.mrf.mxu1  ;;  %v2348_v36 = vpop.f32.mrf.mxu0 }
 0x2d2   : > { %v1569_v30 = vadd.f32 %v1568_v26, %v4572_v14  ;;  %v3854_v8 = vpop.eup %3853 }
 0x2d3   : > { %v2551_v57 = vadd.f32 %v3777_v31, %v2455_v22  ;;  %v2347_v54 = vadd.f32 %v2346_v23, %v2258_v55  ;;  %v2626_v35 = vmul.f32 256.0, %v3854_v8  ;;  %vm2630_vm0 = vweird.f32 %v3854_v8 }
 0x2d5   : > { %v2583_v53 = vmax.f32 %v2551_v57, 0.0  ;;  %v2384_v32 = vadd.f32 %v2347_v54, %v1567_v25  ;;  %v2627_v60 = vsub.f32 1.0, %v2626_v35 }
 0x2d7   : > { %v2614_v21 = vadd.f32 %v2613_v44, %v2583_v53  ;;  %v2420_v37 = vmul.f32 %v4593_v15, %v2384_v32  ;;  %v2628_v57 = vmul.f32 %v3854_v8, %v2627_v60 }
 0x2d8   : > { %v2170_v16 = vpop.f32.mrf.mxu2  ;;  %v2259_v24 = vpop.f32.mrf.mxu3 }
 0x2d9   : > { %v2456_v46 = vadd.f32 %v4610_v47, %v2420_v37  ;;  %v2260_v4 = vadd.f32 %v2259_v24, %v2170_v16  ;;  %v1571_v7 = vpop.f32.mrf.mxu1  ;;  %v2351_v41 = vpop.f32.mrf.mxu0  ;;  %v2629_v26 = vadd.f32 %v3854_v8, %v2628_v57 }
 0x2da   : > { %v1572_v14 = vadd.f32 %v1571_v7, %v4578_v61 }
 0x2db   : > { %v2552_v62 = vadd.f32 %v3780_v18, %v2456_v46  ;;  %v2349_v20 = vadd.f32 %v2348_v36, %v2260_v4  ;;  %v2631_v53 = vsel %vm2630_vm0, %v3854_v8, %v2629_v26 }
 0x2dd   : > { %v2584_v43 = vmax.f32 %v2552_v62, 0.0  ;;  %v2385_v27 = vadd.f32 %v2349_v20, %v1569_v30 }
 0x2df   : > { %v2615_v5 = vadd.f32 %v2614_v21, %v2584_v43  ;;  %v2421_v15 = vmul.f32 %v3855_v48, %v2385_v27 }
 0x2e0   : > { %v2173_v42 = vpop.f32.mrf.mxu2  ;;  %v2262_v49 = vpop.f32.mrf.mxu3 }
 0x2e1   : > { %v2457_v9 = vadd.f32 %v4610_v47, %v2421_v15  ;;  %v2263_v40 = vadd.f32 %v2262_v49, %v2173_v42  ;;  %v1573_v10 = vpop.f32.mrf.mxu1  ;;  %v2353_v50 = vpop.f32.mrf.mxu0 }
 0x2e2   : > { %v1574_v39 = vadd.f32 %v1573_v10, %v4586_v11 }
 0x2e3   : > { %v2553_v45 = vadd.f32 %v3781_v6, %v2457_v9  ;;  %v2352_v19 = vadd.f32 %v2351_v41, %v2263_v40 }
 0x2e5   : > { %v2585_v13 = vmax.f32 %v2553_v45, 0.0  ;;  %v2386_v59 = vadd.f32 %v2352_v19, %v1572_v14 }
 0x2e7   : > { %v2616_v1 = vadd.f32 %v2615_v5, %v2585_v13  ;;  %v2422_v38 = vmul.f32 %v3855_v48, %v2386_v59 }
 0x2e8   : > { %v2175_v0 = vpop.f32.mrf.mxu2  ;;  %v2264_v3 = vpop.f32.mrf.mxu3 }
 0x2e9   : > { %v2458_v56 = vadd.f32 %v3856_v33, %v2422_v38  ;;  %v2265_v47 = vadd.f32 %v2264_v3, %v2175_v0 }
 0x2eb   : > { %v2554_v61 = vadd.f32 %v3784_v29, %v2458_v56  ;;  %v2354_v12 = vadd.f32 %v2353_v50, %v2265_v47 }
 0x2ed   : > { %v2586_v28 = vmax.f32 %v2554_v61, 0.0  ;;  %v2387_v63 = vadd.f32 %v2354_v12, %v1574_v39 }
 0x2ef   : > { %v2617_v23 = vadd.f32 %v2616_v1, %v2586_v28  ;;  %v2423_v17 = vmul.f32 %v3855_v48, %v2387_v63 }
 0x2f1   : > { %v2459_v44 = vadd.f32 %v3856_v33, %v2423_v17 }
 0x2f3   : > { %v2555_v31 = vadd.f32 %v3785_v51, %v2459_v44 }
 0x2f5   : > { %v2587_v52 = vmax.f32 %v2555_v31, 0.0 }
 0x2f7   : > { %v2618_v22 = vadd.f32 %v2617_v23, %v2587_v52 }
 0x2f9   : > { %v2619_v55 = vrot.slane %v2618_v22, 4 }
 0x2fb   : > { %v2620_v25 = vadd.f32 %v2619_v55, %v2618_v22 }
 0x2fd   : > { %v2621_v54 = vrot.slane %v2620_v25, 2 }
 0x2ff   : > { %v2622_v11 = vadd.f32 %v2621_v54, %v2620_v25 }
 0x301   : > { %v2623_v58 = vrot.slane %v2622_v11, 1 }
 0x303   : > { %v2624_v32 = vadd.f32 %v2623_v58, %v2622_v11 }
 0x305   : > { %v2632_v36 = vmul.f32 %v2631_v53, %v2624_v32 }
 0x307   : > { %2633 = vst [vmem:[%s316_s22] sm:$0x1] %v2632_v36 }
 0x308 PF: > { %s15_s20 = sadd.s32 1, %s3879_s20   ;;  %s4800_s18 = smov %s3875_s19 }
 0x309   : > { %p12_p5 = scmp.ge.s32.totalorder %s15_s20, 4   ;;  %s4801_s19 = smov %s4803_s21 }
 0x30b   :  { %14 = sbr.rel (!%p12_p5) target bundleno = 2 (0x2), region = 84 }

// kernel: vitaa_forward.15
= control target key start
LH: loop header
LB: loop body
LE: loop exit
PB: predicated region body
PF: predicated region fallthrough
CT: control target
= control target key end

     0   :  { %vm24_vm0 = vcmask 125952   ;;  %s143_s0 = inlined_call_operand.vmem [shape: f32[8,2,4,16], index: 0, kind: input, shape index: {}]   ;;  %s144_s1 = inlined_call_operand.vmem [shape: f32[2,4,16], index: 1, kind: output, shape index: {}]  }
   0x1   :  { %v8_v0 = vld [vmem:[%s143_s0] sm:$0xf]  ;;  %v10_v1 = vld [vmem:[%s143_s0 + $0x8] sm:$0xf]  ;;  %v12_v2 = vld [vmem:[%s143_s0 + $0x10] sm:$0xf] }
   0x2   :  { %v14_v3 = vld [vmem:[%s143_s0 + $0x18] sm:$0xf]  ;;  %v16_v4 = vld [vmem:[%s143_s0 + $0x20] sm:$0xf]  ;;  %v18_v5 = vld [vmem:[%s143_s0 + $0x28] sm:$0xf] }
   0x3   :  { %v20_v6 = vld [vmem:[%s143_s0 + $0x30] sm:$0xf]  ;;  %v22_v7 = vld [vmem:[%s143_s0 + $0x38] sm:$0xf]  ;;  %v25_v8 = vsel %vm24_vm0, %v8_v0, -inf  ;;  %v26_v9 = vsel %vm24_vm0, %v10_v1, -inf }
   0x4   :  { %v27_v10 = vsel %vm24_vm0, %v12_v2, -inf  ;;  %v29_v11 = vsel %vm24_vm0, %v14_v3, -inf  ;;  %v31_v12 = vsel %vm24_vm0, %v16_v4, -inf  ;;  %v33_v13 = vsel %vm24_vm0, %v18_v5, -inf  ;;  %v9_v14 = vld [vmem:[%s143_s0 + $0x4] sm:$0xf] }
   0x5   :  { %v28_v15 = vmax.f32 %v25_v8, %v27_v10  ;;  %v30_v16 = vmax.f32 %v26_v9, %v29_v11  ;;  %v35_v17 = vsel %vm24_vm0, %v20_v6, -inf  ;;  %v37_v18 = vsel %vm24_vm0, %v22_v7, -inf  ;;  %v11_v19 = vld [vmem:[%s143_s0 + $0xc] sm:$0xf]  ;;  %v13_v20 = vld [vmem:[%s143_s0 + $0x14] sm:$0xf] }
   0x6   :  { %v15_v21 = vld [vmem:[%s143_s0 + $0x1c] sm:$0xf]  ;;  %v17_v22 = vld [vmem:[%s143_s0 + $0x24] sm:$0xf]  ;;  %v19_v23 = vld [vmem:[%s143_s0 + $0x2c] sm:$0xf] }
   0x7   :  { %v32_v24 = vmax.f32 %v28_v15, %v31_v12  ;;  %v34_v25 = vmax.f32 %v30_v16, %v33_v13  ;;  %v21_v26 = vld [vmem:[%s143_s0 + $0x34] sm:$0xf]  ;;  %v23_v27 = vld [vmem:[%s143_s0 + $0x3c] sm:$0xf]  ;;  %v40_v28 = vsel %vm24_vm0, %v9_v14, -inf  ;;  %v41_v29 = vsel %vm24_vm0, %v11_v19, -inf }
   0x8   :  { %v42_v30 = vsel %vm24_vm0, %v13_v20, -inf  ;;  %v44_v31 = vsel %vm24_vm0, %v15_v21, -inf  ;;  %v46_v32 = vsel %vm24_vm0, %v17_v22, -inf  ;;  %v48_v33 = vsel %vm24_vm0, %v19_v23, -inf }
   0x9   :  { %v36_v34 = vmax.f32 %v32_v24, %v35_v17  ;;  %v38_v35 = vmax.f32 %v34_v25, %v37_v18  ;;  %v43_v36 = vmax.f32 %v40_v28, %v42_v30  ;;  %v45_v37 = vmax.f32 %v41_v29, %v44_v31 }
   0xa   :  { %v50_v38 = vsel %vm24_vm0, %v21_v26, -inf  ;;  %v52_v39 = vsel %vm24_vm0, %v23_v27, -inf }
   0xb   :  { %v39_v40 = vmax.f32 %v36_v34, %v38_v35  ;;  %v47_v41 = vmax.f32 %v43_v36, %v46_v32  ;;  %v49_v42 = vmax.f32 %v45_v37, %v48_v33 }
   0xd   :  { %55 = vst.msk [vmem:[%s144_s1] sm:$0xf] %vm24_vm0, %v39_v40  ;;  %v51_v43 = vmax.f32 %v47_v41, %v50_v38  ;;  %v53_v44 = vmax.f32 %v49_v42, %v52_v39 }
   0xf   :  { %v54_v45 = vmax.f32 %v51_v43, %v53_v44 }
  0x11   :  { %56 = vst.msk [vmem:[%s144_s1 + $0x4] sm:$0xf] %vm24_vm0, %v54_v45 }

// kernel: vitaa_forward.13
= control target key start
LH: loop header
LB: loop body
LE: loop exit
PB: predicated region body
PF: predicated region fallthrough
CT: control target
= control target key end

     0   :  { %s300_s1 = inlined_call_operand.vmem [shape: bf16[128,128], index: 1, kind: input, shape index: {}]   ;;  %s301_s2 = inlined_call_operand.vmem [shape: f32[1,128], index: 2, kind: input, shape index: {}]   ;;  %s302_s3 = inlined_call_operand.vmem [shape: f32[1,128], index: 3, kind: input, shape index: {}]   ;;  %s303_s0 = inlined_call_operand.vmem [shape: bf16[32,128], index: 0, kind: input, shape index: {}]   ;;  %s304_s4 = inlined_call_operand.vmem [shape: f32[32,128], index: 4, kind: output, shape index: {}]  }
   0x1   :  { %v216_v0 = vld [vmem:[%s300_s1 + $0x38] sm:$0xff]  ;;  %v215_v1 = vld [vmem:[%s300_s1 + $0x30] sm:$0xff]  ;;  %v214_v2 = vld [vmem:[%s300_s1 + $0x28] sm:$0xff] }
   0x2   :  { %109 = vmatpush.bf16.msra.mxu0 %v216_v0  ;;  %217 = vmatpush.bf16.msra.mxu1 %v216_v0  ;;  %v213_v3 = vld [vmem:[%s300_s1 + $0x20] sm:$0xff]  ;;  %v212_v4 = vld [vmem:[%s300_s1 + $0x18] sm:$0xff]  ;;  %v211_v5 = vld [vmem:[%s300_s1 + $0x10] sm:$0xff] }
   0x3   :  { %v210_v6 = vld [vmem:[%s300_s1 + $0x8] sm:$0xff]  ;;  %v209_v7 = vld [vmem:[%s300_s1] sm:$0xff] }
   0x4   :  { %v207_v8 = vld [vmem:[%s303_s0] sm:$0xff]  ;;  %v208_v9 = vld [vmem:[%s303_s0 + $0x8] sm:$0xff] }
   0x5   :  { %v225_v10 = vld [vmem:[%s301_s2] ss:$0 sm:$0xff] }
   0x6   :  { %110 = vmatpush.bf16.msra.mxu0 %v215_v1  ;;  %218 = vmatpush.bf16.msra.mxu1 %v215_v1  ;;  %v226_v11 = vld [vmem:[%s302_s3] ss:$0 sm:$0xff] }
   0xa   :  { %111 = vmatpush.bf16.msra.mxu0 %v214_v2  ;;  %219 = vmatpush.bf16.msra.mxu1 %v214_v2 }
   0xe   :  { %112 = vmatpush.bf16.msra.mxu0 %v213_v3  ;;  %220 = vmatpush.bf16.msra.mxu1 %v213_v3 }
  0x12   :  { %113 = vmatpush.bf16.msra.mxu0 %v212_v4  ;;  %221 = vmatpush.bf16.msra.mxu1 %v212_v4 }
  0x16   :  { %114 = vmatpush.bf16.msra.mxu0 %v211_v5  ;;  %222 = vmatpush.bf16.msra.mxu1 %v211_v5 }
  0x1a   :  { %115 = vmatpush.bf16.msra.mxu0 %v210_v6  ;;  %223 = vmatpush.bf16.msra.mxu1 %v210_v6 }
  0x1e   :  { %116 = vmatpush.bf16.msra.mxu0 %v209_v7  ;;  %224 = vmatpush.bf16.msra.mxu1 %v209_v7 }
  0x21   :  { %117 = vmatmul.bf16.vlgmr.msra.gmra.mxu0 %v207_v8  ;;  %122 = vmatmul.bf16.vlgmr.msra.gmra.mxu1 %v208_v9 }
  0x9e   :  { %v118_v12 = vpop.f32.mrf.mxu0  ;;  %v123_v13 = vpop.f32.mrf.mxu1 }
  0x9f   :  { %v147_v14 = vmul.f32 %v225_v10, %v118_v12  ;;  %v149_v15 = vmul.f32 %v225_v10, %v123_v13 }
  0xa1   :  { %v155_v16 = vadd.f32 %v226_v11, %v147_v14  ;;  %v157_v17 = vadd.f32 %v226_v11, %v149_v15 }
  0xa3   :  { %159 = vst [vmem:[%s304_s4] sm:$0xff] %v155_v16 }
  0xa4   :  { %161 = vst [vmem:[%s304_s4 + $0x10] sm:$0xff] %v157_v17 }
  0xa6   :  { %v120_v18 = vpop.f32.mrf.mxu0  ;;  %v125_v19 = vpop.f32.mrf.mxu1 }
  0xa7   :  { %v148_v20 = vmul.f32 %v225_v10, %v120_v18  ;;  %v150_v21 = vmul.f32 %v225_v10, %v125_v19 }
  0xa9   :  { %v156_v22 = vadd.f32 %v226_v11, %v148_v20  ;;  %v158_v23 = vadd.f32 %v226_v11, %v150_v21 }
  0xab   :  { %160 = vst [vmem:[%s304_s4 + $0x8] sm:$0xff] %v156_v22 }
  0xac   :  { %162 = vst [vmem:[%s304_s4 + $0x18] sm:$0xff] %v158_v23 }

// kernel: vitaa_forward.14
= control target key start
LH: loop header
LB: loop body
LE: loop exit
PB: predicated region body
PF: predicated region fallthrough
CT: control target
= control target key end

     0   :  { %vm16_vm0 = vcmask 125952   ;;  %v1611_v1 = vmov 0.0   ;;  %vm35_vm1 = vcmask 130048   ;;  %s1612_s13 = smov 16   ;;  %s1613_s18 = smov 96   ;;  %s1940_s1 = inlined_call_operand.vmem [shape: bf16[2,16,64], index: 1, kind: input, shape index: {}]   ;;  %s1941_s0 = inlined_call_operand.vmem [shape: f32[8,2,4,64], index: 0, kind: input, shape index: {}]   ;;  %s1942_s2 = inlined_call_operand.vmem [shape: f32[8,2,4,16], index: 2, kind: output, shape index: {}]  }
   0x1   :  { %v1461_v0 = vld [vmem:[%s1940_s1] sm:$0xff]  ;;  %17 = vst.msk [vmem:[#allocation2] sm:$0xf] %vm16_vm0, %v1611_v1  ;;  %v1462_v2 = vld [vmem:[%s1940_s1 + $0x8] sm:$0xff]  ;;  %s1614_s19 = smov 32   ;;  %s1615_s20 = smov 112  }
   0x2   :  { %18 = vst.msk [vmem:[#allocation2 + $0x4] sm:$0xf] %vm16_vm0, %v1611_v1  ;;  %46 = vmatpush.bf16.msra.mxu0 %v1461_v0  ;;  %68 = vmatpush.bf16.msra.mxu1 %v1462_v2  ;;  %v74_v9 = vld [vmem:[%s1941_s0] sm:$0xf]  ;;  %v75_v13 = vld [vmem:[%s1941_s0 + $0x4] sm:$0xf] }
   0x3   :  { %19 = vst.msk [vmem:[#allocation3] sm:$0xf] %vm16_vm0, %v1611_v1  ;;  %s1616_s21 = smov 80  }
   0x4   :  { %20 = vst.msk [vmem:[#allocation3 + $0x4] sm:$0xf] %vm16_vm0, %v1611_v1  ;;  %v1463_v1 = vld [vmem:[%s1940_s1] sm:$0xff] }
   0x5   :  { %209 = vmatpush.bf16.msra.mxu2 %v1463_v1 }
   0x8   :  { %v21_v3 = vld [vmem:[#allocation2] sm:$0xf] }
   0x9   :  { %v23_v4 = vpack.c.bf16 %v21_v3, %v21_v3  ;;  %v22_v5 = vld [vmem:[#allocation2 + $0x4] sm:$0xf]  ;;  %v1464_v3 = vld [vmem:[%s1940_s1 + $0x8] sm:$0xff] }
   0xa   :  { %v24_v6 = vpack.c.bf16 %v22_v5, %v22_v5  ;;  %v118_v7 = vld [vmem:[#allocation3] sm:$0xf]  ;;  %231 = vmatpush.bf16.msra.mxu3 %v1464_v3 }
   0xb   :  { %1341 = vmatmul.msk.bf16.vlgmr.msra.gmra.mxu0 %vm35_vm1, %v23_v4  ;;  %122 = vrot.lane.b32.xlu1 %v118_v7, %s1612_s13  ;;  %v119_v8 = vld [vmem:[#allocation3 + $0x4] sm:$0xf] }
   0xc   :  { %1346 = vmatmul.msk.bf16.vlgmr.msra.gmra.mxu1 %vm35_vm1, %v24_v6 }
  0x13   :  { %124 = vrot.lane.b32.xlu1 %v119_v8, %s1612_s13 }
  0x7d   :  { %v123_v49 = vpop.permute.xlu1 %122 }
  0x85   :  { %v125_v53 = vpop.permute.xlu1 %124 }
  0x88   :  { %v48_v10 = vpop.f32.mrf.mxu0 }
  0x89   :  { %v76_v11 = vadd.f32 %v74_v9, %v48_v10  ;;  %v70_v12 = vpop.f32.mrf.mxu1  ;;  %v1359_v10 = vld [vmem:[%s1941_s0 + $0x8] sm:$0xf] }
  0x8a   :  { %v77_v14 = vadd.f32 %v75_v13, %v70_v12 }
  0x8b   :  { %1483 = vtanh.f32 %v76_v11  ;;  %v1347_v19 = vmul.f32 -1.442695, %v76_v11 }
  0x8c   :  { %1485 = vtanh.f32 %v77_v14  ;;  %v1348_v20 = vmul.f32 -1.442695, %v77_v14 }
  0x8d   :  { %1487 = vpow2.f32 %v1347_v19 }
  0x8e   :  { %1489 = vpow2.f32 %v1348_v20 }
  0x90   :  { %v50_v15 = vpop.f32.mrf.mxu0 }
  0x91   :  { %v1484_v16 = vpop.eup %1483  ;;  %v72_v17 = vpop.f32.mrf.mxu1 }
  0x92   :  { %132 = vrot.lane.b32.xlu0 %v1484_v16, %s1613_s18  ;;  %v1486_v18 = vpop.eup %1485  ;;  %v1360_v16 = vld [vmem:[%s1941_s0 + $0xc] sm:$0xf] }
  0x93   :  { %v1488_v21 = vpop.eup %1487 }
  0x94   :  { %v84_v22 = vadd.f32 1.0, %v1488_v21  ;;  %v1490_v23 = vpop.eup %1489 }
  0x95   :  { %v85_v24 = vadd.f32 1.0, %v1490_v23 }
  0x96   :  { %1491 = vrcp.f32 %v84_v22  ;;  %v97_v33 = vand.u32 2147483648, %v84_v22  ;;  %vm91_vm3 = vweird.f32 %v84_v22  ;;  %v95_v34 = vand.u32 2147483647, %v84_v22 }
  0x97   :  { %1493 = vrcp.f32 %v85_v24  ;;  %vm106_vm6 = vweird.f32 %v85_v24  ;;  %v112_v39 = vand.u32 2147483648, %v85_v24  ;;  %v110_v42 = vand.u32 2147483647, %v85_v24 }
  0x98   :  { %v98_v37 = vor.u32 1.1754944e-38, %v97_v33  ;;  %vm96_vm5 = vcmp.eq.f32.partialorder %v95_v34, 8.507059e+37 }
  0x99   :  { %v113_v44 = vor.u32 1.1754944e-38, %v112_v39  ;;  %vm111_vm9 = vcmp.eq.f32.partialorder %v110_v42, 8.507059e+37 }
  0x9a   :  { %134 = vrot.lane.b32.xlu0 %v1486_v18, %s1613_s18 }
  0x9c   :  { %v1492_v25 = vpop.eup %1491 }
  0x9d   :  { %v87_v26 = vmul.f32 %v1492_v25, %v84_v22  ;;  %v1494_v28 = vpop.eup %1493  ;;  %vm92_vm2 = vweird.f32 %v1492_v25 }
  0x9e   :  { %v102_v30 = vmul.f32 %v1494_v28, %v85_v24  ;;  %vm93_vm4 = vmor %vm91_vm3, %vm92_vm2  ;;  %vm107_vm7 = vweird.f32 %v1494_v28 }
  0x9f   :  { %v88_v27 = vsub.f32 1.0, %v87_v26  ;;  %vm108_vm8 = vmor %vm106_vm6, %vm107_vm7 }
  0xa0   :  { %v103_v32 = vsub.f32 1.0, %v102_v30 }
  0xa1   :  { %v89_v29 = vmul.f32 %v1492_v25, %v88_v27 }
  0xa2   :  { %v104_v36 = vmul.f32 %v1494_v28, %v103_v32 }
  0xa3   :  { %v90_v31 = vadd.f32 %v1492_v25, %v89_v29 }
  0xa4   :  { %v105_v41 = vadd.f32 %v1494_v28, %v104_v36 }
  0xa5   :  { %v94_v35 = vsel %vm93_vm4, %v1492_v25, %v90_v31 }
  0xa6   :  { %v99_v38 = vsel %vm96_vm5, %v98_v37, %v94_v35  ;;  %v109_v45 = vsel %vm108_vm8, %v1494_v28, %v105_v41 }
  0xa7   :  { %v114_v46 = vsel %vm111_vm9, %v113_v44, %v109_v45  ;;  %v128_v50 = vmul.f32 %v123_v49, %v99_v38 }
  0xa8   :  { %v129_v54 = vmul.f32 %v125_v53, %v114_v46 }
 0x104   :  { %v133_v40 = vpop.permute.xlu0 %132 }
 0x105   :  { %v138_v43 = vmul.f32 %v133_v40, %v99_v38 }
 0x107   :  { %142 = vrot.lane.b32.xlu2 %v138_v43, %s1612_s13 }
 0x10c   :  { %v135_v47 = vpop.permute.xlu0 %134 }
 0x10d   :  { %v139_v48 = vmul.f32 %v135_v47, %v114_v46 }
 0x10f   :  { %144 = vrot.lane.b32.xlu2 %v139_v48, %s1612_s13 }
 0x161   :  { %v143_v51 = vpop.permute.xlu2 %142 }
 0x162   :  { %v148_v52 = vadd.f32 %v143_v51, %v128_v50 }
 0x164   :  { %1495 = vtanh.f32 %v148_v52 }
 0x169   :  { %v145_v55 = vpop.permute.xlu2 %144 }
 0x16a   :  { %v1496_v56 = vpop.eup %1495  ;;  %v149_v57 = vadd.f32 %v145_v55, %v129_v54 }
 0x16b   :  { %154 = vrot.lane.b32.xlu0 %v1496_v56, %s1614_s19 }
 0x16c   :  { %1497 = vtanh.f32 %v149_v57 }
 0x172   :  { %v1498_v58 = vpop.eup %1497 }
 0x173   :  { %156 = vrot.lane.b32.xlu1 %v1498_v58, %s1614_s19 }
 0x17b   :  { %164 = vrot.lane.b32.xlu1 %v148_v52, %s1615_s20 }
 0x1dd   :  { %v155_v59 = vpop.permute.xlu0 %154 }
 0x1de   :  { %v160_v60 = vmul.f32 %v155_v59, %v99_v38 }
 0x1e0   :  { %175 = vrot.lane.b32.xlu2 %v160_v60, %s1616_s21 }
 0x1e5   :  { %v157_v61 = vpop.permute.xlu1 %156 }
 0x1e6   :  { %v161_v62 = vmul.f32 %v157_v61, %v114_v46  ;;  %v1465_v61 = vld [vmem:[%s1940_s1] sm:$0xff] }
 0x1e7   :  { %373 = vmatpush.bf16.msrb.mxu0 %v1465_v61 }
 0x1e8   :  { %177 = vrot.lane.b32.xlu0 %v161_v62, %s1616_s21  ;;  %166 = vrot.lane.b32.xlu2 %v149_v57, %s1615_s20 }
 0x1ed   :  { %v165_v63 = vpop.permute.xlu1 %164 }
 0x1ee   :  { %171 = vst.msk [vmem:[#allocation3] sm:$0xf] %vm16_vm0, %v165_v63 }
 0x1f5   :  { %v282_v0 = vld [vmem:[#allocation3] sm:$0xf] }
 0x1f6   :  { %286 = vrot.lane.b32.xlu2 %v282_v0, %s1612_s13 }
 0x23a   :  { %v176_v2 = vpop.permute.xlu2 %175 }
 0x23b   :  { %181 = vst.msk [vmem:[#allocation2] sm:$0xf] %vm16_vm0, %v176_v2 }
 0x23c   :  { %183 = vst.msk [vmem:[%s1942_s2] sm:$0xf] %vm16_vm0, %v176_v2 }
 0x242   :  { %v167_v4 = vpop.permute.xlu2 %166  ;;  %v185_v5 = vld [vmem:[#allocation2] sm:$0xf] }
 0x243   :  { %172 = vst.msk [vmem:[#allocation3 + $0x4] sm:$0xf] %vm16_vm0, %v167_v4  ;;  %v187_v6 = vpack.c.bf16 %v185_v5, %v185_v5  ;;  %v1466_v5 = vld [vmem:[%s1940_s1 + $0x8] sm:$0xff] }
 0x244   :  { %395 = vmatpush.bf16.msrb.mxu1 %v1466_v5 }
 0x245   :  { %1353 = vmatmul.msk.bf16.vlgmr.msra.gmra.mxu2 %vm35_vm1, %v187_v6 }
 0x24a   :  { %v283_v15 = vld [vmem:[#allocation3 + $0x4] sm:$0xf] }
 0x250   :  { %v287_v51 = vpop.permute.xlu2 %286 }
 0x25a   :  { %v178_v7 = vpop.permute.xlu0 %177 }
 0x25b   :  { %182 = vst.msk [vmem:[#allocation2 + $0x4] sm:$0xf] %vm16_vm0, %v178_v7 }
 0x25c   :  { %184 = vst.msk [vmem:[%s1942_s2 + $0x4] sm:$0xf] %vm16_vm0, %v178_v7 }
 0x262   :  { %v186_v8 = vld [vmem:[#allocation2 + $0x4] sm:$0xf] }
 0x263   :  { %v188_v9 = vpack.c.bf16 %v186_v8, %v186_v8 }
 0x265   :  { %1358 = vmatmul.msk.bf16.vlgmr.msra.gmra.mxu3 %vm35_vm1, %v188_v9 }
 0x2c8   :  { %v211_v11 = vpop.f32.mrf.mxu2 }
 0x2c9   :  { %v240_v12 = vadd.f32 %v1359_v10, %v211_v11 }
 0x2cb   :  { %1499 = vtanh.f32 %v240_v12  ;;  %v1361_v21 = vmul.f32 -1.442695, %v240_v12  ;;  %v1375_v12 = vld [vmem:[%s1941_s0 + $0x10] sm:$0xf] }
 0x2d0   :  { %v213_v13 = vpop.f32.mrf.mxu2 }
 0x2d1   :  { %v1500_v14 = vpop.eup %1499 }
 0x2d2   :  { %296 = vrot.lane.b32.xlu0 %v1500_v14, %s1613_s18 }
 0x2da   :  { %288 = vrot.lane.b32.xlu0 %v283_v15, %s1612_s13 }
 0x2e8   :  { %v233_v17 = vpop.f32.mrf.mxu3 }
 0x2e9   :  { %v241_v18 = vadd.f32 %v1360_v16, %v233_v17 }
 0x2eb   :  { %1501 = vtanh.f32 %v241_v18  ;;  %v1362_v27 = vmul.f32 -1.442695, %v241_v18  ;;  %v1376_v18 = vld [vmem:[%s1941_s0 + $0x14] sm:$0xf] }
 0x2ec   :  { %1503 = vpow2.f32 %v1361_v21 }
 0x2f0   :  { %v235_v19 = vpop.f32.mrf.mxu3 }
 0x2f1   :  { %v1502_v20 = vpop.eup %1501 }
 0x2f2   :  { %298 = vrot.lane.b32.xlu1 %v1502_v20, %s1613_s18  ;;  %v1504_v22 = vpop.eup %1503 }
 0x2f3   :  { %v248_v23 = vadd.f32 1.0, %v1504_v22 }
 0x2f5   :  { %1505 = vrcp.f32 %v248_v23  ;;  %v261_v30 = vand.u32 2147483648, %v248_v23  ;;  %vm255_vm11 = vweird.f32 %v248_v23  ;;  %v259_v31 = vand.u32 2147483647, %v248_v23 }
 0x2f6   :  { %1507 = vpow2.f32 %v1362_v27 }
 0x2f7   :  { %v262_v34 = vor.u32 1.1754944e-38, %v261_v30  ;;  %vm260_vm13 = vcmp.eq.f32.partialorder %v259_v31, 8.507059e+37 }
 0x2fb   :  { %v1506_v24 = vpop.eup %1505 }
 0x2fc   :  { %v251_v25 = vmul.f32 %v1506_v24, %v248_v23  ;;  %vm256_vm10 = vweird.f32 %v1506_v24  ;;  %v1508_v32 = vpop.eup %1507 }
 0x2fd   :  { %vm257_vm12 = vmor %vm255_vm11, %vm256_vm10  ;;  %v249_v35 = vadd.f32 1.0, %v1508_v32 }
 0x2fe   :  { %v252_v26 = vsub.f32 1.0, %v251_v25 }
 0x2ff   :  { %1509 = vrcp.f32 %v249_v35  ;;  %v276_v44 = vand.u32 2147483648, %v249_v35  ;;  %vm270_vm15 = vweird.f32 %v249_v35  ;;  %v274_v45 = vand.u32 2147483647, %v249_v35 }
 0x300   :  { %v253_v28 = vmul.f32 %v1506_v24, %v252_v26 }
 0x301   :  { %v277_v47 = vor.u32 1.1754944e-38, %v276_v44  ;;  %vm275_vm3 = vcmp.eq.f32.partialorder %v274_v45, 8.507059e+37 }
 0x302   :  { %v254_v29 = vadd.f32 %v1506_v24, %v253_v28 }
 0x304   :  { %v258_v33 = vsel %vm257_vm12, %v1506_v24, %v254_v29 }
 0x305   :  { %v263_v36 = vsel %vm260_vm13, %v262_v34, %v258_v33  ;;  %v1510_v39 = vpop.eup %1509 }
 0x306   :  { %v266_v40 = vmul.f32 %v1510_v39, %v249_v35  ;;  %vm271_vm14 = vweird.f32 %v1510_v39  ;;  %v292_v52 = vmul.f32 %v287_v51, %v263_v36 }
 0x307   :  { %vm272_vm2 = vmor %vm270_vm15, %vm271_vm14 }
 0x308   :  { %v267_v41 = vsub.f32 1.0, %v266_v40 }
 0x30a   :  { %v268_v42 = vmul.f32 %v1510_v39, %v267_v41 }
 0x30c   :  { %v269_v43 = vadd.f32 %v1510_v39, %v268_v42 }
 0x30e   :  { %v273_v46 = vsel %vm272_vm2, %v1510_v39, %v269_v43 }
 0x30f   :  { %v278_v48 = vsel %vm275_vm3, %v277_v47, %v273_v46 }
 0x344   :  { %v297_v37 = vpop.permute.xlu0 %296 }
 0x345   :  { %v302_v38 = vmul.f32 %v297_v37, %v263_v36 }
 0x347   :  { %306 = vrot.lane.b32.xlu1 %v302_v38, %s1612_s13 }
 0x34c   :  { %v289_v55 = vpop.permute.xlu0 %288 }
 0x34d   :  { %v293_v56 = vmul.f32 %v289_v55, %v278_v48 }
 0x364   :  { %v299_v49 = vpop.permute.xlu1 %298 }
 0x365   :  { %v303_v50 = vmul.f32 %v299_v49, %v278_v48 }
 0x367   :  { %308 = vrot.lane.b32.xlu2 %v303_v50, %s1612_s13 }
 0x3b9   :  { %v307_v53 = vpop.permute.xlu1 %306 }
 0x3ba   :  { %v312_v54 = vadd.f32 %v307_v53, %v292_v52 }
 0x3bc   :  { %1511 = vtanh.f32 %v312_v54 }
 0x3c1   :  { %v309_v57 = vpop.permute.xlu2 %308 }
 0x3c2   :  { %v1512_v58 = vpop.eup %1511  ;;  %v313_v59 = vadd.f32 %v309_v57, %v293_v56 }
 0x3c3   :  { %318 = vrot.lane.b32.xlu0 %v1512_v58, %s1614_s19 }
 0x3c4   :  { %1513 = vtanh.f32 %v313_v59 }
 0x3ca   :  { %v1514_v60 = vpop.eup %1513 }
 0x3cb   :  { %320 = vrot.lane.b32.xlu1 %v1514_v60, %s1614_s19 }
 0x3d3   :  { %328 = vrot.lane.b32.xlu1 %v312_v54, %s1615_s20 }
 0x435   :  { %v319_v62 = vpop.permute.xlu0 %318 }
 0x436   :  { %v324_v63 = vmul.f32 %v319_v62, %v263_v36 }
 0x438   :  { %338 = vrot.lane.b32.xlu2 %v324_v63, %s1616_s21  ;;  %v1467_v63 = vld [vmem:[%s1940_s1] sm:$0xff] }
 0x439   :  { %537 = vmatpush.bf16.msrb.mxu2 %v1467_v63 }
 0x43d   :  { %v321_v0 = vpop.permute.xlu1 %320 }
 0x43e   :  { %v325_v1 = vmul.f32 %v321_v0, %v278_v48 }
 0x440   :  { %340 = vrot.lane.b32.xlu0 %v325_v1, %s1616_s21  ;;  %330 = vrot.lane.b32.xlu2 %v313_v59, %s1615_s20 }
 0x445   :  { %v329_v2 = vpop.permute.xlu1 %328 }
 0x446   :  { %334 = vst.msk [vmem:[#allocation3] sm:$0xf] %vm16_vm0, %v329_v2 }
 0x44d   :  { %v446_v3 = vld [vmem:[#allocation3] sm:$0xf] }
 0x44e   :  { %450 = vrot.lane.b32.xlu2 %v446_v3, %s1612_s13 }
 0x492   :  { %v339_v4 = vpop.permute.xlu2 %338 }
 0x493   :  { %344 = vst.msk [vmem:[#allocation2] sm:$0xf] %vm16_vm0, %v339_v4 }
 0x494   :  { %1363 = vst.msk [vmem:[%s1942_s2 + $0x8] sm:$0xf] %vm16_vm0, %v339_v4 }
 0x49a   :  { %v331_v6 = vpop.permute.xlu2 %330  ;;  %v349_v7 = vld [vmem:[#allocation2] sm:$0xf] }
 0x49b   :  { %335 = vst.msk [vmem:[#allocation3 + $0x4] sm:$0xf] %vm16_vm0, %v331_v6  ;;  %v351_v8 = vpack.c.bf16 %v349_v7, %v349_v7  ;;  %v1468_v7 = vld [vmem:[%s1940_s1 + $0x8] sm:$0xff] }
 0x49c   :  { %559 = vmatpush.bf16.msrb.mxu3 %v1468_v7 }
 0x49d   :  { %1369 = vmatmul.msk.bf16.vlgmr.msrb.gmra.mxu0 %vm35_vm1, %v351_v8 }
 0x4a2   :  { %v447_v17 = vld [vmem:[#allocation3 + $0x4] sm:$0xf] }
 0x4a8   :  { %v451_v53 = vpop.permute.xlu2 %450 }
 0x4b2   :  { %v341_v9 = vpop.permute.xlu0 %340 }
 0x4b3   :  { %345 = vst.msk [vmem:[#allocation2 + $0x4] sm:$0xf] %vm16_vm0, %v341_v9 }
 0x4b4   :  { %1364 = vst.msk [vmem:[%s1942_s2 + $0xc] sm:$0xf] %vm16_vm0, %v341_v9 }
 0x4ba   :  { %v350_v10 = vld [vmem:[#allocation2 + $0x4] sm:$0xf] }
 0x4bb   :  { %v352_v11 = vpack.c.bf16 %v350_v10, %v350_v10 }
 0x4bd   :  { %1374 = vmatmul.msk.bf16.vlgmr.msrb.gmra.mxu1 %vm35_vm1, %v352_v11 }
 0x51a   :  { %v375_v13 = vpop.f32.mrf.mxu0 }
 0x51b   :  { %v404_v14 = vadd.f32 %v1375_v12, %v375_v13 }
 0x51d   :  { %1515 = vtanh.f32 %v404_v14  ;;  %v1377_v23 = vmul.f32 -1.442695, %v404_v14  ;;  %v1391_v14 = vld [vmem:[%s1941_s0 + $0x18] sm:$0xf] }
 0x522   :  { %v377_v15 = vpop.f32.mrf.mxu0 }
 0x523   :  { %v1516_v16 = vpop.eup %1515 }
 0x524   :  { %460 = vrot.lane.b32.xlu0 %v1516_v16, %s1613_s18 }
 0x52c   :  { %452 = vrot.lane.b32.xlu0 %v447_v17, %s1612_s13 }
 0x53a   :  { %v397_v19 = vpop.f32.mrf.mxu1 }
 0x53b   :  { %v405_v20 = vadd.f32 %v1376_v18, %v397_v19 }
 0x53d   :  { %1517 = vtanh.f32 %v405_v20  ;;  %v1378_v29 = vmul.f32 -1.442695, %v405_v20  ;;  %v1392_v20 = vld [vmem:[%s1941_s0 + $0x1c] sm:$0xf] }
 0x53e   :  { %1519 = vpow2.f32 %v1377_v23 }
 0x542   :  { %v399_v21 = vpop.f32.mrf.mxu1 }
 0x543   :  { %v1518_v22 = vpop.eup %1517 }
 0x544   :  { %462 = vrot.lane.b32.xlu1 %v1518_v22, %s1613_s18  ;;  %v1520_v24 = vpop.eup %1519 }
 0x545   :  { %v412_v25 = vadd.f32 1.0, %v1520_v24 }
 0x547   :  { %1521 = vrcp.f32 %v412_v25  ;;  %v425_v32 = vand.u32 2147483648, %v412_v25  ;;  %vm419_vm5 = vweird.f32 %v412_v25  ;;  %v423_v33 = vand.u32 2147483647, %v412_v25 }
 0x548   :  { %1523 = vpow2.f32 %v1378_v29 }
 0x549   :  { %v426_v36 = vor.u32 1.1754944e-38, %v425_v32  ;;  %vm424_vm7 = vcmp.eq.f32.partialorder %v423_v33, 8.507059e+37 }
 0x54d   :  { %v1522_v26 = vpop.eup %1521 }
 0x54e   :  { %v415_v27 = vmul.f32 %v1522_v26, %v412_v25  ;;  %vm420_vm4 = vweird.f32 %v1522_v26  ;;  %v1524_v34 = vpop.eup %1523 }
 0x54f   :  { %vm421_vm6 = vmor %vm419_vm5, %vm420_vm4  ;;  %v413_v37 = vadd.f32 1.0, %v1524_v34 }
 0x550   :  { %v416_v28 = vsub.f32 1.0, %v415_v27 }
 0x551   :  { %1525 = vrcp.f32 %v413_v37  ;;  %v440_v46 = vand.u32 2147483648, %v413_v37  ;;  %vm434_vm9 = vweird.f32 %v413_v37  ;;  %v438_v47 = vand.u32 2147483647, %v413_v37 }
 0x552   :  { %v417_v30 = vmul.f32 %v1522_v26, %v416_v28 }
 0x553   :  { %v441_v49 = vor.u32 1.1754944e-38, %v440_v46  ;;  %vm439_vm11 = vcmp.eq.f32.partialorder %v438_v47, 8.507059e+37 }
 0x554   :  { %v418_v31 = vadd.f32 %v1522_v26, %v417_v30 }
 0x556   :  { %v422_v35 = vsel %vm421_vm6, %v1522_v26, %v418_v31 }
 0x557   :  { %v427_v38 = vsel %vm424_vm7, %v426_v36, %v422_v35  ;;  %v1526_v41 = vpop.eup %1525 }
 0x558   :  { %v430_v42 = vmul.f32 %v1526_v41, %v413_v37  ;;  %vm435_vm8 = vweird.f32 %v1526_v41  ;;  %v456_v54 = vmul.f32 %v451_v53, %v427_v38 }
 0x559   :  { %vm436_vm10 = vmor %vm434_vm9, %vm435_vm8 }
 0x55a   :  { %v431_v43 = vsub.f32 1.0, %v430_v42 }
 0x55c   :  { %v432_v44 = vmul.f32 %v1526_v41, %v431_v43 }
 0x55e   :  { %v433_v45 = vadd.f32 %v1526_v41, %v432_v44 }
 0x560   :  { %v437_v48 = vsel %vm436_vm10, %v1526_v41, %v433_v45 }
 0x561   :  { %v442_v50 = vsel %vm439_vm11, %v441_v49, %v437_v48 }
 0x596   :  { %v461_v39 = vpop.permute.xlu0 %460 }
 0x597   :  { %v466_v40 = vmul.f32 %v461_v39, %v427_v38 }
 0x599   :  { %470 = vrot.lane.b32.xlu1 %v466_v40, %s1612_s13 }
 0x59e   :  { %v453_v57 = vpop.permute.xlu0 %452 }
 0x59f   :  { %v457_v58 = vmul.f32 %v453_v57, %v442_v50 }
 0x5b6   :  { %v463_v51 = vpop.permute.xlu1 %462 }
 0x5b7   :  { %v467_v52 = vmul.f32 %v463_v51, %v442_v50 }
 0x5b9   :  { %472 = vrot.lane.b32.xlu2 %v467_v52, %s1612_s13 }
 0x60b   :  { %v471_v55 = vpop.permute.xlu1 %470 }
 0x60c   :  { %v476_v56 = vadd.f32 %v471_v55, %v456_v54 }
 0x60e   :  { %1527 = vtanh.f32 %v476_v56 }
 0x613   :  { %v473_v59 = vpop.permute.xlu2 %472 }
 0x614   :  { %v1528_v60 = vpop.eup %1527  ;;  %v477_v61 = vadd.f32 %v473_v59, %v457_v58 }
 0x615   :  { %482 = vrot.lane.b32.xlu0 %v1528_v60, %s1614_s19 }
 0x616   :  { %1529 = vtanh.f32 %v477_v61 }
 0x61c   :  { %v1530_v62 = vpop.eup %1529 }
 0x61d   :  { %484 = vrot.lane.b32.xlu1 %v1530_v62, %s1614_s19 }
 0x625   :  { %492 = vrot.lane.b32.xlu1 %v476_v56, %s1615_s20 }
 0x687   :  { %v483_v0 = vpop.permute.xlu0 %482 }
 0x688   :  { %v488_v1 = vmul.f32 %v483_v0, %v427_v38 }
 0x68a   :  { %502 = vrot.lane.b32.xlu2 %v488_v1, %s1616_s21  ;;  %v1469_v1 = vld [vmem:[%s1940_s1] sm:$0xff] }
 0x68b   :  { %701 = vmatpush.bf16.msra.mxu0 %v1469_v1 }
 0x68f   :  { %v485_v2 = vpop.permute.xlu1 %484 }
 0x690   :  { %v489_v3 = vmul.f32 %v485_v2, %v442_v50 }
 0x692   :  { %504 = vrot.lane.b32.xlu0 %v489_v3, %s1616_s21  ;;  %494 = vrot.lane.b32.xlu2 %v477_v61, %s1615_s20 }
 0x697   :  { %v493_v4 = vpop.permute.xlu1 %492 }
 0x698   :  { %498 = vst.msk [vmem:[#allocation3] sm:$0xf] %vm16_vm0, %v493_v4 }
 0x69f   :  { %v610_v5 = vld [vmem:[#allocation3] sm:$0xf] }
 0x6a0   :  { %614 = vrot.lane.b32.xlu2 %v610_v5, %s1612_s13 }
 0x6e4   :  { %v503_v6 = vpop.permute.xlu2 %502 }
 0x6e5   :  { %508 = vst.msk [vmem:[#allocation2] sm:$0xf] %vm16_vm0, %v503_v6 }
 0x6e6   :  { %1379 = vst.msk [vmem:[%s1942_s2 + $0x10] sm:$0xf] %vm16_vm0, %v503_v6 }
 0x6ec   :  { %v495_v8 = vpop.permute.xlu2 %494  ;;  %v513_v9 = vld [vmem:[#allocation2] sm:$0xf] }
 0x6ed   :  { %499 = vst.msk [vmem:[#allocation3 + $0x4] sm:$0xf] %vm16_vm0, %v495_v8  ;;  %v515_v10 = vpack.c.bf16 %v513_v9, %v513_v9  ;;  %v1470_v9 = vld [vmem:[%s1940_s1 + $0x8] sm:$0xff] }
 0x6ee   :  { %723 = vmatpush.bf16.msra.mxu1 %v1470_v9 }
 0x6ef   :  { %1385 = vmatmul.msk.bf16.vlgmr.msrb.gmra.mxu2 %vm35_vm1, %v515_v10 }
 0x6f4   :  { %v611_v19 = vld [vmem:[#allocation3 + $0x4] sm:$0xf] }
 0x6fa   :  { %v615_v55 = vpop.permute.xlu2 %614 }
 0x704   :  { %v505_v11 = vpop.permute.xlu0 %504 }
 0x705   :  { %509 = vst.msk [vmem:[#allocation2 + $0x4] sm:$0xf] %vm16_vm0, %v505_v11 }
 0x706   :  { %1380 = vst.msk [vmem:[%s1942_s2 + $0x14] sm:$0xf] %vm16_vm0, %v505_v11 }
 0x70c   :  { %v514_v12 = vld [vmem:[#allocation2 + $0x4] sm:$0xf] }
 0x70d   :  { %v516_v13 = vpack.c.bf16 %v514_v12, %v514_v12 }
 0x70f   :  { %1390 = vmatmul.msk.bf16.vlgmr.msrb.gmra.mxu3 %vm35_vm1, %v516_v13 }
 0x772   :  { %v539_v15 = vpop.f32.mrf.mxu2 }
 0x773   :  { %v568_v16 = vadd.f32 %v1391_v14, %v539_v15 }
 0x775   :  { %1531 = vtanh.f32 %v568_v16  ;;  %v1393_v25 = vmul.f32 -1.442695, %v568_v16  ;;  %v1407_v16 = vld [vmem:[%s1941_s0 + $0x20] sm:$0xf] }
 0x77a   :  { %v541_v17 = vpop.f32.mrf.mxu2 }
 0x77b   :  { %v1532_v18 = vpop.eup %1531 }
 0x77c   :  { %624 = vrot.lane.b32.xlu0 %v1532_v18, %s1613_s18 }
 0x784   :  { %616 = vrot.lane.b32.xlu0 %v611_v19, %s1612_s13 }
 0x792   :  { %v561_v21 = vpop.f32.mrf.mxu3 }
 0x793   :  { %v569_v22 = vadd.f32 %v1392_v20, %v561_v21 }
 0x795   :  { %1533 = vtanh.f32 %v569_v22  ;;  %v1394_v31 = vmul.f32 -1.442695, %v569_v22  ;;  %v1408_v22 = vld [vmem:[%s1941_s0 + $0x24] sm:$0xf] }
 0x796   :  { %1535 = vpow2.f32 %v1393_v25 }
 0x79a   :  { %v563_v23 = vpop.f32.mrf.mxu3 }
 0x79b   :  { %v1534_v24 = vpop.eup %1533 }
 0x79c   :  { %626 = vrot.lane.b32.xlu1 %v1534_v24, %s1613_s18  ;;  %v1536_v26 = vpop.eup %1535 }
 0x79d   :  { %v576_v27 = vadd.f32 1.0, %v1536_v26 }
 0x79f   :  { %1537 = vrcp.f32 %v576_v27  ;;  %v589_v34 = vand.u32 2147483648, %v576_v27  ;;  %vm583_vm13 = vweird.f32 %v576_v27  ;;  %v587_v35 = vand.u32 2147483647, %v576_v27 }
 0x7a0   :  { %1539 = vpow2.f32 %v1394_v31 }
 0x7a1   :  { %v590_v38 = vor.u32 1.1754944e-38, %v589_v34  ;;  %vm588_vm15 = vcmp.eq.f32.partialorder %v587_v35, 8.507059e+37 }
 0x7a5   :  { %v1538_v28 = vpop.eup %1537 }
 0x7a6   :  { %v579_v29 = vmul.f32 %v1538_v28, %v576_v27  ;;  %vm584_vm12 = vweird.f32 %v1538_v28  ;;  %v1540_v36 = vpop.eup %1539 }
 0x7a7   :  { %vm585_vm14 = vmor %vm583_vm13, %vm584_vm12  ;;  %v577_v39 = vadd.f32 1.0, %v1540_v36 }
 0x7a8   :  { %v580_v30 = vsub.f32 1.0, %v579_v29 }
 0x7a9   :  { %1541 = vrcp.f32 %v577_v39  ;;  %v604_v48 = vand.u32 2147483648, %v577_v39  ;;  %vm598_vm3 = vweird.f32 %v577_v39  ;;  %v602_v49 = vand.u32 2147483647, %v577_v39 }
 0x7aa   :  { %v581_v32 = vmul.f32 %v1538_v28, %v580_v30 }
 0x7ab   :  { %v605_v51 = vor.u32 1.1754944e-38, %v604_v48  ;;  %vm603_vm5 = vcmp.eq.f32.partialorder %v602_v49, 8.507059e+37 }
 0x7ac   :  { %v582_v33 = vadd.f32 %v1538_v28, %v581_v32 }
 0x7ae   :  { %v586_v37 = vsel %vm585_vm14, %v1538_v28, %v582_v33 }
 0x7af   :  { %v591_v40 = vsel %vm588_vm15, %v590_v38, %v586_v37  ;;  %v1542_v43 = vpop.eup %1541 }
 0x7b0   :  { %v594_v44 = vmul.f32 %v1542_v43, %v577_v39  ;;  %vm599_vm2 = vweird.f32 %v1542_v43  ;;  %v620_v56 = vmul.f32 %v615_v55, %v591_v40 }
 0x7b1   :  { %vm600_vm4 = vmor %vm598_vm3, %vm599_vm2 }
 0x7b2   :  { %v595_v45 = vsub.f32 1.0, %v594_v44 }
 0x7b4   :  { %v596_v46 = vmul.f32 %v1542_v43, %v595_v45 }
 0x7b6   :  { %v597_v47 = vadd.f32 %v1542_v43, %v596_v46 }
 0x7b8   :  { %v601_v50 = vsel %vm600_vm4, %v1542_v43, %v597_v47 }
 0x7b9   :  { %v606_v52 = vsel %vm603_vm5, %v605_v51, %v601_v50 }
 0x7ee   :  { %v625_v41 = vpop.permute.xlu0 %624 }
 0x7ef   :  { %v630_v42 = vmul.f32 %v625_v41, %v591_v40 }
 0x7f1   :  { %634 = vrot.lane.b32.xlu1 %v630_v42, %s1612_s13 }
 0x7f6   :  { %v617_v59 = vpop.permute.xlu0 %616 }
 0x7f7   :  { %v621_v60 = vmul.f32 %v617_v59, %v606_v52 }
 0x80e   :  { %v627_v53 = vpop.permute.xlu1 %626 }
 0x80f   :  { %v631_v54 = vmul.f32 %v627_v53, %v606_v52 }
 0x811   :  { %636 = vrot.lane.b32.xlu2 %v631_v54, %s1612_s13 }
 0x863   :  { %v635_v57 = vpop.permute.xlu1 %634 }
 0x864   :  { %v640_v58 = vadd.f32 %v635_v57, %v620_v56 }
 0x866   :  { %1543 = vtanh.f32 %v640_v58 }
 0x86b   :  { %v637_v61 = vpop.permute.xlu2 %636 }
 0x86c   :  { %v1544_v62 = vpop.eup %1543  ;;  %v641_v63 = vadd.f32 %v637_v61, %v621_v60 }
 0x86d   :  { %646 = vrot.lane.b32.xlu0 %v1544_v62, %s1614_s19 }
 0x86e   :  { %1545 = vtanh.f32 %v641_v63 }
 0x874   :  { %v1546_v0 = vpop.eup %1545 }
 0x875   :  { %648 = vrot.lane.b32.xlu1 %v1546_v0, %s1614_s19 }
 0x87d   :  { %656 = vrot.lane.b32.xlu1 %v640_v58, %s1615_s20 }
 0x8df   :  { %v647_v2 = vpop.permute.xlu0 %646 }
 0x8e0   :  { %v652_v3 = vmul.f32 %v647_v2, %v591_v40 }
 0x8e2   :  { %666 = vrot.lane.b32.xlu2 %v652_v3, %s1616_s21  ;;  %v1471_v3 = vld [vmem:[%s1940_s1] sm:$0xff] }
 0x8e3   :  { %865 = vmatpush.bf16.msra.mxu2 %v1471_v3 }
 0x8e7   :  { %v649_v4 = vpop.permute.xlu1 %648 }
 0x8e8   :  { %v653_v5 = vmul.f32 %v649_v4, %v606_v52 }
 0x8ea   :  { %668 = vrot.lane.b32.xlu0 %v653_v5, %s1616_s21  ;;  %658 = vrot.lane.b32.xlu2 %v641_v63, %s1615_s20 }
 0x8ef   :  { %v657_v6 = vpop.permute.xlu1 %656 }
 0x8f0   :  { %662 = vst.msk [vmem:[#allocation3] sm:$0xf] %vm16_vm0, %v657_v6 }
 0x8f7   :  { %v774_v7 = vld [vmem:[#allocation3] sm:$0xf] }
 0x8f8   :  { %778 = vrot.lane.b32.xlu2 %v774_v7, %s1612_s13 }
 0x93c   :  { %v667_v8 = vpop.permute.xlu2 %666 }
 0x93d   :  { %672 = vst.msk [vmem:[#allocation2] sm:$0xf] %vm16_vm0, %v667_v8 }
 0x93e   :  { %1395 = vst.msk [vmem:[%s1942_s2 + $0x18] sm:$0xf] %vm16_vm0, %v667_v8 }
 0x944   :  { %v659_v10 = vpop.permute.xlu2 %658  ;;  %v677_v11 = vld [vmem:[#allocation2] sm:$0xf] }
 0x945   :  { %663 = vst.msk [vmem:[#allocation3 + $0x4] sm:$0xf] %vm16_vm0, %v659_v10  ;;  %v679_v12 = vpack.c.bf16 %v677_v11, %v677_v11  ;;  %v1472_v11 = vld [vmem:[%s1940_s1 + $0x8] sm:$0xff] }
 0x946   :  { %887 = vmatpush.bf16.msra.mxu3 %v1472_v11 }
 0x947   :  { %1401 = vmatmul.msk.bf16.vlgmr.msra.gmra.mxu0 %vm35_vm1, %v679_v12 }
 0x94c   :  { %v775_v21 = vld [vmem:[#allocation3 + $0x4] sm:$0xf] }
 0x952   :  { %v779_v57 = vpop.permute.xlu2 %778 }
 0x95c   :  { %v669_v13 = vpop.permute.xlu0 %668 }
 0x95d   :  { %673 = vst.msk [vmem:[#allocation2 + $0x4] sm:$0xf] %vm16_vm0, %v669_v13 }
 0x95e   :  { %1396 = vst.msk [vmem:[%s1942_s2 + $0x1c] sm:$0xf] %vm16_vm0, %v669_v13 }
 0x964   :  { %v678_v14 = vld [vmem:[#allocation2 + $0x4] sm:$0xf] }
 0x965   :  { %v680_v15 = vpack.c.bf16 %v678_v14, %v678_v14 }
 0x967   :  { %1406 = vmatmul.msk.bf16.vlgmr.msra.gmra.mxu1 %vm35_vm1, %v680_v15 }
 0x9c4   :  { %v703_v17 = vpop.f32.mrf.mxu0 }
 0x9c5   :  { %v732_v18 = vadd.f32 %v1407_v16, %v703_v17 }
 0x9c7   :  { %1547 = vtanh.f32 %v732_v18  ;;  %v1409_v27 = vmul.f32 -1.442695, %v732_v18  ;;  %v1423_v18 = vld [vmem:[%s1941_s0 + $0x28] sm:$0xf] }
 0x9cc   :  { %v705_v19 = vpop.f32.mrf.mxu0 }
 0x9cd   :  { %v1548_v20 = vpop.eup %1547 }
 0x9ce   :  { %788 = vrot.lane.b32.xlu0 %v1548_v20, %s1613_s18 }
 0x9d6   :  { %780 = vrot.lane.b32.xlu0 %v775_v21, %s1612_s13 }
 0x9e4   :  { %v725_v23 = vpop.f32.mrf.mxu1 }
 0x9e5   :  { %v733_v24 = vadd.f32 %v1408_v22, %v725_v23 }
 0x9e7   :  { %1549 = vtanh.f32 %v733_v24  ;;  %v1410_v33 = vmul.f32 -1.442695, %v733_v24  ;;  %v1424_v24 = vld [vmem:[%s1941_s0 + $0x2c] sm:$0xf] }
 0x9e8   :  { %1551 = vpow2.f32 %v1409_v27 }
 0x9ec   :  { %v727_v25 = vpop.f32.mrf.mxu1 }
 0x9ed   :  { %v1550_v26 = vpop.eup %1549 }
 0x9ee   :  { %790 = vrot.lane.b32.xlu1 %v1550_v26, %s1613_s18  ;;  %v1552_v28 = vpop.eup %1551 }
 0x9ef   :  { %v740_v29 = vadd.f32 1.0, %v1552_v28 }
 0x9f1   :  { %1553 = vrcp.f32 %v740_v29  ;;  %v753_v36 = vand.u32 2147483648, %v740_v29  ;;  %vm747_vm7 = vweird.f32 %v740_v29  ;;  %v751_v37 = vand.u32 2147483647, %v740_v29 }
 0x9f2   :  { %1555 = vpow2.f32 %v1410_v33 }
 0x9f3   :  { %v754_v40 = vor.u32 1.1754944e-38, %v753_v36  ;;  %vm752_vm9 = vcmp.eq.f32.partialorder %v751_v37, 8.507059e+37 }
 0x9f7   :  { %v1554_v30 = vpop.eup %1553 }
 0x9f8   :  { %v743_v31 = vmul.f32 %v1554_v30, %v740_v29  ;;  %vm748_vm6 = vweird.f32 %v1554_v30  ;;  %v1556_v38 = vpop.eup %1555 }
 0x9f9   :  { %vm749_vm8 = vmor %vm747_vm7, %vm748_vm6  ;;  %v741_v41 = vadd.f32 1.0, %v1556_v38 }
 0x9fa   :  { %v744_v32 = vsub.f32 1.0, %v743_v31 }
 0x9fb   :  { %1557 = vrcp.f32 %v741_v41  ;;  %v768_v50 = vand.u32 2147483648, %v741_v41  ;;  %vm762_vm11 = vweird.f32 %v741_v41  ;;  %v766_v51 = vand.u32 2147483647, %v741_v41 }
 0x9fc   :  { %v745_v34 = vmul.f32 %v1554_v30, %v744_v32 }
 0x9fd   :  { %v769_v53 = vor.u32 1.1754944e-38, %v768_v50  ;;  %vm767_vm13 = vcmp.eq.f32.partialorder %v766_v51, 8.507059e+37 }
 0x9fe   :  { %v746_v35 = vadd.f32 %v1554_v30, %v745_v34 }
 0xa00   :  { %v750_v39 = vsel %vm749_vm8, %v1554_v30, %v746_v35 }
 0xa01   :  { %v755_v42 = vsel %vm752_vm9, %v754_v40, %v750_v39  ;;  %v1558_v45 = vpop.eup %1557 }
 0xa02   :  { %v758_v46 = vmul.f32 %v1558_v45, %v741_v41  ;;  %vm763_vm10 = vweird.f32 %v1558_v45  ;;  %v784_v58 = vmul.f32 %v779_v57, %v755_v42 }
 0xa03   :  { %vm764_vm12 = vmor %vm762_vm11, %vm763_vm10 }
 0xa04   :  { %v759_v47 = vsub.f32 1.0, %v758_v46 }
 0xa06   :  { %v760_v48 = vmul.f32 %v1558_v45, %v759_v47 }
 0xa08   :  { %v761_v49 = vadd.f32 %v1558_v45, %v760_v48 }
 0xa0a   :  { %v765_v52 = vsel %vm764_vm12, %v1558_v45, %v761_v49 }
 0xa0b   :  { %v770_v54 = vsel %vm767_vm13, %v769_v53, %v765_v52 }
 0xa40   :  { %v789_v43 = vpop.permute.xlu0 %788 }
 0xa41   :  { %v794_v44 = vmul.f32 %v789_v43, %v755_v42 }
 0xa43   :  { %798 = vrot.lane.b32.xlu1 %v794_v44, %s1612_s13 }
 0xa48   :  { %v781_v61 = vpop.permute.xlu0 %780 }
 0xa49   :  { %v785_v62 = vmul.f32 %v781_v61, %v770_v54 }
 0xa60   :  { %v791_v55 = vpop.permute.xlu1 %790 }
 0xa61   :  { %v795_v56 = vmul.f32 %v791_v55, %v770_v54 }
 0xa63   :  { %800 = vrot.lane.b32.xlu2 %v795_v56, %s1612_s13 }
 0xab5   :  { %v799_v59 = vpop.permute.xlu1 %798 }
 0xab6   :  { %v804_v60 = vadd.f32 %v799_v59, %v784_v58 }
 0xab8   :  { %1559 = vtanh.f32 %v804_v60 }
 0xabd   :  { %v801_v63 = vpop.permute.xlu2 %800 }
 0xabe   :  { %v1560_v0 = vpop.eup %1559  ;;  %v805_v1 = vadd.f32 %v801_v63, %v785_v62 }
 0xabf   :  { %810 = vrot.lane.b32.xlu0 %v1560_v0, %s1614_s19 }
 0xac0   :  { %1561 = vtanh.f32 %v805_v1 }
 0xac6   :  { %v1562_v2 = vpop.eup %1561 }
 0xac7   :  { %812 = vrot.lane.b32.xlu1 %v1562_v2, %s1614_s19 }
 0xacf   :  { %820 = vrot.lane.b32.xlu1 %v804_v60, %s1615_s20 }
 0xb31   :  { %v811_v4 = vpop.permute.xlu0 %810 }
 0xb32   :  { %v816_v5 = vmul.f32 %v811_v4, %v755_v42 }
 0xb34   :  { %830 = vrot.lane.b32.xlu2 %v816_v5, %s1616_s21  ;;  %v1473_v5 = vld [vmem:[%s1940_s1] sm:$0xff] }
 0xb35   :  { %1029 = vmatpush.bf16.msrb.mxu0 %v1473_v5 }
 0xb39   :  { %v813_v6 = vpop.permute.xlu1 %812 }
 0xb3a   :  { %v817_v7 = vmul.f32 %v813_v6, %v770_v54 }
 0xb3c   :  { %832 = vrot.lane.b32.xlu0 %v817_v7, %s1616_s21  ;;  %822 = vrot.lane.b32.xlu2 %v805_v1, %s1615_s20 }
 0xb41   :  { %v821_v8 = vpop.permute.xlu1 %820 }
 0xb42   :  { %826 = vst.msk [vmem:[#allocation3] sm:$0xf] %vm16_vm0, %v821_v8 }
 0xb49   :  { %v938_v9 = vld [vmem:[#allocation3] sm:$0xf] }
 0xb4a   :  { %942 = vrot.lane.b32.xlu2 %v938_v9, %s1612_s13 }
 0xb8e   :  { %v831_v10 = vpop.permute.xlu2 %830 }
 0xb8f   :  { %836 = vst.msk [vmem:[#allocation2] sm:$0xf] %vm16_vm0, %v831_v10 }
 0xb90   :  { %1411 = vst.msk [vmem:[%s1942_s2 + $0x20] sm:$0xf] %vm16_vm0, %v831_v10 }
 0xb96   :  { %v823_v12 = vpop.permute.xlu2 %822  ;;  %v841_v13 = vld [vmem:[#allocation2] sm:$0xf] }
 0xb97   :  { %827 = vst.msk [vmem:[#allocation3 + $0x4] sm:$0xf] %vm16_vm0, %v823_v12  ;;  %v843_v14 = vpack.c.bf16 %v841_v13, %v841_v13  ;;  %v1474_v13 = vld [vmem:[%s1940_s1 + $0x8] sm:$0xff] }
 0xb98   :  { %1051 = vmatpush.bf16.msrb.mxu1 %v1474_v13 }
 0xb99   :  { %1417 = vmatmul.msk.bf16.vlgmr.msra.gmra.mxu2 %vm35_vm1, %v843_v14 }
 0xb9e   :  { %v939_v23 = vld [vmem:[#allocation3 + $0x4] sm:$0xf] }
 0xba4   :  { %v943_v59 = vpop.permute.xlu2 %942 }
 0xbae   :  { %v833_v15 = vpop.permute.xlu0 %832 }
 0xbaf   :  { %837 = vst.msk [vmem:[#allocation2 + $0x4] sm:$0xf] %vm16_vm0, %v833_v15 }
 0xbb0   :  { %1412 = vst.msk [vmem:[%s1942_s2 + $0x24] sm:$0xf] %vm16_vm0, %v833_v15 }
 0xbb6   :  { %v842_v16 = vld [vmem:[#allocation2 + $0x4] sm:$0xf] }
 0xbb7   :  { %v844_v17 = vpack.c.bf16 %v842_v16, %v842_v16 }
 0xbb9   :  { %1422 = vmatmul.msk.bf16.vlgmr.msra.gmra.mxu3 %vm35_vm1, %v844_v17 }
 0xc1c   :  { %v867_v19 = vpop.f32.mrf.mxu2 }
 0xc1d   :  { %v896_v20 = vadd.f32 %v1423_v18, %v867_v19 }
 0xc1f   :  { %1563 = vtanh.f32 %v896_v20  ;;  %v1425_v29 = vmul.f32 -1.442695, %v896_v20  ;;  %v1439_v20 = vld [vmem:[%s1941_s0 + $0x30] sm:$0xf] }
 0xc24   :  { %v869_v21 = vpop.f32.mrf.mxu2 }
 0xc25   :  { %v1564_v22 = vpop.eup %1563 }
 0xc26   :  { %952 = vrot.lane.b32.xlu0 %v1564_v22, %s1613_s18 }
 0xc2e   :  { %944 = vrot.lane.b32.xlu0 %v939_v23, %s1612_s13 }
 0xc3c   :  { %v889_v25 = vpop.f32.mrf.mxu3 }
 0xc3d   :  { %v897_v26 = vadd.f32 %v1424_v24, %v889_v25 }
 0xc3f   :  { %1565 = vtanh.f32 %v897_v26  ;;  %v1426_v35 = vmul.f32 -1.442695, %v897_v26  ;;  %v1440_v26 = vld [vmem:[%s1941_s0 + $0x34] sm:$0xf] }
 0xc40   :  { %1567 = vpow2.f32 %v1425_v29 }
 0xc44   :  { %v891_v27 = vpop.f32.mrf.mxu3 }
 0xc45   :  { %v1566_v28 = vpop.eup %1565 }
 0xc46   :  { %954 = vrot.lane.b32.xlu1 %v1566_v28, %s1613_s18  ;;  %v1568_v30 = vpop.eup %1567 }
 0xc47   :  { %v904_v31 = vadd.f32 1.0, %v1568_v30 }
 0xc49   :  { %1569 = vrcp.f32 %v904_v31  ;;  %v917_v38 = vand.u32 2147483648, %v904_v31  ;;  %vm911_vm15 = vweird.f32 %v904_v31  ;;  %v915_v39 = vand.u32 2147483647, %v904_v31 }
 0xc4a   :  { %1571 = vpow2.f32 %v1426_v35 }
 0xc4b   :  { %v918_v42 = vor.u32 1.1754944e-38, %v917_v38  ;;  %vm916_vm3 = vcmp.eq.f32.partialorder %v915_v39, 8.507059e+37 }
 0xc4f   :  { %v1570_v32 = vpop.eup %1569 }
 0xc50   :  { %v907_v33 = vmul.f32 %v1570_v32, %v904_v31  ;;  %vm912_vm14 = vweird.f32 %v1570_v32  ;;  %v1572_v40 = vpop.eup %1571 }
 0xc51   :  { %vm913_vm2 = vmor %vm911_vm15, %vm912_vm14  ;;  %v905_v43 = vadd.f32 1.0, %v1572_v40 }
 0xc52   :  { %v908_v34 = vsub.f32 1.0, %v907_v33 }
 0xc53   :  { %1573 = vrcp.f32 %v905_v43  ;;  %v932_v52 = vand.u32 2147483648, %v905_v43  ;;  %vm926_vm5 = vweird.f32 %v905_v43  ;;  %v930_v53 = vand.u32 2147483647, %v905_v43 }
 0xc54   :  { %v909_v36 = vmul.f32 %v1570_v32, %v908_v34 }
 0xc55   :  { %v933_v55 = vor.u32 1.1754944e-38, %v932_v52  ;;  %vm931_vm7 = vcmp.eq.f32.partialorder %v930_v53, 8.507059e+37 }
 0xc56   :  { %v910_v37 = vadd.f32 %v1570_v32, %v909_v36 }
 0xc58   :  { %v914_v41 = vsel %vm913_vm2, %v1570_v32, %v910_v37 }
 0xc59   :  { %v919_v44 = vsel %vm916_vm3, %v918_v42, %v914_v41  ;;  %v1574_v47 = vpop.eup %1573 }
 0xc5a   :  { %v922_v48 = vmul.f32 %v1574_v47, %v905_v43  ;;  %vm927_vm4 = vweird.f32 %v1574_v47  ;;  %v948_v60 = vmul.f32 %v943_v59, %v919_v44 }
 0xc5b   :  { %vm928_vm6 = vmor %vm926_vm5, %vm927_vm4 }
 0xc5c   :  { %v923_v49 = vsub.f32 1.0, %v922_v48 }
 0xc5e   :  { %v924_v50 = vmul.f32 %v1574_v47, %v923_v49 }
 0xc60   :  { %v925_v51 = vadd.f32 %v1574_v47, %v924_v50 }
 0xc62   :  { %v929_v54 = vsel %vm928_vm6, %v1574_v47, %v925_v51 }
 0xc63   :  { %v934_v56 = vsel %vm931_vm7, %v933_v55, %v929_v54 }
 0xc98   :  { %v953_v45 = vpop.permute.xlu0 %952 }
 0xc99   :  { %v958_v46 = vmul.f32 %v953_v45, %v919_v44 }
 0xc9b   :  { %962 = vrot.lane.b32.xlu1 %v958_v46, %s1612_s13 }
 0xca0   :  { %v945_v63 = vpop.permute.xlu0 %944 }
 0xca1   :  { %v949_v0 = vmul.f32 %v945_v63, %v934_v56 }
 0xcb8   :  { %v955_v57 = vpop.permute.xlu1 %954 }
 0xcb9   :  { %v959_v58 = vmul.f32 %v955_v57, %v934_v56 }
 0xcbb   :  { %964 = vrot.lane.b32.xlu2 %v959_v58, %s1612_s13 }
 0xd0d   :  { %v963_v61 = vpop.permute.xlu1 %962 }
 0xd0e   :  { %v968_v62 = vadd.f32 %v963_v61, %v948_v60 }
 0xd10   :  { %1575 = vtanh.f32 %v968_v62 }
 0xd15   :  { %v965_v1 = vpop.permute.xlu2 %964 }
 0xd16   :  { %v1576_v2 = vpop.eup %1575  ;;  %v969_v3 = vadd.f32 %v965_v1, %v949_v0 }
 0xd17   :  { %974 = vrot.lane.b32.xlu0 %v1576_v2, %s1614_s19 }
 0xd18   :  { %1577 = vtanh.f32 %v969_v3 }
 0xd1e   :  { %v1578_v4 = vpop.eup %1577 }
 0xd1f   :  { %976 = vrot.lane.b32.xlu1 %v1578_v4, %s1614_s19 }
 0xd27   :  { %984 = vrot.lane.b32.xlu1 %v968_v62, %s1615_s20 }
 0xd89   :  { %v975_v6 = vpop.permute.xlu0 %974 }
 0xd8a   :  { %v980_v7 = vmul.f32 %v975_v6, %v919_v44 }
 0xd8c   :  { %994 = vrot.lane.b32.xlu2 %v980_v7, %s1616_s21  ;;  %v1475_v7 = vld [vmem:[%s1940_s1] sm:$0xff] }
 0xd8d   :  { %1193 = vmatpush.bf16.msrb.mxu2 %v1475_v7 }
 0xd91   :  { %v977_v8 = vpop.permute.xlu1 %976 }
 0xd92   :  { %v981_v9 = vmul.f32 %v977_v8, %v934_v56 }
 0xd94   :  { %996 = vrot.lane.b32.xlu0 %v981_v9, %s1616_s21  ;;  %986 = vrot.lane.b32.xlu2 %v969_v3, %s1615_s20 }
 0xd99   :  { %v985_v10 = vpop.permute.xlu1 %984 }
 0xd9a   :  { %990 = vst.msk [vmem:[#allocation3] sm:$0xf] %vm16_vm0, %v985_v10 }
 0xda1   :  { %v1102_v11 = vld [vmem:[#allocation3] sm:$0xf] }
 0xda2   :  { %1106 = vrot.lane.b32.xlu2 %v1102_v11, %s1612_s13 }
 0xde6   :  { %v995_v12 = vpop.permute.xlu2 %994 }
 0xde7   :  { %1000 = vst.msk [vmem:[#allocation2] sm:$0xf] %vm16_vm0, %v995_v12 }
 0xde8   :  { %1427 = vst.msk [vmem:[%s1942_s2 + $0x28] sm:$0xf] %vm16_vm0, %v995_v12 }
 0xdee   :  { %v987_v14 = vpop.permute.xlu2 %986  ;;  %v1005_v15 = vld [vmem:[#allocation2] sm:$0xf] }
 0xdef   :  { %991 = vst.msk [vmem:[#allocation3 + $0x4] sm:$0xf] %vm16_vm0, %v987_v14  ;;  %v1007_v16 = vpack.c.bf16 %v1005_v15, %v1005_v15  ;;  %v1476_v15 = vld [vmem:[%s1940_s1 + $0x8] sm:$0xff] }
 0xdf0   :  { %1215 = vmatpush.bf16.msrb.mxu3 %v1476_v15 }
 0xdf1   :  { %1433 = vmatmul.msk.bf16.vlgmr.msrb.gmra.mxu0 %vm35_vm1, %v1007_v16 }
 0xdf6   :  { %v1103_v25 = vld [vmem:[#allocation3 + $0x4] sm:$0xf] }
 0xdfc   :  { %v1107_v61 = vpop.permute.xlu2 %1106 }
 0xe06   :  { %v997_v17 = vpop.permute.xlu0 %996 }
 0xe07   :  { %1001 = vst.msk [vmem:[#allocation2 + $0x4] sm:$0xf] %vm16_vm0, %v997_v17 }
 0xe08   :  { %1428 = vst.msk [vmem:[%s1942_s2 + $0x2c] sm:$0xf] %vm16_vm0, %v997_v17 }
 0xe0e   :  { %v1006_v18 = vld [vmem:[#allocation2 + $0x4] sm:$0xf] }
 0xe0f   :  { %v1008_v19 = vpack.c.bf16 %v1006_v18, %v1006_v18 }
 0xe11   :  { %1438 = vmatmul.msk.bf16.vlgmr.msrb.gmra.mxu1 %vm35_vm1, %v1008_v19 }
 0xe6e   :  { %v1031_v21 = vpop.f32.mrf.mxu0 }
 0xe6f   :  { %v1060_v22 = vadd.f32 %v1439_v20, %v1031_v21 }
 0xe71   :  { %1579 = vtanh.f32 %v1060_v22  ;;  %v1441_v31 = vmul.f32 -1.442695, %v1060_v22  ;;  %v1455_v22 = vld [vmem:[%s1941_s0 + $0x38] sm:$0xf] }
 0xe76   :  { %v1033_v23 = vpop.f32.mrf.mxu0 }
 0xe77   :  { %v1580_v24 = vpop.eup %1579 }
 0xe78   :  { %1116 = vrot.lane.b32.xlu0 %v1580_v24, %s1613_s18 }
 0xe80   :  { %1108 = vrot.lane.b32.xlu0 %v1103_v25, %s1612_s13 }
 0xe8e   :  { %v1053_v27 = vpop.f32.mrf.mxu1 }
 0xe8f   :  { %v1061_v28 = vadd.f32 %v1440_v26, %v1053_v27 }
 0xe91   :  { %1581 = vtanh.f32 %v1061_v28  ;;  %v1442_v37 = vmul.f32 -1.442695, %v1061_v28  ;;  %v1456_v28 = vld [vmem:[%s1941_s0 + $0x3c] sm:$0xf] }
 0xe92   :  { %1583 = vpow2.f32 %v1441_v31 }
 0xe96   :  { %v1055_v29 = vpop.f32.mrf.mxu1 }
 0xe97   :  { %v1582_v30 = vpop.eup %1581 }
 0xe98   :  { %1118 = vrot.lane.b32.xlu1 %v1582_v30, %s1613_s18  ;;  %v1584_v32 = vpop.eup %1583 }
 0xe99   :  { %v1068_v33 = vadd.f32 1.0, %v1584_v32 }
 0xe9b   :  { %1585 = vrcp.f32 %v1068_v33  ;;  %v1081_v40 = vand.u32 2147483648, %v1068_v33  ;;  %vm1075_vm9 = vweird.f32 %v1068_v33  ;;  %v1079_v41 = vand.u32 2147483647, %v1068_v33 }
 0xe9c   :  { %1587 = vpow2.f32 %v1442_v37 }
 0xe9d   :  { %v1082_v44 = vor.u32 1.1754944e-38, %v1081_v40  ;;  %vm1080_vm11 = vcmp.eq.f32.partialorder %v1079_v41, 8.507059e+37 }
 0xea1   :  { %v1586_v34 = vpop.eup %1585 }
 0xea2   :  { %v1071_v35 = vmul.f32 %v1586_v34, %v1068_v33  ;;  %vm1076_vm8 = vweird.f32 %v1586_v34  ;;  %v1588_v42 = vpop.eup %1587 }
 0xea3   :  { %vm1077_vm10 = vmor %vm1075_vm9, %vm1076_vm8  ;;  %v1069_v45 = vadd.f32 1.0, %v1588_v42 }
 0xea4   :  { %v1072_v36 = vsub.f32 1.0, %v1071_v35 }
 0xea5   :  { %1589 = vrcp.f32 %v1069_v45  ;;  %v1096_v54 = vand.u32 2147483648, %v1069_v45  ;;  %vm1090_vm13 = vweird.f32 %v1069_v45  ;;  %v1094_v55 = vand.u32 2147483647, %v1069_v45 }
 0xea6   :  { %v1073_v38 = vmul.f32 %v1586_v34, %v1072_v36 }
 0xea7   :  { %v1097_v57 = vor.u32 1.1754944e-38, %v1096_v54  ;;  %vm1095_vm15 = vcmp.eq.f32.partialorder %v1094_v55, 8.507059e+37 }
 0xea8   :  { %v1074_v39 = vadd.f32 %v1586_v34, %v1073_v38 }
 0xeaa   :  { %v1078_v43 = vsel %vm1077_vm10, %v1586_v34, %v1074_v39 }
 0xeab   :  { %v1083_v46 = vsel %vm1080_vm11, %v1082_v44, %v1078_v43  ;;  %v1590_v49 = vpop.eup %1589 }
 0xeac   :  { %v1086_v50 = vmul.f32 %v1590_v49, %v1069_v45  ;;  %vm1091_vm12 = vweird.f32 %v1590_v49  ;;  %v1112_v62 = vmul.f32 %v1107_v61, %v1083_v46 }
 0xead   :  { %vm1092_vm14 = vmor %vm1090_vm13, %vm1091_vm12 }
 0xeae   :  { %v1087_v51 = vsub.f32 1.0, %v1086_v50 }
 0xeb0   :  { %v1088_v52 = vmul.f32 %v1590_v49, %v1087_v51 }
 0xeb2   :  { %v1089_v53 = vadd.f32 %v1590_v49, %v1088_v52 }
 0xeb4   :  { %v1093_v56 = vsel %vm1092_vm14, %v1590_v49, %v1089_v53 }
 0xeb5   :  { %v1098_v58 = vsel %vm1095_vm15, %v1097_v57, %v1093_v56 }
 0xeea   :  { %v1117_v47 = vpop.permute.xlu0 %1116 }
 0xeeb   :  { %v1122_v48 = vmul.f32 %v1117_v47, %v1083_v46 }
 0xeed   :  { %1126 = vrot.lane.b32.xlu1 %v1122_v48, %s1612_s13 }
 0xef2   :  { %v1109_v1 = vpop.permute.xlu0 %1108 }
 0xef3   :  { %v1113_v2 = vmul.f32 %v1109_v1, %v1098_v58 }
 0xf0a   :  { %v1119_v59 = vpop.permute.xlu1 %1118 }
 0xf0b   :  { %v1123_v60 = vmul.f32 %v1119_v59, %v1098_v58 }
 0xf0d   :  { %1128 = vrot.lane.b32.xlu2 %v1123_v60, %s1612_s13 }
 0xf5f   :  { %v1127_v63 = vpop.permute.xlu1 %1126 }
 0xf60   :  { %v1132_v0 = vadd.f32 %v1127_v63, %v1112_v62 }
 0xf62   :  { %1591 = vtanh.f32 %v1132_v0 }
 0xf67   :  { %v1129_v3 = vpop.permute.xlu2 %1128 }
 0xf68   :  { %v1592_v4 = vpop.eup %1591  ;;  %v1133_v5 = vadd.f32 %v1129_v3, %v1113_v2 }
 0xf69   :  { %1138 = vrot.lane.b32.xlu0 %v1592_v4, %s1614_s19 }
 0xf6a   :  { %1593 = vtanh.f32 %v1133_v5 }
 0xf70   :  { %v1594_v6 = vpop.eup %1593 }
 0xf71   :  { %1140 = vrot.lane.b32.xlu1 %v1594_v6, %s1614_s19 }
 0xf79   :  { %1148 = vrot.lane.b32.xlu1 %v1132_v0, %s1615_s20 }
 0xfdb   :  { %v1139_v8 = vpop.permute.xlu0 %1138 }
 0xfdc   :  { %v1144_v9 = vmul.f32 %v1139_v8, %v1083_v46 }
 0xfde   :  { %1158 = vrot.lane.b32.xlu2 %v1144_v9, %s1616_s21 }
 0xfe3   :  { %v1141_v10 = vpop.permute.xlu1 %1140 }
 0xfe4   :  { %v1145_v11 = vmul.f32 %v1141_v10, %v1098_v58 }
 0xfe6   :  { %1160 = vrot.lane.b32.xlu0 %v1145_v11, %s1616_s21  ;;  %1150 = vrot.lane.b32.xlu2 %v1133_v5, %s1615_s20 }
 0xfeb   :  { %v1149_v12 = vpop.permute.xlu1 %1148 }
 0xfec   :  { %1154 = vst.msk [vmem:[#allocation3] sm:$0xf] %vm16_vm0, %v1149_v12 }
 0xff3   :  { %v1266_v13 = vld [vmem:[#allocation3] sm:$0xf] }
 0xff4   :  { %1270 = vrot.lane.b32.xlu2 %v1266_v13, %s1612_s13 }
0x1038   :  { %v1159_v14 = vpop.permute.xlu2 %1158 }
0x1039   :  { %1164 = vst.msk [vmem:[#allocation2] sm:$0xf] %vm16_vm0, %v1159_v14 }
0x103a   :  { %1443 = vst.msk [vmem:[%s1942_s2 + $0x30] sm:$0xf] %vm16_vm0, %v1159_v14 }
0x1040   :  { %v1151_v16 = vpop.permute.xlu2 %1150  ;;  %v1169_v17 = vld [vmem:[#allocation2] sm:$0xf] }
0x1041   :  { %1155 = vst.msk [vmem:[#allocation3 + $0x4] sm:$0xf] %vm16_vm0, %v1151_v16  ;;  %v1171_v18 = vpack.c.bf16 %v1169_v17, %v1169_v17 }
0x1043   :  { %1449 = vmatmul.msk.bf16.vlgmr.msrb.gmra.mxu2 %vm35_vm1, %v1171_v18 }
0x1048   :  { %v1267_v27 = vld [vmem:[#allocation3 + $0x4] sm:$0xf] }
0x104e   :  { %v1271_v63 = vpop.permute.xlu2 %1270 }
0x1058   :  { %v1161_v19 = vpop.permute.xlu0 %1160 }
0x1059   :  { %1165 = vst.msk [vmem:[#allocation2 + $0x4] sm:$0xf] %vm16_vm0, %v1161_v19 }
0x105a   :  { %1444 = vst.msk [vmem:[%s1942_s2 + $0x34] sm:$0xf] %vm16_vm0, %v1161_v19 }
0x1060   :  { %v1170_v20 = vld [vmem:[#allocation2 + $0x4] sm:$0xf] }
0x1061   :  { %v1172_v21 = vpack.c.bf16 %v1170_v20, %v1170_v20 }
0x1063   :  { %1454 = vmatmul.msk.bf16.vlgmr.msrb.gmra.mxu3 %vm35_vm1, %v1172_v21 }
0x10c6   :  { %v1195_v23 = vpop.f32.mrf.mxu2 }
0x10c7   :  { %v1224_v24 = vadd.f32 %v1455_v22, %v1195_v23 }
0x10c9   :  { %1595 = vtanh.f32 %v1224_v24  ;;  %v1457_v33 = vmul.f32 -1.442695, %v1224_v24 }
0x10ce   :  { %v1197_v25 = vpop.f32.mrf.mxu2 }
0x10cf   :  { %v1596_v26 = vpop.eup %1595 }
0x10d0   :  { %1280 = vrot.lane.b32.xlu0 %v1596_v26, %s1613_s18 }
0x10d8   :  { %1272 = vrot.lane.b32.xlu0 %v1267_v27, %s1612_s13 }
0x10e6   :  { %v1217_v29 = vpop.f32.mrf.mxu3 }
0x10e7   :  { %v1225_v30 = vadd.f32 %v1456_v28, %v1217_v29 }
0x10e9   :  { %1597 = vtanh.f32 %v1225_v30  ;;  %v1458_v39 = vmul.f32 -1.442695, %v1225_v30 }
0x10ea   :  { %1599 = vpow2.f32 %v1457_v33 }
0x10ee   :  { %v1219_v31 = vpop.f32.mrf.mxu3 }
0x10ef   :  { %v1598_v32 = vpop.eup %1597 }
0x10f0   :  { %1282 = vrot.lane.b32.xlu1 %v1598_v32, %s1613_s18  ;;  %v1600_v34 = vpop.eup %1599 }
0x10f1   :  { %v1232_v35 = vadd.f32 1.0, %v1600_v34 }
0x10f3   :  { %1601 = vrcp.f32 %v1232_v35  ;;  %v1245_v42 = vand.u32 2147483648, %v1232_v35  ;;  %vm1239_vm2 = vweird.f32 %v1232_v35  ;;  %v1243_v43 = vand.u32 2147483647, %v1232_v35 }
0x10f4   :  { %1603 = vpow2.f32 %v1458_v39 }
0x10f5   :  { %v1246_v46 = vor.u32 1.1754944e-38, %v1245_v42  ;;  %vm1244_vm4 = vcmp.eq.f32.partialorder %v1243_v43, 8.507059e+37 }
0x10f9   :  { %v1602_v36 = vpop.eup %1601 }
0x10fa   :  { %v1235_v37 = vmul.f32 %v1602_v36, %v1232_v35  ;;  %vm1240_vm1 = vweird.f32 %v1602_v36  ;;  %v1604_v44 = vpop.eup %1603 }
0x10fb   :  { %vm1241_vm3 = vmor %vm1239_vm2, %vm1240_vm1  ;;  %v1233_v47 = vadd.f32 1.0, %v1604_v44 }
0x10fc   :  { %v1236_v38 = vsub.f32 1.0, %v1235_v37 }
0x10fd   :  { %1605 = vrcp.f32 %v1233_v47  ;;  %v1260_v56 = vand.u32 2147483648, %v1233_v47  ;;  %vm1254_vm6 = vweird.f32 %v1233_v47  ;;  %v1258_v57 = vand.u32 2147483647, %v1233_v47 }
0x10fe   :  { %v1237_v40 = vmul.f32 %v1602_v36, %v1236_v38 }
0x10ff   :  { %v1261_v59 = vor.u32 1.1754944e-38, %v1260_v56  ;;  %vm1259_vm8 = vcmp.eq.f32.partialorder %v1258_v57, 8.507059e+37 }
0x1100   :  { %v1238_v41 = vadd.f32 %v1602_v36, %v1237_v40 }
0x1102   :  { %v1242_v45 = vsel %vm1241_vm3, %v1602_v36, %v1238_v41 }
0x1103   :  { %v1247_v48 = vsel %vm1244_vm4, %v1246_v46, %v1242_v45  ;;  %v1606_v51 = vpop.eup %1605 }
0x1104   :  { %v1250_v52 = vmul.f32 %v1606_v51, %v1233_v47  ;;  %vm1255_vm5 = vweird.f32 %v1606_v51  ;;  %v1276_v0 = vmul.f32 %v1271_v63, %v1247_v48 }
0x1105   :  { %vm1256_vm7 = vmor %vm1254_vm6, %vm1255_vm5 }
0x1106   :  { %v1251_v53 = vsub.f32 1.0, %v1250_v52 }
0x1108   :  { %v1252_v54 = vmul.f32 %v1606_v51, %v1251_v53 }
0x110a   :  { %v1253_v55 = vadd.f32 %v1606_v51, %v1252_v54 }
0x110c   :  { %v1257_v58 = vsel %vm1256_vm7, %v1606_v51, %v1253_v55 }
0x110d   :  { %v1262_v60 = vsel %vm1259_vm8, %v1261_v59, %v1257_v58 }
0x1142   :  { %v1281_v49 = vpop.permute.xlu0 %1280 }
0x1143   :  { %v1286_v50 = vmul.f32 %v1281_v49, %v1247_v48 }
0x1145   :  { %1290 = vrot.lane.b32.xlu1 %v1286_v50, %s1612_s13 }
0x114a   :  { %v1273_v3 = vpop.permute.xlu0 %1272 }
0x114b   :  { %v1277_v4 = vmul.f32 %v1273_v3, %v1262_v60 }
0x1162   :  { %v1283_v61 = vpop.permute.xlu1 %1282 }
0x1163   :  { %v1287_v62 = vmul.f32 %v1283_v61, %v1262_v60 }
0x1165   :  { %1292 = vrot.lane.b32.xlu2 %v1287_v62, %s1612_s13 }
0x11b7   :  { %v1291_v1 = vpop.permute.xlu1 %1290 }
0x11b8   :  { %v1296_v2 = vadd.f32 %v1291_v1, %v1276_v0 }
0x11ba   :  { %1607 = vtanh.f32 %v1296_v2  ;;  %1312 = vrot.lane.b32.xlu2 %v1296_v2, %s1615_s20 }
0x11bf   :  { %v1293_v5 = vpop.permute.xlu2 %1292 }
0x11c0   :  { %v1608_v6 = vpop.eup %1607  ;;  %v1297_v7 = vadd.f32 %v1293_v5, %v1277_v4 }
0x11c1   :  { %1302 = vrot.lane.b32.xlu0 %v1608_v6, %s1614_s19 }
0x11c2   :  { %1609 = vtanh.f32 %v1297_v7 }
0x11c8   :  { %v1610_v8 = vpop.eup %1609 }
0x11c9   :  { %1314 = vrot.lane.b32.xlu0 %v1297_v7, %s1615_s20  ;;  %1304 = vrot.lane.b32.xlu1 %v1610_v8, %s1614_s19 }
0x1214   :  { %v1313_v9 = vpop.permute.xlu2 %1312 }
0x1215   :  { %1318 = vst.msk [vmem:[#allocation3] sm:$0xf] %vm16_vm0, %v1313_v9 }
0x1233   :  { %v1303_v10 = vpop.permute.xlu0 %1302 }
0x1234   :  { %v1308_v11 = vmul.f32 %v1303_v10, %v1247_v48 }
0x1236   :  { %1322 = vrot.lane.b32.xlu1 %v1308_v11, %s1616_s21 }
0x123b   :  { %v1305_v12 = vpop.permute.xlu1 %1304  ;;  %v1315_v13 = vpop.permute.xlu0 %1314 }
0x123c   :  { %v1309_v14 = vmul.f32 %v1305_v12, %v1262_v60  ;;  %1319 = vst.msk [vmem:[#allocation3 + $0x4] sm:$0xf] %vm16_vm0, %v1315_v13 }
0x123e   :  { %1324 = vrot.lane.b32.xlu2 %v1309_v14, %s1616_s21 }
0x1298   :  { %v1325_v15 = vpop.permute.xlu2 %1324 }
0x1299   :  { %1329 = vst.msk [vmem:[#allocation2 + $0x4] sm:$0xf] %vm16_vm0, %v1325_v15 }
0x129a   :  { %1460 = vst.msk [vmem:[%s1942_s2 + $0x3c] sm:$0xf] %vm16_vm0, %v1325_v15 }
0x12a8   :  { %v1323_v16 = vpop.permute.xlu1 %1322 }
0x12a9   :  { %1328 = vst.msk [vmem:[#allocation2] sm:$0xf] %vm16_vm0, %v1323_v16 }
0x12aa   :  { %1459 = vst.msk [vmem:[%s1942_s2 + $0x38] sm:$0xf] %vm16_vm0, %v1323_v16 }

// kernel: vitaa_forward.17
= control target key start
LH: loop header
LB: loop body
LE: loop exit
PB: predicated region body
PF: predicated region fallthrough
CT: control target
= control target key end

     0   :  { %vm36_vm0 = vcmask 261120   ;;  %vm54_vm1 = vcmask 1043456   ;;  %s124_s1 = inlined_call_operand.vmem [shape: bf16[32,128], index: 1, kind: input, shape index: {}]   ;;  %s125_s2 = inlined_call_operand.vmem [shape: f32[1,128], index: 2, kind: input, shape index: {}]   ;;  %s126_s0 = inlined_call_operand.vmem [shape: bf16[4,32], index: 0, kind: input, shape index: {}]   ;;  %s127_s3 = inlined_call_operand.vmem [shape: f32[4,128], index: 3, kind: output, shape index: {}]  }
   0x1   :  { %v85_v0 = vld [vmem:[%s124_s1 + $0x8] sm:$0xff]  ;;  %v84_v1 = vld [vmem:[%s124_s1] sm:$0xff] }
   0x2   :  { %46 = vmatpush.bf16.msra.mxu0 %v85_v0  ;;  %v15_v2 = vld [vmem:[%s126_s0] sm:$0x3] }
   0x3   :  { %v86_v3 = vld [vmem:[%s125_s2] ss:$0 sm:$0xff] }
   0x6   :  { %47 = vmatpush.bf16.msra.mxu0 %v84_v1 }
   0x9   :  { %83 = vmatmul.msk.bf16.vlgmr.msra.gmra.mxu0 %vm36_vm0, %v15_v2 }
  0x86   :  { %v49_v4 = vpop.f32.mrf.mxu0 }
  0x87   :  { %v50_v5 = vadd.f32 %v86_v3, %v49_v4 }
  0x89   :  { %v53_v6 = vmul.f32 %v50_v5, %v50_v5 }
  0x8b   :  { %v55_v7 = vsel %vm54_vm1, %v53_v6, 0.0 }
  0x8c   :  { %56 = vadd.xlane.f32.xlu0 %v55_v7 }
  0x8e   :  { %v51_v8 = vpop.f32.mrf.mxu0 }
  0xff   :  { %v57_v9 = vpop.xlane.xlu0 %56 }
 0x100   :  { %v58_v10 = vmax.f32 %v57_v9, 1e-24 }
 0x102   :  { %87 = vrsqrt.f32 %v58_v10  ;;  %vm65_vm3 = vweird.f32 %v58_v10 }
 0x108   :  { %v88_v11 = vpop.eup %87 }
 0x109   :  { %v60_v12 = vmul.f32 %v88_v11, %v58_v10  ;;  %vm66_vm2 = vweird.f32 %v88_v11 }
 0x10a   :  { %vm67_vm4 = vmor %vm65_vm3, %vm66_vm2 }
 0x10b   :  { %v61_v13 = vmul.f32 %v88_v11, %v60_v12 }
 0x10d   :  { %v62_v14 = vmul.f32 0.5, %v61_v13 }
 0x10f   :  { %v63_v15 = vsub.f32 1.5, %v62_v14 }
 0x111   :  { %v64_v16 = vmul.f32 %v88_v11, %v63_v15 }
 0x113   :  { %v68_v17 = vsel %vm67_vm4, %v88_v11, %v64_v16 }
 0x114   :  { %v69_v18 = vmul.f32 %v68_v17, %v50_v5 }
 0x116   :  { %70 = vst [vmem:[%s127_s3] sm:$0xf] %v69_v18 }

</bundles_post_ra>
